<compile_context>
chip_gen: v6e
topology: v6e:2x2x1
jax: 0.10.0
libtpu: 0.0.40
codegen_flags: <defaults>
</compile_context>

<pallas_src>
import functools

import jax
import jax.numpy as jnp
from jax.experimental import pallas as pl
from jax.experimental.pallas import tpu as pltpu


def _round_up(x, m):
    return (x + m - 1) // m * m


# ----------------------------------------------------------------------------
# Kernel 1: ConvTranspose2d(k=2, s=2) + bias; 4 taps fused into one matmul,
#           2x2 depth-to-space fused into the output block layout.
# ----------------------------------------------------------------------------
def _conv_transpose2x2_kernel(x_ref, w_ref, b_ref, o_ref, *, th, wp, cop):
    # x_ref: (1, th*wp, cip)        bf16 flattened row-band of the input image
    # w_ref: (cip, 4*cop)           bf16, column block index = 2*ki + kj
    # b_ref: (1, 4*cop)             f32 (zero-padded bias tiled over the taps)
    # o_ref: (1, th, 2, wp, 2*cop)  layout (h, ki, w, kj*cop + c) so a plain
    #                               reshape in the wrapper gives (2H, 2W, cop)
    y = jnp.dot(x_ref[0], w_ref[...], preferred_element_type=jnp.float32)
    y = (y + b_ref[...]).astype(o_ref.dtype).reshape(th, wp, 4 * cop)
    o_ref[0, :, 0, :, :] = y[:, :, :2 * cop]      # ki = 0 -> taps (0,0),(0,1)
    o_ref[0, :, 1, :, :] = y[:, :, 2 * cop:]      # ki = 1 -> taps (1,0),(1,1)


def fused_conv_transpose2x2(x, w4, bias4, *, out_dtype=jnp.bfloat16,
                            target_rows=256):
    """x: (N, H, W, C) bf16, C % 128 == 0. Returns (N, 2H, 2W, cop) bf16."""
    N, H, W, C = x.shape
    cip, ncols = w4.shape
    cop = ncols // 4
    assert cip == C and C % 128 == 0 and cop % 128 == 0 and ncols == 4 * cop

    wp = _round_up(W, 8)
    th = max(1, min(H, target_rows // wp)) if wp <= target_rows else 1
    hp = _round_up(H, th)
    r_tiles = hp // th

    xp = jnp.pad(x, ((0, 0), (0, hp - H), (0, wp - W), (0, 0)))
    x_flat = xp.reshape(N, hp * wp, C)

    flops = 2 * N * hp * wp * C * 4 * cop
    bytes_accessed = (x_flat.size * x_flat.dtype.itemsize
                      + w4.size * w4.dtype.itemsize
                      + N * hp * 2 * wp * 2 * cop * jnp.dtype(out_dtype).itemsize)

    out5 = pl.pallas_call(
        functools.partial(_conv_transpose2x2_kernel, th=th, wp=wp, cop=cop),
        out_shape=jax.ShapeDtypeStruct((N, hp, 2, wp, 2 * cop), out_dtype),
        grid_spec=pltpu.PrefetchScalarGridSpec(
            num_scalar_prefetch=0,
            grid=(N, r_tiles),
            in_specs=[
                pl.BlockSpec((1, th * wp, C), lambda n, r: (n, r, 0)),
                pl.BlockSpec((C, 4 * cop), lambda n, r: (0, 0)),
                pl.BlockSpec((1, 4 * cop), lambda n, r: (0, 0)),
            ],
            out_specs=pl.BlockSpec((1, th, 2, wp, 2 * cop),
                                   lambda n, r: (n, r, 0, 0, 0)),
        ),
        compiler_params=pltpu.CompilerParams(
            dimension_semantics=("parallel", "parallel"),
            vmem_limit_bytes=40 * 1024 * 1024,
        ),
        cost_estimate=pl.CostEstimate(flops=flops, transcendentals=0,
                                      bytes_accessed=bytes_accessed),
    )(x_flat, w4, bias4.reshape(1, 4 * cop))

    up = out5.reshape(N, 2 * hp, 2 * wp, cop)     # metadata-only reshape
    return up[:, :2 * H, :2 * W, :]


# ----------------------------------------------------------------------------
# Kernel 2: Conv2d(3x3, pad=1) + folded BatchNorm + ReLU.
#   - inputs stay in HBM; each grid step DMAs its halo row-band to VMEM
#   - all 9 taps fused in-kernel as static row shifts of the flattened band
#   - 1 or 2 inputs (2-input form fuses the channel concat of conv1)
# ----------------------------------------------------------------------------
def _conv3x3_bn_relu_kernel(*refs, num_x, th, wpad, kc):
    x_hbms = refs[:num_x]
    w_ref, scale_ref, shift_ref, o_ref = refs[num_x:num_x + 4]
    band, sem, acc = refs[num_x + 4:num_x + 7]

    n = pl.program_id(0)
    r = pl.program_id(1)
    tile_m = th * wpad
    band_rows = (th + 3) * wpad
    base = pl.multiple_of(r * tile_m, 8)

    # DMA the halo row-band of each input into its lane slice of the band
    # buffer (the 2-input case fuses the channel concat at zero HBM cost).
    copies = []
    for i in range(num_x):
        dst = band if num_x == 1 else band.at[:, i * kc:(i + 1) * kc]
        cp = pltpu.make_async_copy(
            x_hbms[i].at[n, pl.ds(base, band_rows), :], dst, sem.at[i])
        cp.start()
        copies.append(cp)
    for cp in copies:
        cp.wait()

    # 9 taps: tap (dy, dx) is a static (dy*wpad + dx)-row shift of the
    # flattened, haloed image band (unaligned sublane shifts use the XLU,
    # which is otherwise idle here).  Accumulate in a f32 VMEM scratch.
    for t in range(9):
        dy, dx = divmod(t, 3)
        xs = band[pl.ds(dy * wpad + dx, tile_m), :]
        part = jnp.dot(xs, w_ref[t], preferred_element_type=jnp.float32)
        if t == 0:
            acc[...] = part
        else:
            acc[...] += part

    y = acc[...] * scale_ref[...] + shift_ref[...]
    o_ref[0, :, :] = jnp.maximum(y, 0.0).astype(o_ref.dtype)


def _to_flat_padded(x, hp, wpad):
    """(N, H, W, C) -> flattened (N, (hp+3)*wpad, C) with 1-pixel zero halo.

    Image pixel (h, w) lives at flattened row (h+1)*wpad + (w+1)."""
    N, H, W, C = x.shape
    xp = jnp.pad(x, ((0, 0), (1, hp - H + 2), (1, wpad - W - 1), (0, 0)))
    return xp.reshape(N, (hp + 3) * wpad, C)


def fused_conv3x3_bn_relu(xs, w_stack, scale, shift, *, out_dtype=jnp.bfloat16,
                          target_rows=256):
    """xs: list of (N, H, W, kc) arrays (kc % 128 == 0), interpreted as a
    channel concat.  Returns (N, H, W, cop)."""
    num_x = len(xs)
    N, H, W, kc = xs[0].shape
    for x in xs[1:]:
        assert x.shape == (N, H, W, kc) and x.dtype == xs[0].dtype
    k9, K, cop = w_stack.shape
    assert k9 == 9 and K == num_x * kc and kc % 128 == 0 and cop % 128 == 0

    wpad = _round_up(W + 2, 8)                    # 1-col halo each side + align
    th = max(1, min(H, target_rows // wpad)) if wpad <= target_rows else 1
    hp = _round_up(H, th)
    r_tiles = hp // th
    tile_m = th * wpad
    band_rows = (th + 3) * wpad

    x_flats = [_to_flat_padded(x, hp, wpad) for x in xs]   # stay in HBM

    flops = 2 * N * hp * wpad * 9 * K * cop
    bytes_accessed = (sum(xf.size * xf.dtype.itemsize for xf in x_flats)
                      + w_stack.size * w_stack.dtype.itemsize
                      + N * hp * wpad * cop * jnp.dtype(out_dtype).itemsize)

    in_specs = ([pl.BlockSpec(memory_space=pl.ANY)] * num_x
                + [pl.BlockSpec((9, K, cop), lambda n, r: (0, 0, 0)),
                   pl.BlockSpec((1, cop), lambda n, r: (0, 0)),
                   pl.BlockSpec((1, cop), lambda n, r: (0, 0))])

    out = pl.pallas_call(
        functools.partial(_conv3x3_bn_relu_kernel,
                          num_x=num_x, th=th, wpad=wpad, kc=kc),
        out_shape=jax.ShapeDtypeStruct((N, hp * wpad, cop), out_dtype),
        grid_spec=pltpu.PrefetchScalarGridSpec(
            num_scalar_prefetch=0,
            grid=(N, r_tiles),
            in_specs=in_specs,
            out_specs=pl.BlockSpec((1, tile_m, cop), lambda n, r: (n, r, 0)),
            scratch_shapes=[
                pltpu.VMEM((band_rows, num_x * kc), xs[0].dtype),  # halo band
                pltpu.SemaphoreType.DMA((num_x,)),
                pltpu.VMEM((tile_m, cop), jnp.float32),            # f32 acc
            ],
        ),
        compiler_params=pltpu.CompilerParams(
            dimension_semantics=("parallel", "parallel"),
            vmem_limit_bytes=40 * 1024 * 1024,
        ),
        cost_estimate=pl.CostEstimate(flops=flops, transcendentals=0,
                                      bytes_accessed=bytes_accessed),
    )(*x_flats, w_stack, scale.reshape(1, cop), shift.reshape(1, cop))

    out = out.reshape(N, hp, wpad, cop)           # metadata-only reshape
    return out[:, :H, :W, :]


# ----------------------------------------------------------------------------
# Parameter re-layout helpers (lane-padded weight stacks, folded BatchNorm)
# ----------------------------------------------------------------------------
def _make_convt_weight_stack(wt_iokk, cip, cop):
    """PyTorch ConvTranspose2d weight (Cin, Cout, 2, 2) -> (cip, 4*cop),
    column block index = 2*ki + kj."""
    cin, cout = wt_iokk.shape[0], wt_iokk.shape[1]
    w = jnp.zeros((2, 2, cip, cop), jnp.float32)
    w = w.at[:, :, :cin, :cout].set(jnp.transpose(wt_iokk, (2, 3, 0, 1)))
    return jnp.transpose(w, (2, 0, 1, 3)).reshape(cip, 4 * cop)


def _make_conv_weight_stack(w_oihw, in_map, K, cop):
    """PyTorch Conv2d weight (Cout, Cin, 3, 3) -> (9, K, cop), tap = dy*3+dx.

    in_map: list of (src_lo, src_hi, dst_off) channel mappings from PyTorch
    Cin indexing into the padded K layout of the activations."""
    cout = w_oihw.shape[0]
    w = jnp.zeros((3, 3, K, cop), jnp.float32)
    for (s0, s1, d0) in in_map:
        blk = jnp.transpose(w_oihw[:, s0:s1, :, :], (2, 3, 1, 0))  # (3,3,n,cout)
        w = w.at[:, :, d0:d0 + (s1 - s0), :cout].set(blk)
    return w.reshape(9, K, cop)


def _bn_fold(bias, gamma, beta, mean, var, cop, eps=1e-5):
    scale = gamma / jnp.sqrt(var + eps)
    shift = beta + scale * (bias - mean)
    c = scale.shape[0]
    scale_p = jnp.zeros((cop,), jnp.float32).at[:c].set(scale)
    shift_p = jnp.zeros((cop,), jnp.float32).at[:c].set(shift)
    return scale_p, shift_p


# ----------------------------------------------------------------------------
# Up module: forward + deterministic parameter init
# ----------------------------------------------------------------------------
def init_up_params(key, in_channels, out_channels):
    half = in_channels // 2
    ks = jax.random.split(key, 8)

    def bn_params(k, c):
        k1, k2, k3, k4 = jax.random.split(k, 4)
        gamma = 1.0 + 0.1 * jax.random.normal(k1, (c,), jnp.float32)
        beta = 0.1 * jax.random.normal(k2, (c,), jnp.float32)
        mean = 0.05 * jax.random.normal(k3, (c,), jnp.float32)
        var = jax.random.uniform(k4, (c,), jnp.float32, 0.5, 1.5)
        return gamma, beta, mean, var

    return {
        "wt": 0.1 * jax.random.normal(ks[0], (in_channels, half, 2, 2), jnp.float32),
        "bt": 0.1 * jax.random.normal(ks[1], (half,), jnp.float32),
        "w1": 0.1 * jax.random.normal(ks[2], (out_channels, in_channels, 3, 3), jnp.float32),
        "b1": 0.1 * jax.random.normal(ks[3], (out_channels,), jnp.float32),
        "bn1": bn_params(ks[4], out_channels),
        "w2": 0.1 * jax.random.normal(ks[5], (out_channels, out_channels, 3, 3), jnp.float32),
        "b2": 0.1 * jax.random.normal(ks[6], (out_channels,), jnp.float32),
        "bn2": bn_params(ks[7], out_channels),
    }


def up_forward(params, x_down_nchw, x_skip_nchw):
    """Pallas implementation of Up.forward. Inputs/outputs are NCHW (PyTorch)."""
    # TODO(synk): these boundary NCHW<->NHWC transposes disappear if the
    # surrounding network stays NHWC end-to-end.
    x_down = jnp.transpose(x_down_nchw, (0, 2, 3, 1))
    x_skip = jnp.transpose(x_skip_nchw, (0, 2, 3, 1))

    N, H, W, cin = x_down.shape
    chalf = params["wt"].shape[1]
    cout = params["w1"].shape[0]
    cip = _round_up(cin, 128)      # padded convT input channels
    chp = _round_up(chalf, 128)    # padded half channels (up / skip lanes)
    cop = _round_up(cout, 128)     # padded output channels

    # --- ConvTranspose2d(k=2, s=2), 4 taps in one matmul, fused d2s ---
    wt4 = _make_convt_weight_stack(params["wt"], cip, chp).astype(jnp.bfloat16)
    bt_pad = jnp.zeros((chp,), jnp.float32).at[:chalf].set(params["bt"])
    bt4 = jnp.tile(bt_pad, 4)
    xd = jnp.pad(x_down, ((0, 0), (0, 0), (0, 0), (0, cip - cin))).astype(jnp.bfloat16)
    x_up = fused_conv_transpose2x2(xd, wt4, bt4)           # (N, 2H, 2W, chp)

    # --- skip in the same padded lane layout (concat fused into conv1) ---
    skip_p = jnp.pad(x_skip, ((0, 0), (0, 0), (0, 0),
                              (0, chp - chalf))).astype(jnp.bfloat16)

    # --- DoubleConv: (Conv3x3 + BN + ReLU) x 2, fused ---
    w1s = _make_conv_weight_stack(
        params["w1"], [(0, chalf, 0), (chalf, 2 * chalf, chp)],
        2 * chp, cop).astype(jnp.bfloat16)
    s1, h1 = _bn_fold(params["b1"], *params["bn1"], cop)
    y = fused_conv3x3_bn_relu([x_up, skip_p], w1s, s1, h1,
                              out_dtype=jnp.bfloat16)

    w2s = _make_conv_weight_stack(
        params["w2"], [(0, cout, 0)], cop, cop).astype(jnp.bfloat16)
    s2, h2 = _bn_fold(params["b2"], *params["bn2"], cop)
    y = fused_conv3x3_bn_relu([y], w2s, s2, h2, out_dtype=jnp.bfloat16)

    y = y[..., :cout].astype(jnp.float32)         # slice lanes before transpose
    return jnp.transpose(y, (0, 3, 1, 2))         # -> NCHW


# ----------------------------------------------------------------------------
# Pure-JAX reference (correctness check only)
# ----------------------------------------------------------------------------
def up_reference(params, x_down, x_skip, eps=1e-5):
    wt, bt = params["wt"], params["bt"]
    N, Cin, H, W = x_down.shape
    Chalf = wt.shape[1]
    up = jnp.einsum("nchw,cokl->nohwkl", x_down, wt)
    up = up.transpose(0, 1, 2, 4, 3, 5).reshape(N, Chalf, 2 * H, 2 * W)
    up = up + bt[None, :, None, None]
    cat = jnp.concatenate([up, x_skip], axis=1)

    def conv3x3(x, w, b):
        y = jax.lax.conv_general_dilated(
            x, w, (1, 1), "SAME", dimension_numbers=("NCHW", "OIHW", "NCHW"))
        return y + b[None, :, None, None]

    def bn(x, gamma, beta, mean, var):
        s = gamma / jnp.sqrt(var + eps)
        return x * s[None, :, None, None] + (beta - mean * s)[None, :, None, None]

    y = jax.nn.relu(bn(conv3x3(cat, params["w1"], params["b1"]), *params["bn1"]))
    y = jax.nn.relu(bn(conv3x3(y, params["w2"], params["b2"]), *params["bn2"]))
    return y


if __name__ == "__main__":
    in_channels, out_channels = 8, 4
    N, H, W = 2, 8, 8                      # x_down spatial; skip is 2H x 2W

    key = jax.random.PRNGKey(0)
    k_params, k_xd, k_sk = jax.random.split(key, 3)
    params = init_up_params(k_params, in_channels, out_channels)

    x_down = jax.random.normal(k_xd, (N, in_channels, H, W), jnp.float32)
    x_skip = jax.random.normal(k_sk, (N, in_channels // 2, 2 * H, 2 * W), jnp.float32)

    fwd = jax.jit(up_forward)
    out = jax.block_until_ready(fwd(params, x_down, x_skip))
    ref = jax.block_until_ready(up_reference(params, x_down, x_skip))

    assert out.shape == (N, out_channels, 2 * H, 2 * W), out.shape
    assert bool(jnp.all(jnp.isfinite(out)))
    max_err = float(jnp.max(jnp.abs(out - ref)))
    # bf16 matmul inputs with f32 accumulation -> bf16-level tolerance.
    assert jnp.allclose(out, ref, atol=7e-2, rtol=7e-2), max_err

    print("KERNEL_OK")
</pallas_src>

<mosaic_0001>
module attributes {stable_mosaic.version = 11 : i64} {
  func.func @_conv_transpose2x2_kernel(%arg0: i32, %arg1: i32, %arg2: memref<1x64x128xbf16, #tpu.memory_space<vmem>>, %arg3: memref<128x512xbf16, #tpu.memory_space<vmem>>, %arg4: memref<1x512xf32, #tpu.memory_space<vmem>>, %arg5: memref<1x8x2x8x256xbf16, #tpu.memory_space<vmem>>) attributes {dimension_semantics = [#tpu.dimension_semantics<parallel>, #tpu.dimension_semantics<parallel>], iteration_bounds = array<i64: 2, 1>, scalar_prefetch = 0 : i64, scratch_operands = 0 : i64, tpu.core_type = #tpu.core_type<tc>, window_params = [{transform_indices = @transform_0, window_bounds = array<i64: 1, 64, 128>}, {pipeline_mode = #tpu.pipeline_mode<synchronous>, transform_indices = @transform_1, window_bounds = array<i64: 128, 512>}, {pipeline_mode = #tpu.pipeline_mode<synchronous>, transform_indices = @transform_2, window_bounds = array<i64: 1, 512>}, {transform_indices = @transform_3, window_bounds = array<i64: 1, 8, 2, 8, 256>}]} {
    %c0 = arith.constant 0 : index
    %c0_0 = arith.constant 0 : index
    %c0_1 = arith.constant 0 : index
    %0 = vector.load %arg2[%c0, %c0_0, %c0_1] : memref<1x64x128xbf16, #tpu.memory_space<vmem>>, vector<1x64x128xbf16>
    %1 = vector.shape_cast %0 : vector<1x64x128xbf16> to vector<64x128xbf16>
    %c0_2 = arith.constant 0 : index
    %c0_3 = arith.constant 0 : index
    %2 = vector.load %arg3[%c0_2, %c0_3] : memref<128x512xbf16, #tpu.memory_space<vmem>>, vector<128x512xbf16>
    %cst = arith.constant dense<0.000000e+00> : vector<64x512xf32>
    %3 = tpu.matmul %1, %2, %cst {dimension_numbers = #tpu.dot_dimension_numbers<[1], [0], [0], [1], [0, 0, 1, 1], [], []>} : vector<64x128xbf16>, vector<128x512xbf16>, vector<64x512xf32> -> vector<64x512xf32>
    %c0_4 = arith.constant 0 : index
    %c0_5 = arith.constant 0 : index
    %4 = vector.load %arg4[%c0_4, %c0_5] : memref<1x512xf32, #tpu.memory_space<vmem>>, vector<1x512xf32>
    %5 = vector.broadcast %4 : vector<1x512xf32> to vector<64x512xf32>
    %6 = arith.addf %3, %5 : vector<64x512xf32>
    %7 = arith.truncf %6 : vector<64x512xf32> to vector<64x512xbf16>
    %8 = vector.shape_cast %7 : vector<64x512xbf16> to vector<8x8x512xbf16>
    %9 = vector.extract_strided_slice %8 {offsets = [0, 0, 0], sizes = [8, 8, 256], strides = [1, 1, 1]} : vector<8x8x512xbf16> to vector<8x8x256xbf16>
    %c0_6 = arith.constant 0 : index
    %c0_7 = arith.constant 0 : index
    %c0_8 = arith.constant 0 : index
    %c0_9 = arith.constant 0 : index
    %c0_10 = arith.constant 0 : index
    %10 = vector.load %arg5[%c0_6, %c0_7, %c0_8, %c0_9, %c0_10] : memref<1x8x2x8x256xbf16, #tpu.memory_space<vmem>>, vector<1x8x1x8x256xbf16>
    %11 = vector.shape_cast %10 : vector<1x8x1x8x256xbf16> to vector<8x8x256xbf16>
    %12 = vector.shape_cast %9 : vector<8x8x256xbf16> to vector<1x8x1x8x256xbf16>
    tpu.vector_store %arg5[%c0_6, %c0_7, %c0_8, %c0_9, %c0_10], %12 {strides = array<i32>} : memref<1x8x2x8x256xbf16, #tpu.memory_space<vmem>>, vector<1x8x1x8x256xbf16>,
    %13 = vector.extract_strided_slice %8 {offsets = [0, 0, 256], sizes = [8, 8, 256], strides = [1, 1, 1]} : vector<8x8x512xbf16> to vector<8x8x256xbf16>
    %c0_11 = arith.constant 0 : index
    %c0_12 = arith.constant 0 : index
    %c1 = arith.constant 1 : index
    %c0_13 = arith.constant 0 : index
    %c0_14 = arith.constant 0 : index
    %14 = vector.load %arg5[%c0_11, %c0_12, %c1, %c0_13, %c0_14] : memref<1x8x2x8x256xbf16, #tpu.memory_space<vmem>>, vector<1x8x1x8x256xbf16>
    %15 = vector.shape_cast %14 : vector<1x8x1x8x256xbf16> to vector<8x8x256xbf16>
    %16 = vector.shape_cast %13 : vector<8x8x256xbf16> to vector<1x8x1x8x256xbf16>
    tpu.vector_store %arg5[%c0_11, %c0_12, %c1, %c0_13, %c0_14], %16 {strides = array<i32>} : memref<1x8x2x8x256xbf16, #tpu.memory_space<vmem>>, vector<1x8x1x8x256xbf16>,
    return
  }
  func.func @transform_0(%arg0: i32, %arg1: i32) -> (i32, i32, i32) {
    %c0_i32 = arith.constant 0 : i32
    %c0_i32_0 = arith.constant 0 : i32
    return %arg0, %arg1, %c0_i32 : i32, i32, i32
  }
  func.func @transform_1(%arg0: i32, %arg1: i32) -> (i32, i32) {
    %c0_i32 = arith.constant 0 : i32
    %c0_i32_0 = arith.constant 0 : i32
    %c0_i32_1 = arith.constant 0 : i32
    return %c0_i32, %c0_i32_0 : i32, i32
  }
  func.func @transform_2(%arg0: i32, %arg1: i32) -> (i32, i32) {
    %c0_i32 = arith.constant 0 : i32
    %c0_i32_0 = arith.constant 0 : i32
    %c0_i32_1 = arith.constant 0 : i32
    return %c0_i32, %c0_i32_0 : i32, i32
  }
  func.func @transform_3(%arg0: i32, %arg1: i32) -> (i32, i32, i32, i32, i32) {
    %c0_i32 = arith.constant 0 : i32
    %c0_i32_0 = arith.constant 0 : i32
    %c0_i32_1 = arith.constant 0 : i32
    %c0_i32_2 = arith.constant 0 : i32
    return %arg0, %arg1, %c0_i32, %c0_i32_0, %c0_i32_1 : i32, i32, i32, i32, i32
  }
}

module attributes {stable_mosaic.version = 11 : i64} {
  func.func @_conv3x3_bn_relu_kernel(%arg0: i32, %arg1: i32, %arg2: memref<2x552x128xbf16, #tpu.memory_space<any>>, %arg3: memref<2x552x128xbf16, #tpu.memory_space<any>>, %arg4: memref<9x256x128xbf16, #tpu.memory_space<vmem>>, %arg5: memref<1x128xf32, #tpu.memory_space<vmem>>, %arg6: memref<1x128xf32, #tpu.memory_space<vmem>>, %arg7: memref<1x240x128xbf16, #tpu.memory_space<vmem>>, %arg8: memref<312x256xbf16, #tpu.memory_space<vmem>>, %arg9: memref<2x!tpu.dma_semaphore, #tpu.memory_space<semaphore_mem>>, %arg10: memref<240x128xf32, #tpu.memory_space<vmem>>) attributes {dimension_semantics = [#tpu.dimension_semantics<parallel>, #tpu.dimension_semantics<parallel>], iteration_bounds = array<i64: 2, 2>, scalar_prefetch = 0 : i64, scratch_operands = 3 : i64, tpu.core_type = #tpu.core_type<tc>, window_params = [{}, {}, {pipeline_mode = #tpu.pipeline_mode<synchronous>, transform_indices = @transform_2, window_bounds = array<i64: 9, 256, 128>}, {pipeline_mode = #tpu.pipeline_mode<synchronous>, transform_indices = @transform_3, window_bounds = array<i64: 1, 128>}, {pipeline_mode = #tpu.pipeline_mode<synchronous>, transform_indices = @transform_4, window_bounds = array<i64: 1, 128>}, {transform_indices = @transform_5, window_bounds = array<i64: 1, 240, 128>}]} {
    %c240_i32 = arith.constant 240 : i32
    %0 = arith.muli %arg1, %c240_i32 : i32
    %1 = tpu.assume_multiple %0, 8 : i32
    %c0_i32 = arith.constant 0 : i32
    %c0_i32_0 = arith.constant 0 : i32
    %2 = tpu.memref_slice %arg2[%arg0, %1, %c0_i32_0] : memref<2x552x128xbf16, #tpu.memory_space<any>> -> memref<1x312x128xbf16, #tpu.memory_space<any>>
    %3 = tpu.memref_squeeze %2 : memref<1x312x128xbf16, #tpu.memory_space<any>> -> memref<312x128xbf16, #tpu.memory_space<any>>
    %c0_i32_1 = arith.constant 0 : i32
    %c0_i32_2 = arith.constant 0 : i32
    %4 = tpu.memref_slice %arg8[%c0_i32_1, %c0_i32_2] : memref<312x256xbf16, #tpu.memory_space<vmem>> -> memref<312x128xbf16, #tpu.memory_space<vmem>>
    %5 = tpu.memref_slice %arg9[%c0_i32] : memref<2x!tpu.dma_semaphore, #tpu.memory_space<semaphore_mem>> -> memref<1x!tpu.dma_semaphore, #tpu.memory_space<semaphore_mem>>
    %6 = tpu.memref_squeeze %5 : memref<1x!tpu.dma_semaphore, #tpu.memory_space<semaphore_mem>> -> memref<!tpu.dma_semaphore, #tpu.memory_space<semaphore_mem>>
    tpu.enqueue_dma source(%3 : memref<312x128xbf16, #tpu.memory_space<any>>) target(%4 : memref<312x128xbf16, #tpu.memory_space<vmem>>) target_semaphore(%6 : memref<!tpu.dma_semaphore, #tpu.memory_space<semaphore_mem>>)
    %c1_i32 = arith.constant 1 : i32
    %c0_i32_3 = arith.constant 0 : i32
    %7 = tpu.memref_slice %arg3[%arg0, %1, %c0_i32_3] : memref<2x552x128xbf16, #tpu.memory_space<any>> -> memref<1x312x128xbf16, #tpu.memory_space<any>>
    %8 = tpu.memref_squeeze %7 : memref<1x312x128xbf16, #tpu.memory_space<any>> -> memref<312x128xbf16, #tpu.memory_space<any>>
    %c0_i32_4 = arith.constant 0 : i32
    %c128_i32 = arith.constant 128 : i32
    %9 = tpu.memref_slice %arg8[%c0_i32_4, %c128_i32] : memref<312x256xbf16, #tpu.memory_space<vmem>> -> memref<312x128xbf16, #tpu.memory_space<vmem>>
    %10 = tpu.memref_slice %arg9[%c1_i32] : memref<2x!tpu.dma_semaphore, #tpu.memory_space<semaphore_mem>> -> memref<1x!tpu.dma_semaphore, #tpu.memory_space<semaphore_mem>>
    %11 = tpu.memref_squeeze %10 : memref<1x!tpu.dma_semaphore, #tpu.memory_space<semaphore_mem>> -> memref<!tpu.dma_semaphore, #tpu.memory_space<semaphore_mem>>
    tpu.enqueue_dma source(%8 : memref<312x128xbf16, #tpu.memory_space<any>>) target(%9 : memref<312x128xbf16, #tpu.memory_space<vmem>>) target_semaphore(%11 : memref<!tpu.dma_semaphore, #tpu.memory_space<semaphore_mem>>)
    %c0_i32_5 = arith.constant 0 : i32
    %c0_i32_6 = arith.constant 0 : i32
    %12 = tpu.memref_slice %arg2[%arg0, %1, %c0_i32_6] : memref<2x552x128xbf16, #tpu.memory_space<any>> -> memref<1x312x128xbf16, #tpu.memory_space<any>>
    %13 = tpu.memref_squeeze %12 : memref<1x312x128xbf16, #tpu.memory_space<any>> -> memref<312x128xbf16, #tpu.memory_space<any>>
    %c0_i32_7 = arith.constant 0 : i32
    %c0_i32_8 = arith.constant 0 : i32
    %14 = tpu.memref_slice %arg8[%c0_i32_7, %c0_i32_8] : memref<312x256xbf16, #tpu.memory_space<vmem>> -> memref<312x128xbf16, #tpu.memory_space<vmem>>
    %15 = tpu.memref_slice %arg9[%c0_i32_5] : memref<2x!tpu.dma_semaphore, #tpu.memory_space<semaphore_mem>> -> memref<1x!tpu.dma_semaphore, #tpu.memory_space<semaphore_mem>>
    %16 = tpu.memref_squeeze %15 : memref<1x!tpu.dma_semaphore, #tpu.memory_space<semaphore_mem>> -> memref<!tpu.dma_semaphore, #tpu.memory_space<semaphore_mem>>
    tpu.wait_dma2 semaphore(%16 : memref<!tpu.dma_semaphore, #tpu.memory_space<semaphore_mem>>) src(%13 : memref<312x128xbf16, #tpu.memory_space<any>>) dst(%14 : memref<312x128xbf16, #tpu.memory_space<vmem>>)
    %c1_i32_9 = arith.constant 1 : i32
    %c0_i32_10 = arith.constant 0 : i32
    %17 = tpu.memref_slice %arg3[%arg0, %1, %c0_i32_10] : memref<2x552x128xbf16, #tpu.memory_space<any>> -> memref<1x312x128xbf16, #tpu.memory_space<any>>
    %18 = tpu.memref_squeeze %17 : memref<1x312x128xbf16, #tpu.memory_space<any>> -> memref<312x128xbf16, #tpu.memory_space<any>>
    %c0_i32_11 = arith.constant 0 : i32
    %c128_i32_12 = arith.constant 128 : i32
    %19 = tpu.memref_slice %arg8[%c0_i32_11, %c128_i32_12] : memref<312x256xbf16, #tpu.memory_space<vmem>> -> memref<312x128xbf16, #tpu.memory_space<vmem>>
    %20 = tpu.memref_slice %arg9[%c1_i32_9] : memref<2x!tpu.dma_semaphore, #tpu.memory_space<semaphore_mem>> -> memref<1x!tpu.dma_semaphore, #tpu.memory_space<semaphore_mem>>
    %21 = tpu.memref_squeeze %20 : memref<1x!tpu.dma_semaphore, #tpu.memory_space<semaphore_mem>> -> memref<!tpu.dma_semaphore, #tpu.memory_space<semaphore_mem>>
    tpu.wait_dma2 semaphore(%21 : memref<!tpu.dma_semaphore, #tpu.memory_space<semaphore_mem>>) src(%18 : memref<312x128xbf16, #tpu.memory_space<any>>) dst(%19 : memref<312x128xbf16, #tpu.memory_space<vmem>>)
    %c0 = arith.constant 0 : index
    %c0_13 = arith.constant 0 : index
    %22 = vector.load %arg8[%c0, %c0_13] : memref<312x256xbf16, #tpu.memory_space<vmem>>, vector<240x256xbf16>
    %c0_14 = arith.constant 0 : index
    %c0_15 = arith.constant 0 : index
    %c0_16 = arith.constant 0 : index
    %23 = vector.load %arg4[%c0_14, %c0_15, %c0_16] : memref<9x256x128xbf16, #tpu.memory_space<vmem>>, vector<1x256x128xbf16>
    %24 = vector.shape_cast %23 : vector<1x256x128xbf16> to vector<256x128xbf16>
    %cst = arith.constant dense<0.000000e+00> : vector<240x128xf32>
    %25 = tpu.matmul %22, %24, %cst {dimension_numbers = #tpu.dot_dimension_numbers<[1], [0], [0], [1], [0, 0, 1, 1], [], []>} : vector<240x256xbf16>, vector<256x128xbf16>, vector<240x128xf32> -> vector<240x128xf32>
    %c0_17 = arith.constant 0 : index
    %c0_18 = arith.constant 0 : index
    %26 = vector.load %arg10[%c0_17, %c0_18] : memref<240x128xf32, #tpu.memory_space<vmem>>, vector<240x128xf32>
    tpu.vector_store %arg10[%c0_17, %c0_18], %25 {strides = array<i32>} : memref<240x128xf32, #tpu.memory_space<vmem>>, vector<240x128xf32>,
    %c1 = arith.constant 1 : index
    %c0_19 = arith.constant 0 : index
    %27 = vector.load %arg8[%c1, %c0_19] : memref<312x256xbf16, #tpu.memory_space<vmem>>, vector<240x256xbf16>
    %c1_20 = arith.constant 1 : index
    %c0_21 = arith.constant 0 : index
    %c0_22 = arith.constant 0 : index
    %28 = vector.load %arg4[%c1_20, %c0_21, %c0_22] : memref<9x256x128xbf16, #tpu.memory_space<vmem>>, vector<1x256x128xbf16>
    %29 = vector.shape_cast %28 : vector<1x256x128xbf16> to vector<256x128xbf16>
    %cst_23 = arith.constant dense<0.000000e+00> : vector<240x128xf32>
    %30 = tpu.matmul %27, %29, %cst_23 {dimension_numbers = #tpu.dot_dimension_numbers<[1], [0], [0], [1], [0, 0, 1, 1], [], []>} : vector<240x256xbf16>, vector<256x128xbf16>, vector<240x128xf32> -> vector<240x128xf32>
    %c0_24 = arith.constant 0 : index
    %c0_25 = arith.constant 0 : index
    %31 = vector.load %arg10[%c0_24, %c0_25] : memref<240x128xf32, #tpu.memory_space<vmem>>, vector<240x128xf32>
    %32 = arith.addf %31, %30 : vector<240x128xf32>
    %c0_26 = arith.constant 0 : index
    %c0_27 = arith.constant 0 : index
    %33 = vector.load %arg10[%c0_26, %c0_27] : memref<240x128xf32, #tpu.memory_space<vmem>>, vector<240x128xf32>
    tpu.vector_store %arg10[%c0_26, %c0_27], %32 {strides = array<i32>} : memref<240x128xf32, #tpu.memory_space<vmem>>, vector<240x128xf32>,
    %c2 = arith.constant 2 : index
    %c0_28 = arith.constant 0 : index
    %34 = vector.load %arg8[%c2, %c0_28] : memref<312x256xbf16, #tpu.memory_space<vmem>>, vector<240x256xbf16>
    %c2_29 = arith.constant 2 : index
    %c0_30 = arith.constant 0 : index
    %c0_31 = arith.constant 0 : index
    %35 = vector.load %arg4[%c2_29, %c0_30, %c0_31] : memref<9x256x128xbf16, #tpu.memory_space<vmem>>, vector<1x256x128xbf16>
    %36 = vector.shape_cast %35 : vector<1x256x128xbf16> to vector<256x128xbf16>
    %cst_32 = arith.constant dense<0.000000e+00> : vector<240x128xf32>
    %37 = tpu.matmul %34, %36, %cst_32 {dimension_numbers = #tpu.dot_dimension_numbers<[1], [0], [0], [1], [0, 0, 1, 1], [], []>} : vector<240x256xbf16>, vector<256x128xbf16>, vector<240x128xf32> -> vector<240x128xf32>
    %c0_33 = arith.constant 0 : index
    %c0_34 = arith.constant 0 : index
    %38 = vector.load %arg10[%c0_33, %c0_34] : memref<240x128xf32, #tpu.memory_space<vmem>>, vector<240x128xf32>
    %39 = arith.addf %38, %37 : vector<240x128xf32>
    %c0_35 = arith.constant 0 : index
    %c0_36 = arith.constant 0 : index
    %40 = vector.load %arg10[%c0_35, %c0_36] : memref<240x128xf32, #tpu.memory_space<vmem>>, vector<240x128xf32>
    tpu.vector_store %arg10[%c0_35, %c0_36], %39 {strides = array<i32>} : memref<240x128xf32, #tpu.memory_space<vmem>>, vector<240x128xf32>,
    %c24 = arith.constant 24 : index
    %c0_37 = arith.constant 0 : index
    %41 = vector.load %arg8[%c24, %c0_37] : memref<312x256xbf16, #tpu.memory_space<vmem>>, vector<240x256xbf16>
    %c3 = arith.constant 3 : index
    %c0_38 = arith.constant 0 : index
    %c0_39 = arith.constant 0 : index
    %42 = vector.load %arg4[%c3, %c0_38, %c0_39] : memref<9x256x128xbf16, #tpu.memory_space<vmem>>, vector<1x256x128xbf16>
    %43 = vector.shape_cast %42 : vector<1x256x128xbf16> to vector<256x128xbf16>
    %cst_40 = arith.constant dense<0.000000e+00> : vector<240x128xf32>
    %44 = tpu.matmul %41, %43, %cst_40 {dimension_numbers = #tpu.dot_dimension_numbers<[1], [0], [0], [1], [0, 0, 1, 1], [], []>} : vector<240x256xbf16>, vector<256x128xbf16>, vector<240x128xf32> -> vector<240x128xf32>
    %c0_41 = arith.constant 0 : index
    %c0_42 = arith.constant 0 : index
    %45 = vector.load %arg10[%c0_41, %c0_42] : memref<240x128xf32, #tpu.memory_space<vmem>>, vector<240x128xf32>
    %46 = arith.addf %45, %44 : vector<240x128xf32>
    %c0_43 = arith.constant 0 : index
    %c0_44 = arith.constant 0 : index
    %47 = vector.load %arg10[%c0_43, %c0_44] : memref<240x128xf32, #tpu.memory_space<vmem>>, vector<240x128xf32>
    tpu.vector_store %arg10[%c0_43, %c0_44], %46 {strides = array<i32>} : memref<240x128xf32, #tpu.memory_space<vmem>>, vector<240x128xf32>,
    %c25 = arith.constant 25 : index
    %c0_45 = arith.constant 0 : index
    %48 = vector.load %arg8[%c25, %c0_45] : memref<312x256xbf16, #tpu.memory_space<vmem>>, vector<240x256xbf16>
    %c4 = arith.constant 4 : index
    %c0_46 = arith.constant 0 : index
    %c0_47 = arith.constant 0 : index
    %49 = vector.load %arg4[%c4, %c0_46, %c0_47] : memref<9x256x128xbf16, #tpu.memory_space<vmem>>, vector<1x256x128xbf16>
    %50 = vector.shape_cast %49 : vector<1x256x128xbf16> to vector<256x128xbf16>
    %cst_48 = arith.constant dense<0.000000e+00> : vector<240x128xf32>
    %51 = tpu.matmul %48, %50, %cst_48 {dimension_numbers = #tpu.dot_dimension_numbers<[1], [0], [0], [1], [0, 0, 1, 1], [], []>} : vector<240x256xbf16>, vector<256x128xbf16>, vector<240x128xf32> -> vector<240x128xf32>
    %c0_49 = arith.constant 0 : index
    %c0_50 = arith.constant 0 : index
    %52 = vector.load %arg10[%c0_49, %c0_50] : memref<240x128xf32, #tpu.memory_space<vmem>>, vector<240x128xf32>
    %53 = arith.addf %52, %51 : vector<240x128xf32>
    %c0_51 = arith.constant 0 : index
    %c0_52 = arith.constant 0 : index
    %54 = vector.load %arg10[%c0_51, %c0_52] : memref<240x128xf32, #tpu.memory_space<vmem>>, vector<240x128xf32>
    tpu.vector_store %arg10[%c0_51, %c0_52], %53 {strides = array<i32>} : memref<240x128xf32, #tpu.memory_space<vmem>>, vector<240x128xf32>,
    %c26 = arith.constant 26 : index
    %c0_53 = arith.constant 0 : index
    %55 = vector.load %arg8[%c26, %c0_53] : memref<312x256xbf16, #tpu.memory_space<vmem>>, vector<240x256xbf16>
    %c5 = arith.constant 5 : index
    %c0_54 = arith.constant 0 : index
    %c0_55 = arith.constant 0 : index
    %56 = vector.load %arg4[%c5, %c0_54, %c0_55] : memref<9x256x128xbf16, #tpu.memory_space<vmem>>, vector<1x256x128xbf16>
    %57 = vector.shape_cast %56 : vector<1x256x128xbf16> to vector<256x128xbf16>
    %cst_56 = arith.constant dense<0.000000e+00> : vector<240x128xf32>
    %58 = tpu.matmul %55, %57, %cst_56 {dimension_numbers = #tpu.dot_dimension_numbers<[1], [0], [0], [1], [0, 0, 1, 1], [], []>} : vector<240x256xbf16>, vector<256x128xbf16>, vector<240x128xf32> -> vector<240x128xf32>
    %c0_57 = arith.constant 0 : index
    %c0_58 = arith.constant 0 : index
    %59 = vector.load %arg10[%c0_57, %c0_58] : memref<240x128xf32, #tpu.memory_space<vmem>>, vector<240x128xf32>
    %60 = arith.addf %59, %58 : vector<240x128xf32>
    %c0_59 = arith.constant 0 : index
    %c0_60 = arith.constant 0 : index
    %61 = vector.load %arg10[%c0_59, %c0_60] : memref<240x128xf32, #tpu.memory_space<vmem>>, vector<240x128xf32>
    tpu.vector_store %arg10[%c0_59, %c0_60], %60 {strides = array<i32>} : memref<240x128xf32, #tpu.memory_space<vmem>>, vector<240x128xf32>,
    %c48 = arith.constant 48 : index
    %c0_61 = arith.constant 0 : index
    %62 = vector.load %arg8[%c48, %c0_61] : memref<312x256xbf16, #tpu.memory_space<vmem>>, vector<240x256xbf16>
    %c6 = arith.constant 6 : index
    %c0_62 = arith.constant 0 : index
    %c0_63 = arith.constant 0 : index
    %63 = vector.load %arg4[%c6, %c0_62, %c0_63] : memref<9x256x128xbf16, #tpu.memory_space<vmem>>, vector<1x256x128xbf16>
    %64 = vector.shape_cast %63 : vector<1x256x128xbf16> to vector<256x128xbf16>
    %cst_64 = arith.constant dense<0.000000e+00> : vector<240x128xf32>
    %65 = tpu.matmul %62, %64, %cst_64 {dimension_numbers = #tpu.dot_dimension_numbers<[1], [0], [0], [1], [0, 0, 1, 1], [], []>} : vector<240x256xbf16>, vector<256x128xbf16>, vector<240x128xf32> -> vector<240x128xf32>
    %c0_65 = arith.constant 0 : index
    %c0_66 = arith.constant 0 : index
    %66 = vector.load %arg10[%c0_65, %c0_66] : memref<240x128xf32, #tpu.memory_space<vmem>>, vector<240x128xf32>
    %67 = arith.addf %66, %65 : vector<240x128xf32>
    %c0_67 = arith.constant 0 : index
    %c0_68 = arith.constant 0 : index
    %68 = vector.load %arg10[%c0_67, %c0_68] : memref<240x128xf32, #tpu.memory_space<vmem>>, vector<240x128xf32>
    tpu.vector_store %arg10[%c0_67, %c0_68], %67 {strides = array<i32>} : memref<240x128xf32, #tpu.memory_space<vmem>>, vector<240x128xf32>,
    %c49 = arith.constant 49 : index
    %c0_69 = arith.constant 0 : index
    %69 = vector.load %arg8[%c49, %c0_69] : memref<312x256xbf16, #tpu.memory_space<vmem>>, vector<240x256xbf16>
    %c7 = arith.constant 7 : index
    %c0_70 = arith.constant 0 : index
    %c0_71 = arith.constant 0 : index
    %70 = vector.load %arg4[%c7, %c0_70, %c0_71] : memref<9x256x128xbf16, #tpu.memory_space<vmem>>, vector<1x256x128xbf16>
    %71 = vector.shape_cast %70 : vector<1x256x128xbf16> to vector<256x128xbf16>
    %cst_72 = arith.constant dense<0.000000e+00> : vector<240x128xf32>
    %72 = tpu.matmul %69, %71, %cst_72 {dimension_numbers = #tpu.dot_dimension_numbers<[1], [0], [0], [1], [0, 0, 1, 1], [], []>} : vector<240x256xbf16>, vector<256x128xbf16>, vector<240x128xf32> -> vector<240x128xf32>
    %c0_73 = arith.constant 0 : index
    %c0_74 = arith.constant 0 : index
    %73 = vector.load %arg10[%c0_73, %c0_74] : memref<240x128xf32, #tpu.memory_space<vmem>>, vector<240x128xf32>
    %74 = arith.addf %73, %72 : vector<240x128xf32>
    %c0_75 = arith.constant 0 : index
    %c0_76 = arith.constant 0 : index
    %75 = vector.load %arg10[%c0_75, %c0_76] : memref<240x128xf32, #tpu.memory_space<vmem>>, vector<240x128xf32>
    tpu.vector_store %arg10[%c0_75, %c0_76], %74 {strides = array<i32>} : memref<240x128xf32, #tpu.memory_space<vmem>>, vector<240x128xf32>,
    %c50 = arith.constant 50 : index
    %c0_77 = arith.constant 0 : index
    %76 = vector.load %arg8[%c50, %c0_77] : memref<312x256xbf16, #tpu.memory_space<vmem>>, vector<240x256xbf16>
    %c8 = arith.constant 8 : index
    %c0_78 = arith.constant 0 : index
    %c0_79 = arith.constant 0 : index
    %77 = vector.load %arg4[%c8, %c0_78, %c0_79] : memref<9x256x128xbf16, #tpu.memory_space<vmem>>, vector<1x256x128xbf16>
    %78 = vector.shape_cast %77 : vector<1x256x128xbf16> to vector<256x128xbf16>
    %cst_80 = arith.constant dense<0.000000e+00> : vector<240x128xf32>
    %79 = tpu.matmul %76, %78, %cst_80 {dimension_numbers = #tpu.dot_dimension_numbers<[1], [0], [0], [1], [0, 0, 1, 1], [], []>} : vector<240x256xbf16>, vector<256x128xbf16>, vector<240x128xf32> -> vector<240x128xf32>
    %c0_81 = arith.constant 0 : index
    %c0_82 = arith.constant 0 : index
    %80 = vector.load %arg10[%c0_81, %c0_82] : memref<240x128xf32, #tpu.memory_space<vmem>>, vector<240x128xf32>
    %81 = arith.addf %80, %79 : vector<240x128xf32>
    %c0_83 = arith.constant 0 : index
    %c0_84 = arith.constant 0 : index
    %82 = vector.load %arg10[%c0_83, %c0_84] : memref<240x128xf32, #tpu.memory_space<vmem>>, vector<240x128xf32>
    tpu.vector_store %arg10[%c0_83, %c0_84], %81 {strides = array<i32>} : memref<240x128xf32, #tpu.memory_space<vmem>>, vector<240x128xf32>,
    %c0_85 = arith.constant 0 : index
    %c0_86 = arith.constant 0 : index
    %83 = vector.load %arg10[%c0_85, %c0_86] : memref<240x128xf32, #tpu.memory_space<vmem>>, vector<240x128xf32>
    %c0_87 = arith.constant 0 : index
    %c0_88 = arith.constant 0 : index
    %84 = vector.load %arg5[%c0_87, %c0_88] : memref<1x128xf32, #tpu.memory_space<vmem>>, vector<1x128xf32>
    %85 = vector.broadcast %84 : vector<1x128xf32> to vector<240x128xf32>
    %86 = arith.mulf %83, %85 : vector<240x128xf32>
    %c0_89 = arith.constant 0 : index
    %c0_90 = arith.constant 0 : index
    %87 = vector.load %arg6[%c0_89, %c0_90] : memref<1x128xf32, #tpu.memory_space<vmem>>, vector<1x128xf32>
    %88 = vector.broadcast %87 : vector<1x128xf32> to vector<240x128xf32>
    %89 = arith.addf %86, %88 : vector<240x128xf32>
    %cst_91 = arith.constant 0.000000e+00 : f32
    %90 = vector.broadcast %cst_91 : f32 to vector<240x128xf32>
    %91 = arith.maximumf %89, %90 : vector<240x128xf32>
    %92 = arith.truncf %91 : vector<240x128xf32> to vector<240x128xbf16>
    %c0_92 = arith.constant 0 : index
    %c0_93 = arith.constant 0 : index
    %c0_94 = arith.constant 0 : index
    %93 = vector.load %arg7[%c0_92, %c0_93, %c0_94] : memref<1x240x128xbf16, #tpu.memory_space<vmem>>, vector<1x240x128xbf16>
    %94 = vector.shape_cast %93 : vector<1x240x128xbf16> to vector<240x128xbf16>
    %95 = vector.shape_cast %92 : vector<240x128xbf16> to vector<1x240x128xbf16>
    tpu.vector_store %arg7[%c0_92, %c0_93, %c0_94], %95 {strides = array<i32>} : memref<1x240x128xbf16, #tpu.memory_space<vmem>>, vector<1x240x128xbf16>,
    return
  }
  func.func @transform_2(%arg0: i32, %arg1: i32) -> (i32, i32, i32) {
    %c0_i32 = arith.constant 0 : i32
    %c0_i32_0 = arith.constant 0 : i32
    %c0_i32_1 = arith.constant 0 : i32
    %c0_i32_2 = arith.constant 0 : i32
    return %c0_i32, %c0_i32_0, %c0_i32_1 : i32, i32, i32
  }
  func.func @transform_3(%arg0: i32, %arg1: i32) -> (i32, i32) {
    %c0_i32 = arith.constant 0 : i32
    %c0_i32_0 = arith.constant 0 : i32
    %c0_i32_1 = arith.constant 0 : i32
    return %c0_i32, %c0_i32_0 : i32, i32
  }
  func.func @transform_4(%arg0: i32, %arg1: i32) -> (i32, i32) {
    %c0_i32 = arith.constant 0 : i32
    %c0_i32_0 = arith.constant 0 : i32
    %c0_i32_1 = arith.constant 0 : i32
    return %c0_i32, %c0_i32_0 : i32, i32
  }
  func.func @transform_5(%arg0: i32, %arg1: i32) -> (i32, i32, i32) {
    %c0_i32 = arith.constant 0 : i32
    %c0_i32_0 = arith.constant 0 : i32
    return %arg0, %arg1, %c0_i32 : i32, i32, i32
  }
}

module attributes {stable_mosaic.version = 11 : i64} {
  func.func @_conv3x3_bn_relu_kernel(%arg0: i32, %arg1: i32, %arg2: memref<2x552x128xbf16, #tpu.memory_space<any>>, %arg3: memref<9x128x128xbf16, #tpu.memory_space<vmem>>, %arg4: memref<1x128xf32, #tpu.memory_space<vmem>>, %arg5: memref<1x128xf32, #tpu.memory_space<vmem>>, %arg6: memref<1x240x128xbf16, #tpu.memory_space<vmem>>, %arg7: memref<312x128xbf16, #tpu.memory_space<vmem>>, %arg8: memref<1x!tpu.dma_semaphore, #tpu.memory_space<semaphore_mem>>, %arg9: memref<240x128xf32, #tpu.memory_space<vmem>>) attributes {dimension_semantics = [#tpu.dimension_semantics<parallel>, #tpu.dimension_semantics<parallel>], iteration_bounds = array<i64: 2, 2>, scalar_prefetch = 0 : i64, scratch_operands = 3 : i64, tpu.core_type = #tpu.core_type<tc>, window_params = [{}, {pipeline_mode = #tpu.pipeline_mode<synchronous>, transform_indices = @transform_1, window_bounds = array<i64: 9, 128, 128>}, {pipeline_mode = #tpu.pipeline_mode<synchronous>, transform_indices = @transform_2, window_bounds = array<i64: 1, 128>}, {pipeline_mode = #tpu.pipeline_mode<synchronous>, transform_indices = @transform_3, window_bounds = array<i64: 1, 128>}, {transform_indices = @transform_4, window_bounds = array<i64: 1, 240, 128>}]} {
    %c240_i32 = arith.constant 240 : i32
    %0 = arith.muli %arg1, %c240_i32 : i32
    %1 = tpu.assume_multiple %0, 8 : i32
    %c0_i32 = arith.constant 0 : i32
    %c0_i32_0 = arith.constant 0 : i32
    %2 = tpu.memref_slice %arg2[%arg0, %1, %c0_i32_0] : memref<2x552x128xbf16, #tpu.memory_space<any>> -> memref<1x312x128xbf16, #tpu.memory_space<any>>
    %3 = tpu.memref_squeeze %2 : memref<1x312x128xbf16, #tpu.memory_space<any>> -> memref<312x128xbf16, #tpu.memory_space<any>>
    %4 = tpu.memref_slice %arg8[%c0_i32] : memref<1x!tpu.dma_semaphore, #tpu.memory_space<semaphore_mem>> -> memref<1x!tpu.dma_semaphore, #tpu.memory_space<semaphore_mem>>
    %5 = tpu.memref_squeeze %4 : memref<1x!tpu.dma_semaphore, #tpu.memory_space<semaphore_mem>> -> memref<!tpu.dma_semaphore, #tpu.memory_space<semaphore_mem>>
    tpu.enqueue_dma source(%3 : memref<312x128xbf16, #tpu.memory_space<any>>) target(%arg7 : memref<312x128xbf16, #tpu.memory_space<vmem>>) target_semaphore(%5 : memref<!tpu.dma_semaphore, #tpu.memory_space<semaphore_mem>>)
    %c0_i32_1 = arith.constant 0 : i32
    %c0_i32_2 = arith.constant 0 : i32
    %6 = tpu.memref_slice %arg2[%arg0, %1, %c0_i32_2] : memref<2x552x128xbf16, #tpu.memory_space<any>> -> memref<1x312x128xbf16, #tpu.memory_space<any>>
    %7 = tpu.memref_squeeze %6 : memref<1x312x128xbf16, #tpu.memory_space<any>> -> memref<312x128xbf16, #tpu.memory_space<any>>
    %8 = tpu.memref_slice %arg8[%c0_i32_1] : memref<1x!tpu.dma_semaphore, #tpu.memory_space<semaphore_mem>> -> memref<1x!tpu.dma_semaphore, #tpu.memory_space<semaphore_mem>>
    %9 = tpu.memref_squeeze %8 : memref<1x!tpu.dma_semaphore, #tpu.memory_space<semaphore_mem>> -> memref<!tpu.dma_semaphore, #tpu.memory_space<semaphore_mem>>
    tpu.wait_dma2 semaphore(%9 : memref<!tpu.dma_semaphore, #tpu.memory_space<semaphore_mem>>) src(%7 : memref<312x128xbf16, #tpu.memory_space<any>>) dst(%arg7 : memref<312x128xbf16, #tpu.memory_space<vmem>>)
    %c0 = arith.constant 0 : index
    %c0_3 = arith.constant 0 : index
    %10 = vector.load %arg7[%c0, %c0_3] : memref<312x128xbf16, #tpu.memory_space<vmem>>, vector<240x128xbf16>
    %c0_4 = arith.constant 0 : index
    %c0_5 = arith.constant 0 : index
    %c0_6 = arith.constant 0 : index
    %11 = vector.load %arg3[%c0_4, %c0_5, %c0_6] : memref<9x128x128xbf16, #tpu.memory_space<vmem>>, vector<1x128x128xbf16>
    %12 = vector.shape_cast %11 : vector<1x128x128xbf16> to vector<128x128xbf16>
    %cst = arith.constant dense<0.000000e+00> : vector<240x128xf32>
    %13 = tpu.matmul %10, %12, %cst {dimension_numbers = #tpu.dot_dimension_numbers<[1], [0], [0], [1], [0, 0, 1, 1], [], []>} : vector<240x128xbf16>, vector<128x128xbf16>, vector<240x128xf32> -> vector<240x128xf32>
    %c0_7 = arith.constant 0 : index
    %c0_8 = arith.constant 0 : index
    %14 = vector.load %arg9[%c0_7, %c0_8] : memref<240x128xf32, #tpu.memory_space<vmem>>, vector<240x128xf32>
    tpu.vector_store %arg9[%c0_7, %c0_8], %13 {strides = array<i32>} : memref<240x128xf32, #tpu.memory_space<vmem>>, vector<240x128xf32>,
    %c1 = arith.constant 1 : index
    %c0_9 = arith.constant 0 : index
    %15 = vector.load %arg7[%c1, %c0_9] : memref<312x128xbf16, #tpu.memory_space<vmem>>, vector<240x128xbf16>
    %c1_10 = arith.constant 1 : index
    %c0_11 = arith.constant 0 : index
    %c0_12 = arith.constant 0 : index
    %16 = vector.load %arg3[%c1_10, %c0_11, %c0_12] : memref<9x128x128xbf16, #tpu.memory_space<vmem>>, vector<1x128x128xbf16>
    %17 = vector.shape_cast %16 : vector<1x128x128xbf16> to vector<128x128xbf16>
    %cst_13 = arith.constant dense<0.000000e+00> : vector<240x128xf32>
    %18 = tpu.matmul %15, %17, %cst_13 {dimension_numbers = #tpu.dot_dimension_numbers<[1], [0], [0], [1], [0, 0, 1, 1], [], []>} : vector<240x128xbf16>, vector<128x128xbf16>, vector<240x128xf32> -> vector<240x128xf32>
    %c0_14 = arith.constant 0 : index
    %c0_15 = arith.constant 0 : index
    %19 = vector.load %arg9[%c0_14, %c0_15] : memref<240x128xf32, #tpu.memory_space<vmem>>, vector<240x128xf32>
    %20 = arith.addf %19, %18 : vector<240x128xf32>
    %c0_16 = arith.constant 0 : index
    %c0_17 = arith.constant 0 : index
    %21 = vector.load %arg9[%c0_16, %c0_17] : memref<240x128xf32, #tpu.memory_space<vmem>>, vector<240x128xf32>
    tpu.vector_store %arg9[%c0_16, %c0_17], %20 {strides = array<i32>} : memref<240x128xf32, #tpu.memory_space<vmem>>, vector<240x128xf32>,
    %c2 = arith.constant 2 : index
    %c0_18 = arith.constant 0 : index
    %22 = vector.load %arg7[%c2, %c0_18] : memref<312x128xbf16, #tpu.memory_space<vmem>>, vector<240x128xbf16>
    %c2_19 = arith.constant 2 : index
    %c0_20 = arith.constant 0 : index
    %c0_21 = arith.constant 0 : index
    %23 = vector.load %arg3[%c2_19, %c0_20, %c0_21] : memref<9x128x128xbf16, #tpu.memory_space<vmem>>, vector<1x128x128xbf16>
    %24 = vector.shape_cast %23 : vector<1x128x128xbf16> to vector<128x128xbf16>
    %cst_22 = arith.constant dense<0.000000e+00> : vector<240x128xf32>
    %25 = tpu.matmul %22, %24, %cst_22 {dimension_numbers = #tpu.dot_dimension_numbers<[1], [0], [0], [1], [0, 0, 1, 1], [], []>} : vector<240x128xbf16>, vector<128x128xbf16>, vector<240x128xf32> -> vector<240x128xf32>
    %c0_23 = arith.constant 0 : index
    %c0_24 = arith.constant 0 : index
    %26 = vector.load %arg9[%c0_23, %c0_24] : memref<240x128xf32, #tpu.memory_space<vmem>>, vector<240x128xf32>
    %27 = arith.addf %26, %25 : vector<240x128xf32>
    %c0_25 = arith.constant 0 : index
    %c0_26 = arith.constant 0 : index
    %28 = vector.load %arg9[%c0_25, %c0_26] : memref<240x128xf32, #tpu.memory_space<vmem>>, vector<240x128xf32>
    tpu.vector_store %arg9[%c0_25, %c0_26], %27 {strides = array<i32>} : memref<240x128xf32, #tpu.memory_space<vmem>>, vector<240x128xf32>,
    %c24 = arith.constant 24 : index
    %c0_27 = arith.constant 0 : index
    %29 = vector.load %arg7[%c24, %c0_27] : memref<312x128xbf16, #tpu.memory_space<vmem>>, vector<240x128xbf16>
    %c3 = arith.constant 3 : index
    %c0_28 = arith.constant 0 : index
    %c0_29 = arith.constant 0 : index
    %30 = vector.load %arg3[%c3, %c0_28, %c0_29] : memref<9x128x128xbf16, #tpu.memory_space<vmem>>, vector<1x128x128xbf16>
    %31 = vector.shape_cast %30 : vector<1x128x128xbf16> to vector<128x128xbf16>
    %cst_30 = arith.constant dense<0.000000e+00> : vector<240x128xf32>
    %32 = tpu.matmul %29, %31, %cst_30 {dimension_numbers = #tpu.dot_dimension_numbers<[1], [0], [0], [1], [0, 0, 1, 1], [], []>} : vector<240x128xbf16>, vector<128x128xbf16>, vector<240x128xf32> -> vector<240x128xf32>
    %c0_31 = arith.constant 0 : index
    %c0_32 = arith.constant 0 : index
    %33 = vector.load %arg9[%c0_31, %c0_32] : memref<240x128xf32, #tpu.memory_space<vmem>>, vector<240x128xf32>
    %34 = arith.addf %33, %32 : vector<240x128xf32>
    %c0_33 = arith.constant 0 : index
    %c0_34 = arith.constant 0 : index
    %35 = vector.load %arg9[%c0_33, %c0_34] : memref<240x128xf32, #tpu.memory_space<vmem>>, vector<240x128xf32>
    tpu.vector_store %arg9[%c0_33, %c0_34], %34 {strides = array<i32>} : memref<240x128xf32, #tpu.memory_space<vmem>>, vector<240x128xf32>,
    %c25 = arith.constant 25 : index
    %c0_35 = arith.constant 0 : index
    %36 = vector.load %arg7[%c25, %c0_35] : memref<312x128xbf16, #tpu.memory_space<vmem>>, vector<240x128xbf16>
    %c4 = arith.constant 4 : index
    %c0_36 = arith.constant 0 : index
    %c0_37 = arith.constant 0 : index
    %37 = vector.load %arg3[%c4, %c0_36, %c0_37] : memref<9x128x128xbf16, #tpu.memory_space<vmem>>, vector<1x128x128xbf16>
    %38 = vector.shape_cast %37 : vector<1x128x128xbf16> to vector<128x128xbf16>
    %cst_38 = arith.constant dense<0.000000e+00> : vector<240x128xf32>
    %39 = tpu.matmul %36, %38, %cst_38 {dimension_numbers = #tpu.dot_dimension_numbers<[1], [0], [0], [1], [0, 0, 1, 1], [], []>} : vector<240x128xbf16>, vector<128x128xbf16>, vector<240x128xf32> -> vector<240x128xf32>
    %c0_39 = arith.constant 0 : index
    %c0_40 = arith.constant 0 : index
    %40 = vector.load %arg9[%c0_39, %c0_40] : memref<240x128xf32, #tpu.memory_space<vmem>>, vector<240x128xf32>
    %41 = arith.addf %40, %39 : vector<240x128xf32>
    %c0_41 = arith.constant 0 : index
    %c0_42 = arith.constant 0 : index
    %42 = vector.load %arg9[%c0_41, %c0_42] : memref<240x128xf32, #tpu.memory_space<vmem>>, vector<240x128xf32>
    tpu.vector_store %arg9[%c0_41, %c0_42], %41 {strides = array<i32>} : memref<240x128xf32, #tpu.memory_space<vmem>>, vector<240x128xf32>,
    %c26 = arith.constant 26 : index
    %c0_43 = arith.constant 0 : index
    %43 = vector.load %arg7[%c26, %c0_43] : memref<312x128xbf16, #tpu.memory_space<vmem>>, vector<240x128xbf16>
    %c5 = arith.constant 5 : index
    %c0_44 = arith.constant 0 : index
    %c0_45 = arith.constant 0 : index
    %44 = vector.load %arg3[%c5, %c0_44, %c0_45] : memref<9x128x128xbf16, #tpu.memory_space<vmem>>, vector<1x128x128xbf16>
    %45 = vector.shape_cast %44 : vector<1x128x128xbf16> to vector<128x128xbf16>
    %cst_46 = arith.constant dense<0.000000e+00> : vector<240x128xf32>
    %46 = tpu.matmul %43, %45, %cst_46 {dimension_numbers = #tpu.dot_dimension_numbers<[1], [0], [0], [1], [0, 0, 1, 1], [], []>} : vector<240x128xbf16>, vector<128x128xbf16>, vector<240x128xf32> -> vector<240x128xf32>
    %c0_47 = arith.constant 0 : index
    %c0_48 = arith.constant 0 : index
    %47 = vector.load %arg9[%c0_47, %c0_48] : memref<240x128xf32, #tpu.memory_space<vmem>>, vector<240x128xf32>
    %48 = arith.addf %47, %46 : vector<240x128xf32>
    %c0_49 = arith.constant 0 : index
    %c0_50 = arith.constant 0 : index
    %49 = vector.load %arg9[%c0_49, %c0_50] : memref<240x128xf32, #tpu.memory_space<vmem>>, vector<240x128xf32>
    tpu.vector_store %arg9[%c0_49, %c0_50], %48 {strides = array<i32>} : memref<240x128xf32, #tpu.memory_space<vmem>>, vector<240x128xf32>,
    %c48 = arith.constant 48 : index
    %c0_51 = arith.constant 0 : index
    %50 = vector.load %arg7[%c48, %c0_51] : memref<312x128xbf16, #tpu.memory_space<vmem>>, vector<240x128xbf16>
    %c6 = arith.constant 6 : index
    %c0_52 = arith.constant 0 : index
    %c0_53 = arith.constant 0 : index
    %51 = vector.load %arg3[%c6, %c0_52, %c0_53] : memref<9x128x128xbf16, #tpu.memory_space<vmem>>, vector<1x128x128xbf16>
    %52 = vector.shape_cast %51 : vector<1x128x128xbf16> to vector<128x128xbf16>
    %cst_54 = arith.constant dense<0.000000e+00> : vector<240x128xf32>
    %53 = tpu.matmul %50, %52, %cst_54 {dimension_numbers = #tpu.dot_dimension_numbers<[1], [0], [0], [1], [0, 0, 1, 1], [], []>} : vector<240x128xbf16>, vector<128x128xbf16>, vector<240x128xf32> -> vector<240x128xf32>
    %c0_55 = arith.constant 0 : index
    %c0_56 = arith.constant 0 : index
    %54 = vector.load %arg9[%c0_55, %c0_56] : memref<240x128xf32, #tpu.memory_space<vmem>>, vector<240x128xf32>
    %55 = arith.addf %54, %53 : vector<240x128xf32>
    %c0_57 = arith.constant 0 : index
    %c0_58 = arith.constant 0 : index
    %56 = vector.load %arg9[%c0_57, %c0_58] : memref<240x128xf32, #tpu.memory_space<vmem>>, vector<240x128xf32>
    tpu.vector_store %arg9[%c0_57, %c0_58], %55 {strides = array<i32>} : memref<240x128xf32, #tpu.memory_space<vmem>>, vector<240x128xf32>,
    %c49 = arith.constant 49 : index
    %c0_59 = arith.constant 0 : index
    %57 = vector.load %arg7[%c49, %c0_59] : memref<312x128xbf16, #tpu.memory_space<vmem>>, vector<240x128xbf16>
    %c7 = arith.constant 7 : index
    %c0_60 = arith.constant 0 : index
    %c0_61 = arith.constant 0 : index
    %58 = vector.load %arg3[%c7, %c0_60, %c0_61] : memref<9x128x128xbf16, #tpu.memory_space<vmem>>, vector<1x128x128xbf16>
    %59 = vector.shape_cast %58 : vector<1x128x128xbf16> to vector<128x128xbf16>
    %cst_62 = arith.constant dense<0.000000e+00> : vector<240x128xf32>
    %60 = tpu.matmul %57, %59, %cst_62 {dimension_numbers = #tpu.dot_dimension_numbers<[1], [0], [0], [1], [0, 0, 1, 1], [], []>} : vector<240x128xbf16>, vector<128x128xbf16>, vector<240x128xf32> -> vector<240x128xf32>
    %c0_63 = arith.constant 0 : index
    %c0_64 = arith.constant 0 : index
    %61 = vector.load %arg9[%c0_63, %c0_64] : memref<240x128xf32, #tpu.memory_space<vmem>>, vector<240x128xf32>
    %62 = arith.addf %61, %60 : vector<240x128xf32>
    %c0_65 = arith.constant 0 : index
    %c0_66 = arith.constant 0 : index
    %63 = vector.load %arg9[%c0_65, %c0_66] : memref<240x128xf32, #tpu.memory_space<vmem>>, vector<240x128xf32>
    tpu.vector_store %arg9[%c0_65, %c0_66], %62 {strides = array<i32>} : memref<240x128xf32, #tpu.memory_space<vmem>>, vector<240x128xf32>,
    %c50 = arith.constant 50 : index
    %c0_67 = arith.constant 0 : index
    %64 = vector.load %arg7[%c50, %c0_67] : memref<312x128xbf16, #tpu.memory_space<vmem>>, vector<240x128xbf16>
    %c8 = arith.constant 8 : index
    %c0_68 = arith.constant 0 : index
    %c0_69 = arith.constant 0 : index
    %65 = vector.load %arg3[%c8, %c0_68, %c0_69] : memref<9x128x128xbf16, #tpu.memory_space<vmem>>, vector<1x128x128xbf16>
    %66 = vector.shape_cast %65 : vector<1x128x128xbf16> to vector<128x128xbf16>
    %cst_70 = arith.constant dense<0.000000e+00> : vector<240x128xf32>
    %67 = tpu.matmul %64, %66, %cst_70 {dimension_numbers = #tpu.dot_dimension_numbers<[1], [0], [0], [1], [0, 0, 1, 1], [], []>} : vector<240x128xbf16>, vector<128x128xbf16>, vector<240x128xf32> -> vector<240x128xf32>
    %c0_71 = arith.constant 0 : index
    %c0_72 = arith.constant 0 : index
    %68 = vector.load %arg9[%c0_71, %c0_72] : memref<240x128xf32, #tpu.memory_space<vmem>>, vector<240x128xf32>
    %69 = arith.addf %68, %67 : vector<240x128xf32>
    %c0_73 = arith.constant 0 : index
    %c0_74 = arith.constant 0 : index
    %70 = vector.load %arg9[%c0_73, %c0_74] : memref<240x128xf32, #tpu.memory_space<vmem>>, vector<240x128xf32>
    tpu.vector_store %arg9[%c0_73, %c0_74], %69 {strides = array<i32>} : memref<240x128xf32, #tpu.memory_space<vmem>>, vector<240x128xf32>,
    %c0_75 = arith.constant 0 : index
    %c0_76 = arith.constant 0 : index
    %71 = vector.load %arg9[%c0_75, %c0_76] : memref<240x128xf32, #tpu.memory_space<vmem>>, vector<240x128xf32>
    %c0_77 = arith.constant 0 : index
    %c0_78 = arith.constant 0 : index
    %72 = vector.load %arg4[%c0_77, %c0_78] : memref<1x128xf32, #tpu.memory_space<vmem>>, vector<1x128xf32>
    %73 = vector.broadcast %72 : vector<1x128xf32> to vector<240x128xf32>
    %74 = arith.mulf %71, %73 : vector<240x128xf32>
    %c0_79 = arith.constant 0 : index
    %c0_80 = arith.constant 0 : index
    %75 = vector.load %arg5[%c0_79, %c0_80] : memref<1x128xf32, #tpu.memory_space<vmem>>, vector<1x128xf32>
    %76 = vector.broadcast %75 : vector<1x128xf32> to vector<240x128xf32>
    %77 = arith.addf %74, %76 : vector<240x128xf32>
    %cst_81 = arith.constant 0.000000e+00 : f32
    %78 = vector.broadcast %cst_81 : f32 to vector<240x128xf32>
    %79 = arith.maximumf %77, %78 : vector<240x128xf32>
    %80 = arith.truncf %79 : vector<240x128xf32> to vector<240x128xbf16>
    %c0_82 = arith.constant 0 : index
    %c0_83 = arith.constant 0 : index
    %c0_84 = arith.constant 0 : index
    %81 = vector.load %arg6[%c0_82, %c0_83, %c0_84] : memref<1x240x128xbf16, #tpu.memory_space<vmem>>, vector<1x240x128xbf16>
    %82 = vector.shape_cast %81 : vector<1x240x128xbf16> to vector<240x128xbf16>
    %83 = vector.shape_cast %80 : vector<240x128xbf16> to vector<1x240x128xbf16>
    tpu.vector_store %arg6[%c0_82, %c0_83, %c0_84], %83 {strides = array<i32>} : memref<1x240x128xbf16, #tpu.memory_space<vmem>>, vector<1x240x128xbf16>,
    return
  }
  func.func @transform_1(%arg0: i32, %arg1: i32) -> (i32, i32, i32) {
    %c0_i32 = arith.constant 0 : i32
    %c0_i32_0 = arith.constant 0 : i32
    %c0_i32_1 = arith.constant 0 : i32
    %c0_i32_2 = arith.constant 0 : i32
    return %c0_i32, %c0_i32_0, %c0_i32_1 : i32, i32, i32
  }
  func.func @transform_2(%arg0: i32, %arg1: i32) -> (i32, i32) {
    %c0_i32 = arith.constant 0 : i32
    %c0_i32_0 = arith.constant 0 : i32
    %c0_i32_1 = arith.constant 0 : i32
    return %c0_i32, %c0_i32_0 : i32, i32
  }
  func.func @transform_3(%arg0: i32, %arg1: i32) -> (i32, i32) {
    %c0_i32 = arith.constant 0 : i32
    %c0_i32_0 = arith.constant 0 : i32
    %c0_i32_1 = arith.constant 0 : i32
    return %c0_i32, %c0_i32_0 : i32, i32
  }
  func.func @transform_4(%arg0: i32, %arg1: i32) -> (i32, i32, i32) {
    %c0_i32 = arith.constant 0 : i32
    %c0_i32_0 = arith.constant 0 : i32
    return %arg0, %arg1, %c0_i32 : i32, i32, i32
  }
}

</mosaic_0001>

<bundles_post_ra>
// kernel: tile.8
= control target key start
LH: loop header
LB: loop body
LE: loop exit
PB: predicated region body
PF: predicated region fallthrough
CT: control target
= control target key end

     0   :  { %s22_s0 = inlined_call_operand.vmem [shape: f32[128], index: 0, kind: input, shape index: {}]   ;;  %s23_s1 = inlined_call_operand.vmem [shape: f32[4,128], index: 1, kind: output, shape index: {}]  }
   0x1   :  { %v4_v0 = vld [vmem:[%s22_s0] ss:$0 sm:$0xff] }
   0x2   :  { %5 = vst [vmem:[%s23_s1] sm:$0xf] %v4_v0 }

// kernel: up_forward.3
= control target key start
LH: loop header
LB: loop body
LE: loop exit
PB: predicated region body
PF: predicated region fallthrough
CT: control target
= control target key end

     0   :  { %s1022_s12 = smov 0   ;;  %s1024_s13 = smov 0   ;;  %s1234_s0 = inlined_call_operand.vmem [shape: bf16[2,64,128], index: 0, kind: input, shape index: {}]   ;;  %s1235_s1 = inlined_call_operand.vmem [shape: bf16[128,512], index: 1, kind: input, shape index: {}]   ;;  %s1236_s2 = inlined_call_operand.vmem [shape: f32[1,512], index: 2, kind: input, shape index: {}]   ;;  %s1237_s3 = inlined_call_operand.vmem [shape: bf16[2,8,2,8,256], index: 3, kind: output, shape index: {}]  }
   0x1   :  { %s1026_s14 = smov 0  }
   0x2 LB: > { %s25_s15 = sadd.s32 1, %s995_s13  ;;  %p815_p0 = scmp.ge.s32.totalorder %s999_s14, 1  ;;  %s999_s14 = sphi %s1026_s14, %s13_s14   ;;  %s995_s13 = sphi %s1024_s13, %s1239_s13   ;;  %s991_s12 = sphi %s1022_s12, %s1238_s12  }
   0x3   : > { %p27_p1 = scmp.ge.s32.totalorder %s25_s15, 2  ;;  %p158_p2 = scmp.lt.s32.totalorder %s999_s14, 3 }
   0x5   : > { %s1241_s15 = smov (%p27_p1, %s25_s15), 0  ;;  %p159_p3 = pnand %p815_p0, %p158_p2 }
   0x6   : > { %p192_p4 = scmp.lt.s32.totalorder (!%p159_p3), %s991_s12, 1 }
   0x7   : > { %162 = sbr.rel (%p159_p3) target bundleno = 274 (0x112), region = 32 }
   0xc   : > { %v925_v0 = vld [vmem:[%s1235_s1 + $0xe4] ss:$16 sps:$4 sm:$0xff]   ;;  %v927_v1 = vld [vmem:[%s1235_s1 + $0xec] ss:$16 sps:$4 sm:$0xff]   ;;  %v1001_v2 = vmov 0   ;;  %s1243_s12 = smov (!%p192_p4, %s991_s12), 1  ;;  %v255_v37 = vlaneseq }
   0xd   : > { %491 = vmatprep.mubr.bf16.mxu0 %v1001_v2  ;;  %564 = vmatprep.mubr.bf16.mxu1 %v1001_v2  ;;  %v929_v3 = vld [vmem:[%s1235_s1 + $0xe0] ss:$16 sps:$4 sm:$0xff]   ;;  %v930_v4 = vld [vmem:[%s1235_s1 + $0xe8] ss:$16 sps:$4 sm:$0xff]   ;;  %v931_v5 = vld [vmem:[%s1235_s1 + $0xc4] ss:$16 sps:$4 sm:$0xff]  }
   0xe   : > { %459 = vmatprep.subr.bf16.mxu0 %v925_v0  ;;  %532 = vmatprep.subr.bf16.mxu1 %v927_v1  ;;  %v933_v6 = vld [vmem:[%s1235_s1 + $0xcc] ss:$16 sps:$4 sm:$0xff]   ;;  %v935_v7 = vld [vmem:[%s1235_s1 + $0xc0] ss:$16 sps:$4 sm:$0xff]   ;;  %v936_v8 = vld [vmem:[%s1235_s1 + $0xc8] ss:$16 sps:$4 sm:$0xff]  }
   0xf   : > { %460 = vmatpush1.bf16.msra.mxu0 %v929_v3  ;;  %533 = vmatpush1.bf16.msra.mxu1 %v930_v4  ;;  %v937_v9 = vld [vmem:[%s1235_s1 + $0xa4] ss:$16 sps:$4 sm:$0xff]   ;;  %v939_v10 = vld [vmem:[%s1235_s1 + $0xac] ss:$16 sps:$4 sm:$0xff]   ;;  %v941_v11 = vld [vmem:[%s1235_s1 + $0xa0] ss:$16 sps:$4 sm:$0xff]  }
  0x10   : > { %461 = vmatprep.subr.bf16.mxu0 %v931_v5  ;;  %534 = vmatprep.subr.bf16.mxu1 %v933_v6  ;;  %v942_v12 = vld [vmem:[%s1235_s1 + $0xa8] ss:$16 sps:$4 sm:$0xff]   ;;  %v943_v13 = vld [vmem:[%s1235_s1 + $0x84] ss:$16 sps:$4 sm:$0xff]   ;;  %v945_v14 = vld [vmem:[%s1235_s1 + $0x8c] ss:$16 sps:$4 sm:$0xff]  }
  0x11   : > { %v947_v15 = vld [vmem:[%s1235_s1 + $0x80] ss:$16 sps:$4 sm:$0xff]   ;;  %v948_v16 = vld [vmem:[%s1235_s1 + $0x88] ss:$16 sps:$4 sm:$0xff]   ;;  %v949_v17 = vld [vmem:[%s1235_s1 + $0x64] ss:$16 sps:$4 sm:$0xff]  }
  0x12   : > { %v951_v18 = vld [vmem:[%s1235_s1 + $0x6c] ss:$16 sps:$4 sm:$0xff]   ;;  %v953_v19 = vld [vmem:[%s1235_s1 + $0x60] ss:$16 sps:$4 sm:$0xff]   ;;  %v954_v20 = vld [vmem:[%s1235_s1 + $0x68] ss:$16 sps:$4 sm:$0xff]  }
  0x13   : > { %462 = vmatpush1.bf16.msra.mxu0 %v935_v7  ;;  %535 = vmatpush1.bf16.msra.mxu1 %v936_v8  ;;  %v955_v21 = vld [vmem:[%s1235_s1 + $0x44] ss:$16 sps:$4 sm:$0xff]   ;;  %v957_v22 = vld [vmem:[%s1235_s1 + $0x4c] ss:$16 sps:$4 sm:$0xff]   ;;  %s882_s10 = sshll.u32 %s1243_s12, 5  ;;  %v256_v38 = vshrl.u32 %v255_v37, 7 }
  0x14   : > { %463 = vmatprep.subr.bf16.mxu0 %v937_v9  ;;  %536 = vmatprep.subr.bf16.mxu1 %v939_v10  ;;  %v959_v23 = vld [vmem:[%s1235_s1 + $0x40] ss:$16 sps:$4 sm:$0xff]   ;;  %v960_v24 = vld [vmem:[%s1235_s1 + $0x48] ss:$16 sps:$4 sm:$0xff]   ;;  %v961_v25 = vld [vmem:[%s1235_s1 + $0x24] ss:$16 sps:$4 sm:$0xff]   ;;  %s1127_s23 = scalar_lea.vmem %s1234_s0, %s882_s10 }
  0x15   : > { %v963_v26 = vld [vmem:[%s1235_s1 + $0x2c] ss:$16 sps:$4 sm:$0xff]   ;;  %v965_v27 = vld [vmem:[%s1235_s1 + $0x20] ss:$16 sps:$4 sm:$0xff]   ;;  %v966_v28 = vld [vmem:[%s1235_s1 + $0x28] ss:$16 sps:$4 sm:$0xff]  }
  0x16   : > { %v967_v29 = vld [vmem:[%s1235_s1 + $0x4] ss:$16 sps:$4 sm:$0xff]   ;;  %v969_v30 = vld [vmem:[%s1235_s1 + $0xc] ss:$16 sps:$4 sm:$0xff]   ;;  %v971_v31 = vld [vmem:[%s1235_s1] ss:$16 sps:$4 sm:$0xff]  }
  0x17   : > { %464 = vmatpush1.bf16.msra.mxu0 %v941_v11  ;;  %537 = vmatpush1.bf16.msra.mxu1 %v942_v12  ;;  %v972_v32 = vld [vmem:[%s1235_s1 + $0x8] ss:$16 sps:$4 sm:$0xff]   ;;  %v973_v33 = vld [vmem:[%s1127_s23] sm:$0xff]   ;;  %v975_v35 = vld [vmem:[%s1127_s23 + $0x10] sm:$0xff]   ;;  %v257_v39 = vsub.s32 0, %v256_v38  ;;  %v265_v40 = vsub.s32 2, %v256_v38 }
  0x18   : > { %465 = vmatprep.subr.bf16.mxu0 %v943_v13  ;;  %538 = vmatprep.subr.bf16.mxu1 %v945_v14  ;;  %v974_v34 = vld [vmem:[%s1127_s23 + $0x8] sm:$0xff]   ;;  %v976_v36 = vld [vmem:[%s1127_s23 + $0x18] sm:$0xff]   ;;  %v261_v41 = vsub.s32 1, %v256_v38  ;;  %v269_v42 = vsub.s32 3, %v256_v38  ;;  %v253_v43 = vld [vmem:[%s1236_s2] sm:$0xf] }
  0x19   : > { %v1163_v44 = vrot.slane %v253_v43, %v257_v39  ;;  %v1165_v45 = vrot.slane %v253_v43, %v265_v40  ;;  %s883_s17 = sshll.u32 %s1243_s12, 7 }
  0x1a   : > { %v1167_v46 = vrot.slane %v253_v43, %v261_v41  ;;  %v1169_v47 = vrot.slane %v253_v43, %v269_v42  ;;  %s1179_s20 = scalar_lea.vmem %s1237_s3, %s883_s17 }
  0x1b   : > { %466 = vmatpush1.bf16.msra.mxu0 %v947_v15  ;;  %539 = vmatpush1.bf16.msra.mxu1 %v948_v16 }
  0x1c   : > { %467 = vmatprep.subr.bf16.mxu0 %v949_v17  ;;  %540 = vmatprep.subr.bf16.mxu1 %v951_v18 }
  0x1f   : > { %468 = vmatpush1.bf16.msra.mxu0 %v953_v19  ;;  %541 = vmatpush1.bf16.msra.mxu1 %v954_v20 }
  0x20   : > { %469 = vmatprep.subr.bf16.mxu0 %v955_v21  ;;  %542 = vmatprep.subr.bf16.mxu1 %v957_v22 }
  0x23   : > { %470 = vmatpush1.bf16.msra.mxu0 %v959_v23  ;;  %543 = vmatpush1.bf16.msra.mxu1 %v960_v24 }
  0x24   : > { %471 = vmatprep.subr.bf16.mxu0 %v961_v25  ;;  %544 = vmatprep.subr.bf16.mxu1 %v963_v26 }
  0x27   : > { %472 = vmatpush1.bf16.msra.mxu0 %v965_v27  ;;  %545 = vmatpush1.bf16.msra.mxu1 %v966_v28 }
  0x28   : > { %473 = vmatprep.subr.bf16.mxu0 %v967_v29  ;;  %546 = vmatprep.subr.bf16.mxu1 %v969_v30 }
  0x2b   : > { %474 = vmatpush1.bf16.msra.mxu0 %v971_v31  ;;  %547 = vmatpush1.bf16.msra.mxu1 %v972_v32 }
  0x2e   : > { %492 = vmatmul.mubr.bf16.vlgmr.msra.gmra.mxu0 %v973_v33  ;;  %565 = vmatmul.mubr.bf16.vlgmr.msra.gmra.mxu1 %v973_v33 }
  0x2f   : > { %501 = vmatprep.mubr.bf16.mxu0 %v1001_v2  ;;  %574 = vmatprep.mubr.bf16.mxu1 %v1001_v2 }
  0x36   : > { %502 = vmatmul.mubr.bf16.gmra.mxu0 %v974_v34  ;;  %575 = vmatmul.mubr.bf16.gmra.mxu1 %v974_v34 }
  0x37   : > { %511 = vmatprep.mubr.bf16.mxu0 %v1001_v2  ;;  %584 = vmatprep.mubr.bf16.mxu1 %v1001_v2 }
  0x3e   : > { %512 = vmatmul.mubr.bf16.gmra.mxu0 %v975_v35  ;;  %585 = vmatmul.mubr.bf16.gmra.mxu1 %v975_v35 }
  0x3f   : > { %521 = vmatprep.mubr.bf16.mxu0 %v1001_v2  ;;  %594 = vmatprep.mubr.bf16.mxu1 %v1001_v2 }
  0x46   : > { %522 = vmatmul.mubr.bf16.gmra.mxu0 %v976_v36  ;;  %595 = vmatmul.mubr.bf16.gmra.mxu1 %v976_v36 }
  0xee   : > { %v493_v48 = vpop.f32.mrf.mxu0  ;;  %v566_v49 = vpop.f32.mrf.mxu1 }
  0xef   : > { %v494_v52 = vadd.f32 %v493_v48, %v1163_v44  ;;  %v567_v53 = vadd.f32 %v566_v49, %v1165_v45 }
  0xf0   : > { %v495_v50 = vpop.f32.mrf.mxu0  ;;  %v568_v51 = vpop.f32.mrf.mxu1 }
  0xf1   : > { %v496_v54 = vadd.f32 %v495_v50, %v1167_v46  ;;  %v569_v55 = vadd.f32 %v568_v51, %v1169_v47 }
  0xf2   : > { %v497_v56 = vpop.f32.mrf.mxu0  ;;  %v570_v57 = vpop.f32.mrf.mxu1 }
  0xf3   : > { %v884_v58 = vpack.c.bf16 %v496_v54, %v494_v52  ;;  %v885_v59 = vpack.c.bf16 %v569_v55, %v567_v53  ;;  %v498_v62 = vadd.f32 %v497_v56, %v1163_v44  ;;  %v571_v63 = vadd.f32 %v570_v57, %v1165_v45 }
  0xf4   : > { %v499_v60 = vpop.f32.mrf.mxu0  ;;  %v572_v61 = vpop.f32.mrf.mxu1 }
  0xf5   : > { %701 = vst [vmem:[%s1179_s20] sm:$0xff] %v884_v58  ;;  %872 = vst [vmem:[%s1179_s20 + $0x8] sm:$0xff] %v885_v59  ;;  %v500_v0 = vadd.f32 %v499_v60, %v1167_v46  ;;  %v573_v1 = vadd.f32 %v572_v61, %v1169_v47 }
  0xf6   : > { %v503_v2 = vpop.f32.mrf.mxu0  ;;  %v576_v3 = vpop.f32.mrf.mxu1 }
  0xf7   : > { %v886_v4 = vpack.c.bf16 %v500_v0, %v498_v62  ;;  %v887_v5 = vpack.c.bf16 %v573_v1, %v571_v63  ;;  %v504_v8 = vadd.f32 %v503_v2, %v1163_v44  ;;  %v577_v9 = vadd.f32 %v576_v3, %v1165_v45 }
  0xf8   : > { %v505_v6 = vpop.f32.mrf.mxu0  ;;  %v578_v7 = vpop.f32.mrf.mxu1 }
  0xf9   : > { %702 = vst [vmem:[%s1179_s20 + $0x10] sm:$0xff] %v886_v4  ;;  %873 = vst [vmem:[%s1179_s20 + $0x18] sm:$0xff] %v887_v5  ;;  %v506_v10 = vadd.f32 %v505_v6, %v1167_v46  ;;  %v579_v11 = vadd.f32 %v578_v7, %v1169_v47 }
  0xfa   : > { %v507_v12 = vpop.f32.mrf.mxu0  ;;  %v580_v13 = vpop.f32.mrf.mxu1 }
  0xfb   : > { %v888_v14 = vpack.c.bf16 %v506_v10, %v504_v8  ;;  %v889_v15 = vpack.c.bf16 %v579_v11, %v577_v9  ;;  %v508_v18 = vadd.f32 %v507_v12, %v1163_v44  ;;  %v581_v19 = vadd.f32 %v580_v13, %v1165_v45 }
  0xfc   : > { %v509_v16 = vpop.f32.mrf.mxu0  ;;  %v582_v17 = vpop.f32.mrf.mxu1 }
  0xfd   : > { %703 = vst [vmem:[%s1179_s20 + $0x20] sm:$0xff] %v888_v14  ;;  %874 = vst [vmem:[%s1179_s20 + $0x28] sm:$0xff] %v889_v15  ;;  %v510_v20 = vadd.f32 %v509_v16, %v1167_v46  ;;  %v583_v21 = vadd.f32 %v582_v17, %v1169_v47 }
  0xfe   : > { %v513_v22 = vpop.f32.mrf.mxu0  ;;  %v586_v23 = vpop.f32.mrf.mxu1 }
  0xff   : > { %v890_v24 = vpack.c.bf16 %v510_v20, %v508_v18  ;;  %v891_v25 = vpack.c.bf16 %v583_v21, %v581_v19  ;;  %v514_v28 = vadd.f32 %v513_v22, %v1163_v44  ;;  %v587_v29 = vadd.f32 %v586_v23, %v1165_v45 }
 0x100   : > { %v515_v26 = vpop.f32.mrf.mxu0  ;;  %v588_v27 = vpop.f32.mrf.mxu1 }
 0x101   : > { %704 = vst [vmem:[%s1179_s20 + $0x30] sm:$0xff] %v890_v24  ;;  %875 = vst [vmem:[%s1179_s20 + $0x38] sm:$0xff] %v891_v25  ;;  %v516_v30 = vadd.f32 %v515_v26, %v1167_v46  ;;  %v589_v31 = vadd.f32 %v588_v27, %v1169_v47 }
 0x102   : > { %v517_v32 = vpop.f32.mrf.mxu0  ;;  %v590_v33 = vpop.f32.mrf.mxu1 }
 0x103   : > { %v892_v34 = vpack.c.bf16 %v516_v30, %v514_v28  ;;  %v893_v35 = vpack.c.bf16 %v589_v31, %v587_v29  ;;  %v518_v38 = vadd.f32 %v517_v32, %v1163_v44  ;;  %v591_v39 = vadd.f32 %v590_v33, %v1165_v45 }
 0x104   : > { %v519_v36 = vpop.f32.mrf.mxu0  ;;  %v592_v37 = vpop.f32.mrf.mxu1 }
 0x105   : > { %705 = vst [vmem:[%s1179_s20 + $0x40] sm:$0xff] %v892_v34  ;;  %876 = vst [vmem:[%s1179_s20 + $0x48] sm:$0xff] %v893_v35  ;;  %v520_v40 = vadd.f32 %v519_v36, %v1167_v46  ;;  %v593_v41 = vadd.f32 %v592_v37, %v1169_v47 }
 0x106   : > { %v523_v42 = vpop.f32.mrf.mxu0  ;;  %v596_v43 = vpop.f32.mrf.mxu1 }
 0x107   : > { %v894_v48 = vpack.c.bf16 %v520_v40, %v518_v38  ;;  %v895_v49 = vpack.c.bf16 %v593_v41, %v591_v39  ;;  %v524_v52 = vadd.f32 %v523_v42, %v1163_v44  ;;  %v597_v53 = vadd.f32 %v596_v43, %v1165_v45 }
 0x108   : > { %v525_v50 = vpop.f32.mrf.mxu0  ;;  %v598_v51 = vpop.f32.mrf.mxu1 }
 0x109   : > { %706 = vst [vmem:[%s1179_s20 + $0x50] sm:$0xff] %v894_v48  ;;  %877 = vst [vmem:[%s1179_s20 + $0x58] sm:$0xff] %v895_v49  ;;  %v526_v54 = vadd.f32 %v525_v50, %v1167_v46  ;;  %v599_v55 = vadd.f32 %v598_v51, %v1169_v47 }
 0x10a   : > { %v527_v56 = vpop.f32.mrf.mxu0  ;;  %v600_v57 = vpop.f32.mrf.mxu1 }
 0x10b   : > { %v896_v58 = vpack.c.bf16 %v526_v54, %v524_v52  ;;  %v897_v59 = vpack.c.bf16 %v599_v55, %v597_v53  ;;  %v528_v62 = vadd.f32 %v527_v56, %v1163_v44  ;;  %v601_v63 = vadd.f32 %v600_v57, %v1165_v45 }
 0x10c   : > { %v529_v60 = vpop.f32.mrf.mxu0  ;;  %v602_v61 = vpop.f32.mrf.mxu1 }
 0x10d   : > { %707 = vst [vmem:[%s1179_s20 + $0x60] sm:$0xff] %v896_v58  ;;  %878 = vst [vmem:[%s1179_s20 + $0x68] sm:$0xff] %v897_v59  ;;  %v530_v0 = vadd.f32 %v529_v60, %v1167_v46  ;;  %v603_v1 = vadd.f32 %v602_v61, %v1169_v47 }
 0x10f   : > { %v898_v2 = vpack.c.bf16 %v530_v0, %v528_v62  ;;  %v899_v3 = vpack.c.bf16 %v603_v1, %v601_v63 }
 0x111   : > { %708 = vst [vmem:[%s1179_s20 + $0x70] sm:$0xff] %v898_v2  ;;  %879 = vst [vmem:[%s1179_s20 + $0x78] sm:$0xff] %v899_v3 }
 0x112 PF: > { %s13_s14 = sadd.s32 1, %s999_s14   ;;  %s1238_s12 = smov %s995_s13 }
 0x113   : > { %p10_p5 = scmp.ge.s32.totalorder %s13_s14, 4   ;;  %s1239_s13 = smov %s1241_s15 }
 0x115   :  { %12 = sbr.rel (!%p10_p5) target bundleno = 2 (0x2), region = 63 }

// kernel: up_forward.4
= control target key start
LH: loop header
LB: loop body
LE: loop exit
PB: predicated region body
PF: predicated region fallthrough
CT: control target
= control target key end

     0   :  { %s9185_s18 = smov 0   ;;  %s9187_s19 = smov 0   ;;  %s11119_s0 = inlined_call_operand.vmem [shape: bf16[2,552,128], index: 0, kind: input, shape index: {}]   ;;  %s11120_s1 = inlined_call_operand.vmem [shape: bf16[2,552,128], index: 1, kind: input, shape index: {}]   ;;  %s11121_s2 = inlined_call_operand.vmem [shape: bf16[9,256,128], index: 2, kind: input, shape index: {}]   ;;  %s11122_s3 = inlined_call_operand.vmem [shape: f32[1,128], index: 3, kind: input, shape index: {}]   ;;  %s11123_s4 = inlined_call_operand.vmem [shape: f32[1,128], index: 4, kind: input, shape index: {}]   ;;  %s11124_s5 = inlined_call_operand.vmem [shape: bf16[2,480,128], index: 5, kind: output, shape index: {}]  }
   0x1   :  { %s9189_s20 = smov 0   ;;  %s9191_s21 = smov 0  }
   0x2   :  { %s9193_s22 = smov 0  }
   0x3 LB: > { %s24_s23 = sadd.s32 1, %s9145_s20  ;;  %s27_s24 = sadd.s32 1, %s9149_s21  ;;  %s9153_s22 = sphi %s9193_s22, %s15_s22   ;;  %s9149_s21 = sphi %s9191_s21, %s11128_s21   ;;  %s9145_s20 = sphi %s9189_s20, %s11127_s20   ;;  %s9141_s19 = sphi %s9187_s19, %s11126_s19   ;;  %s9137_s18 = sphi %s9185_s18, %s11125_s18  }
   0x4   : > { %p25_p0 = scmp.ge.s32.totalorder %s24_s23, 2  ;;  %p6890_p1 = scmp.ge.s32.totalorder %s9153_s22, 1 }
   0x5   : > { %p143_p2 = scmp.lt.s32.totalorder %s9153_s22, 5 }
   0x6   : > { %s11130_s23 = smov (%p25_p0, %s24_s23), 0  ;;  %s11132_s24 = smov (!%p25_p0, %s27_s24), %s9149_s21 }
   0x7   : > { %p144_p3 = pnand %p6890_p1, %p143_p2  ;;  %p29_p4 = scmp.ge.s32.totalorder %s11132_s24, 2 }
   0x8   : > { %s166_s25 = smul.u32 (!%p144_p3), 30, %s9137_s18  ;;  %p167_p5 = scmp.lt.s32.totalorder (!%p144_p3), %s9141_s19, 1 }
   0x9   : > { %s11134_s24 = smov (%p29_p4, %s11132_s24), 0  ;;  %147 = sbr.rel (%p144_p3) target bundleno = 854 (0x356), region = 32 }
   0xa   : > { %s177_s26 = smul.u32 (!%p144_p3), 240, %s9137_s18  ;;  %p169_p6 = scmp.lt.s32.totalorder (!%p144_p3), %s166_s25, 59 }
   0xb   : > { %s180_s30 = smul.u32 (!%p144_p3), 69, %s9141_s19 }
   0xc   : > { %s178_s29 = sshra.s32 (!%p144_p3), %s177_s26, 3 }
   0xd   : > { %s9215_s8 = sadd.s32 (!%p144_p3), %s180_s30, %s178_s29 }
   0xe   : > { %s168_s27 = scalar_select %p167_p5, %s9141_s19, 1 }
   0xf   : > { %s11136_s25 = smov (!%p169_p6, %s166_s25), 59  ;;  %s6892_s12 = sshll.u32 %s9215_s8, 2 }
  0x10   : > { %s8701_s28 = smul.u32 60, %s168_s27  ;;  %s9228_s15 = scalar_lea.vmem %s11119_s0, %s6892_s12 }
  0x11   : > { %v202_v0 = vld [vmem:[%s9228_s15] sm:$0xf]  ;;  %v204_v1 = vld [vmem:[%s9228_s15 + $0x4] sm:$0xf]  ;;  %v206_v2 = vld [vmem:[%s9228_s15 + $0x8] sm:$0xf] }
  0x12   : > { %s172_s6 = sadd.s32 %s8701_s28, %s11136_s25  ;;  %203 = vst [vmem:[#allocation2] sm:$0xf] %v202_v0  ;;  %205 = vst [vmem:[#allocation2 + $0x8] sm:$0xf] %v204_v1  ;;  %v208_v3 = vld [vmem:[%s9228_s15 + $0xc] sm:$0xf] }
  0x13   : > { %s6891_s7 = sshll.u32 %s172_s6, 2  ;;  %207 = vst [vmem:[#allocation2 + $0x10] sm:$0xf] %v206_v2  ;;  %v210_v4 = vld [vmem:[%s9228_s15 + $0x10] sm:$0xf] }
  0x14   : > { %s9220_s11 = scalar_lea.vmem %s11124_s5, %s6891_s7  ;;  %v212_v5 = vld [vmem:[%s9228_s15 + $0x14] sm:$0xf]  ;;  %209 = vst [vmem:[#allocation2 + $0x18] sm:$0xf] %v208_v3  ;;  %211 = vst [vmem:[#allocation2 + $0x20] sm:$0xf] %v210_v4 }
  0x15   : > { %213 = vst [vmem:[#allocation2 + $0x28] sm:$0xf] %v212_v5  ;;  %v214_v6 = vld [vmem:[%s9228_s15 + $0x18] sm:$0xf]  ;;  %v216_v7 = vld [vmem:[%s9228_s15 + $0x1c] sm:$0xf] }
  0x16   : > { %v218_v8 = vld [vmem:[%s9228_s15 + $0x20] sm:$0xf]  ;;  %215 = vst [vmem:[#allocation2 + $0x30] sm:$0xf] %v214_v6  ;;  %217 = vst [vmem:[#allocation2 + $0x38] sm:$0xf] %v216_v7 }
  0x17   : > { %219 = vst [vmem:[#allocation2 + $0x40] sm:$0xf] %v218_v8  ;;  %v220_v9 = vld [vmem:[%s9228_s15 + $0x24] sm:$0xf]  ;;  %v222_v10 = vld [vmem:[%s9228_s15 + $0x28] sm:$0xf] }
  0x18   : > { %v224_v11 = vld [vmem:[%s9228_s15 + $0x2c] sm:$0xf]  ;;  %221 = vst [vmem:[#allocation2 + $0x48] sm:$0xf] %v220_v9  ;;  %223 = vst [vmem:[#allocation2 + $0x50] sm:$0xf] %v222_v10 }
  0x19   : > { %225 = vst [vmem:[#allocation2 + $0x58] sm:$0xf] %v224_v11  ;;  %v226_v12 = vld [vmem:[%s9228_s15 + $0x30] sm:$0xf]  ;;  %v228_v13 = vld [vmem:[%s9228_s15 + $0x34] sm:$0xf] }
  0x1a   : > { %v230_v14 = vld [vmem:[%s9228_s15 + $0x38] sm:$0xf]  ;;  %227 = vst [vmem:[#allocation2 + $0x60] sm:$0xf] %v226_v12  ;;  %229 = vst [vmem:[#allocation2 + $0x68] sm:$0xf] %v228_v13 }
  0x1b   : > { %231 = vst [vmem:[#allocation2 + $0x70] sm:$0xf] %v230_v14  ;;  %v232_v15 = vld [vmem:[%s9228_s15 + $0x3c] sm:$0xf]  ;;  %v234_v16 = vld [vmem:[%s9228_s15 + $0x40] sm:$0xf] }
  0x1c   : > { %v236_v17 = vld [vmem:[%s9228_s15 + $0x44] sm:$0xf]  ;;  %233 = vst [vmem:[#allocation2 + $0x78] sm:$0xf] %v232_v15  ;;  %235 = vst [vmem:[#allocation2 + $0x80] sm:$0xf] %v234_v16 }
  0x1d   : > { %237 = vst [vmem:[#allocation2 + $0x88] sm:$0xf] %v236_v17  ;;  %v238_v18 = vld [vmem:[%s9228_s15 + $0x48] sm:$0xf]  ;;  %v240_v19 = vld [vmem:[%s9228_s15 + $0x4c] sm:$0xf] }
  0x1e   : > { %v242_v20 = vld [vmem:[%s9228_s15 + $0x50] sm:$0xf]  ;;  %239 = vst [vmem:[#allocation2 + $0x90] sm:$0xf] %v238_v18  ;;  %241 = vst [vmem:[#allocation2 + $0x98] sm:$0xf] %v240_v19 }
  0x1f   : > { %243 = vst [vmem:[#allocation2 + $0xa0] sm:$0xf] %v242_v20  ;;  %v244_v21 = vld [vmem:[%s9228_s15 + $0x54] sm:$0xf]  ;;  %v246_v22 = vld [vmem:[%s9228_s15 + $0x58] sm:$0xf] }
  0x20   : > { %v248_v23 = vld [vmem:[%s9228_s15 + $0x5c] sm:$0xf]  ;;  %245 = vst [vmem:[#allocation2 + $0xa8] sm:$0xf] %v244_v21  ;;  %247 = vst [vmem:[#allocation2 + $0xb0] sm:$0xf] %v246_v22 }
  0x21   : > { %249 = vst [vmem:[#allocation2 + $0xb8] sm:$0xf] %v248_v23  ;;  %v250_v24 = vld [vmem:[%s9228_s15 + $0x60] sm:$0xf]  ;;  %v252_v25 = vld [vmem:[%s9228_s15 + $0x64] sm:$0xf] }
  0x22   : > { %v254_v26 = vld [vmem:[%s9228_s15 + $0x68] sm:$0xf]  ;;  %251 = vst [vmem:[#allocation2 + $0xc0] sm:$0xf] %v250_v24  ;;  %253 = vst [vmem:[#allocation2 + $0xc8] sm:$0xf] %v252_v25 }
  0x23   : > { %255 = vst [vmem:[#allocation2 + $0xd0] sm:$0xf] %v254_v26  ;;  %v256_v27 = vld [vmem:[%s9228_s15 + $0x6c] sm:$0xf]  ;;  %v258_v28 = vld [vmem:[%s9228_s15 + $0x70] sm:$0xf] }
  0x24   : > { %v260_v29 = vld [vmem:[%s9228_s15 + $0x74] sm:$0xf]  ;;  %257 = vst [vmem:[#allocation2 + $0xd8] sm:$0xf] %v256_v27  ;;  %259 = vst [vmem:[#allocation2 + $0xe0] sm:$0xf] %v258_v28 }
  0x25   : > { %261 = vst [vmem:[#allocation2 + $0xe8] sm:$0xf] %v260_v29  ;;  %v262_v30 = vld [vmem:[%s9228_s15 + $0x78] sm:$0xf]  ;;  %v264_v31 = vld [vmem:[%s9228_s15 + $0x7c] sm:$0xf] }
  0x26   : > { %v266_v32 = vld [vmem:[%s9228_s15 + $0x80] sm:$0xf]  ;;  %263 = vst [vmem:[#allocation2 + $0xf0] sm:$0xf] %v262_v30  ;;  %265 = vst [vmem:[#allocation2 + $0xf8] sm:$0xf] %v264_v31 }
  0x27   : > { %267 = vst [vmem:[#allocation2 + $0x100] sm:$0xf] %v266_v32  ;;  %v268_v33 = vld [vmem:[%s9228_s15 + $0x84] sm:$0xf]  ;;  %v270_v34 = vld [vmem:[%s9228_s15 + $0x88] sm:$0xf] }
  0x28   : > { %v272_v35 = vld [vmem:[%s9228_s15 + $0x8c] sm:$0xf]  ;;  %269 = vst [vmem:[#allocation2 + $0x108] sm:$0xf] %v268_v33  ;;  %271 = vst [vmem:[#allocation2 + $0x110] sm:$0xf] %v270_v34 }
  0x29   : > { %273 = vst [vmem:[#allocation2 + $0x118] sm:$0xf] %v272_v35  ;;  %v274_v36 = vld [vmem:[%s9228_s15 + $0x90] sm:$0xf] }
  0x2a   : > { %275 = vst [vmem:[#allocation2 + $0x120] sm:$0xf] %v274_v36 }
  0x2b   : > { %389 = vsyncadd [#allocation3], 2496  ;;  %s9272_s18 = scalar_lea.vmem %s11120_s1, %s6892_s12 }
  0x2c   : > { %v412_v37 = vld [vmem:[%s9272_s18] sm:$0xf]  ;;  %v414_v38 = vld [vmem:[%s9272_s18 + $0x4] sm:$0xf]  ;;  %v416_v39 = vld [vmem:[%s9272_s18 + $0x8] sm:$0xf] }
  0x2d   : > { %413 = vst [vmem:[#allocation2 + $0x4] sm:$0xf] %v412_v37  ;;  %415 = vst [vmem:[#allocation2 + $0xc] sm:$0xf] %v414_v38  ;;  %v418_v40 = vld [vmem:[%s9272_s18 + $0xc] sm:$0xf] }
  0x2e   : > { %417 = vst [vmem:[#allocation2 + $0x14] sm:$0xf] %v416_v39  ;;  %v420_v41 = vld [vmem:[%s9272_s18 + $0x10] sm:$0xf]  ;;  %v422_v42 = vld [vmem:[%s9272_s18 + $0x14] sm:$0xf] }
  0x2f   : > { %419 = vst [vmem:[#allocation2 + $0x1c] sm:$0xf] %v418_v40  ;;  %421 = vst [vmem:[#allocation2 + $0x24] sm:$0xf] %v420_v41  ;;  %v424_v43 = vld [vmem:[%s9272_s18 + $0x18] sm:$0xf] }
  0x30   : > { %423 = vst [vmem:[#allocation2 + $0x2c] sm:$0xf] %v422_v42  ;;  %v426_v44 = vld [vmem:[%s9272_s18 + $0x1c] sm:$0xf]  ;;  %v428_v45 = vld [vmem:[%s9272_s18 + $0x20] sm:$0xf] }
  0x31   : > { %425 = vst [vmem:[#allocation2 + $0x34] sm:$0xf] %v424_v43  ;;  %427 = vst [vmem:[#allocation2 + $0x3c] sm:$0xf] %v426_v44  ;;  %v430_v46 = vld [vmem:[%s9272_s18 + $0x24] sm:$0xf] }
  0x32   : > { %429 = vst [vmem:[#allocation2 + $0x44] sm:$0xf] %v428_v45  ;;  %v432_v47 = vld [vmem:[%s9272_s18 + $0x28] sm:$0xf]  ;;  %v434_v48 = vld [vmem:[%s9272_s18 + $0x2c] sm:$0xf] }
  0x33   : > { %431 = vst [vmem:[#allocation2 + $0x4c] sm:$0xf] %v430_v46  ;;  %433 = vst [vmem:[#allocation2 + $0x54] sm:$0xf] %v432_v47  ;;  %v436_v49 = vld [vmem:[%s9272_s18 + $0x30] sm:$0xf] }
  0x34   : > { %435 = vst [vmem:[#allocation2 + $0x5c] sm:$0xf] %v434_v48  ;;  %v438_v50 = vld [vmem:[%s9272_s18 + $0x34] sm:$0xf]  ;;  %v440_v51 = vld [vmem:[%s9272_s18 + $0x38] sm:$0xf] }
  0x35   : > { %437 = vst [vmem:[#allocation2 + $0x64] sm:$0xf] %v436_v49  ;;  %439 = vst [vmem:[#allocation2 + $0x6c] sm:$0xf] %v438_v50  ;;  %v442_v52 = vld [vmem:[%s9272_s18 + $0x3c] sm:$0xf] }
  0x36   : > { %441 = vst [vmem:[#allocation2 + $0x74] sm:$0xf] %v440_v51  ;;  %v444_v53 = vld [vmem:[%s9272_s18 + $0x40] sm:$0xf]  ;;  %v446_v54 = vld [vmem:[%s9272_s18 + $0x44] sm:$0xf] }
  0x37   : > { %443 = vst [vmem:[#allocation2 + $0x7c] sm:$0xf] %v442_v52  ;;  %445 = vst [vmem:[#allocation2 + $0x84] sm:$0xf] %v444_v53  ;;  %v448_v55 = vld [vmem:[%s9272_s18 + $0x48] sm:$0xf] }
  0x38   : > { %447 = vst [vmem:[#allocation2 + $0x8c] sm:$0xf] %v446_v54  ;;  %v450_v56 = vld [vmem:[%s9272_s18 + $0x4c] sm:$0xf]  ;;  %v452_v57 = vld [vmem:[%s9272_s18 + $0x50] sm:$0xf] }
  0x39   : > { %449 = vst [vmem:[#allocation2 + $0x94] sm:$0xf] %v448_v55  ;;  %451 = vst [vmem:[#allocation2 + $0x9c] sm:$0xf] %v450_v56  ;;  %v454_v58 = vld [vmem:[%s9272_s18 + $0x54] sm:$0xf] }
  0x3a   : > { %453 = vst [vmem:[#allocation2 + $0xa4] sm:$0xf] %v452_v57  ;;  %v456_v59 = vld [vmem:[%s9272_s18 + $0x58] sm:$0xf]  ;;  %v458_v60 = vld [vmem:[%s9272_s18 + $0x5c] sm:$0xf] }
  0x3b   : > { %455 = vst [vmem:[#allocation2 + $0xac] sm:$0xf] %v454_v58  ;;  %457 = vst [vmem:[#allocation2 + $0xb4] sm:$0xf] %v456_v59  ;;  %v460_v61 = vld [vmem:[%s9272_s18 + $0x60] sm:$0xf] }
  0x3c   : > { %459 = vst [vmem:[#allocation2 + $0xbc] sm:$0xf] %v458_v60  ;;  %v462_v62 = vld [vmem:[%s9272_s18 + $0x64] sm:$0xf]  ;;  %v464_v63 = vld [vmem:[%s9272_s18 + $0x68] sm:$0xf] }
  0x3d   : > { %461 = vst [vmem:[#allocation2 + $0xc4] sm:$0xf] %v460_v61  ;;  %463 = vst [vmem:[#allocation2 + $0xcc] sm:$0xf] %v462_v62  ;;  %v466_v0 = vld [vmem:[%s9272_s18 + $0x6c] sm:$0xf] }
  0x3e   : > { %465 = vst [vmem:[#allocation2 + $0xd4] sm:$0xf] %v464_v63  ;;  %v468_v1 = vld [vmem:[%s9272_s18 + $0x70] sm:$0xf]  ;;  %v470_v2 = vld [vmem:[%s9272_s18 + $0x74] sm:$0xf] }
  0x3f   : > { %467 = vst [vmem:[#allocation2 + $0xdc] sm:$0xf] %v466_v0  ;;  %469 = vst [vmem:[#allocation2 + $0xe4] sm:$0xf] %v468_v1  ;;  %v472_v3 = vld [vmem:[%s9272_s18 + $0x78] sm:$0xf] }
  0x40   : > { %471 = vst [vmem:[#allocation2 + $0xec] sm:$0xf] %v470_v2  ;;  %v474_v4 = vld [vmem:[%s9272_s18 + $0x7c] sm:$0xf]  ;;  %v476_v5 = vld [vmem:[%s9272_s18 + $0x80] sm:$0xf] }
  0x41   : > { %473 = vst [vmem:[#allocation2 + $0xf4] sm:$0xf] %v472_v3  ;;  %475 = vst [vmem:[#allocation2 + $0xfc] sm:$0xf] %v474_v4  ;;  %v478_v6 = vld [vmem:[%s9272_s18 + $0x84] sm:$0xf] }
  0x42   : > { %477 = vst [vmem:[#allocation2 + $0x104] sm:$0xf] %v476_v5  ;;  %v480_v7 = vld [vmem:[%s9272_s18 + $0x88] sm:$0xf]  ;;  %v482_v8 = vld [vmem:[%s9272_s18 + $0x8c] sm:$0xf] }
  0x43   : > { %479 = vst [vmem:[#allocation2 + $0x10c] sm:$0xf] %v478_v6  ;;  %481 = vst [vmem:[#allocation2 + $0x114] sm:$0xf] %v480_v7  ;;  %v484_v9 = vld [vmem:[%s9272_s18 + $0x90] sm:$0xf] }
  0x44   : > { %483 = vst [vmem:[#allocation2 + $0x11c] sm:$0xf] %v482_v8  ;;  %485 = vst [vmem:[#allocation2 + $0x124] sm:$0xf] %v484_v9 }
  0x45   : > { %599 = vsyncadd [#allocation3 + $0x1], 2496 }
  0x46   : > { %9131 = dma.done.wait [#allocation3], 2496 }
  0x47   : > { %9132 = vsyncadd [#allocation3], 4294964800 }
  0x48   : > { %9133 = dma.done.wait [#allocation3 + $0x1], 2496 }
  0x49   : > { %9134 = vsyncadd [#allocation3 + $0x1], 4294964800  ;;  %v8742_v10 = vld [vmem:[%s11121_s2 + $0x78] sm:$0xff]   ;;  %v8744_v12 = vld [vmem:[%s11121_s2 + $0x70] sm:$0xff]   ;;  %vm1286_vm0 = vsmask.f32 7424 }
  0x4a   : > { %v8743_v11 = vld [vmem:[%s11121_s2 + $0x38] sm:$0xff]   ;;  %7731 = vmatprep.subr.bf16.mxu0 %v8742_v10  ;;  %8685 = vmatprep.subr.bf16.mxu1 %v8742_v10  ;;  %v8745_v13 = vld [vmem:[%s11121_s2 + $0x30] sm:$0xff]   ;;  %v8746_v14 = vld [vmem:[%s11121_s2 + $0x68] sm:$0xff]   ;;  %vm2093_vm1 = vcmask 1046528  }
  0x4b   : > { %7732 = vmatpush3.bf16.msra.mxu0 %v8743_v11  ;;  %8693 = vmatpush3.bf16.msra.mxu1 %v8743_v11  ;;  %v8747_v15 = vld [vmem:[%s11121_s2 + $0x28] sm:$0xff]   ;;  %v8748_v16 = vld [vmem:[%s11121_s2 + $0x60] sm:$0xff]   ;;  %v8750_v18 = vld [vmem:[%s11121_s2 + $0x58] sm:$0xff]  }
  0x4c   : > { %7733 = vmatprep.subr.bf16.mxu0 %v8744_v12  ;;  %8686 = vmatprep.subr.bf16.mxu1 %v8744_v12  ;;  %v8749_v17 = vld [vmem:[%s11121_s2 + $0x20] sm:$0xff]   ;;  %v8751_v19 = vld [vmem:[%s11121_s2 + $0x18] sm:$0xff]   ;;  %v8752_v20 = vld [vmem:[%s11121_s2 + $0x50] sm:$0xff]  }
  0x4d   : > { %v606_v21 = vld [vmem:[#allocation2] sm:$0xff]  ;;  %v9344_v22 = vld [vmem:[#allocation2 + $0x8] sm:$0xff]  ;;  %v8753_v25 = vld [vmem:[%s11121_s2 + $0x10] sm:$0xff]  }
  0x4e   : > { %v9347_v23 = vcombine.high %v606_v21, %v9344_v22  ;;  %v9349_v24 = vld [vmem:[#allocation2 + $0x84] ss:$8 sps:$4 sm:$0xff]   ;;  %v8763_v30 = vld [vmem:[%s11121_s2 + $0x178] sm:$0xff]   ;;  %v9371_v31 = vld [vmem:[#allocation2 + $0x80] ss:$8 sps:$4 sm:$0xff]   ;;  %v9380_v34 = vcombine.low %v606_v21, %v9344_v22 }
  0x4f   : > { %7734 = vmatpush3.bf16.msra.mxu0 %v8745_v13  ;;  %8694 = vmatpush3.bf16.msra.mxu1 %v8745_v13  ;;  %v8754_v26 = vld [vmem:[%s11121_s2 + $0x48] sm:$0xff]   ;;  %v8756_v28 = vld [vmem:[%s11121_s2 + $0x40] sm:$0xff]   ;;  %v8765_v32 = vld [vmem:[%s11121_s2 + $0xf8] sm:$0xff]  }
  0x50   : > { %7735 = vmatprep.subr.bf16.mxu0 %v8746_v14  ;;  %8687 = vmatprep.subr.bf16.mxu1 %v8746_v14  ;;  %v8755_v27 = vld [vmem:[%s11121_s2 + $0x8] sm:$0xff]   ;;  %v8757_v29 = vld [vmem:[%s11121_s2] sm:$0xff]   ;;  %v8764_v33 = vld [vmem:[%s11121_s2 + $0x138] sm:$0xff]   ;;  %v1302_v13 = vshll.u32 %v9347_v23, 16  ;;  %v1288_v21 = vshrl.u32 %v9380_v34, 16 }
  0x51   : > { %946 = vmatprep.mubr.bf16.mxu0 %v9347_v23  ;;  %1010 = vmatprep.mubr.bf16.mxu1 %v9349_v24  ;;  %v9382_v35 = vld [vmem:[#allocation2 + $0x14] ss:$8 sps:$4 sm:$0xff]   ;;  %v9405_v42 = vld [vmem:[#allocation2 + $0x10] ss:$8 sps:$4 sm:$0xff]   ;;  %v8783_v44 = vld [vmem:[%s11121_s2 + $0x168] sm:$0xff]  }
  0x52   : > { %v9384_v36 = vld [vmem:[#allocation2 + $0x94] ss:$8 sps:$4 sm:$0xff]   ;;  %v9407_v43 = vld [vmem:[#allocation2 + $0x90] ss:$8 sps:$4 sm:$0xff]   ;;  %v9412_v45 = vld [vmem:[#allocation2 + $0x24] ss:$8 sps:$4 sm:$0xff]  }
  0x53   : > { %7736 = vmatpush3.bf16.msra.mxu0 %v8747_v15  ;;  %8695 = vmatpush3.bf16.msra.mxu1 %v8747_v15  ;;  %v8770_v37 = vld [vmem:[%s11121_s2 + $0xb8] sm:$0xff]   ;;  %v8773_v38 = vld [vmem:[%s11121_s2 + $0x170] sm:$0xff]   ;;  %v9414_v46 = vld [vmem:[#allocation2 + $0xa4] ss:$8 sps:$4 sm:$0xff]   ;;  %v1307_v15 = vshll.u32 %v9382_v35, 16 }
  0x54   : > { %7737 = vmatprep.subr.bf16.mxu0 %v8748_v16  ;;  %8688 = vmatprep.subr.bf16.mxu1 %v8748_v16  ;;  %v8775_v39 = vld [vmem:[%s11121_s2 + $0xf0] sm:$0xff]   ;;  %v8785_v47 = vld [vmem:[%s11121_s2 + $0xe8] sm:$0xff]   ;;  %v8793_v50 = vld [vmem:[%s11121_s2 + $0x160] sm:$0xff]  }
  0x55   : > { %v8774_v40 = vld [vmem:[%s11121_s2 + $0x130] sm:$0xff]   ;;  %v8784_v48 = vld [vmem:[%s11121_s2 + $0x128] sm:$0xff]   ;;  %v8795_v51 = vld [vmem:[%s11121_s2 + $0xe0] sm:$0xff]  }
  0x56   : > { %v8776_v41 = vld [vmem:[%s11121_s2 + $0xb0] sm:$0xff]   ;;  %v8786_v49 = vld [vmem:[%s11121_s2 + $0xa8] sm:$0xff]   ;;  %v8794_v54 = vld [vmem:[%s11121_s2 + $0x120] sm:$0xff]  }
  0x57   : > { %7738 = vmatpush3.bf16.msra.mxu0 %v8749_v17  ;;  %8696 = vmatpush3.bf16.msra.mxu1 %v8749_v17  ;;  %v9435_v52 = vld [vmem:[#allocation2 + $0x20] ss:$8 sps:$4 sm:$0xff]   ;;  %v9445_v56 = vld [vmem:[#allocation2 + $0x34] ss:$8 sps:$4 sm:$0xff]   ;;  %v9465_v62 = vld [vmem:[#allocation2 + $0x30] ss:$8 sps:$4 sm:$0xff]  }
  0x58   : > { %7739 = vmatprep.subr.bf16.mxu0 %v8750_v18  ;;  %8689 = vmatprep.subr.bf16.mxu1 %v8750_v18  ;;  %v9437_v53 = vld [vmem:[#allocation2 + $0xa0] ss:$8 sps:$4 sm:$0xff]   ;;  %v9447_v57 = vld [vmem:[#allocation2 + $0xb4] ss:$8 sps:$4 sm:$0xff]   ;;  %v9467_v63 = vld [vmem:[#allocation2 + $0xb0] ss:$8 sps:$4 sm:$0xff]  }
  0x59   : > { %v8796_v55 = vld [vmem:[%s11121_s2 + $0xa0] sm:$0xff]   ;;  %v8803_v58 = vld [vmem:[%s11121_s2 + $0x158] sm:$0xff]   ;;  %v8813_v0 = vld [vmem:[%s11121_s2 + $0x150] sm:$0xff]   ;;  %v1300_v18 = vshrl.u32 %v9347_v23, 16  ;;  %v1309_v23 = vrot.slane %v1307_v15, 1 }
  0x5a   : > { %v8804_v59 = vld [vmem:[%s11121_s2 + $0x118] sm:$0xff]   ;;  %v9472_v1 = vld [vmem:[#allocation2 + $0x44] ss:$8 sps:$4 sm:$0xff]   ;;  %v8814_v3 = vld [vmem:[%s11121_s2 + $0xd0] sm:$0xff]  }
  0x5b   : > { %7740 = vmatpush3.bf16.msra.mxu0 %v8751_v19  ;;  %8697 = vmatpush3.bf16.msra.mxu1 %v8751_v19  ;;  %v8805_v60 = vld [vmem:[%s11121_s2 + $0xd8] sm:$0xff]   ;;  %v9474_v2 = vld [vmem:[#allocation2 + $0xc4] ss:$8 sps:$4 sm:$0xff]   ;;  %v8815_v4 = vld [vmem:[%s11121_s2 + $0x110] sm:$0xff]   ;;  %v1290_v19 = vshll.u32 %v9380_v34, 16 }
  0x5c   : > { %7741 = vmatprep.subr.bf16.mxu0 %v8752_v20  ;;  %8690 = vmatprep.subr.bf16.mxu1 %v8752_v20  ;;  %v8806_v61 = vld [vmem:[%s11121_s2 + $0x98] sm:$0xff]   ;;  %v8816_v5 = vld [vmem:[%s11121_s2 + $0x90] sm:$0xff]   ;;  %v8823_v6 = vld [vmem:[%s11121_s2 + $0xc8] sm:$0xff]   ;;  %v1304_v20 = vrot.slane %v1302_v13, 1 }
  0x5d   : > { %v8824_v7 = vld [vmem:[%s11121_s2 + $0x148] sm:$0xff]   ;;  %v9502_v11 = vld [vmem:[#allocation2 + $0x54] ss:$8 sps:$4 sm:$0xff]   ;;  %v8827_v14 = vld [vmem:[%s11121_s2 + $0xc0] sm:$0xff]  }
  0x5e   : > { %v9495_v8 = vld [vmem:[#allocation2 + $0x40] ss:$8 sps:$4 sm:$0xff]   ;;  %v9512_v16 = vld [vmem:[#allocation2 + $0xd4] ss:$8 sps:$4 sm:$0xff]  }
  0x5f   : > { %7742 = vmatpush3.bf16.msra.mxu0 %v8753_v25  ;;  %8698 = vmatpush3.bf16.msra.mxu1 %v8753_v25  ;;  %v9497_v9 = vld [vmem:[#allocation2 + $0xc0] ss:$8 sps:$4 sm:$0xff]  }
  0x60   : > { %7743 = vmatprep.subr.bf16.mxu0 %v8754_v26  ;;  %8691 = vmatprep.subr.bf16.mxu1 %v8754_v26  ;;  %v8825_v10 = vld [vmem:[%s11121_s2 + $0x88] sm:$0xff]   ;;  %v8828_v17 = vld [vmem:[%s11121_s2 + $0x80] sm:$0xff]   ;;  %v1419_v26 = vshll.u32 %v9349_v24, 16 }
  0x61   : > { %v8826_v12 = vld [vmem:[%s11121_s2 + $0x108] sm:$0xff]   ;;  %v8832_v25 = vld [vmem:[%s11121_s2 + $0x140] sm:$0xff]  }
  0x63   : > { %7744 = vmatpush3.bf16.msra.mxu0 %v8755_v27  ;;  %8699 = vmatpush3.bf16.msra.mxu1 %v8755_v27  ;;  %v8833_v27 = vld [vmem:[%s11121_s2 + $0x100] sm:$0xff]  }
  0x64   : > { %7745 = vmatprep.subr.bf16.mxu0 %v8756_v28  ;;  %8692 = vmatprep.subr.bf16.mxu1 %v8756_v28  ;;  %v9531_v28 = vld [vmem:[#allocation2 + $0x50] ss:$8 sps:$4 sm:$0xff]  }
  0x67   : > { %7746 = vmatpush3.bf16.msra.mxu0 %v8757_v29  ;;  %8700 = vmatpush3.bf16.msra.mxu1 %v8757_v29  ;;  %v1292_v29 = vrot.slane %v1290_v19, 1  ;;  %v1427_v19 = vshll.u32 %v9407_v43, 16 }
  0x68   : > { %7943 = vmatprep.subr.bf16.mxu0 %v8763_v30  ;;  %7837 = vmatprep.subr.bf16.mxu1 %v8765_v32  ;;  %v8834_v30 = vld [vmem:[%s11121_s2 + $0x1f8] sm:$0xff]  }
  0x69   : > { %v9536_v32 = vld [vmem:[#allocation2 + $0xd0] ss:$8 sps:$4 sm:$0xff]  }
  0x6a   : > { %947 = vmatmul.mubr.bf16.vlgmr.msra.gmra.mxu0 %v9380_v34  ;;  %1011 = vmatmul.mubr.bf16.vlgmr.msra.gmra.mxu1 %v9371_v31  ;;  %v8838_v34 = vld [vmem:[%s11121_s2 + $0x278] sm:$0xff]  }
  0x6b   : > { %7944 = vmatpush3.bf16.msra.mxu0 %v8764_v33  ;;  %954 = vmatprep.mubr.bf16.mxu0 %v9382_v35  ;;  %v1295_v33 = vshll.u32 %v9405_v42, 16 }
  0x6c   : > { %1018 = vmatprep.mubr.bf16.mxu1 %v9384_v36  ;;  %7838 = vmatpush3.bf16.msra.mxu1 %v8770_v37  ;;  %v9542_v37 = vld [vmem:[#allocation2 + $0x64] ss:$8 sps:$4 sm:$0xff]  }
  0x6d   : > { %7945 = vmatprep.subr.bf16.mxu0 %v8773_v38  ;;  %7839 = vmatprep.subr.bf16.mxu1 %v8775_v39  ;;  %v9544_v38 = vld [vmem:[#allocation2 + $0xe4] ss:$8 sps:$4 sm:$0xff]   ;;  %v1319_v39 = vshrl.u32 %v9382_v35, 16 }
  0x6f   : > { %7946 = vmatpush3.bf16.msra.mxu0 %v8774_v40  ;;  %v2095_v40 = vrot.slane %v9405_v42, 1  ;;  %v1321_v13 = vor.u32 %v1319_v39, %v1309_v23 }
  0x70   : > { %7840 = vmatpush3.bf16.msra.mxu1 %v8776_v41  ;;  %7947 = vmatprep.subr.bf16.mxu0 %v8783_v44  ;;  %v1297_v41 = vrot.slane %v1295_v33, 1  ;;  %v2098_v44 = vrot.slane %v9382_v35, 1  ;;  %v1429_v33 = vrot.slane %v1427_v19, 1  ;;  %v8841_v19 = vld [vmem:[%s11121_s2 + $0x1b0] sm:$0xff]  }
  0x71   : > { %7841 = vmatprep.subr.bf16.mxu1 %v8785_v47  ;;  %v1323_v47 = vshll.u32 %v9412_v45, 16 }
  0x72   : > { %955 = vmatmul.mubr.bf16.gmra.mxu0 %v9405_v42  ;;  %1019 = vmatmul.mubr.bf16.gmra.mxu1 %v9407_v43 }
  0x73   : > { %962 = vmatprep.mubr.bf16.mxu0 %v9412_v45  ;;  %1026 = vmatprep.mubr.bf16.mxu1 %v9414_v46 }
  0x74   : > { %7948 = vmatpush3.bf16.msra.mxu0 %v8784_v48  ;;  %7842 = vmatpush3.bf16.msra.mxu1 %v8786_v49  ;;  %v1315_v48 = vshll.u32 %v9435_v52, 16  ;;  %v9555_v49 = vld [vmem:[#allocation2 + $0x60] ss:$8 sps:$4 sm:$0xff]  }
  0x75   : > { %7949 = vmatprep.subr.bf16.mxu0 %v8793_v50  ;;  %7843 = vmatprep.subr.bf16.mxu1 %v8795_v51  ;;  %v9557_v50 = vld [vmem:[#allocation2 + $0xe0] ss:$8 sps:$4 sm:$0xff]   ;;  %v1305_v51 = vor.u32 %v1304_v20, %v1300_v18  ;;  %v1423_v18 = vshrl.u32 %v9371_v31, 16  ;;  %v9581_v20 = vld [vmem:[#allocation2 + $0x70] ss:$8 sps:$4 sm:$0xff]  }
  0x78   : > { %7950 = vmatpush3.bf16.msra.mxu0 %v8794_v54  ;;  %7844 = vmatpush3.bf16.msra.mxu1 %v8796_v55  ;;  %v1904_v54 = vld [vmem:[#allocation2] sm:$0xee]  ;;  %v9559_v55 = vld [vmem:[#allocation2 + $0x74] ss:$8 sps:$4 sm:$0xff]  }
  0x79   : > { %7951 = vmatprep.subr.bf16.mxu0 %v8803_v58  ;;  %7845 = vmatprep.subr.bf16.mxu1 %v8805_v60  ;;  %v1311_v58 = vshrl.u32 %v9405_v42, 16  ;;  %v7053_v60 = vcombine.high %v1904_v54, %v9344_v22  ;;  %v1487_v42 = vshrl.u32 %v9497_v9, 16 }
  0x7a   : > { %963 = vmatmul.mubr.bf16.gmra.mxu0 %v9435_v52  ;;  %1027 = vmatmul.mubr.bf16.gmra.mxu1 %v9437_v53 }
  0x7b   : > { %970 = vmatprep.mubr.bf16.mxu0 %v9445_v56  ;;  %1034 = vmatprep.mubr.bf16.mxu1 %v9447_v57  ;;  %v2097_v15 = vrot.slane %v7053_v60, 1 }
  0x7c   : > { %7952 = vmatpush3.bf16.msra.mxu0 %v8804_v59  ;;  %7846 = vmatpush3.bf16.msra.mxu1 %v8806_v61  ;;  %v9562_v59 = vrot.slane %v1419_v26, 1  ;;  %v1411_v61 = vshll.u32 %v9371_v31, 16 }
  0x7d   : > { %7953 = vmatprep.subr.bf16.mxu0 %v8813_v0  ;;  %7847 = vmatprep.subr.bf16.mxu1 %v8814_v3  ;;  %v1431_v0 = vshrl.u32 %v9349_v24, 16  ;;  %v1310_v3 = vsel %vm1286_vm0, %v1305_v51, %v1309_v23  ;;  %v1447_v23 = vshrl.u32 %v9384_v36, 16  ;;  %v2099_v51 = vsel %vm2093_vm1, %v2097_v15, %v2098_v44 }
  0x80   : > { %7954 = vmatpush3.bf16.msra.mxu0 %v8815_v4  ;;  %7848 = vmatpush3.bf16.msra.mxu1 %v8816_v5  ;;  %v1293_v4 = vor.u32 %v1292_v29, %v1288_v21  ;;  %v1325_v5 = vrot.slane %v1323_v47, 1  ;;  %v1339_v29 = vshll.u32 %v9445_v56, 16  ;;  %v1451_v47 = vshll.u32 %v9414_v46, 16 }
  0x81   : > { %7849 = vmatprep.subr.bf16.mxu1 %v8823_v6  ;;  %7955 = vmatprep.subr.bf16.mxu0 %v8824_v7  ;;  %v1435_v6 = vshll.u32 %v9384_v36, 16  ;;  %v9569_v7 = vrot.slane %v1315_v48, 1  ;;  %v7052_v48 = vcombine.low %v1904_v54, %v9344_v22  ;;  %v1467_v22 = vshll.u32 %v9447_v57, 16 }
  0x82   : > { %971 = vmatmul.mubr.bf16.gmra.mxu0 %v9465_v62  ;;  %1035 = vmatmul.mubr.bf16.gmra.mxu1 %v9467_v63  ;;  %v1298_v21 = vsel %vm1286_vm0, %v1293_v4, %v1297_v41  ;;  %v1326_v31 = vsel %vm1286_vm0, %v1321_v13, %v1325_v5  ;;  %v1453_v60 = vrot.slane %v1451_v47, 1  ;;  %v1341_v54 = vrot.slane %v1339_v29, 1  ;;  %v8840_v4 = vld [vmem:[%s11121_s2 + $0x1f0] sm:$0xff]  }
  0x83   : > { %978 = vmatprep.mubr.bf16.mxu0 %v9472_v1  ;;  %1042 = vmatprep.mubr.bf16.mxu1 %v9474_v2  ;;  %v1437_v24 = vrot.slane %v1435_v6, 1  ;;  %v2094_v15 = vrot.slane %v7052_v48, 1  ;;  %v1483_v47 = vshll.u32 %v9474_v2, 16 }
  0x84   : > { %7850 = vmatpush3.bf16.msra.mxu1 %v8825_v10  ;;  %7956 = vmatpush3.bf16.msra.mxu0 %v8826_v12  ;;  %v1335_v10 = vshrl.u32 %v9412_v45, 16  ;;  %v1433_v12 = vor.u32 %v1431_v0, %v9562_v59  ;;  %v1463_v0 = vshrl.u32 %v9414_v46, 16 }
  0x85   : > { %7851 = vmatprep.subr.bf16.mxu1 %v8827_v14  ;;  %7957 = vmatprep.subr.bf16.mxu0 %v8832_v25  ;;  %v2102_v14 = vrot.slane %v9412_v45, 1  ;;  %v1327_v25 = vshrl.u32 %v9435_v52, 16  ;;  %v1449_v39 = vor.u32 %v1447_v23, %v1437_v24  ;;  %v2096_v48 = vsel %vm2093_vm1, %v2094_v15, %v2095_v40  ;;  %v8852_v45 = vld [vmem:[%s11121_s2 + $0x1d8] sm:$0xff]  }
  0x86   : > { %v9586_v26 = vsel %vm1286_vm0, %v1433_v12, %v1437_v24  ;;  %v1465_v46 = vor.u32 %v1463_v0, %v1453_v60  ;;  %v1469_v24 = vrot.slane %v1467_v22, 1  ;;  %v1337_v23 = vor.u32 %v1335_v10, %v1325_v5 }
  0x87   : > { %v9615_v12 = vsel %vm1286_vm0, %v1449_v39, %v1453_v60  ;;  %v1351_v39 = vshrl.u32 %v9445_v56, 16  ;;  %v2106_v5 = vrot.slane %v9445_v56, 1  ;;  %v1479_v10 = vshrl.u32 %v9447_v57, 16  ;;  %v8842_v57 = vld [vmem:[%s11121_s2 + $0x270] sm:$0xff]   ;;  %v8869_v56 = vld [vmem:[%s11121_s2 + $0x188] sm:$0xff]  }
  0x88   : > { %7852 = vmatpush3.bf16.msra.mxu1 %v8828_v17  ;;  %7958 = vmatpush3.bf16.msra.mxu0 %v8833_v27  ;;  %v9577_v17 = vrot.slane %v1411_v61, 1  ;;  %v1313_v27 = vor.u32 %v1311_v58, %v1297_v41  ;;  %v1439_v41 = vshrl.u32 %v9407_v43, 16  ;;  %v8837_v58 = vld [vmem:[%s11121_s2 + $0x1b8] sm:$0xff]   ;;  %v1443_v61 = vshll.u32 %v9437_v53, 16 }
  0x89   : > { %8049 = vmatprep.subr.bf16.mxu1 %v8834_v30  ;;  %8155 = vmatprep.subr.bf16.mxu0 %v8838_v34  ;;  %v1331_v34 = vshll.u32 %v9465_v62, 16  ;;  %v1455_v43 = vshrl.u32 %v9437_v53, 16  ;;  %v1459_v53 = vshll.u32 %v9467_v63, 16  ;;  %v9627_v29 = vsel %vm1286_vm0, %v1465_v46, %v1469_v24 }
  0x8a   : > { %979 = vmatmul.mubr.bf16.gmra.mxu0 %v9495_v8  ;;  %1043 = vmatmul.mubr.bf16.gmra.mxu1 %v9497_v9  ;;  %v1425_v30 = vor.u32 %v1423_v18, %v9577_v17  ;;  %v1441_v6 = vor.u32 %v1439_v41, %v1429_v33  ;;  %v1445_v13 = vrot.slane %v1443_v61, 1  ;;  %v1342_v60 = vsel %vm1286_vm0, %v1337_v23, %v1341_v54  ;;  %v8845_v61 = vld [vmem:[%s11121_s2 + $0x1a8] sm:$0xff]  }
  0x8b   : > { %986 = vmatprep.mubr.bf16.mxu0 %v9502_v11  ;;  %1050 = vmatprep.mubr.bf16.mxu1 %v9512_v16  ;;  %v9617_v18 = vrot.slane %v1331_v34, 1  ;;  %v1461_v34 = vrot.slane %v1459_v53, 1  ;;  %v1481_v0 = vor.u32 %v1479_v10, %v1469_v24  ;;  %v1485_v22 = vrot.slane %v1483_v47, 1  ;;  %v8846_v53 = vld [vmem:[%s11121_s2 + $0x268] sm:$0xff]  }
  0x8c   : > { %v9599_v36 = vsel %vm1286_vm0, %v1425_v30, %v1429_v33  ;;  %v1457_v30 = vor.u32 %v1455_v43, %v1445_v13  ;;  %v1318_v33 = vsel %vm1286_vm0, %v1313_v27, %v9569_v7  ;;  %v8839_v27 = vld [vmem:[%s11121_s2 + $0x238] sm:$0xff]   ;;  %v8848_v43 = vld [vmem:[%s11121_s2 + $0x1e0] sm:$0xff]   ;;  %v1495_v46 = vshrl.u32 %v9474_v2, 16  ;;  %v8843_v2 = vld [vmem:[%s11121_s2 + $0x230] sm:$0xff]  }
  0x8d   : > { %v1353_v24 = vor.u32 %v1351_v39, %v1341_v54  ;;  %v1343_v15 = vshrl.u32 %v9465_v62, 16  ;;  %v1511_v39 = vshrl.u32 %v9512_v16, 16  ;;  %v1371_v10 = vshll.u32 %v9502_v11, 16 }
  0x8e   : > { %v9646_v41 = vsel %vm1286_vm0, %v1457_v30, %v1461_v34  ;;  %v1491_v30 = vshll.u32 %v9536_v32, 16 }
  0x92   : > { %987 = vmatmul.mubr.bf16.gmra.mxu0 %v9531_v28  ;;  %1051 = vmatmul.mubr.bf16.gmra.mxu1 %v9536_v32 }
  0x93   : > { %994 = vmatprep.mubr.bf16.mxu0 %v9542_v37  ;;  %1058 = vmatprep.mubr.bf16.mxu1 %v9544_v38 }
  0x9a   : > { %995 = vmatmul.mubr.bf16.gmra.mxu0 %v9555_v49  ;;  %1059 = vmatmul.mubr.bf16.gmra.mxu1 %v9557_v50 }
  0x9b   : > { %1002 = vmatprep.mubr.bf16.mxu0 %v9559_v55  ;;  %1693 = vmatprep.mubr.bf16.mxu1 %v1310_v3  ;;  %v2100_v3 = vrot.slane %v9435_v52, 1  ;;  %v8855_v52 = vld [vmem:[%s11121_s2 + $0x218] sm:$0xff]  }
  0x9d   : > { %v2101_v35 = vsel %vm2093_vm1, %v2095_v40, %v2100_v3 }
  0xa2   : > { %1003 = vmatmul.mubr.bf16.gmra.mxu0 %v9581_v20  ;;  %1694 = vmatmul.mubr.bf16.vlgmr.msra.gmra.mxu1 %v1298_v21  ;;  %v9624_v21 = vsel %vm1286_vm0, %v1441_v6, %v1445_v13  ;;  %v1329_v6 = vor.u32 %v1327_v25, %v9569_v7  ;;  %v1499_v25 = vshll.u32 %v9512_v16, 16  ;;  %v8847_v16 = vld [vmem:[%s11121_s2 + $0x228] sm:$0xff]  }
  0xa3   : > { %1701 = vmatprep.mubr.bf16.mxu1 %v1326_v31  ;;  %2314 = vmatprep.mubr.bf16.mxu0 %v2099_v51  ;;  %v8844_v31 = vld [vmem:[%s11121_s2 + $0x1e8] sm:$0xff]   ;;  %v1355_v51 = vshll.u32 %v9472_v1, 16 }
  0xa4   : > { %8050 = vmatpush3.bf16.msra.mxu1 %v8837_v58  ;;  %v1471_v58 = vshrl.u32 %v9467_v63, 16  ;;  %v2103_v63 = vsel %vm2093_vm1, %v2098_v44, %v2102_v14  ;;  %v9675_v44 = vsel %vm1286_vm0, %v1481_v0, %v1485_v22  ;;  %v1501_v54 = vrot.slane %v1499_v25, 1 }
  0xa5   : > { %8051 = vmatprep.subr.bf16.mxu1 %v8840_v4  ;;  %v1475_v4 = vshll.u32 %v9497_v9, 16  ;;  %v1357_v40 = vrot.slane %v1355_v51, 1  ;;  %v8849_v9 = vld [vmem:[%s11121_s2 + $0x1a0] sm:$0xff]   ;;  %v1334_v51 = vsel %vm1286_vm0, %v1329_v6, %v9617_v18  ;;  %v1373_v25 = vrot.slane %v1371_v10, 1 }
  0xa6   : > { %v1473_v13 = vor.u32 %v1471_v58, %v1461_v34  ;;  %v2107_v58 = vsel %vm2093_vm1, %v2102_v14, %v2106_v5 }
  0xa7   : > { %v1477_v7 = vrot.slane %v1475_v4, 1 }
  0xa8   : > { %8052 = vmatpush3.bf16.msra.mxu1 %v8841_v19  ;;  %v1497_v19 = vor.u32 %v1495_v46, %v1485_v22  ;;  %v1507_v22 = vshll.u32 %v9557_v50, 16  ;;  %v1345_v50 = vor.u32 %v1343_v15, %v9617_v18  ;;  %v2104_v46 = vrot.slane %v9465_v62, 1  ;;  %v8854_v62 = vld [vmem:[%s11121_s2 + $0x258] sm:$0xff]  }
  0xa9   : > { %8053 = vmatprep.subr.bf16.mxu1 %v8844_v31  ;;  %v9687_v23 = vsel %vm1286_vm0, %v1473_v13, %v1477_v7  ;;  %v1367_v31 = vshrl.u32 %v9472_v1, 16  ;;  %v1489_v34 = vor.u32 %v1487_v42, %v1477_v7  ;;  %v1363_v42 = vshll.u32 %v9531_v28, 16 }
  0xaa   : > { %1702 = vmatmul.mubr.bf16.gmra.mxu1 %v1318_v33  ;;  %2315 = vmatmul.mubr.bf16.vlgmr.msra.gmra.mxu0 %v2096_v48  ;;  %v1347_v33 = vshll.u32 %v9495_v8, 16  ;;  %v9698_v47 = vsel %vm1286_vm0, %v1497_v19, %v1501_v54  ;;  %v1493_v48 = vrot.slane %v1491_v30, 1  ;;  %v2105_v15 = vsel %vm2093_vm1, %v2100_v3, %v2104_v46  ;;  %v8862_v3 = vld [vmem:[%s11121_s2 + $0x250] sm:$0xff]  }
  0xab   : > { %8156 = vmatpush3.bf16.msra.mxu0 %v8839_v27  ;;  %1709 = vmatprep.mubr.bf16.mxu1 %v1342_v60  ;;  %v1515_v27 = vshll.u32 %v9544_v38, 16  ;;  %v1513_v60 = vor.u32 %v1511_v39, %v1501_v54  ;;  %v8850_v38 = vld [vmem:[%s11121_s2 + $0x260] sm:$0xff]   ;;  %v1369_v7 = vor.u32 %v1367_v31, %v1357_v40  ;;  %v1359_v19 = vshrl.u32 %v9495_v8, 16 }
  0xac   : > { %2322 = vmatprep.mubr.bf16.mxu0 %v2103_v63  ;;  %8157 = vmatprep.subr.bf16.mxu0 %v8842_v57  ;;  %v1503_v57 = vshrl.u32 %v9536_v32, 16  ;;  %v9720_v14 = vsel %vm1286_vm0, %v1489_v34, %v1493_v48  ;;  %v8853_v32 = vld [vmem:[%s11121_s2 + $0x198] sm:$0xff]   ;;  %v8860_v63 = vld [vmem:[%s11121_s2 + $0x1d0] sm:$0xff]   ;;  %v1349_v13 = vrot.slane %v1347_v33, 1  ;;  %v1383_v54 = vshrl.u32 %v9502_v11, 16  ;;  %v8868_v33 = vld [vmem:[%s11121_s2 + $0x1c8] sm:$0xff]  }
  0xad   : > { %8054 = vmatpush3.bf16.msra.mxu1 %v8845_v61  ;;  %v1358_v61 = vsel %vm1286_vm0, %v1353_v24, %v1357_v40  ;;  %v9722_v0 = vrot.slane %v1515_v27, 1  ;;  %v8851_v24 = vld [vmem:[%s11121_s2 + $0x220] sm:$0xff]   ;;  %v1374_v40 = vsel %vm1286_vm0, %v1369_v7, %v1373_v25  ;;  %v1387_v30 = vshll.u32 %v9542_v37, 16  ;;  %v8863_v27 = vld [vmem:[%s11121_s2 + $0x210] sm:$0xff]  }
  0xae   : > { %8055 = vmatprep.subr.bf16.mxu1 %v8848_v43  ;;  %v1505_v4 = vor.u32 %v1503_v57, %v1493_v48  ;;  %v9735_v43 = vrot.slane %v1507_v22, 1  ;;  %v1350_v18 = vsel %vm1286_vm0, %v1345_v50, %v1349_v13  ;;  %v1361_v31 = vor.u32 %v1359_v19, %v1349_v13  ;;  %v8871_v57 = vld [vmem:[%s11121_s2 + $0x208] sm:$0xff]  }
  0xaf   : > { %8158 = vmatpush3.bf16.msra.mxu0 %v8843_v2  ;;  %v9733_v6 = vsel %vm1286_vm0, %v1513_v60, %v9722_v0  ;;  %v2108_v34 = vrot.slane %v9495_v8, 1  ;;  %v1385_v39 = vor.u32 %v1383_v54, %v1373_v25  ;;  %v1389_v10 = vrot.slane %v1387_v30, 1  ;;  %v8880_v8 = vld [vmem:[%s11121_s2 + $0x180] sm:$0xff]  }
  0xb0   : > { %8159 = vmatprep.subr.bf16.mxu0 %v8846_v53  ;;  %v9745_v2 = vsel %vm1286_vm0, %v1505_v4, %v9735_v43  ;;  %v2114_v48 = vrot.slane %v9502_v11, 1  ;;  %v1379_v60 = vshll.u32 %v9555_v49, 16  ;;  %v1403_v22 = vshll.u32 %v9559_v55, 16  ;;  %v8881_v4 = vld [vmem:[%s11121_s2 + $0x240] sm:$0xff]  }
  0xb1   : > { %8056 = vmatpush3.bf16.msra.mxu1 %v8849_v9  ;;  %v1365_v9 = vrot.slane %v1363_v42, 1  ;;  %v2118_v25 = vrot.slane %v9542_v37, 1  ;;  %v1415_v19 = vshrl.u32 %v9559_v55, 16  ;;  %v2122_v30 = vrot.slane %v9559_v55, 1  ;;  %v9107_v55 = vld [vmem:[#allocation2 + $0x84] ss:$8 sps:$4 sm:$0xff]  }
  0xb2   : > { %1710 = vmatmul.mubr.bf16.gmra.mxu1 %v1334_v51  ;;  %2323 = vmatmul.mubr.bf16.gmra.mxu0 %v2101_v35  ;;  %v2110_v35 = vrot.slane %v9472_v1, 1  ;;  %v8861_v1 = vld [vmem:[%s11121_s2 + $0x190] sm:$0xff]   ;;  %v8870_v51 = vld [vmem:[%s11121_s2 + $0x248] sm:$0xff]   ;;  %v1381_v13 = vrot.slane %v1379_v60, 1  ;;  %v1405_v7 = vrot.slane %v1403_v22, 1 }
  0xb3   : > { %1717 = vmatprep.mubr.bf16.mxu1 %v1358_v61  ;;  %2330 = vmatprep.mubr.bf16.mxu0 %v2107_v58  ;;  %v1375_v58 = vshrl.u32 %v9531_v28, 16  ;;  %v1366_v11 = vsel %vm1286_vm0, %v1361_v31, %v1365_v9  ;;  %v1390_v61 = vsel %vm1286_vm0, %v1385_v39, %v1389_v10  ;;  %v2120_v39 = vrot.slane %v9581_v20, 1 }
  0xb4   : > { %8160 = vmatpush3.bf16.msra.mxu0 %v8847_v16  ;;  %8057 = vmatprep.subr.bf16.mxu1 %v8852_v45  ;;  %v2111_v53 = vsel %vm2093_vm1, %v2106_v5, %v2110_v35  ;;  %v8877_v5 = vld [vmem:[%s11121_s2 + $0x1c0] sm:$0xff]   ;;  %v2109_v16 = vsel %vm2093_vm1, %v2104_v46, %v2108_v34  ;;  %v1399_v45 = vshrl.u32 %v9542_v37, 16  ;;  %v1417_v54 = vor.u32 %v1415_v19, %v1405_v7 }
  0xb5   : > { %8161 = vmatprep.subr.bf16.mxu0 %v8850_v38  ;;  %8058 = vmatpush3.bf16.msra.mxu1 %v8853_v32  ;;  %v2115_v38 = vsel %vm2093_vm1, %v2110_v35, %v2114_v48  ;;  %v8888_v32 = vld [vmem:[%s11121_s2 + $0x2f8] sm:$0xff]   ;;  %v1377_v50 = vor.u32 %v1375_v58, %v1365_v9  ;;  %v8882_v35 = vld [vmem:[%s11121_s2 + $0x200] sm:$0xff]   ;;  %v1407_v9 = vshrl.u32 %v9581_v20, 16 }
  0xb6   : > { %8059 = vmatprep.subr.bf16.mxu1 %v8860_v63  ;;  %v2112_v63 = vrot.slane %v9531_v28, 1  ;;  %v1401_v46 = vor.u32 %v1399_v45, %v1389_v10  ;;  %v2126_v10 = vrot.slane %v9107_v55, 1 }
  0xb7   : > { %v1382_v28 = vsel %vm1286_vm0, %v1377_v50, %v1381_v13 }
  0xb8   : > { %8162 = vmatpush3.bf16.msra.mxu0 %v8851_v24  ;;  %v8893_v24 = vld [vmem:[%s11121_s2 + $0x378] sm:$0xff]   ;;  %v1406_v37 = vsel %vm1286_vm0, %v1401_v46, %v1405_v7  ;;  %v1925_v7 = vld [vmem:[#allocation2 + $0xa8] sm:$0xff] }
  0xb9   : > { %8163 = vmatprep.subr.bf16.mxu0 %v8854_v62  ;;  %8060 = vmatpush3.bf16.msra.mxu1 %v8861_v1  ;;  %v2113_v62 = vsel %vm2093_vm1, %v2108_v34, %v2112_v63  ;;  %v1391_v1 = vshrl.u32 %v9555_v49, 16  ;;  %v1422_v34 = vsel %vm1286_vm0, %v1417_v54, %v9562_v59 }
  0xba   : > { %1718 = vmatmul.mubr.bf16.gmra.mxu1 %v1350_v18  ;;  %2331 = vmatmul.mubr.bf16.gmra.mxu0 %v2105_v15  ;;  %v1395_v18 = vshll.u32 %v9581_v20, 16  ;;  %v2119_v15 = vsel %vm2093_vm1, %v2114_v48, %v2118_v25  ;;  %v1923_v48 = vld [vmem:[#allocation2 + $0x98] sm:$0xff] }
  0xbb   : > { %1725 = vmatprep.mubr.bf16.mxu1 %v1374_v40  ;;  %2338 = vmatprep.mubr.bf16.mxu0 %v2111_v53  ;;  %v1393_v42 = vor.u32 %v1391_v1, %v1381_v13  ;;  %v2116_v53 = vrot.slane %v9555_v49, 1  ;;  %v2123_v49 = vsel %vm2093_vm1, %v2118_v25, %v2122_v30  ;;  %v2127_v13 = vsel %vm2093_vm1, %v2122_v30, %v2126_v10 }
  0xbc   : > { %8164 = vmatpush3.bf16.msra.mxu0 %v8855_v52  ;;  %8061 = vmatprep.subr.bf16.mxu1 %v8868_v33  ;;  %v1397_v40 = vrot.slane %v1395_v18, 1  ;;  %v1922_v52 = vld [vmem:[#allocation2 + $0x90] sm:$0xff] }
  0xbd   : > { %8165 = vmatprep.subr.bf16.mxu0 %v8862_v3  ;;  %8062 = vmatpush3.bf16.msra.mxu1 %v8869_v56  ;;  %v2539_v3 = vld [vmem:[#allocation2 + $0x88] sm:$0xff]  ;;  %v2117_v31 = vsel %vm2093_vm1, %v2112_v63, %v2116_v53  ;;  %v9858_v63 = vld [vmem:[#allocation2 + $0xb0] sm:$0xff]  ;;  %v7071_v46 = vcombine.high %v1922_v52, %v1923_v48 }
  0xbe   : > { %8063 = vmatprep.subr.bf16.mxu1 %v8877_v5  ;;  %v9825_v33 = vcombine.low %v2539_v3, %v1922_v52  ;;  %v9827_v56 = vcombine.high %v2539_v3, %v1922_v52  ;;  %v1398_v5 = vsel %vm1286_vm0, %v1393_v42, %v1397_v40  ;;  %v1409_v59 = vor.u32 %v1407_v9, %v1397_v40 }
  0xc0   : > { %8166 = vmatpush3.bf16.msra.mxu0 %v8863_v27  ;;  %v9836_v27 = vld [vmem:[#allocation2 + $0xa0] sm:$0xff]  ;;  %v3394_v60 = vshrl.u32 %v9827_v56, 16 }
  0xc1   : > { %8167 = vmatprep.subr.bf16.mxu0 %v8870_v51  ;;  %8064 = vmatpush3.bf16.msra.mxu1 %v8880_v8  ;;  %v3382_v51 = vshll.u32 %v9827_v56, 16  ;;  %v3374_v8 = vshll.u32 %v9825_v33, 16  ;;  %v9841_v58 = vcombine.high %v1923_v48, %v9836_v27  ;;  %v7073_v40 = vcombine.high %v9836_v27, %v1925_v7 }
  0xc2   : > { %1726 = vmatmul.mubr.bf16.gmra.mxu1 %v1366_v11  ;;  %2339 = vmatmul.mubr.bf16.gmra.mxu0 %v2109_v16  ;;  %v9848_v16 = vcombine.low %v1923_v48, %v9836_v27 }
  0xc3   : > { %1733 = vmatprep.mubr.bf16.mxu1 %v1390_v61  ;;  %2346 = vmatprep.mubr.bf16.mxu0 %v2115_v38  ;;  %v9843_v11 = vrot.slane %v3382_v51, 1  ;;  %v9845_v20 = vrot.slane %v3374_v8, 1  ;;  %v3386_v61 = vshrl.u32 %v9825_v33, 16  ;;  %v3410_v19 = vshrl.u32 %v9841_v58, 16  ;;  %v2545_v51 = vld [vmem:[#allocation2 + $0xb8] sm:$0xff] }
  0xc4   : > { %8168 = vmatpush3.bf16.msra.mxu0 %v8871_v57  ;;  %8261 = vmatprep.subr.bf16.mxu1 %v8888_v32  ;;  %v3398_v57 = vshll.u32 %v9841_v58, 16  ;;  %v3390_v22 = vshll.u32 %v9848_v16, 16  ;;  %v1414_v32 = vsel %vm1286_vm0, %v1409_v59, %v9577_v17  ;;  %v7070_v17 = vcombine.low %v1922_v52, %v1923_v48 }
  0xc5   : > { %8169 = vmatprep.subr.bf16.mxu0 %v8881_v4  ;;  %v3396_v38 = vor.u32 %v3394_v60, %v9843_v11  ;;  %v2121_v4 = vsel %vm2093_vm1, %v2116_v53, %v2120_v39  ;;  %v3388_v50 = vor.u32 %v3386_v61, %v9845_v20  ;;  %v3402_v53 = vshrl.u32 %v9848_v16, 16 }
  0xc6   : > { %v3400_v45 = vrot.slane %v3398_v57, 1  ;;  %v2128_v30 = vrot.slane %v7070_v17, 1  ;;  %v2134_v55 = vrot.slane %v7073_v40, 1 }
  0xc8   : > { %8170 = vmatpush3.bf16.msra.mxu0 %v8882_v35  ;;  %v9863_v25 = vsel %vm1286_vm0, %v3396_v38, %v3400_v45  ;;  %v3392_v35 = vrot.slane %v3390_v22, 1  ;;  %v3412_v52 = vor.u32 %v3410_v19, %v3400_v45  ;;  %v7072_v22 = vcombine.low %v9836_v27, %v1925_v7  ;;  %v1931_v19 = vld [vmem:[#allocation2 + $0xd8] sm:$0xff] }
  0xc9   : > { %8367 = vmatprep.subr.bf16.mxu0 %v8893_v24  ;;  %v9108_v24 = vld [vmem:[#allocation2 + $0x80] ss:$8 sps:$4 sm:$0xff]  }
  0xca   : > { %1734 = vmatmul.mubr.bf16.gmra.mxu1 %v1382_v28  ;;  %2347 = vmatmul.mubr.bf16.gmra.mxu0 %v2113_v62  ;;  %v2124_v28 = vrot.slane %v9108_v24, 1  ;;  %v2543_v62 = vld [vmem:[#allocation2 + $0xa8] sm:$0xff]  ;;  %v9866_v1 = vsel %vm1286_vm0, %v3388_v50, %v3392_v35  ;;  %v2132_v27 = vrot.slane %v7072_v22, 1 }
  0xcb   : > { %1741 = vmatprep.mubr.bf16.mxu1 %v1406_v37  ;;  %2354 = vmatprep.mubr.bf16.mxu0 %v2119_v15  ;;  %v9869_v18 = vcombine.high %v2543_v62, %v9858_v63  ;;  %v9873_v37 = vcombine.low %v2543_v62, %v9858_v63  ;;  %v2130_v15 = vrot.slane %v7071_v46, 1 }
  0xcc   : > { %v2133_v24 = vsel %vm2093_vm1, %v2128_v30, %v2132_v27 }
  0xcd   : > { %v3414_v42 = vshll.u32 %v9869_v18, 16  ;;  %v3406_v54 = vshll.u32 %v9873_v37, 16  ;;  %v3418_v57 = vshrl.u32 %v9873_v37, 16 }
  0xcf   : > { %v3416_v3 = vrot.slane %v3414_v42, 1  ;;  %v3408_v9 = vrot.slane %v3406_v54, 1 }
  0xd2   : > { %1742 = vmatmul.mubr.bf16.gmra.mxu1 %v1398_v5  ;;  %2355 = vmatmul.mubr.bf16.gmra.mxu0 %v2117_v31  ;;  %v1928_v5 = vld [vmem:[#allocation2 + $0xc0] sm:$0xff]  ;;  %v3404_v31 = vor.u32 %v3402_v53, %v3392_v35  ;;  %v1929_v35 = vld [vmem:[#allocation2 + $0xc8] sm:$0xff]  ;;  %v1127_v53 = vld [vmem:[#allocation2 + $0xf0] sm:$0x11] }
  0xd3   : > { %1749 = vmatprep.mubr.bf16.mxu1 %v1422_v34  ;;  %2362 = vmatprep.mubr.bf16.mxu0 %v2123_v49  ;;  %v2131_v34 = vsel %vm2093_vm1, %v2126_v10, %v2130_v15  ;;  %v9883_v49 = vsel %vm1286_vm0, %v3412_v52, %v3416_v3  ;;  %v9889_v8 = vcombine.high %v2545_v51, %v1928_v5  ;;  %v3426_v10 = vshrl.u32 %v9869_v18, 16 }
  0xd4   : > { %v9886_v48 = vsel %vm1286_vm0, %v3404_v31, %v3408_v9  ;;  %v9892_v59 = vcombine.low %v2545_v51, %v1928_v5  ;;  %v7077_v17 = vcombine.high %v1928_v5, %v1929_v35  ;;  %v7076_v40 = vcombine.low %v1928_v5, %v1929_v35  ;;  %v8875_v31 = vld [vmem:[#allocation2 + $0xe4] ss:$8 sps:$4 sm:$0xff]  }
  0xd5   : > { %v3430_v60 = vshll.u32 %v9889_v8, 16  ;;  %v3428_v38 = vor.u32 %v3426_v10, %v3416_v3  ;;  %v2150_v10 = vrot.slane %v8875_v31, 1 }
  0xd6   : > { %v3422_v61 = vshll.u32 %v9892_v59, 16 }
  0xd7   : > { %v9898_v45 = vrot.slane %v3430_v60, 1  ;;  %v8879_v60 = vld [vmem:[#allocation2 + $0xe0] ss:$8 sps:$4 sm:$0xff]  }
  0xda   : > { %1750 = vmatmul.mubr.bf16.gmra.mxu1 %v1414_v32  ;;  %2363 = vmatmul.mubr.bf16.gmra.mxu0 %v2121_v4  ;;  %v9902_v32 = vrot.slane %v3422_v61, 1  ;;  %v2135_v4 = vsel %vm2093_vm1, %v2130_v15, %v2134_v55  ;;  %v2142_v15 = vrot.slane %v7077_v17, 1 }
  0xdb   : > { %1757 = vmatprep.mubr.bf16.mxu1 %v9586_v26  ;;  %2370 = vmatprep.mubr.bf16.mxu0 %v2127_v13  ;;  %v2125_v26 = vsel %vm2093_vm1, %v2120_v39, %v2124_v28  ;;  %v1927_v39 = vld [vmem:[#allocation2 + $0xb8] sm:$0xff]  ;;  %v9908_v13 = vsel %vm1286_vm0, %v3428_v38, %v9898_v45  ;;  %v9110_v38 = vld [vmem:[#allocation2 + $0xe0] ss:$8 sps:$4 sm:$0xff]  }
  0xdc   : > { %v7075_v50 = vcombine.high %v9858_v63, %v1927_v39 }
  0xde   : > { %v2138_v7 = vrot.slane %v7075_v50, 1  ;;  %v2148_v50 = vrot.slane %v8879_v60, 1  ;;  %v8908_v60 = vld [vmem:[%s11121_s2 + $0x2e8] sm:$0xff]  }
  0xe0   : > { %v2139_v62 = vsel %vm2093_vm1, %v2134_v55, %v2138_v7  ;;  %v1934_v55 = vld [vmem:[#allocation2 + $0xf0] sm:$0x11] }
  0xe1   : > { %v7082_v17 = vcombine.low %v1934_v55, %v1934_v55 }
  0xe2   : > { %1758 = vmatmul.mubr.bf16.gmra.mxu1 %v9599_v36  ;;  %2371 = vmatmul.mubr.bf16.gmra.mxu0 %v2125_v26  ;;  %v2129_v36 = vsel %vm2093_vm1, %v2124_v28, %v2128_v30  ;;  %v7074_v28 = vcombine.low %v9858_v63, %v1927_v39  ;;  %v2143_v63 = vsel %vm2093_vm1, %v2138_v7, %v2142_v15  ;;  %v9109_v26 = vld [vmem:[#allocation2 + $0xe4] ss:$8 sps:$4 sm:$0xff]  }
  0xe3   : > { %1765 = vmatprep.mubr.bf16.mxu1 %v9615_v12  ;;  %2378 = vmatprep.mubr.bf16.mxu0 %v2131_v34  ;;  %v3420_v12 = vor.u32 %v3418_v57, %v3408_v9  ;;  %v7003_v30 = vcombine.high %v1127_v53, %v1127_v53  ;;  %v1527_v5 = vshrl.u32 %v9109_v26, 16  ;;  %v8886_v57 = vld [vmem:[#allocation2 + $0x1c] ss:$8 sps:$4 sm:$0xff]   ;;  %v8889_v7 = vld [vmem:[#allocation2 + $0x2c] ss:$8 sps:$4 sm:$0xff]  }
  0xe4   : > { %v3281_v35 = vshll.u32 %v8886_v57, 16  ;;  %v8892_v26 = vld [vmem:[%s11121_s2 + $0x2b8] sm:$0xff]  }
  0xe5   : > { %v9912_v46 = vsel %vm1286_vm0, %v3420_v12, %v9902_v32  ;;  %v1531_v34 = vshll.u32 %v7003_v30, 16  ;;  %v1529_v51 = vor.u32 %v1527_v5, %v9722_v0  ;;  %v3298_v5 = vshrl.u32 %v8889_v7, 16 }
  0xe7   : > { %v1533_v39 = vrot.slane %v1531_v34, 1 }
  0xea   : > { %1766 = vmatmul.mubr.bf16.gmra.mxu1 %v9624_v21  ;;  %2379 = vmatmul.mubr.bf16.gmra.mxu0 %v2129_v36  ;;  %v2136_v21 = vrot.slane %v7074_v28, 1  ;;  %v1519_v36 = vshrl.u32 %v9110_v38, 16 }
  0xeb   : > { %1773 = vmatprep.mubr.bf16.mxu1 %v9627_v29  ;;  %2386 = vmatprep.mubr.bf16.mxu0 %v2135_v4  ;;  %v9921_v29 = vld [vmem:[#allocation2 + $0xd0] sm:$0xff] }
  0xec   : > { %v2137_v42 = vsel %vm2093_vm1, %v2132_v27, %v2136_v21  ;;  %v7079_v54 = vcombine.high %v9921_v29, %v1931_v19  ;;  %v7078_v3 = vcombine.low %v9921_v29, %v1931_v19  ;;  %v1521_v0 = vor.u32 %v1519_v36, %v9735_v43 }
  0xed   : > { %v3286_v19 = vshll.u32 %v8889_v7, 16  ;;  %v2152_v43 = vrot.slane %v7082_v17, 1  ;;  %v8910_v17 = vld [vmem:[%s11121_s2 + $0x368] sm:$0xff]  }
  0xf2   : > { %1774 = vmatmul.mubr.bf16.gmra.mxu1 %v9646_v41  ;;  %2387 = vmatmul.mubr.bf16.gmra.mxu0 %v2133_v24  ;;  %v2140_v41 = vrot.slane %v7076_v40, 1 }
  0xf3   : > { %1781 = vmatprep.mubr.bf16.mxu1 %v9675_v44  ;;  %2394 = vmatprep.mubr.bf16.mxu0 %v2139_v62  ;;  %v2146_v44 = vrot.slane %v7079_v54, 1  ;;  %v8884_v62 = vld [vmem:[#allocation2 + $0x18] ss:$8 sps:$4 sm:$0xff]   ;;  %v8895_v54 = vld [vmem:[#allocation2 + $0x3c] ss:$8 sps:$4 sm:$0xff]  }
  0xf4   : > { %v2141_v52 = vsel %vm2093_vm1, %v2136_v21, %v2140_v41  ;;  %v3269_v40 = vshll.u32 %v8884_v62, 16  ;;  %v3302_v31 = vshll.u32 %v8895_v54, 16 }
  0xf5   : > { %v2147_v9 = vsel %vm2093_vm1, %v2142_v15, %v2146_v44  ;;  %v2151_v12 = vsel %vm2093_vm1, %v2146_v44, %v2150_v10  ;;  %v3279_v15 = vshrl.u32 %v8886_v57, 16  ;;  %v3267_v44 = vshrl.u32 %v8884_v62, 16 }
  0xf6   : > { %v3271_v30 = vrot.slane %v3269_v40, 1 }
  0xf8   : > { %v3272_v34 = vor.u32 %v3271_v30, %v3267_v44 }
  0xfa   : > { %1782 = vmatmul.mubr.bf16.gmra.mxu1 %v9687_v23  ;;  %2395 = vmatmul.mubr.bf16.gmra.mxu0 %v2137_v42  ;;  %v2144_v23 = vrot.slane %v7078_v3, 1  ;;  %v8891_v42 = vld [vmem:[#allocation2 + $0x28] ss:$8 sps:$4 sm:$0xff]  }
  0xfb   : > { %1789 = vmatprep.mubr.bf16.mxu1 %v9698_v47  ;;  %2402 = vmatprep.mubr.bf16.mxu0 %v2143_v63  ;;  %v7002_v47 = vcombine.low %v1127_v53, %v1127_v53  ;;  %v3288_v63 = vrot.slane %v3286_v19, 1  ;;  %v3290_v38 = vshrl.u32 %v8891_v42, 16 }
  0xfc   : > { %v2145_v61 = vsel %vm2093_vm1, %v2140_v41, %v2144_v23  ;;  %v2149_v28 = vsel %vm2093_vm1, %v2144_v23, %v2148_v50  ;;  %v2153_v41 = vsel %vm2093_vm1, %v2148_v50, %v2152_v43 }
  0xfd   : > { %v1523_v22 = vshll.u32 %v7002_v47, 16  ;;  %v8897_v47 = vld [vmem:[#allocation2 + $0x38] ss:$8 sps:$4 sm:$0xff]  }
  0xfe   : > { %v3294_v36 = vshll.u32 %v8897_v47, 16 }
  0xff   : > { %v1525_v4 = vrot.slane %v1523_v22, 1  ;;  %v3314_v22 = vshrl.u32 %v8895_v54, 16 }
 0x101   : > { %v1526_v24 = vsel %vm1286_vm0, %v1521_v0, %v1525_v4  ;;  %v8909_v0 = vld [vmem:[%s11121_s2 + $0x2a8] sm:$0xff]   ;;  %v8918_v4 = vld [vmem:[%s11121_s2 + $0x2e0] sm:$0xff]  }
 0x102   : > { %1790 = vmatmul.mubr.bf16.gmra.mxu1 %v9720_v14  ;;  %2403 = vmatmul.mubr.bf16.gmra.mxu0 %v2141_v52  ;;  %v1534_v14 = vsel %vm1286_vm0, %v1529_v51, %v1533_v39  ;;  %v3274_v52 = vshll.u32 %v8891_v42, 16  ;;  %v8900_v51 = vld [vmem:[#allocation2 + $0x4c] ss:$8 sps:$4 sm:$0xff]   ;;  %v3300_v39 = vor.u32 %v3298_v5, %v3288_v63  ;;  %v10002_v5 = vld [vmem:[#allocation2 + $0x58] ss:$8 sps:$4 sm:$0xff]  }
 0x103   : > { %1797 = vmatprep.mubr.bf16.mxu1 %v9733_v6  ;;  %2410 = vmatprep.mubr.bf16.mxu0 %v2147_v9  ;;  %v7083_v6 = vcombine.high %v1934_v55, %v1934_v55  ;;  %v8898_v9 = vld [vmem:[%s11121_s2 + $0x2f0] sm:$0xff]  }
 0x104   : > { %v3276_v23 = vrot.slane %v3274_v52, 1  ;;  %v8899_v55 = vld [vmem:[%s11121_s2 + $0x2b0] sm:$0xff]  }
 0x105   : > { %v2154_v27 = vrot.slane %v7083_v6, 1  ;;  %v8934_v52 = vld [vmem:[%s11121_s2 + $0x2d0] sm:$0xff]  }
 0x106   : > { %v3292_v50 = vor.u32 %v3290_v38, %v3276_v23 }
 0x107   : > { %v2155_v21 = vsel %vm2093_vm1, %v2150_v10, %v2154_v27  ;;  %v3304_v10 = vrot.slane %v3302_v31, 1  ;;  %v3296_v27 = vrot.slane %v3294_v36, 1 }
 0x109   : > { %v3305_v6 = vsel %vm1286_vm0, %v3300_v39, %v3304_v10 }
 0x10a   : > { %1798 = vmatmul.mubr.bf16.gmra.mxu1 %v9745_v2  ;;  %2411 = vmatmul.mubr.bf16.gmra.mxu0 %v2145_v61  ;;  %v3283_v2 = vrot.slane %v3281_v35, 1  ;;  %v8894_v61 = vld [vmem:[%s11121_s2 + $0x338] sm:$0xff]   ;;  %v8904_v35 = vld [vmem:[%s11121_s2 + $0x330] sm:$0xff]  }
 0x10b   : > { %1805 = vmatprep.mubr.bf16.mxu1 %v1534_v14  ;;  %2418 = vmatprep.mubr.bf16.mxu0 %v2151_v12  ;;  %v3318_v14 = vshll.u32 %v8900_v51, 16  ;;  %v8902_v12 = vld [vmem:[%s11121_s2 + $0x370] sm:$0xff]  }
 0x10c   : > { %v3284_v53 = vor.u32 %v3283_v2, %v3279_v15  ;;  %v3297_v15 = vsel %vm1286_vm0, %v3292_v50, %v3296_v27  ;;  %v3306_v2 = vshrl.u32 %v8897_v47, 16  ;;  %v8929_v50 = vld [vmem:[%s11121_s2 + $0x318] sm:$0xff]  }
 0x10e   : > { %v3289_v3 = vsel %vm1286_vm0, %v3284_v53, %v3288_v63  ;;  %v8913_v53 = vld [vmem:[%s11121_s2 + $0x328] sm:$0xff]   ;;  %v8926_v63 = vld [vmem:[%s11121_s2 + $0x2d8] sm:$0xff]  }
 0x112   : > { %1806 = vmatmul.mubr.bf16.gmra.mxu1 %v1526_v24  ;;  %2419 = vmatmul.mubr.bf16.gmra.mxu0 %v2149_v28  ;;  %v3316_v24 = vor.u32 %v3314_v22, %v3304_v10  ;;  %v3320_v28 = vrot.slane %v3318_v14, 1  ;;  %v8928_v10 = vld [vmem:[%s11121_s2 + $0x358] sm:$0xff]   ;;  %v3326_v22 = vshll.u32 %v10002_v5, 16 }
 0x113   : > { %2426 = vmatprep.mubr.bf16.mxu0 %v2155_v21  ;;  %2866 = vmatprep.mubr.bf16.mxu1 %v8886_v57  ;;  %v3277_v57 = vsel %vm1286_vm0, %v3272_v34, %v3276_v23  ;;  %v8919_v21 = vld [vmem:[%s11121_s2 + $0x2a0] sm:$0xff]  }
 0x114   : > { %v3321_v43 = vsel %vm1286_vm0, %v3316_v24, %v3320_v28 }
 0x11a   : > { %2427 = vmatmul.mubr.bf16.gmra.mxu0 %v2153_v41  ;;  %2867 = vmatmul.mubr.bf16.vlgmr.msra.gmra.mxu1 %v8884_v62  ;;  %v9975_v62 = vld [vmem:[#allocation2 + $0x5c] ss:$8 sps:$4 sm:$0xff]  }
 0x11b   : > { %2874 = vmatprep.mubr.bf16.mxu1 %v8889_v7  ;;  %3672 = vmatprep.mubr.bf16.mxu0 %v3289_v3  ;;  %v9970_v7 = vld [vmem:[#allocation2 + $0x48] ss:$8 sps:$4 sm:$0xff]   ;;  %v3334_v40 = vshll.u32 %v9975_v62, 16  ;;  %v8927_v41 = vld [vmem:[%s11121_s2 + $0x298] sm:$0xff]   ;;  %v3308_v3 = vor.u32 %v3306_v2, %v3296_v27  ;;  %v8955_v2 = vld [vmem:[%s11121_s2 + $0x2c0] sm:$0xff]  }
 0x11c   : > { %8262 = vmatpush3.bf16.msra.mxu1 %v8892_v26  ;;  %v3310_v19 = vshll.u32 %v9970_v7, 16  ;;  %v3322_v36 = vshrl.u32 %v9970_v7, 16  ;;  %v8945_v27 = vld [vmem:[%s11121_s2 + $0x2c8] sm:$0xff]  }
 0x11d   : > { %8263 = vmatprep.subr.bf16.mxu1 %v8898_v9  ;;  %v3336_v23 = vrot.slane %v3334_v40, 1 }
 0x11e   : > { %v3312_v26 = vrot.slane %v3310_v19, 1 }
 0x120   : > { %8264 = vmatpush3.bf16.msra.mxu1 %v8899_v55  ;;  %v10004_v55 = vld [vmem:[#allocation2 + $0x6c] ss:$8 sps:$4 sm:$0xff]   ;;  %v3313_v38 = vsel %vm1286_vm0, %v3308_v3, %v3312_v26  ;;  %v3324_v19 = vor.u32 %v3322_v36, %v3312_v26 }
 0x121   : > { %8265 = vmatprep.subr.bf16.mxu1 %v8908_v60  ;;  %v8935_v60 = vld [vmem:[%s11121_s2 + $0x290] sm:$0xff]  }
 0x122   : > { %2875 = vmatmul.mubr.bf16.gmra.mxu1 %v8891_v42  ;;  %3673 = vmatmul.mubr.bf16.vlgmr.msra.gmra.mxu0 %v3277_v57  ;;  %v3330_v42 = vshrl.u32 %v8900_v51, 16 }
 0x123   : > { %8368 = vmatpush3.bf16.msra.mxu0 %v8894_v61  ;;  %2882 = vmatprep.mubr.bf16.mxu1 %v8895_v54  ;;  %v8920_v54 = vld [vmem:[%s11121_s2 + $0x360] sm:$0xff]  }
 0x124   : > { %3680 = vmatprep.mubr.bf16.mxu0 %v3305_v6  ;;  %8369 = vmatprep.subr.bf16.mxu0 %v8902_v12  ;;  %v3332_v34 = vor.u32 %v3330_v42, %v3320_v28  ;;  %v8936_v28 = vld [vmem:[%s11121_s2 + $0x350] sm:$0xff]  }
 0x125   : > { %8266 = vmatpush3.bf16.msra.mxu1 %v8909_v0  ;;  %v3346_v0 = vshrl.u32 %v9975_v62, 16  ;;  %v10046_v42 = vld [vmem:[#allocation2 + $0x68] ss:$8 sps:$4 sm:$0xff]  }
 0x126   : > { %8267 = vmatprep.subr.bf16.mxu1 %v8918_v4  ;;  %v3337_v6 = vsel %vm1286_vm0, %v3332_v34, %v3336_v23  ;;  %v3350_v4 = vshll.u32 %v10004_v55, 16  ;;  %v3342_v34 = vshll.u32 %v10046_v42, 16 }
 0x127   : > { %8370 = vmatpush3.bf16.msra.mxu0 %v8904_v35 }
 0x128   : > { %8371 = vmatprep.subr.bf16.mxu0 %v8910_v17  ;;  %v8946_v17 = vld [vmem:[%s11121_s2 + $0x288] sm:$0xff]  }
 0x129   : > { %8268 = vmatpush3.bf16.msra.mxu1 %v8919_v21 }
 0x12a   : > { %v7747_v44 = vpop.f32.mrf.mxu0  ;;  %v7795_v30 = vpop.f32.mrf.mxu1  ;;  %2883 = vmatmul.mubr.bf16.gmra.mxu1 %v8897_v47  ;;  %3681 = vmatmul.mubr.bf16.gmra.mxu0 %v3297_v15  ;;  %v8921_v47 = vld [vmem:[%s11121_s2 + $0x320] sm:$0xff]  }
 0x12b   : > { %2890 = vmatprep.mubr.bf16.mxu1 %v8900_v51  ;;  %3688 = vmatprep.mubr.bf16.mxu0 %v3321_v43  ;;  %v3328_v43 = vrot.slane %v3326_v22, 1 }
 0x12c   : > { %v7748_v31 = vpop.f32.mrf.mxu0  ;;  %v7796_v9 = vpop.f32.mrf.mxu1  ;;  %8372 = vmatpush3.bf16.msra.mxu0 %v8913_v53  ;;  %8269 = vmatprep.subr.bf16.mxu1 %v8926_v63  ;;  %v3348_v63 = vor.u32 %v3346_v0, %v3336_v23 }
 0x12d   : > { %v10009_v39 = vadd.f32 %v7748_v31, %v7747_v44  ;;  %v10011_v51 = vadd.f32 %v7796_v9, %v7795_v30  ;;  %8373 = vmatprep.subr.bf16.mxu0 %v8920_v54  ;;  %8270 = vmatpush3.bf16.msra.mxu1 %v8927_v41  ;;  %v3352_v54 = vrot.slane %v3350_v4, 1  ;;  %v10048_v41 = vld [vmem:[#allocation2 + $0x7c] ss:$8 sps:$4 sm:$0xff]   ;;  %v8947_v30 = vld [vmem:[%s11121_s2 + $0x348] sm:$0xff]   ;;  %v3329_v31 = vsel %vm1286_vm0, %v3324_v19, %v3328_v43 }
 0x12e   : > { %v7750_v57 = vpop.f32.mrf.mxu0  ;;  %v7798_v61 = vpop.f32.mrf.mxu1  ;;  %8271 = vmatprep.subr.bf16.mxu1 %v8934_v52  ;;  %v8956_v52 = vld [vmem:[%s11121_s2 + $0x280] sm:$0xff]   ;;  %v3338_v9 = vshrl.u32 %v10002_v5, 16  ;;  %v3344_v4 = vrot.slane %v3342_v34, 1 }
 0x130   : > { %v7751_v14 = vpop.f32.mrf.mxu0  ;;  %v7799_v12 = vpop.f32.mrf.mxu1  ;;  %8374 = vmatpush3.bf16.msra.mxu0 %v8921_v47  ;;  %v3340_v0 = vor.u32 %v3338_v9, %v3328_v43 }
 0x131   : > { %v10031_v35 = vadd.f32 %v7751_v14, %v7750_v57  ;;  %v10033_v24 = vadd.f32 %v7799_v12, %v7798_v61  ;;  %8375 = vmatprep.subr.bf16.mxu0 %v8928_v10  ;;  %8272 = vmatpush3.bf16.msra.mxu1 %v8935_v60  ;;  %v3353_v10 = vsel %vm1286_vm0, %v3348_v63, %v3352_v54  ;;  %v3362_v60 = vshrl.u32 %v10004_v55, 16  ;;  %v8948_v61 = vld [vmem:[%s11121_s2 + $0x308] sm:$0xff]   ;;  %v8957_v14 = vld [vmem:[%s11121_s2 + $0x340] sm:$0xff]  }
 0x132   : > { %v7753_v21 = vpop.f32.mrf.mxu0  ;;  %v7801_v15 = vpop.f32.mrf.mxu1  ;;  %2891 = vmatmul.mubr.bf16.gmra.mxu1 %v9970_v7  ;;  %3689 = vmatmul.mubr.bf16.gmra.mxu0 %v3313_v38  ;;  %v8937_v7 = vld [vmem:[%s11121_s2 + $0x310] sm:$0xff]   ;;  %v3366_v57 = vshll.u32 %v10048_v41, 16  ;;  %v8966_v38 = vld [vmem:[%s11121_s2 + $0x3f8] sm:$0xff]  }
 0x133   : > { %2898 = vmatprep.mubr.bf16.mxu1 %v9975_v62  ;;  %3696 = vmatprep.mubr.bf16.mxu0 %v3337_v6 }
 0x134   : > { %v7754_v40 = vpop.f32.mrf.mxu0  ;;  %v7802_v53 = vpop.f32.mrf.mxu1  ;;  %8376 = vmatpush3.bf16.msra.mxu0 %v8929_v50  ;;  %8273 = vmatprep.subr.bf16.mxu1 %v8945_v27  ;;  %v8915_v50 = vld [vmem:[#allocation2 + $0x78] ss:$8 sps:$4 sm:$0xff]  }
 0x135   : > { %v10053_v44 = vadd.f32 %v7754_v40, %v7753_v21  ;;  %v10055_v62 = vadd.f32 %v7802_v53, %v7801_v15  ;;  %8377 = vmatprep.subr.bf16.mxu0 %v8936_v28  ;;  %8274 = vmatpush3.bf16.msra.mxu1 %v8946_v17  ;;  %v3364_v17 = vor.u32 %v3362_v60, %v3352_v54  ;;  %v3368_v21 = vrot.slane %v3366_v57, 1  ;;  %v8958_v15 = vld [vmem:[%s11121_s2 + $0x300] sm:$0xff]  }
 0x136   : > { %v7756_v3 = vpop.f32.mrf.mxu0  ;;  %v7804_v26 = vpop.f32.mrf.mxu1  ;;  %8275 = vmatprep.subr.bf16.mxu1 %v8955_v2  ;;  %v3345_v40 = vsel %vm1286_vm0, %v3340_v0, %v3344_v4  ;;  %v3354_v53 = vshrl.u32 %v10046_v42, 16  ;;  %v3358_v63 = vshll.u32 %v8915_v50, 16 }
 0x138   : > { %v7757_v23 = vpop.f32.mrf.mxu0  ;;  %v7805_v47 = vpop.f32.mrf.mxu1  ;;  %8378 = vmatpush3.bf16.msra.mxu0 %v8937_v7  ;;  %v3356_v34 = vor.u32 %v3354_v53, %v3344_v4 }
 0x139   : > { %v10075_v36 = vadd.f32 %v7757_v23, %v7756_v3  ;;  %v10077_v22 = vadd.f32 %v7805_v47, %v7804_v26  ;;  %8379 = vmatprep.subr.bf16.mxu0 %v8947_v30  ;;  %8276 = vmatpush3.bf16.msra.mxu1 %v8956_v52  ;;  %v3369_v30 = vsel %vm1286_vm0, %v3364_v17, %v3368_v21  ;;  %v3378_v52 = vshrl.u32 %v10048_v41, 16 }
 0x13a   : > { %v7759_v12 = vpop.f32.mrf.mxu0  ;;  %v7807_v6 = vpop.f32.mrf.mxu1  ;;  %2899 = vmatmul.mubr.bf16.gmra.mxu1 %v10002_v5  ;;  %3697 = vmatmul.mubr.bf16.gmra.mxu0 %v3329_v31  ;;  %v3360_v23 = vrot.slane %v3358_v63, 1 }
 0x13b   : > { %2906 = vmatprep.mubr.bf16.mxu1 %v10004_v55  ;;  %3704 = vmatprep.mubr.bf16.mxu0 %v3353_v10  ;;  %v8972_v55 = vld [vmem:[%s11121_s2 + $0x478] sm:$0xff]   ;;  %v3380_v60 = vor.u32 %v3378_v52, %v3368_v21 }
 0x13c   : > { %v7760_v27 = vpop.f32.mrf.mxu0  ;;  %v7808_v28 = vpop.f32.mrf.mxu1  ;;  %8380 = vmatpush3.bf16.msra.mxu0 %v8948_v61  ;;  %8473 = vmatprep.subr.bf16.mxu1 %v8966_v38 }
 0x13d   : > { %v10087_v2 = vadd.f32 %v7760_v27, %v7759_v12  ;;  %v10089_v5 = vadd.f32 %v7808_v28, %v7807_v6  ;;  %8381 = vmatprep.subr.bf16.mxu0 %v8957_v14  ;;  %v3361_v12 = vsel %vm1286_vm0, %v3356_v34, %v3360_v23  ;;  %v3370_v6 = vshrl.u32 %v8915_v50, 16 }
 0x13e   : > { %v7762_v19 = vpop.f32.mrf.mxu0  ;;  %v7810_v43 = vpop.f32.mrf.mxu1 }
 0x13f   : > { %v3372_v21 = vor.u32 %v3370_v6, %v3360_v23 }
 0x140   : > { %v7763_v54 = vpop.f32.mrf.mxu0  ;;  %v7811_v7 = vpop.f32.mrf.mxu1  ;;  %8382 = vmatpush3.bf16.msra.mxu0 %v8958_v15 }
 0x141   : > { %v10098_v3 = vadd.f32 %v7763_v54, %v7762_v19  ;;  %v10100_v26 = vadd.f32 %v7811_v7, %v7810_v43  ;;  %8579 = vmatprep.subr.bf16.mxu0 %v8972_v55  ;;  %v3377_v53 = vsel %vm1286_vm0, %v3372_v21, %v9845_v20 }
 0x142   : > { %v7765_v31 = vpop.f32.mrf.mxu0  ;;  %v7813_v9 = vpop.f32.mrf.mxu1  ;;  %2907 = vmatmul.mubr.bf16.gmra.mxu1 %v10046_v42  ;;  %3705 = vmatmul.mubr.bf16.gmra.mxu0 %v3345_v40 }
 0x143   : > { %2914 = vmatprep.mubr.bf16.mxu1 %v10048_v41  ;;  %3712 = vmatprep.mubr.bf16.mxu0 %v3369_v30  ;;  %v3385_v41 = vsel %vm1286_vm0, %v3380_v60, %v9843_v11 }
 0x144   : > { %v7766_v47 = vpop.f32.mrf.mxu0  ;;  %v7814_v10 = vpop.f32.mrf.mxu1 }
 0x145   : > { %v10104_v57 = vadd.f32 %v7766_v47, %v7765_v31  ;;  %v10106_v61 = vadd.f32 %v7814_v10, %v7813_v9 }
 0x146   : > { %v7768_v38 = vpop.f32.mrf.mxu0  ;;  %v7816_v14 = vpop.f32.mrf.mxu1 }
 0x148   : > { %v7769_v0 = vpop.f32.mrf.mxu0  ;;  %v7817_v42 = vpop.f32.mrf.mxu1 }
 0x149   : > { %v10111_v27 = vadd.f32 %v7769_v0, %v7768_v38  ;;  %v10113_v4 = vadd.f32 %v7817_v42, %v7816_v14  ;;  %v3100_v14 = vld [vmem:[#allocation2 + $0xd0] sm:$0xff] }
 0x14a   : > { %v7771_v28 = vpop.f32.mrf.mxu0  ;;  %v7819_v17 = vpop.f32.mrf.mxu1  ;;  %2915 = vmatmul.mubr.bf16.gmra.mxu1 %v8915_v50  ;;  %3713 = vmatmul.mubr.bf16.gmra.mxu0 %v3361_v12 }
 0x14b   : > { %2922 = vmatprep.mubr.bf16.mxu1 %v9827_v56  ;;  %3720 = vmatprep.mubr.bf16.mxu0 %v3385_v41 }
 0x14c   : > { %v7772_v15 = vpop.f32.mrf.mxu0  ;;  %v7820_v55 = vpop.f32.mrf.mxu1 }
 0x14d   : > { %v10116_v19 = vadd.f32 %v7772_v15, %v7771_v28  ;;  %v10118_v43 = vadd.f32 %v7820_v55, %v7819_v17 }
 0x14e   : > { %v7774_v40 = vpop.f32.mrf.mxu0  ;;  %v7822_v11 = vpop.f32.mrf.mxu1 }
 0x150   : > { %v7775_v63 = vpop.f32.mrf.mxu0  ;;  %v7823_v54 = vpop.f32.mrf.mxu1 }
 0x151   : > { %v10122_v7 = vadd.f32 %v7775_v63, %v7774_v40  ;;  %v10124_v50 = vadd.f32 %v7823_v54, %v7822_v11 }
 0x152   : > { %v7777_v56 = vpop.f32.mrf.mxu0  ;;  %v7825_v30 = vpop.f32.mrf.mxu1  ;;  %2923 = vmatmul.mubr.bf16.gmra.mxu1 %v9825_v33  ;;  %3721 = vmatmul.mubr.bf16.gmra.mxu0 %v3377_v53  ;;  %v10137_v33 = vld [vmem:[#allocation2 + $0xc8] sm:$0xff] }
 0x153   : > { %2930 = vmatprep.mubr.bf16.mxu1 %v9841_v58  ;;  %3728 = vmatprep.mubr.bf16.mxu0 %v9863_v25  ;;  %v7233_v0 = vcombine.high %v10137_v33, %v3100_v14  ;;  %v10156_v11 = vcombine.low %v10137_v33, %v3100_v14 }
 0x154   : > { %v7778_v52 = vpop.f32.mrf.mxu0  ;;  %v7826_v31 = vpop.f32.mrf.mxu1 }
 0x155   : > { %v10129_v9 = vadd.f32 %v7778_v52, %v7777_v56  ;;  %v10131_v20 = vadd.f32 %v7826_v31, %v7825_v30  ;;  %v3446_v55 = vshll.u32 %v7233_v0, 16  ;;  %v8944_v30 = vld [vmem:[#allocation2 + $0xdc] ss:$8 sps:$4 sm:$0xff]   ;;  %v3458_v14 = vshrl.u32 %v7233_v0, 16 }
 0x156   : > { %v7780_v34 = vpop.f32.mrf.mxu0  ;;  %v7828_v23 = vpop.f32.mrf.mxu1 }
 0x157   : > { %v3448_v56 = vrot.slane %v3446_v55, 1 }
 0x158   : > { %v7781_v47 = vpop.f32.mrf.mxu0  ;;  %v7829_v10 = vpop.f32.mrf.mxu1 }
 0x159   : > { %v10133_v60 = vadd.f32 %v7781_v47, %v7780_v34  ;;  %v10135_v38 = vadd.f32 %v7829_v10, %v7828_v23  ;;  %v3438_v23 = vshll.u32 %v10156_v11, 16  ;;  %v3460_v55 = vor.u32 %v3458_v14, %v3448_v56 }
 0x15a   : > { %v7783_v58 = vpop.f32.mrf.mxu0  ;;  %v7831_v12 = vpop.f32.mrf.mxu1  ;;  %2931 = vmatmul.mubr.bf16.gmra.mxu1 %v9848_v16  ;;  %3729 = vmatmul.mubr.bf16.gmra.mxu0 %v9866_v1  ;;  %v3442_v16 = vshrl.u32 %v9889_v8, 16 }
 0x15b   : > { %2938 = vmatprep.mubr.bf16.mxu1 %v9869_v18  ;;  %3736 = vmatprep.mubr.bf16.mxu0 %v9883_v49 }
 0x15c   : > { %v7784_v25 = vpop.f32.mrf.mxu0  ;;  %v7832_v6 = vpop.f32.mrf.mxu1  ;;  %v3444_v54 = vor.u32 %v3442_v16, %v9898_v45 }
 0x15d   : > { %v10144_v42 = vadd.f32 %v7784_v25, %v7783_v58  ;;  %v10146_v41 = vadd.f32 %v7832_v6, %v7831_v12  ;;  %v3462_v58 = vshll.u32 %v8944_v30, 16 }
 0x15e   : > { %v7786_v28 = vpop.f32.mrf.mxu0  ;;  %v7834_v17 = vpop.f32.mrf.mxu1  ;;  %v3449_v45 = vsel %vm1286_vm0, %v3444_v54, %v3448_v56 }
 0x160   : > { %v7787_v21 = vpop.f32.mrf.mxu0  ;;  %v7835_v15 = vpop.f32.mrf.mxu1 }
 0x161   : > { %v10149_v1 = vadd.f32 %v7787_v21, %v7786_v28  ;;  %v10151_v18 = vadd.f32 %v7835_v15, %v7834_v17  ;;  %v3440_v17 = vrot.slane %v3438_v23, 1  ;;  %v8942_v15 = vld [vmem:[#allocation2 + $0xd8] ss:$8 sps:$4 sm:$0xff]  }
 0x162   : > { %v7789_v49 = vpop.f32.mrf.mxu0  ;;  %v7853_v40 = vpop.f32.mrf.mxu1  ;;  %2939 = vmatmul.mubr.bf16.gmra.mxu1 %v9873_v37  ;;  %3737 = vmatmul.mubr.bf16.gmra.mxu0 %v9886_v48  ;;  %v3434_v48 = vshrl.u32 %v9892_v59, 16 }
 0x163   : > { %2946 = vmatprep.mubr.bf16.mxu1 %v9889_v8  ;;  %3744 = vmatprep.mubr.bf16.mxu0 %v9908_v13  ;;  %v7155_v8 = vcombine.high %v10137_v33, %v9921_v29 }
 0x164   : > { %v7790_v53 = vpop.f32.mrf.mxu0  ;;  %v7854_v63 = vpop.f32.mrf.mxu1 }
 0x165   : > { %v10161_v52 = vadd.f32 %v7790_v53, %v7789_v49  ;;  %v7855_v31 = vadd.f32 %v7854_v63, %v7853_v40  ;;  %v3464_v49 = vrot.slane %v3462_v58, 1  ;;  %v10175_v40 = vld [vmem:[#allocation2 + $0xec] ss:$8 sps:$4 sm:$0xff]  }
 0x166   : > { %v7792_v34 = vpop.f32.mrf.mxu0  ;;  %v7856_v37 = vpop.f32.mrf.mxu1 }
 0x167   : > { %v1844_v47 = vadd.f32 %v7855_v31, %v10009_v39  ;;  %v3436_v39 = vor.u32 %v3434_v48, %v9902_v32  ;;  %v3465_v23 = vsel %vm1286_vm0, %v3460_v55, %v3464_v49 }
 0x168   : > { %v7793_v13 = vpop.f32.mrf.mxu0  ;;  %v7857_v10 = vpop.f32.mrf.mxu1 }
 0x169   : > { %v10169_v12 = vadd.f32 %v7793_v13, %v7792_v34  ;;  %v7858_v25 = vadd.f32 %v7857_v10, %v7856_v37  ;;  %v3441_v32 = vsel %vm1286_vm0, %v3436_v39, %v3440_v17  ;;  %v3450_v34 = vshrl.u32 %v10156_v11, 16 }
 0x16a   : > { %v7859_v6 = vpop.f32.mrf.mxu1  ;;  %v7959_v28 = vpop.f32.mrf.mxu0  ;;  %2947 = vmatmul.mubr.bf16.gmra.mxu1 %v9892_v59  ;;  %3745 = vmatmul.mubr.bf16.gmra.mxu0 %v9912_v46  ;;  %v7154_v46 = vcombine.low %v10137_v33, %v9921_v29  ;;  %v3454_v37 = vshll.u32 %v8942_v15, 16  ;;  %v3478_v13 = vshll.u32 %v10175_v40, 16  ;;  %v10186_v33 = vld [vmem:[#allocation2 + $0xe8] ss:$8 sps:$4 sm:$0xff]  }
 0x16b   : > { %v1845_v21 = vadd.f32 %v7858_v25, %v10031_v35  ;;  %2954 = vmatprep.mubr.bf16.mxu1 %v7155_v8  ;;  %3752 = vmatprep.mubr.bf16.mxu0 %v3449_v45  ;;  %v3474_v8 = vshrl.u32 %v8944_v30, 16  ;;  %v3452_v11 = vor.u32 %v3450_v34, %v3440_v17 }
 0x16c   : > { %v7860_v16 = vpop.f32.mrf.mxu1  ;;  %v7960_v0 = vpop.f32.mrf.mxu0  ;;  %v3456_v58 = vrot.slane %v3454_v37, 1  ;;  %v3480_v39 = vrot.slane %v3478_v13, 1 }
 0x16d   : > { %v7861_v53 = vadd.f32 %v7860_v16, %v7859_v6  ;;  %v7961_v63 = vadd.f32 %v7960_v0, %v7959_v28  ;;  %v3476_v28 = vor.u32 %v3474_v8, %v3464_v49  ;;  %v10191_v16 = vld [vmem:[#allocation2 + $0xfc] ss:$8 sps:$4 sm:$0xff]  }
 0x16e   : > { %v7862_v54 = vpop.f32.mrf.mxu1  ;;  %v7962_v59 = vpop.f32.mrf.mxu0  ;;  %v3494_v34 = vshll.u32 %v10191_v16, 16 }
 0x16f   : > { %v1846_v35 = vadd.f32 %v7861_v53, %v10053_v44  ;;  %v10181_v31 = vadd.f32 %v7961_v63, %v1844_v47  ;;  %v3481_v49 = vsel %vm1286_vm0, %v3476_v28, %v3480_v39 }
 0x170   : > { %v7863_v56 = vpop.f32.mrf.mxu1  ;;  %v7963_v48 = vpop.f32.mrf.mxu0 }
 0x171   : > { %v7864_v10 = vadd.f32 %v7863_v56, %v7862_v54  ;;  %v7964_v45 = vadd.f32 %v7963_v48, %v7962_v59  ;;  %v3466_v54 = vshrl.u32 %v8942_v15, 16  ;;  %v3470_v59 = vshll.u32 %v10186_v33, 16  ;;  %v10201_v48 = vld [vmem:[#allocation2 + $0x108] sm:$0x11] }
 0x172   : > { %v7865_v14 = vpop.f32.mrf.mxu1  ;;  %v7965_v29 = vpop.f32.mrf.mxu0  ;;  %2955 = vmatmul.mubr.bf16.gmra.mxu1 %v7154_v46  ;;  %3753 = vmatmul.mubr.bf16.gmra.mxu0 %v3441_v32  ;;  %v3490_v32 = vshrl.u32 %v10175_v40, 16 }
 0x173   : > { %v1847_v44 = vadd.f32 %v7864_v10, %v10075_v36  ;;  %v10189_v47 = vadd.f32 %v7964_v45, %v1845_v21  ;;  %2962 = vmatprep.mubr.bf16.mxu1 %v8944_v30  ;;  %3760 = vmatprep.mubr.bf16.mxu0 %v3465_v23  ;;  %v3457_v30 = vsel %vm1286_vm0, %v3452_v11, %v3456_v58  ;;  %v10207_v45 = vld [vmem:[#allocation2 + $0xf8] ss:$8 sps:$4 sm:$0xff]  }
 0x174   : > { %v7866_v25 = vpop.f32.mrf.mxu1  ;;  %v7966_v6 = vpop.f32.mrf.mxu0  ;;  %v3492_v11 = vor.u32 %v3490_v32, %v3480_v39  ;;  %v3486_v39 = vshll.u32 %v10207_v45, 16 }
 0x175   : > { %v7867_v0 = vadd.f32 %v7866_v25, %v7865_v14  ;;  %v7967_v55 = vadd.f32 %v7966_v6, %v7965_v29  ;;  %v3496_v25 = vrot.slane %v3494_v34, 1  ;;  %v7241_v6 = vcombine.high %v10201_v48, %v10201_v48 }
 0x176   : > { %v7868_v53 = vpop.f32.mrf.mxu1  ;;  %v7968_v63 = vpop.f32.mrf.mxu0 }
 0x177   : > { %v1848_v36 = vadd.f32 %v7867_v0, %v10087_v2  ;;  %v10195_v21 = vadd.f32 %v7967_v55, %v1846_v35  ;;  %v3468_v2 = vor.u32 %v3466_v54, %v3456_v58  ;;  %v3472_v35 = vrot.slane %v3470_v59, 1  ;;  %v3885_v58 = vld [vmem:[#allocation2 + $0x28] sm:$0xff]  ;;  %v10211_v0 = vld [vmem:[#allocation2 + $0x30] sm:$0xff] }
 0x178   : > { %v7869_v17 = vpop.f32.mrf.mxu1  ;;  %v7969_v46 = vpop.f32.mrf.mxu0  ;;  %v7293_v32 = vcombine.high %v3885_v58, %v10211_v0 }
 0x179   : > { %v7870_v37 = vadd.f32 %v7869_v17, %v7868_v53  ;;  %v7970_v56 = vadd.f32 %v7969_v46, %v7968_v63  ;;  %v3473_v55 = vsel %vm1286_vm0, %v3468_v2, %v3472_v35  ;;  %v3482_v63 = vshrl.u32 %v10186_v33, 16 }
 0x17a   : > { %v7871_v23 = vpop.f32.mrf.mxu1  ;;  %v7971_v8 = vpop.f32.mrf.mxu0  ;;  %2963 = vmatmul.mubr.bf16.gmra.mxu1 %v8942_v15  ;;  %3761 = vmatmul.mubr.bf16.gmra.mxu0 %v3457_v30  ;;  %v3497_v30 = vsel %vm1286_vm0, %v3492_v11, %v3496_v25  ;;  %v3506_v17 = vshrl.u32 %v10191_v16, 16  ;;  %v3510_v46 = vshll.u32 %v7241_v6, 16 }
 0x17b   : > { %v1849_v13 = vadd.f32 %v7870_v37, %v10098_v3  ;;  %v10204_v10 = vadd.f32 %v7970_v56, %v1847_v44  ;;  %2970 = vmatprep.mubr.bf16.mxu1 %v10175_v40  ;;  %3768 = vmatprep.mubr.bf16.mxu0 %v3481_v49  ;;  %v8962_v49 = vld [vmem:[#allocation2 + $0x1c] ss:$8 sps:$4 sm:$0xfe]   ;;  %v3484_v2 = vor.u32 %v3482_v63, %v3472_v35  ;;  %v3498_v35 = vshrl.u32 %v10207_v45, 16 }
 0x17c   : > { %v7872_v14 = vpop.f32.mrf.mxu1  ;;  %v7972_v29 = vpop.f32.mrf.mxu0  ;;  %v3508_v6 = vor.u32 %v3506_v17, %v3496_v25 }
 0x17d   : > { %v7873_v15 = vadd.f32 %v7872_v14, %v7871_v23  ;;  %v7973_v28 = vadd.f32 %v7972_v29, %v7971_v8  ;;  %v3488_v14 = vrot.slane %v3486_v39, 1 }
 0x17e   : > { %v7874_v3 = vpop.f32.mrf.mxu1  ;;  %v7974_v44 = vpop.f32.mrf.mxu0 }
 0x17f   : > { %v1850_v40 = vadd.f32 %v7873_v15, %v10104_v57  ;;  %v10215_v53 = vadd.f32 %v7973_v28, %v1848_v36  ;;  %v7240_v36 = vcombine.low %v10201_v48, %v10201_v48  ;;  %v3512_v15 = vrot.slane %v3510_v46, 1  ;;  %v10231_v48 = vld [vmem:[#allocation2 + $0x40] sm:$0xff] }
 0x180   : > { %v7875_v54 = vpop.f32.mrf.mxu1  ;;  %v7975_v59 = vpop.f32.mrf.mxu0  ;;  %v4075_v28 = vrot.slane %v8962_v49, 1 }
 0x181   : > { %v7876_v34 = vadd.f32 %v7875_v54, %v7874_v3  ;;  %v7976_v37 = vadd.f32 %v7975_v59, %v7974_v44  ;;  %v4076_v3 = vrot.slane %v7293_v32, 1  ;;  %v8960_v54 = vld [vmem:[#allocation2 + $0x18] ss:$8 sps:$4 sm:$0xfe]   ;;  %v3502_v63 = vshll.u32 %v7240_v36, 16 }
 0x182   : > { %v7877_v56 = vpop.f32.mrf.mxu1  ;;  %v7977_v57 = vpop.f32.mrf.mxu0  ;;  %2971 = vmatmul.mubr.bf16.gmra.mxu1 %v10186_v33  ;;  %3769 = vmatmul.mubr.bf16.gmra.mxu0 %v3473_v55  ;;  %v10229_v55 = vld [vmem:[#allocation2 + $0x38] sm:$0xff]  ;;  %v3489_v59 = vsel %vm1286_vm0, %v3484_v2, %v3488_v14  ;;  %v3513_v46 = vsel %vm1286_vm0, %v3508_v6, %v3512_v15 }
 0x183   : > { %v1851_v23 = vadd.f32 %v7876_v34, %v10111_v27  ;;  %v10226_v8 = vadd.f32 %v7976_v37, %v1849_v13  ;;  %2978 = vmatprep.mubr.bf16.mxu1 %v10191_v16  ;;  %3776 = vmatprep.mubr.bf16.mxu0 %v3497_v30  ;;  %v7292_v16 = vcombine.low %v3885_v58, %v10211_v0  ;;  %v3504_v36 = vrot.slane %v3502_v63, 1 }
 0x184   : > { %v7878_v29 = vpop.f32.mrf.mxu1  ;;  %v7978_v11 = vpop.f32.mrf.mxu0  ;;  %v4077_v49 = vsel %vm2093_vm1, %v4075_v28, %v4076_v3  ;;  %v7295_v32 = vcombine.high %v10229_v55, %v10231_v48 }
 0x185   : > { %v7879_v33 = vadd.f32 %v7878_v29, %v7877_v56  ;;  %v7979_v44 = vadd.f32 %v7978_v11, %v7977_v57  ;;  %v3500_v57 = vor.u32 %v3498_v35, %v3488_v14  ;;  %v7294_v35 = vcombine.low %v10229_v55, %v10231_v48 }
 0x186   : > { %v7880_v27 = vpop.f32.mrf.mxu1  ;;  %v7980_v13 = vpop.f32.mrf.mxu0  ;;  %v4080_v15 = vrot.slane %v7295_v32, 1 }
 0x187   : > { %v1852_v39 = vadd.f32 %v7879_v33, %v10116_v19  ;;  %v10236_v25 = vadd.f32 %v7979_v44, %v1850_v40  ;;  %v4072_v19 = vrot.slane %v8960_v54, 1  ;;  %v4073_v40 = vrot.slane %v7292_v16, 1  ;;  %v10247_v44 = vld [vmem:[#allocation2 + $0x48] sm:$0xff] }
 0x188   : > { %v7881_v30 = vpop.f32.mrf.mxu1  ;;  %v7981_v17 = vpop.f32.mrf.mxu0  ;;  %v3505_v14 = vsel %vm1286_vm0, %v3500_v57, %v3504_v36  ;;  %v7371_v16 = vcombine.high %v10211_v0, %v10229_v55  ;;  %v8979_v36 = vld [vmem:[%s11121_s2 + $0x3b0] sm:$0xff]  }
 0x189   : > { %v7882_v34 = vadd.f32 %v7881_v30, %v7880_v27  ;;  %v7982_v58 = vadd.f32 %v7981_v17, %v7980_v13  ;;  %v10249_v27 = vld [vmem:[#allocation2 + $0x50] sm:$0xff]  ;;  %v4074_v54 = vsel %vm2093_vm1, %v4072_v19, %v4073_v40  ;;  %v4081_v30 = vsel %vm2093_vm1, %v4076_v3, %v4080_v15  ;;  %v8970_v17 = vld [vmem:[%s11121_s2 + $0x3b8] sm:$0xff]  }
 0x18a   : > { %v7883_v37 = vpop.f32.mrf.mxu1  ;;  %v7983_v56 = vpop.f32.mrf.mxu0  ;;  %2979 = vmatmul.mubr.bf16.gmra.mxu1 %v10207_v45  ;;  %3777 = vmatmul.mubr.bf16.gmra.mxu0 %v3489_v59 }
 0x18b   : > { %v1853_v2 = vadd.f32 %v7882_v34, %v10122_v7  ;;  %v10245_v29 = vadd.f32 %v7982_v58, %v1851_v23  ;;  %3784 = vmatprep.mubr.bf16.mxu0 %v3513_v46  ;;  %4292 = vmatprep.mubr.bf16.mxu1 %v4077_v49  ;;  %v7297_v46 = vcombine.high %v10247_v44, %v10249_v27  ;;  %v8978_v49 = vld [vmem:[%s11121_s2 + $0x3f0] sm:$0xff]  }
 0x18c   : > { %v7884_v11 = vpop.f32.mrf.mxu1  ;;  %v7984_v6 = vpop.f32.mrf.mxu0 }
 0x18d   : > { %v7885_v28 = vadd.f32 %v7884_v11, %v7883_v37  ;;  %v7985_v33 = vadd.f32 %v7984_v6, %v7983_v56  ;;  %v4078_v37 = vrot.slane %v7294_v35, 1  ;;  %v10272_v57 = vrot.slane %v7297_v46, 1  ;;  %v8973_v35 = vld [vmem:[%s11121_s2 + $0x438] sm:$0xff]   ;;  %v8991_v46 = vld [vmem:[%s11121_s2 + $0x3a8] sm:$0xff]  }
 0x18e   : > { %v7886_v45 = vpop.f32.mrf.mxu1  ;;  %v7986_v13 = vpop.f32.mrf.mxu0 }
 0x18f   : > { %v1854_v7 = vadd.f32 %v7885_v28, %v10129_v9  ;;  %v10254_v23 = vadd.f32 %v7985_v33, %v1852_v39  ;;  %v10277_v28 = vld [vmem:[#allocation2 + $0x58] sm:$0xff] }
 0x190   : > { %v7887_v63 = vpop.f32.mrf.mxu1  ;;  %v7987_v59 = vpop.f32.mrf.mxu0 }
 0x191   : > { %v7888_v9 = vadd.f32 %v7887_v63, %v7886_v45  ;;  %v7988_v39 = vadd.f32 %v7987_v59, %v7986_v13  ;;  %v7370_v13 = vcombine.low %v10211_v0, %v10229_v55  ;;  %v7296_v63 = vcombine.low %v10247_v44, %v10249_v27  ;;  %v8983_v55 = vld [vmem:[%s11121_s2 + $0x470] sm:$0xff]  }
 0x192   : > { %v7889_v32 = vpop.f32.mrf.mxu1  ;;  %v7989_v34 = vpop.f32.mrf.mxu0  ;;  %3785 = vmatmul.mubr.bf16.gmra.mxu0 %v3505_v14  ;;  %4293 = vmatmul.mubr.bf16.vlgmr.msra.gmra.mxu1 %v4074_v54  ;;  %v7373_v0 = vcombine.high %v10231_v48, %v10247_v44 }
 0x193   : > { %v1855_v58 = vadd.f32 %v7888_v9, %v10133_v60  ;;  %v10270_v3 = vadd.f32 %v7988_v39, %v1853_v2  ;;  %4300 = vmatprep.mubr.bf16.mxu1 %v4081_v30  ;;  %4844 = vmatprep.mubr.bf16.mxu0 %v7371_v16  ;;  %v10279_v60 = vld [vmem:[#allocation2 + $0x60] sm:$0xff]  ;;  %v8990_v2 = vld [vmem:[%s11121_s2 + $0x3e8] sm:$0xff]   ;;  %v4079_v16 = vsel %vm2093_vm1, %v4073_v40, %v4078_v37 }
 0x194   : > { %v7890_v56 = vpop.f32.mrf.mxu1  ;;  %v7990_v19 = vpop.f32.mrf.mxu0  ;;  %8474 = vmatpush3.bf16.msra.mxu1 %v8970_v17  ;;  %v4085_v17 = vsel %vm2093_vm1, %v4080_v15, %v10272_v57  ;;  %v9002_v39 = vld [vmem:[%s11121_s2 + $0x3e0] sm:$0xff]  }
 0x195   : > { %v7891_v11 = vadd.f32 %v7890_v56, %v7889_v32  ;;  %v7991_v6 = vadd.f32 %v7990_v19, %v7989_v34  ;;  %8475 = vmatprep.subr.bf16.mxu1 %v8978_v49  ;;  %v10313_v34 = vrot.slane %v7296_v63, 1  ;;  %v8985_v56 = vld [vmem:[%s11121_s2 + $0x430] sm:$0xff]   ;;  %v7298_v63 = vcombine.low %v10277_v28, %v10279_v60 }
 0x196   : > { %v7892_v33 = vpop.f32.mrf.mxu1  ;;  %v7992_v45 = vpop.f32.mrf.mxu0 }
 0x197   : > { %v1856_v14 = vadd.f32 %v7891_v11, %v10144_v42  ;;  %v10287_v54 = vadd.f32 %v7991_v6, %v1854_v7  ;;  %v7299_v42 = vcombine.high %v10277_v28, %v10279_v60 }
 0x198   : > { %v7893_v59 = vpop.f32.mrf.mxu1  ;;  %v7993_v30 = vpop.f32.mrf.mxu0  ;;  %8476 = vmatpush3.bf16.msra.mxu1 %v8979_v36 }
 0x199   : > { %v7894_v40 = vadd.f32 %v7893_v59, %v7892_v33  ;;  %v7994_v7 = vadd.f32 %v7993_v30, %v7992_v45  ;;  %8477 = vmatprep.subr.bf16.mxu1 %v8990_v2  ;;  %v10318_v11 = vrot.slane %v7299_v42, 1  ;;  %v10323_v2 = vld [vmem:[#allocation2 + $0x68] sm:$0xff]  ;;  %v10325_v33 = vld [vmem:[#allocation2 + $0x70] sm:$0xff]  ;;  %v9003_v45 = vld [vmem:[%s11121_s2 + $0x3a0] sm:$0xff]  }
 0x19a   : > { %v7895_v9 = vpop.f32.mrf.mxu1  ;;  %v7995_v15 = vpop.f32.mrf.mxu0  ;;  %4301 = vmatmul.mubr.bf16.gmra.mxu1 %v4079_v16  ;;  %4845 = vmatmul.mubr.bf16.vlgmr.msra.gmra.mxu0 %v7370_v13 }
 0x19b   : > { %v1857_v49 = vadd.f32 %v7894_v40, %v10149_v1  ;;  %v10311_v32 = vadd.f32 %v7994_v7, %v1855_v58  ;;  %8580 = vmatpush3.bf16.msra.mxu0 %v8973_v35  ;;  %4308 = vmatprep.mubr.bf16.mxu1 %v4085_v17  ;;  %v8992_v1 = vld [vmem:[%s11121_s2 + $0x468] sm:$0xff]   ;;  %v7372_v35 = vcombine.low %v10231_v48, %v10247_v44  ;;  %v9004_v7 = vld [vmem:[%s11121_s2 + $0x460] sm:$0xff]  }
 0x19c   : > { %v7896_v19 = vpop.f32.mrf.mxu1  ;;  %v7996_v36 = vpop.f32.mrf.mxu0  ;;  %4852 = vmatprep.mubr.bf16.mxu0 %v7373_v0  ;;  %8581 = vmatprep.subr.bf16.mxu0 %v8983_v55  ;;  %v4083_v17 = vsel %vm2093_vm1, %v4078_v37, %v10313_v34  ;;  %v7375_v0 = vcombine.high %v10249_v27, %v10277_v28  ;;  %v4089_v48 = vsel %vm2093_vm1, %v10272_v57, %v10318_v11  ;;  %v9014_v37 = vld [vmem:[%s11121_s2 + $0x3d8] sm:$0xff]  }
 0x19d   : > { %v7897_v58 = vadd.f32 %v7896_v19, %v7895_v9  ;;  %v7997_v6 = vadd.f32 %v7996_v36, %v7995_v15  ;;  %8478 = vmatpush3.bf16.msra.mxu1 %v8991_v46  ;;  %v7301_v44 = vcombine.high %v10323_v2, %v10325_v33  ;;  %v9015_v57 = vld [vmem:[%s11121_s2 + $0x398] sm:$0xff]   ;;  %v10358_v15 = vrot.slane %v7298_v63, 1 }
 0x19e   : > { %v7898_v13 = vpop.f32.mrf.mxu1  ;;  %v7998_v16 = vpop.f32.mrf.mxu0  ;;  %8479 = vmatprep.subr.bf16.mxu1 %v9002_v39  ;;  %v9026_v39 = vld [vmem:[%s11121_s2 + $0x3d0] sm:$0xff]  }
 0x19f   : > { %v1858_v59 = vadd.f32 %v7897_v58, %v10161_v52  ;;  %v10335_v30 = vadd.f32 %v7997_v6, %v1856_v14  ;;  %8582 = vmatpush3.bf16.msra.mxu0 %v8985_v56  ;;  %v8996_v52 = vld [vmem:[%s11121_s2 + $0x428] sm:$0xff]   ;;  %v10366_v58 = vrot.slane %v7301_v44, 1  ;;  %v10368_v6 = vld [vmem:[#allocation2 + $0x78] sm:$0xff]  ;;  %v7377_v44 = vcombine.high %v10279_v60, %v10323_v2 }
 0x1a0   : > { %v7899_v42 = vpop.f32.mrf.mxu1  ;;  %v7999_v55 = vpop.f32.mrf.mxu0  ;;  %8583 = vmatprep.subr.bf16.mxu0 %v8992_v1 }
 0x1a1   : > { %v7900_v14 = vadd.f32 %v7899_v42, %v7898_v13  ;;  %v8000_v40 = vadd.f32 %v7999_v55, %v7998_v16  ;;  %8480 = vmatpush3.bf16.msra.mxu1 %v9003_v45  ;;  %v9005_v45 = vld [vmem:[%s11121_s2 + $0x420] sm:$0xff]   ;;  %v4087_v42 = vsel %vm2093_vm1, %v10313_v34, %v10358_v15  ;;  %v9038_v34 = vld [vmem:[%s11121_s2 + $0x3c8] sm:$0xff]  }
 0x1a2   : > { %v7901_v46 = vpop.f32.mrf.mxu1  ;;  %v8001_v9 = vpop.f32.mrf.mxu0  ;;  %4309 = vmatmul.mubr.bf16.gmra.mxu1 %v4083_v17  ;;  %4853 = vmatmul.mubr.bf16.gmra.mxu0 %v7372_v35  ;;  %v10373_v35 = vld [vmem:[#allocation2 + $0x80] sm:$0xff] }
 0x1a3   : > { %v1859_v56 = vadd.f32 %v7900_v14, %v10169_v12  ;;  %v10364_v19 = vadd.f32 %v8000_v40, %v1857_v49  ;;  %4316 = vmatprep.mubr.bf16.mxu1 %v4089_v48  ;;  %4860 = vmatprep.mubr.bf16.mxu0 %v7375_v0  ;;  %v9016_v12 = vld [vmem:[%s11121_s2 + $0x458] sm:$0xff]   ;;  %v9027_v49 = vld [vmem:[%s11121_s2 + $0x390] sm:$0xff]   ;;  %v7374_v0 = vcombine.low %v10249_v27, %v10277_v28 }
 0x1a4   : > { %v7902_v36 = vpop.f32.mrf.mxu1  ;;  %v8002_v1 = vpop.f32.mrf.mxu0  ;;  %8584 = vmatpush3.bf16.msra.mxu0 %v8996_v52  ;;  %8481 = vmatprep.subr.bf16.mxu1 %v9014_v37  ;;  %v7300_v52 = vcombine.low %v10323_v2, %v10325_v33  ;;  %v4093_v27 = vsel %vm2093_vm1, %v10318_v11, %v10366_v58  ;;  %v7303_v28 = vcombine.high %v10368_v6, %v10373_v35  ;;  %v9028_v11 = vld [vmem:[%s11121_s2 + $0x450] sm:$0xff]  }
 0x1a5   : > { %v7903_v13 = vadd.f32 %v7902_v36, %v7901_v46  ;;  %v8003_v16 = vadd.f32 %v8002_v1, %v8001_v9  ;;  %8585 = vmatprep.subr.bf16.mxu0 %v9004_v7  ;;  %8482 = vmatpush3.bf16.msra.mxu1 %v9015_v57  ;;  %v9039_v7 = vld [vmem:[%s11121_s2 + $0x388] sm:$0xff]   ;;  %v9049_v9 = vld [vmem:[%s11121_s2 + $0x3c0] sm:$0xff]  }
 0x1a6   : > { %v7904_v63 = vpop.f32.mrf.mxu1  ;;  %v8004_v17 = vpop.f32.mrf.mxu0  ;;  %8483 = vmatprep.subr.bf16.mxu1 %v9026_v39  ;;  %v4090_v1 = vrot.slane %v7300_v52, 1  ;;  %v7376_v52 = vcombine.low %v10279_v60, %v10323_v2 }
 0x1a7   : > { %v1860_v55 = vadd.f32 %v7903_v13, %v10011_v51  ;;  %v10387_v48 = vadd.f32 %v8003_v16, %v1858_v59  ;;  %v9017_v51 = vld [vmem:[%s11121_s2 + $0x418] sm:$0xff]   ;;  %v4096_v16 = vrot.slane %v7303_v28, 1 }
 0x1a8   : > { %v7905_v37 = vpop.f32.mrf.mxu1  ;;  %v8005_v14 = vpop.f32.mrf.mxu0  ;;  %8586 = vmatpush3.bf16.msra.mxu0 %v9005_v45  ;;  %v4091_v28 = vsel %vm2093_vm1, %v10358_v15, %v4090_v1  ;;  %v9052_v15 = vld [vmem:[%s11121_s2 + $0x440] sm:$0xff]  }
 0x1a9   : > { %v7906_v59 = vadd.f32 %v7905_v37, %v7904_v63  ;;  %v8006_v40 = vadd.f32 %v8005_v14, %v8004_v17  ;;  %8587 = vmatprep.subr.bf16.mxu0 %v9016_v12  ;;  %8484 = vmatpush3.bf16.msra.mxu1 %v9027_v49  ;;  %v10416_v12 = vld [vmem:[#allocation2 + $0x88] sm:$0xff]  ;;  %v9029_v49 = vld [vmem:[%s11121_s2 + $0x410] sm:$0xff]   ;;  %v7302_v37 = vcombine.low %v10368_v6, %v10373_v35 }
 0x1aa   : > { %v7907_v57 = vpop.f32.mrf.mxu1  ;;  %v8007_v46 = vpop.f32.mrf.mxu0  ;;  %4317 = vmatmul.mubr.bf16.gmra.mxu1 %v4087_v42  ;;  %4861 = vmatmul.mubr.bf16.gmra.mxu0 %v7374_v0  ;;  %v10421_v0 = vld [vmem:[#allocation2 + $0x90] sm:$0xff] }
 0x1ab   : > { %v1861_v39 = vadd.f32 %v7906_v59, %v10033_v24  ;;  %v10414_v36 = vadd.f32 %v8006_v40, %v1859_v56  ;;  %4324 = vmatprep.mubr.bf16.mxu1 %v4093_v27  ;;  %4868 = vmatprep.mubr.bf16.mxu0 %v7377_v44  ;;  %v9040_v24 = vld [vmem:[%s11121_s2 + $0x448] sm:$0xff]   ;;  %v9051_v56 = vld [vmem:[%s11121_s2 + $0x380] sm:$0xff]   ;;  %v4097_v40 = vsel %vm2093_vm1, %v10366_v58, %v4096_v16  ;;  %v4094_v58 = vrot.slane %v7302_v37, 1 }
 0x1ac   : > { %v7908_v45 = vpop.f32.mrf.mxu1  ;;  %v8008_v13 = vpop.f32.mrf.mxu0  ;;  %8588 = vmatpush3.bf16.msra.mxu0 %v9017_v51  ;;  %8485 = vmatprep.subr.bf16.mxu1 %v9038_v34  ;;  %v7379_v51 = vcombine.high %v10325_v33, %v10368_v6  ;;  %v7305_v60 = vcombine.high %v10416_v12, %v10421_v0 }
 0x1ad   : > { %v7909_v63 = vadd.f32 %v7908_v45, %v7907_v57  ;;  %v8009_v17 = vadd.f32 %v8008_v13, %v8007_v46  ;;  %8589 = vmatprep.subr.bf16.mxu0 %v9028_v11  ;;  %8486 = vmatpush3.bf16.msra.mxu1 %v9039_v7 }
 0x1ae   : > { %v7910_v42 = vpop.f32.mrf.mxu1  ;;  %v8010_v44 = vpop.f32.mrf.mxu0  ;;  %8487 = vmatprep.subr.bf16.mxu1 %v9049_v9  ;;  %v4100_v13 = vrot.slane %v7305_v60, 1 }
 0x1af   : > { %v1862_v14 = vadd.f32 %v7909_v63, %v10055_v62  ;;  %v10434_v27 = vadd.f32 %v8009_v17, %v1860_v55  ;;  %v9041_v62 = vld [vmem:[%s11121_s2 + $0x408] sm:$0xff]  }
 0x1b0   : > { %v7911_v34 = vpop.f32.mrf.mxu1  ;;  %v8011_v59 = vpop.f32.mrf.mxu0  ;;  %8590 = vmatpush3.bf16.msra.mxu0 %v9029_v49  ;;  %v9053_v49 = vld [vmem:[%s11121_s2 + $0x400] sm:$0xff]  }
 0x1b1   : > { %v7912_v2 = vadd.f32 %v7911_v34, %v7910_v42  ;;  %v8012_v55 = vadd.f32 %v8011_v59, %v8010_v44  ;;  %8591 = vmatprep.subr.bf16.mxu0 %v9040_v24  ;;  %8488 = vmatpush3.bf16.msra.mxu1 %v9051_v56  ;;  %v10456_v24 = vld [vmem:[#allocation2 + $0x98] sm:$0xff]  ;;  %v10458_v56 = vld [vmem:[#allocation2 + $0xa0] sm:$0xff]  ;;  %v7378_v42 = vcombine.low %v10325_v33, %v10368_v6 }
 0x1b2   : > { %v7913_v11 = vpop.f32.mrf.mxu1  ;;  %v8013_v7 = vpop.f32.mrf.mxu0  ;;  %4325 = vmatmul.mubr.bf16.gmra.mxu1 %v4091_v28  ;;  %4869 = vmatmul.mubr.bf16.gmra.mxu0 %v7376_v52  ;;  %v4095_v44 = vsel %vm2093_vm1, %v4090_v1, %v4094_v58  ;;  %v7381_v28 = vcombine.high %v10373_v35, %v10416_v12  ;;  %v7307_v60 = vcombine.high %v10456_v24, %v10458_v56 }
 0x1b3   : > { %v1863_v57 = vadd.f32 %v7912_v2, %v10077_v22  ;;  %v10451_v46 = vadd.f32 %v8012_v55, %v1861_v39  ;;  %4332 = vmatprep.mubr.bf16.mxu1 %v4097_v40  ;;  %4876 = vmatprep.mubr.bf16.mxu0 %v7379_v51  ;;  %v7304_v51 = vcombine.low %v10416_v12, %v10421_v0 }
 0x1b4   : > { %v7914_v9 = vpop.f32.mrf.mxu1  ;;  %v8014_v45 = vpop.f32.mrf.mxu0  ;;  %8592 = vmatpush3.bf16.msra.mxu0 %v9041_v62  ;;  %v4101_v40 = vsel %vm2093_vm1, %v4096_v16, %v4100_v13  ;;  %v4104_v16 = vrot.slane %v7307_v60, 1 }
 0x1b5   : > { %v7915_v63 = vadd.f32 %v7914_v9, %v7913_v11  ;;  %v8015_v17 = vadd.f32 %v8014_v45, %v8013_v7  ;;  %8593 = vmatprep.subr.bf16.mxu0 %v9052_v15  ;;  %v4098_v2 = vrot.slane %v7304_v51, 1  ;;  %v10476_v9 = vld [vmem:[#allocation2 + $0xa8] sm:$0xff]  ;;  %v10478_v45 = vld [vmem:[#allocation2 + $0xb0] sm:$0xff] }
 0x1b6   : > { %v7916_v22 = vpop.f32.mrf.mxu1  ;;  %v8016_v39 = vpop.f32.mrf.mxu0  ;;  %v4105_v51 = vsel %vm2093_vm1, %v4100_v13, %v4104_v16 }
 0x1b7   : > { %v1864_v52 = vadd.f32 %v7915_v63, %v10089_v5  ;;  %v10464_v37 = vadd.f32 %v8015_v17, %v1862_v14  ;;  %v7380_v17 = vcombine.low %v10373_v35, %v10416_v12 }
 0x1b8   : > { %v7917_v34 = vpop.f32.mrf.mxu1  ;;  %v8017_v59 = vpop.f32.mrf.mxu0  ;;  %8594 = vmatpush3.bf16.msra.mxu0 %v9053_v49 }
 0x1b9   : > { %v7918_v33 = vadd.f32 %v7917_v34, %v7916_v22  ;;  %v8018_v6 = vadd.f32 %v8017_v59, %v8016_v39  ;;  %v4099_v39 = vsel %vm2093_vm1, %v4094_v58, %v4098_v2  ;;  %v7309_v34 = vcombine.high %v10476_v9, %v10478_v45 }
 0x1ba   : > { %v7919_v1 = vpop.f32.mrf.mxu1  ;;  %v8019_v5 = vpop.f32.mrf.mxu0  ;;  %4333 = vmatmul.mubr.bf16.gmra.mxu1 %v4095_v44  ;;  %4877 = vmatmul.mubr.bf16.gmra.mxu0 %v7378_v42  ;;  %v7383_v42 = vcombine.high %v10421_v0, %v10456_v24 }
 0x1bb   : > { %v1865_v14 = vadd.f32 %v7918_v33, %v10100_v26  ;;  %v10474_v62 = vadd.f32 %v8018_v6, %v1863_v57  ;;  %4340 = vmatprep.mubr.bf16.mxu1 %v4101_v40  ;;  %4884 = vmatprep.mubr.bf16.mxu0 %v7381_v28  ;;  %v7306_v26 = vcombine.low %v10456_v24, %v10458_v56  ;;  %v4108_v6 = vrot.slane %v7309_v34, 1 }
 0x1bc   : > { %v7920_v55 = vpop.f32.mrf.mxu1  ;;  %v8020_v15 = vpop.f32.mrf.mxu0 }
 0x1bd   : > { %v7921_v11 = vadd.f32 %v7920_v55, %v7919_v1  ;;  %v8021_v7 = vadd.f32 %v8020_v15, %v8019_v5  ;;  %v10496_v5 = vld [vmem:[#allocation2 + $0xb8] sm:$0xff]  ;;  %v10498_v55 = vld [vmem:[#allocation2 + $0xc0] sm:$0xff] }
 0x1be   : > { %v7922_v49 = vpop.f32.mrf.mxu1  ;;  %v8022_v63 = vpop.f32.mrf.mxu0 }
 0x1bf   : > { %v1866_v57 = vadd.f32 %v7921_v11, %v10106_v61  ;;  %v10485_v22 = vadd.f32 %v8021_v7, %v1864_v52  ;;  %v4102_v61 = vrot.slane %v7306_v26, 1  ;;  %v7382_v7 = vcombine.low %v10421_v0, %v10456_v24 }
 0x1c0   : > { %v7923_v44 = vpop.f32.mrf.mxu1  ;;  %v8023_v28 = vpop.f32.mrf.mxu0 }
 0x1c1   : > { %v7924_v35 = vadd.f32 %v7923_v44, %v7922_v49  ;;  %v8024_v12 = vadd.f32 %v8023_v28, %v8022_v63  ;;  %v7385_v63 = vcombine.high %v10458_v56, %v10476_v9  ;;  %v7311_v44 = vcombine.high %v10496_v5, %v10498_v55 }
 0x1c2   : > { %v7925_v59 = vpop.f32.mrf.mxu1  ;;  %v8025_v40 = vpop.f32.mrf.mxu0  ;;  %4341 = vmatmul.mubr.bf16.gmra.mxu1 %v4099_v39  ;;  %4885 = vmatmul.mubr.bf16.gmra.mxu0 %v7380_v17  ;;  %v7308_v17 = vcombine.low %v10476_v9, %v10478_v45 }
 0x1c3   : > { %v1867_v52 = vadd.f32 %v7924_v35, %v10113_v4  ;;  %v10494_v58 = vadd.f32 %v8024_v12, %v1865_v14  ;;  %4348 = vmatprep.mubr.bf16.mxu1 %v4105_v51  ;;  %4892 = vmatprep.mubr.bf16.mxu0 %v7383_v42  ;;  %v4103_v4 = vsel %vm2093_vm1, %v4098_v2, %v4102_v61  ;;  %v4112_v12 = vrot.slane %v7311_v44, 1 }
 0x1c4   : > { %v7926_v60 = vpop.f32.mrf.mxu1  ;;  %v8026_v33 = vpop.f32.mrf.mxu0  ;;  %v4109_v42 = vsel %vm2093_vm1, %v4104_v16, %v4108_v6  ;;  %v4106_v51 = vrot.slane %v7308_v17, 1 }
 0x1c5   : > { %v7927_v13 = vadd.f32 %v7926_v60, %v7925_v59  ;;  %v8027_v1 = vadd.f32 %v8026_v33, %v8025_v40  ;;  %v10516_v40 = vld [vmem:[#allocation2 + $0xc8] sm:$0xff]  ;;  %v10518_v60 = vld [vmem:[#allocation2 + $0xd0] sm:$0xff]  ;;  %v4113_v17 = vsel %vm2093_vm1, %v4108_v6, %v4112_v12 }
 0x1c6   : > { %v7928_v15 = vpop.f32.mrf.mxu1  ;;  %v8028_v11 = vpop.f32.mrf.mxu0 }
 0x1c7   : > { %v1868_v14 = vadd.f32 %v7927_v13, %v10118_v43  ;;  %v10504_v49 = vadd.f32 %v8027_v1, %v1866_v57  ;;  %v7384_v1 = vcombine.low %v10458_v56, %v10476_v9 }
 0x1c8   : > { %v7929_v26 = vpop.f32.mrf.mxu1  ;;  %v8029_v39 = vpop.f32.mrf.mxu0 }
 0x1c9   : > { %v7930_v0 = vadd.f32 %v7929_v26, %v7928_v15  ;;  %v8030_v24 = vadd.f32 %v8029_v39, %v8028_v11  ;;  %v4107_v11 = vsel %vm2093_vm1, %v4102_v61, %v4106_v51  ;;  %v7313_v26 = vcombine.high %v10516_v40, %v10518_v60 }
 0x1ca   : > { %v7931_v2 = vpop.f32.mrf.mxu1  ;;  %v8031_v28 = vpop.f32.mrf.mxu0  ;;  %4349 = vmatmul.mubr.bf16.gmra.mxu1 %v4103_v4  ;;  %4893 = vmatmul.mubr.bf16.gmra.mxu0 %v7382_v7  ;;  %v7387_v7 = vcombine.high %v10478_v45, %v10496_v5 }
 0x1cb   : > { %v1869_v43 = vadd.f32 %v7930_v0, %v10124_v50  ;;  %v10514_v57 = vadd.f32 %v8030_v24, %v1867_v52  ;;  %4356 = vmatprep.mubr.bf16.mxu1 %v4109_v42  ;;  %4900 = vmatprep.mubr.bf16.mxu0 %v7385_v63  ;;  %v7310_v50 = vcombine.low %v10496_v5, %v10498_v55  ;;  %v4116_v24 = vrot.slane %v7313_v26, 1 }
 0x1cc   : > { %v7932_v34 = vpop.f32.mrf.mxu1  ;;  %v8032_v35 = vpop.f32.mrf.mxu0 }
 0x1cd   : > { %v7933_v16 = vadd.f32 %v7932_v34, %v7931_v2  ;;  %v8033_v59 = vadd.f32 %v8032_v35, %v8031_v28  ;;  %v10536_v28 = vld [vmem:[#allocation2 + $0xd8] sm:$0xff]  ;;  %v10538_v34 = vld [vmem:[#allocation2 + $0xe0] sm:$0xff] }
 0x1ce   : > { %v7934_v33 = vpop.f32.mrf.mxu1  ;;  %v8034_v13 = vpop.f32.mrf.mxu0 }
 0x1cf   : > { %v1870_v52 = vadd.f32 %v7933_v16, %v10131_v20  ;;  %v10525_v15 = vadd.f32 %v8033_v59, %v1868_v14  ;;  %v4110_v20 = vrot.slane %v7310_v50, 1  ;;  %v7386_v59 = vcombine.low %v10478_v45, %v10496_v5 }
 0x1d0   : > { %v7935_v4 = vpop.f32.mrf.mxu1  ;;  %v8035_v63 = vpop.f32.mrf.mxu0 }
 0x1d1   : > { %v7936_v56 = vadd.f32 %v7935_v4, %v7934_v33  ;;  %v8036_v9 = vadd.f32 %v8035_v63, %v8034_v13  ;;  %v7389_v13 = vcombine.high %v10498_v55, %v10516_v40  ;;  %v7315_v4 = vcombine.high %v10536_v28, %v10538_v34 }
 0x1d2   : > { %v7937_v39 = vpop.f32.mrf.mxu1  ;;  %v8037_v42 = vpop.f32.mrf.mxu0  ;;  %4357 = vmatmul.mubr.bf16.gmra.mxu1 %v4107_v11  ;;  %4901 = vmatmul.mubr.bf16.gmra.mxu0 %v7384_v1  ;;  %v7312_v1 = vcombine.low %v10516_v40, %v10518_v60 }
 0x1d3   : > { %v1871_v14 = vadd.f32 %v7936_v56, %v10135_v38  ;;  %v10534_v61 = vadd.f32 %v8036_v9, %v1869_v43  ;;  %4364 = vmatprep.mubr.bf16.mxu1 %v4113_v17  ;;  %4908 = vmatprep.mubr.bf16.mxu0 %v7387_v7  ;;  %v4111_v38 = vsel %vm2093_vm1, %v4106_v51, %v4110_v20  ;;  %v4120_v9 = vrot.slane %v7315_v4, 1 }
 0x1d4   : > { %v7938_v44 = vpop.f32.mrf.mxu1  ;;  %v8038_v0 = vpop.f32.mrf.mxu0  ;;  %v4117_v7 = vsel %vm2093_vm1, %v4112_v12, %v4116_v24  ;;  %v4114_v17 = vrot.slane %v7312_v1, 1 }
 0x1d5   : > { %v7939_v6 = vadd.f32 %v7938_v44, %v7937_v39  ;;  %v8039_v2 = vadd.f32 %v8038_v0, %v8037_v42  ;;  %v10556_v42 = vld [vmem:[#allocation2 + $0xe8] sm:$0xff]  ;;  %v10558_v44 = vld [vmem:[#allocation2 + $0xf0] sm:$0xff]  ;;  %v4121_v1 = vsel %vm2093_vm1, %v4116_v24, %v4120_v9 }
 0x1d6   : > { %v7940_v35 = vpop.f32.mrf.mxu1  ;;  %v8040_v16 = vpop.f32.mrf.mxu0 }
 0x1d7   : > { %v1872_v43 = vadd.f32 %v7939_v6, %v10146_v41  ;;  %v10544_v33 = vadd.f32 %v8039_v2, %v1870_v52  ;;  %v7388_v2 = vcombine.low %v10498_v55, %v10516_v40 }
 0x1d8   : > { %v7941_v50 = vpop.f32.mrf.mxu1  ;;  %v8041_v11 = vpop.f32.mrf.mxu0 }
 0x1d9   : > { %v7942_v45 = vadd.f32 %v7941_v50, %v7940_v35  ;;  %v8042_v5 = vadd.f32 %v8041_v11, %v8040_v16  ;;  %v4115_v16 = vsel %vm2093_vm1, %v4110_v20, %v4114_v17  ;;  %v7317_v50 = vcombine.high %v10556_v42, %v10558_v44 }
 0x1da   : > { %v8043_v51 = vpop.f32.mrf.mxu0  ;;  %v8065_v63 = vpop.f32.mrf.mxu1  ;;  %4365 = vmatmul.mubr.bf16.gmra.mxu1 %v4111_v38  ;;  %4909 = vmatmul.mubr.bf16.gmra.mxu0 %v7386_v59  ;;  %v7391_v59 = vcombine.high %v10518_v60, %v10536_v28 }
 0x1db   : > { %v1873_v41 = vadd.f32 %v7942_v45, %v10151_v18  ;;  %v10554_v52 = vadd.f32 %v8042_v5, %v1871_v14  ;;  %4372 = vmatprep.mubr.bf16.mxu1 %v4117_v7  ;;  %4916 = vmatprep.mubr.bf16.mxu0 %v7389_v13  ;;  %v7314_v18 = vcombine.low %v10536_v28, %v10538_v34  ;;  %v4124_v5 = vrot.slane %v7317_v50, 1 }
 0x1dc   : > { %v8044_v26 = vpop.f32.mrf.mxu0  ;;  %v8066_v56 = vpop.f32.mrf.mxu1 }
 0x1dd   : > { %v8045_v12 = vadd.f32 %v8044_v26, %v8043_v51  ;;  %v8067_v39 = vadd.f32 %v8066_v56, %v8065_v63  ;;  %v10576_v63 = vld [vmem:[#allocation2 + $0xf8] sm:$0xff]  ;;  %v10578_v26 = vld [vmem:[#allocation2 + $0x100] sm:$0xff] }
 0x1de   : > { %v8046_v0 = vpop.f32.mrf.mxu0  ;;  %v8068_v6 = vpop.f32.mrf.mxu1 }
 0x1df   : > { %v10564_v14 = vadd.f32 %v8045_v12, %v1872_v43  ;;  %v3017_v35 = vadd.f32 %v8067_v39, %v10181_v31  ;;  %v4118_v43 = vrot.slane %v7314_v18, 1  ;;  %v7390_v39 = vcombine.low %v10518_v60, %v10536_v28 }
 0x1e0   : > { %v8047_v38 = vpop.f32.mrf.mxu0  ;;  %v8069_v13 = vpop.f32.mrf.mxu1 }
 0x1e1   : > { %v8048_v55 = vadd.f32 %v8047_v38, %v8046_v0  ;;  %v8070_v40 = vadd.f32 %v8069_v13, %v8068_v6  ;;  %v7393_v6 = vcombine.high %v10538_v34, %v10556_v42  ;;  %v7319_v38 = vcombine.high %v10576_v63, %v10578_v26 }
 0x1e2   : > { %v8071_v11 = vpop.f32.mrf.mxu1  ;;  %v8171_v7 = vpop.f32.mrf.mxu0  ;;  %4373 = vmatmul.mubr.bf16.gmra.mxu1 %v4115_v16  ;;  %4917 = vmatmul.mubr.bf16.gmra.mxu0 %v7388_v2  ;;  %v7316_v2 = vcombine.low %v10556_v42, %v10558_v44 }
 0x1e3   : > { %v10573_v31 = vadd.f32 %v8048_v55, %v1873_v41  ;;  %v3018_v20 = vadd.f32 %v8070_v40, %v10189_v47  ;;  %4380 = vmatprep.mubr.bf16.mxu1 %v4121_v1  ;;  %4924 = vmatprep.mubr.bf16.mxu0 %v7391_v59  ;;  %v4119_v41 = vsel %vm2093_vm1, %v4114_v17, %v4118_v43  ;;  %v4128_v40 = vrot.slane %v7319_v38, 1 }
 0x1e4   : > { %v8072_v4 = vpop.f32.mrf.mxu1  ;;  %v8172_v45 = vpop.f32.mrf.mxu0  ;;  %v4125_v59 = vsel %vm2093_vm1, %v4120_v9, %v4124_v5  ;;  %v4122_v1 = vrot.slane %v7316_v2, 1 }
 0x1e5   : > { %v8073_v24 = vadd.f32 %v8072_v4, %v8071_v11  ;;  %v8173_v51 = vadd.f32 %v8172_v45, %v8171_v7  ;;  %v3913_v7 = vld [vmem:[#allocation2 + $0x108] sm:$0x11]  ;;  %v5055_v4 = vld [vmem:[#allocation2 + $0x30] sm:$0xff]  ;;  %v10596_v45 = vld [vmem:[#allocation2 + $0x38] sm:$0xff] }
 0x1e6   : > { %v8074_v56 = vpop.f32.mrf.mxu1  ;;  %v8174_v12 = vpop.f32.mrf.mxu0 }
 0x1e7   : > { %v3019_v47 = vadd.f32 %v8073_v24, %v10195_v21  ;;  %v10584_v0 = vadd.f32 %v8173_v51, %v3017_v35 }
 0x1e8   : > { %v8075_v18 = vpop.f32.mrf.mxu1  ;;  %v8175_v16 = vpop.f32.mrf.mxu0 }
 0x1e9   : > { %v8076_v60 = vadd.f32 %v8075_v18, %v8074_v56  ;;  %v8176_v28 = vadd.f32 %v8175_v16, %v8174_v12  ;;  %v7392_v56 = vcombine.low %v10538_v34, %v10556_v42  ;;  %v4129_v18 = vsel %vm2093_vm1, %v4124_v5, %v4128_v40  ;;  %v4530_v5 = vld [vmem:[#allocation2 + $0x108] sm:$0xff] }
 0x1ea   : > { %v8077_v17 = vpop.f32.mrf.mxu1  ;;  %v8177_v13 = vpop.f32.mrf.mxu0  ;;  %4381 = vmatmul.mubr.bf16.gmra.mxu1 %v4119_v41  ;;  %4925 = vmatmul.mubr.bf16.gmra.mxu0 %v7390_v39  ;;  %v4123_v39 = vsel %vm2093_vm1, %v4118_v43, %v4122_v1  ;;  %v7395_v41 = vcombine.high %v10558_v44, %v10576_v63  ;;  %v7321_v16 = vcombine.high %v3913_v7, %v3913_v7 }
 0x1eb   : > { %v3020_v21 = vadd.f32 %v8076_v60, %v10204_v10  ;;  %v10594_v35 = vadd.f32 %v8176_v28, %v3018_v20  ;;  %4388 = vmatprep.mubr.bf16.mxu1 %v4125_v59  ;;  %4932 = vmatprep.mubr.bf16.mxu0 %v7393_v6  ;;  %v7318_v10 = vcombine.low %v10576_v63, %v10578_v26 }
 0x1ec   : > { %v8078_v50 = vpop.f32.mrf.mxu1  ;;  %v8178_v55 = vpop.f32.mrf.mxu0  ;;  %v7449_v59 = vcombine.high %v5055_v4, %v10596_v45 }
 0x1ed   : > { %v8079_v9 = vadd.f32 %v8078_v50, %v8077_v17  ;;  %v8179_v11 = vadd.f32 %v8178_v55, %v8177_v13  ;;  %v4132_v13 = vrot.slane %v7321_v16, 1  ;;  %v10613_v50 = vld [vmem:[#allocation2 + $0x44] ss:$8 sps:$4 sm:$0xff]  }
 0x1ee   : > { %v8080_v24 = vpop.f32.mrf.mxu1  ;;  %v8180_v51 = vpop.f32.mrf.mxu0  ;;  %v5259_v55 = vshll.u32 %v7449_v59, 16 }
 0x1ef   : > { %v3021_v20 = vadd.f32 %v8079_v9, %v10215_v53  ;;  %v10603_v12 = vadd.f32 %v8179_v11, %v3019_v47  ;;  %v4126_v53 = vrot.slane %v7318_v10, 1  ;;  %v4133_v16 = vsel %vm2093_vm1, %v4128_v40, %v4132_v13 }
 0x1f0   : > { %v8081_v6 = vpop.f32.mrf.mxu1  ;;  %v8181_v2 = vpop.f32.mrf.mxu0 }
 0x1f1   : > { %v8082_v34 = vadd.f32 %v8081_v6, %v8080_v24  ;;  %v8182_v42 = vadd.f32 %v8181_v2, %v8180_v51  ;;  %v7320_v6 = vcombine.low %v3913_v7, %v3913_v7 }
 0x1f2   : > { %v8083_v38 = vpop.f32.mrf.mxu1  ;;  %v8183_v60 = vpop.f32.mrf.mxu0  ;;  %4389 = vmatmul.mubr.bf16.gmra.mxu1 %v4123_v39  ;;  %4933 = vmatmul.mubr.bf16.gmra.mxu0 %v7392_v56  ;;  %v7394_v56 = vcombine.low %v10558_v44, %v10576_v63 }
 0x1f3   : > { %v3022_v47 = vadd.f32 %v8082_v34, %v10226_v8  ;;  %v10611_v43 = vadd.f32 %v8182_v42, %v3020_v21  ;;  %4396 = vmatprep.mubr.bf16.mxu1 %v4129_v18  ;;  %4940 = vmatprep.mubr.bf16.mxu0 %v7395_v41  ;;  %v4127_v8 = vsel %vm2093_vm1, %v4122_v1, %v4126_v53  ;;  %v5257_v34 = vshrl.u32 %v7449_v59, 16 }
 0x1f4   : > { %v8084_v28 = vpop.f32.mrf.mxu1  ;;  %v8184_v17 = vpop.f32.mrf.mxu0  ;;  %v7448_v21 = vcombine.low %v5055_v4, %v10596_v45  ;;  %v7397_v41 = vcombine.high %v10578_v26, %v4530_v5  ;;  %v5261_v42 = vrot.slane %v5259_v55, 1  ;;  %v4130_v40 = vrot.slane %v7320_v6, 1  ;;  %v10630_v55 = vld [vmem:[#allocation2 + $0x54] ss:$8 sps:$4 sm:$0xff]  }
 0x1f5   : > { %v8085_v9 = vadd.f32 %v8084_v28, %v8083_v38  ;;  %v8185_v11 = vadd.f32 %v8184_v17, %v8183_v60  ;;  %v5264_v38 = vshll.u32 %v10613_v50, 16 }
 0x1f6   : > { %v8086_v24 = vpop.f32.mrf.mxu1  ;;  %v8186_v51 = vpop.f32.mrf.mxu0  ;;  %v5247_v4 = vshll.u32 %v7448_v21, 16  ;;  %v5262_v17 = vor.u32 %v5261_v42, %v5257_v34 }
 0x1f7   : > { %v3023_v10 = vadd.f32 %v8085_v9, %v10236_v25  ;;  %v10620_v39 = vadd.f32 %v8185_v11, %v3021_v20  ;;  %v10625_v25 = vld [vmem:[#allocation2 + $0x40] ss:$8 sps:$4 sm:$0xff]   ;;  %v5266_v13 = vrot.slane %v5264_v38, 1 }
 0x1f8   : > { %v8087_v2 = vpop.f32.mrf.mxu1  ;;  %v8187_v18 = vpop.f32.mrf.mxu0 }
 0x1f9   : > { %v8088_v44 = vadd.f32 %v8087_v2, %v8086_v24  ;;  %v8188_v63 = vadd.f32 %v8187_v18, %v8186_v51  ;;  %v5861_v24 = vld [vmem:[#allocation2 + $0x30] sm:$0xee]  ;;  %v5245_v2 = vshrl.u32 %v7448_v21, 16  ;;  %v4131_v18 = vsel %vm2093_vm1, %v4126_v53, %v4130_v40 }
 0x1fa   : > { %v8089_v1 = vpop.f32.mrf.mxu1  ;;  %v8189_v60 = vpop.f32.mrf.mxu0  ;;  %4397 = vmatmul.mubr.bf16.gmra.mxu1 %v4127_v8  ;;  %4941 = vmatmul.mubr.bf16.gmra.mxu0 %v7394_v56  ;;  %v7396_v8 = vcombine.low %v10578_v26, %v4530_v5  ;;  %v5267_v38 = vsel %vm1286_vm0, %v5262_v17, %v5266_v13  ;;  %v7529_v26 = vcombine.high %v5861_v24, %v10596_v45  ;;  %v10645_v40 = vld [vmem:[#allocation2 + $0x50] ss:$8 sps:$4 sm:$0xff]  }
 0x1fb   : > { %v3024_v20 = vadd.f32 %v8088_v44, %v10245_v29  ;;  %v10628_v7 = vadd.f32 %v8188_v63, %v3022_v47  ;;  %4404 = vmatprep.mubr.bf16.mxu1 %v4133_v16  ;;  %4948 = vmatprep.mubr.bf16.mxu0 %v7397_v41  ;;  %v5249_v29 = vrot.slane %v5247_v4, 1  ;;  %v5252_v47 = vshll.u32 %v10625_v25, 16  ;;  %v9056_v16 = vld [vmem:[#allocation2 + $0x114] ss:$8 sps:$4 sm:$0xff]  }
 0x1fc   : > { %v8090_v59 = vpop.f32.mrf.mxu1  ;;  %v8190_v28 = vpop.f32.mrf.mxu0  ;;  %v5276_v44 = vshrl.u32 %v10613_v50, 16  ;;  %v5280_v63 = vshll.u32 %v10630_v55, 16 }
 0x1fd   : > { %v8091_v9 = vadd.f32 %v8090_v59, %v8089_v1  ;;  %v8191_v11 = vadd.f32 %v8190_v28, %v8189_v60 }
 0x1fe   : > { %v8092_v51 = vpop.f32.mrf.mxu1  ;;  %v8192_v56 = vpop.f32.mrf.mxu0  ;;  %v5278_v17 = vor.u32 %v5276_v44, %v5266_v13  ;;  %v5268_v13 = vshrl.u32 %v10625_v25, 16 }
 0x1ff   : > { %v3025_v41 = vadd.f32 %v8091_v9, %v10254_v23  ;;  %v10635_v6 = vadd.f32 %v8191_v11, %v3023_v10  ;;  %v5250_v23 = vor.u32 %v5249_v29, %v5245_v2  ;;  %v5254_v10 = vrot.slane %v5252_v47, 1 }
 0x200   : > { %v8093_v34 = vpop.f32.mrf.mxu1  ;;  %v8193_v42 = vpop.f32.mrf.mxu0  ;;  %v5282_v9 = vrot.slane %v5280_v63, 1  ;;  %v6053_v11 = vrot.slane %v7529_v26, 1  ;;  %v5292_v26 = vshrl.u32 %v10630_v55, 16 }
 0x201   : > { %v8094_v5 = vadd.f32 %v8093_v34, %v8092_v51  ;;  %v8194_v21 = vadd.f32 %v8193_v42, %v8192_v56  ;;  %v6054_v51 = vrot.slane %v10613_v50, 1  ;;  %v10648_v56 = vld [vmem:[#allocation2 + $0x64] ss:$8 sps:$4 sm:$0xff]   ;;  %v5272_v42 = vshll.u32 %v10645_v40, 16 }
 0x202   : > { %v8095_v1 = vpop.f32.mrf.mxu1  ;;  %v8195_v60 = vpop.f32.mrf.mxu0  ;;  %4405 = vmatmul.mubr.bf16.gmra.mxu1 %v4131_v18  ;;  %4949 = vmatmul.mubr.bf16.gmra.mxu0 %v7396_v8  ;;  %v7528_v18 = vcombine.low %v5861_v24, %v10596_v45  ;;  %v5283_v44 = vsel %vm1286_vm0, %v5278_v17, %v5282_v9 }
 0x203   : > { %v3026_v53 = vadd.f32 %v8094_v5, %v10270_v3  ;;  %v10643_v4 = vadd.f32 %v8194_v21, %v3024_v20  ;;  %4956 = vmatprep.mubr.bf16.mxu0 %v9056_v16  ;;  %5650 = vmatprep.mubr.bf16.mxu1 %v5267_v38  ;;  %v9054_v3 = vld [vmem:[#allocation2 + $0x110] ss:$8 sps:$4 sm:$0xff]   ;;  %v5255_v20 = vsel %vm1286_vm0, %v5250_v23, %v5254_v10  ;;  %v5296_v5 = vshll.u32 %v10648_v56, 16 }
 0x204   : > { %v8096_v59 = vpop.f32.mrf.mxu1  ;;  %v8196_v28 = vpop.f32.mrf.mxu0  ;;  %v6055_v63 = vsel %vm2093_vm1, %v6053_v11, %v6054_v51  ;;  %v5274_v17 = vrot.slane %v5272_v42, 1 }
 0x205   : > { %v8097_v8 = vadd.f32 %v8096_v59, %v8095_v1  ;;  %v8197_v2 = vadd.f32 %v8196_v28, %v8195_v60  ;;  %v6051_v1 = vrot.slane %v10625_v25, 1  ;;  %v10662_v60 = vld [vmem:[#allocation2 + $0x60] ss:$8 sps:$4 sm:$0xff]   ;;  %v5270_v28 = vor.u32 %v5268_v13, %v5254_v10 }
 0x206   : > { %v8098_v29 = vpop.f32.mrf.mxu1  ;;  %v8198_v47 = vpop.f32.mrf.mxu0 }
 0x207   : > { %v3027_v16 = vadd.f32 %v8097_v8, %v10287_v54  ;;  %v10653_v34 = vadd.f32 %v8197_v2, %v3025_v41  ;;  %v6050_v41 = vrot.slane %v7528_v18, 1  ;;  %v5294_v2 = vor.u32 %v5292_v26, %v5282_v9 }
 0x208   : > { %v8099_v50 = vpop.f32.mrf.mxu1  ;;  %v8199_v38 = vpop.f32.mrf.mxu0  ;;  %v5275_v13 = vsel %vm1286_vm0, %v5270_v28, %v5274_v17  ;;  %v5308_v26 = vshrl.u32 %v10648_v56, 16 }
 0x209   : > { %v8100_v21 = vadd.f32 %v8099_v50, %v8098_v29  ;;  %v8200_v45 = vadd.f32 %v8199_v38, %v8198_v47  ;;  %v5298_v29 = vrot.slane %v5296_v5, 1  ;;  %v6058_v47 = vrot.slane %v10630_v55, 1 }
 0x20a   : > { %v8101_v24 = vpop.f32.mrf.mxu1  ;;  %v8201_v54 = vpop.f32.mrf.mxu0  ;;  %4957 = vmatmul.mubr.bf16.gmra.mxu0 %v9054_v3  ;;  %5651 = vmatmul.mubr.bf16.vlgmr.msra.gmra.mxu1 %v5255_v20  ;;  %v10668_v3 = vld [vmem:[#allocation2 + $0x74] ss:$8 sps:$4 sm:$0xff]   ;;  %v6052_v9 = vsel %vm2093_vm1, %v6050_v41, %v6051_v1 }
 0x20b   : > { %v3028_v23 = vadd.f32 %v8100_v21, %v10311_v32  ;;  %v10665_v59 = vadd.f32 %v8200_v45, %v3026_v53  ;;  %5658 = vmatprep.mubr.bf16.mxu1 %v5283_v44  ;;  %6270 = vmatprep.mubr.bf16.mxu0 %v6055_v63  ;;  %v5284_v32 = vshrl.u32 %v10645_v40, 16  ;;  %v5288_v53 = vshll.u32 %v10662_v60, 16 }
 0x20c   : > { %v8102_v11 = vpop.f32.mrf.mxu1  ;;  %v8202_v8 = vpop.f32.mrf.mxu0  ;;  %v5299_v44 = vsel %vm1286_vm0, %v5294_v2, %v5298_v29  ;;  %v6059_v63 = vsel %vm2093_vm1, %v6054_v51, %v6058_v47  ;;  %v5312_v5 = vshll.u32 %v10668_v3, 16  ;;  %v6056_v51 = vrot.slane %v10645_v40, 1 }
 0x20d   : > { %v8103_v20 = vadd.f32 %v8102_v11, %v8101_v24  ;;  %v8203_v25 = vadd.f32 %v8202_v8, %v8201_v54  ;;  %v5290_v54 = vrot.slane %v5288_v53, 1  ;;  %v10685_v11 = vld [vmem:[#allocation2 + $0x70] ss:$8 sps:$4 sm:$0xff]  }
 0x20e   : > { %v8104_v18 = vpop.f32.mrf.mxu1  ;;  %v8204_v50 = vpop.f32.mrf.mxu0 }
 0x20f   : > { %v3029_v38 = vadd.f32 %v8103_v20, %v10335_v30  ;;  %v10673_v10 = vadd.f32 %v8203_v25, %v3027_v16  ;;  %v5286_v16 = vor.u32 %v5284_v32, %v5274_v17  ;;  %v5310_v20 = vor.u32 %v5308_v26, %v5298_v29 }
 0x210   : > { %v8105_v42 = vpop.f32.mrf.mxu1  ;;  %v8205_v55 = vpop.f32.mrf.mxu0  ;;  %v5314_v25 = vrot.slane %v5312_v5, 1  ;;  %v5304_v29 = vshll.u32 %v10685_v11, 16  ;;  %v5324_v26 = vshrl.u32 %v10668_v3, 16 }
 0x211   : > { %v8106_v21 = vadd.f32 %v8105_v42, %v8104_v18  ;;  %v8206_v45 = vadd.f32 %v8205_v55, %v8204_v50  ;;  %v6062_v18 = vrot.slane %v10648_v56, 1  ;;  %v10688_v50 = vld [vmem:[#allocation2 + $0x84] ss:$8 sps:$4 sm:$0xff]   ;;  %v6057_v42 = vsel %vm2093_vm1, %v6051_v1, %v6056_v51  ;;  %v10701_v1 = vld [vmem:[#allocation2 + $0x80] ss:$8 sps:$4 sm:$0xff]  }
 0x212   : > { %v8107_v24 = vpop.f32.mrf.mxu1  ;;  %v8207_v30 = vpop.f32.mrf.mxu0  ;;  %5659 = vmatmul.mubr.bf16.gmra.mxu1 %v5275_v13  ;;  %6271 = vmatmul.mubr.bf16.vlgmr.msra.gmra.mxu0 %v6052_v9  ;;  %v5300_v13 = vshrl.u32 %v10662_v60, 16  ;;  %v5328_v5 = vshll.u32 %v10688_v50, 16 }
 0x213   : > { %v3030_v41 = vadd.f32 %v8106_v21, %v10364_v19  ;;  %v10682_v28 = vadd.f32 %v8206_v45, %v3028_v23  ;;  %5666 = vmatprep.mubr.bf16.mxu1 %v5299_v44  ;;  %6278 = vmatprep.mubr.bf16.mxu0 %v6059_v63  ;;  %v5291_v23 = vsel %vm1286_vm0, %v5286_v16, %v5290_v54 }
 0x214   : > { %v8108_v8 = vpop.f32.mrf.mxu1  ;;  %v8208_v2 = vpop.f32.mrf.mxu0  ;;  %v5315_v44 = vsel %vm1286_vm0, %v5310_v20, %v5314_v25  ;;  %v6063_v63 = vsel %vm2093_vm1, %v6058_v47, %v6062_v18  ;;  %v5306_v47 = vrot.slane %v5304_v29, 1 }
 0x215   : > { %v8109_v17 = vadd.f32 %v8108_v8, %v8107_v24  ;;  %v8209_v32 = vadd.f32 %v8208_v2, %v8207_v30  ;;  %v6060_v8 = vrot.slane %v10662_v60, 1 }
 0x216   : > { %v8110_v53 = vpop.f32.mrf.mxu1  ;;  %v8210_v19 = vpop.f32.mrf.mxu0 }
 0x217   : > { %v3031_v40 = vadd.f32 %v8109_v17, %v10387_v48  ;;  %v10693_v9 = vadd.f32 %v8209_v32, %v3029_v38  ;;  %v5302_v38 = vor.u32 %v5300_v13, %v5290_v54  ;;  %v5326_v17 = vor.u32 %v5324_v26, %v5314_v25 }
 0x218   : > { %v8111_v55 = vpop.f32.mrf.mxu1  ;;  %v8211_v56 = vpop.f32.mrf.mxu0  ;;  %v5330_v32 = vrot.slane %v5328_v5, 1  ;;  %v6061_v25 = vsel %vm2093_vm1, %v6056_v51, %v6060_v8  ;;  %v5340_v26 = vshrl.u32 %v10688_v50, 16 }
 0x219   : > { %v8112_v21 = vadd.f32 %v8111_v55, %v8110_v53  ;;  %v8212_v45 = vadd.f32 %v8211_v56, %v8210_v19  ;;  %v6066_v53 = vrot.slane %v10668_v3, 1  ;;  %v10708_v19 = vld [vmem:[#allocation2 + $0x94] ss:$8 sps:$4 sm:$0xff]   ;;  %v5307_v60 = vsel %vm1286_vm0, %v5302_v38, %v5306_v47 }
 0x21a   : > { %v8113_v24 = vpop.f32.mrf.mxu1  ;;  %v8213_v48 = vpop.f32.mrf.mxu0  ;;  %5667 = vmatmul.mubr.bf16.gmra.mxu1 %v5291_v23  ;;  %6279 = vmatmul.mubr.bf16.gmra.mxu0 %v6057_v42  ;;  %v5344_v5 = vshll.u32 %v10708_v19, 16 }
 0x21b   : > { %v3032_v30 = vadd.f32 %v8112_v21, %v10414_v36  ;;  %v10704_v16 = vadd.f32 %v8212_v45, %v3030_v41  ;;  %5674 = vmatprep.mubr.bf16.mxu1 %v5315_v44  ;;  %6286 = vmatprep.mubr.bf16.mxu0 %v6063_v63  ;;  %v5316_v36 = vshrl.u32 %v10685_v11, 16  ;;  %v5320_v41 = vshll.u32 %v10701_v1, 16 }
 0x21c   : > { %v8114_v2 = vpop.f32.mrf.mxu1  ;;  %v8214_v20 = vpop.f32.mrf.mxu0  ;;  %v5331_v44 = vsel %vm1286_vm0, %v5326_v17, %v5330_v32  ;;  %v6067_v63 = vsel %vm2093_vm1, %v6062_v18, %v6066_v53  ;;  %v6064_v18 = vrot.slane %v10685_v11, 1 }
 0x21d   : > { %v8115_v54 = vadd.f32 %v8114_v2, %v8113_v24  ;;  %v8215_v23 = vadd.f32 %v8214_v20, %v8213_v48  ;;  %v5322_v48 = vrot.slane %v5320_v41, 1  ;;  %v10725_v2 = vld [vmem:[#allocation2 + $0x90] ss:$8 sps:$4 sm:$0xff]  }
 0x21e   : > { %v8116_v13 = vpop.f32.mrf.mxu1  ;;  %v8216_v42 = vpop.f32.mrf.mxu0 }
 0x21f   : > { %v3033_v29 = vadd.f32 %v8115_v54, %v10434_v27  ;;  %v10713_v55 = vadd.f32 %v8215_v23, %v3031_v40  ;;  %v5318_v40 = vor.u32 %v5316_v36, %v5306_v47  ;;  %v5342_v54 = vor.u32 %v5340_v26, %v5330_v32 }
 0x220   : > { %v8117_v56 = vpop.f32.mrf.mxu1  ;;  %v8217_v3 = vpop.f32.mrf.mxu0  ;;  %v5346_v23 = vrot.slane %v5344_v5, 1  ;;  %v5336_v32 = vshll.u32 %v10725_v2, 16  ;;  %v5356_v26 = vshrl.u32 %v10708_v19, 16 }
 0x221   : > { %v8118_v21 = vadd.f32 %v8117_v56, %v8116_v13  ;;  %v8218_v45 = vadd.f32 %v8217_v3, %v8216_v42  ;;  %v6070_v13 = vrot.slane %v10688_v50, 1  ;;  %v10728_v42 = vld [vmem:[#allocation2 + $0xa4] ss:$8 sps:$4 sm:$0xff]   ;;  %v6065_v56 = vsel %vm2093_vm1, %v6060_v8, %v6064_v18  ;;  %v10741_v8 = vld [vmem:[#allocation2 + $0xa0] ss:$8 sps:$4 sm:$0xff]  }
 0x222   : > { %v8119_v24 = vpop.f32.mrf.mxu1  ;;  %v8219_v27 = vpop.f32.mrf.mxu0  ;;  %5675 = vmatmul.mubr.bf16.gmra.mxu1 %v5307_v60  ;;  %6287 = vmatmul.mubr.bf16.gmra.mxu0 %v6061_v25  ;;  %v5332_v60 = vshrl.u32 %v10701_v1, 16  ;;  %v5360_v5 = vshll.u32 %v10728_v42, 16 }
 0x223   : > { %v3034_v51 = vadd.f32 %v8118_v21, %v10451_v46  ;;  %v10722_v38 = vadd.f32 %v8218_v45, %v3032_v30  ;;  %5682 = vmatprep.mubr.bf16.mxu1 %v5331_v44  ;;  %6294 = vmatprep.mubr.bf16.mxu0 %v6067_v63  ;;  %v5323_v30 = vsel %vm1286_vm0, %v5318_v40, %v5322_v48 }
 0x224   : > { %v8120_v20 = vpop.f32.mrf.mxu1  ;;  %v8220_v17 = vpop.f32.mrf.mxu0  ;;  %v5347_v44 = vsel %vm1286_vm0, %v5342_v54, %v5346_v23  ;;  %v6071_v63 = vsel %vm2093_vm1, %v6066_v53, %v6070_v13  ;;  %v5338_v53 = vrot.slane %v5336_v32, 1 }
 0x225   : > { %v8121_v47 = vadd.f32 %v8120_v20, %v8119_v24  ;;  %v8221_v36 = vadd.f32 %v8220_v17, %v8219_v27  ;;  %v6068_v20 = vrot.slane %v10701_v1, 1 }
 0x226   : > { %v8122_v41 = vpop.f32.mrf.mxu1  ;;  %v8222_v46 = vpop.f32.mrf.mxu0 }
 0x227   : > { %v3035_v11 = vadd.f32 %v8121_v47, %v10464_v37  ;;  %v10733_v25 = vadd.f32 %v8221_v36, %v3033_v29  ;;  %v5334_v29 = vor.u32 %v5332_v60, %v5322_v48  ;;  %v5358_v47 = vor.u32 %v5356_v26, %v5346_v23 }
 0x228   : > { %v8123_v3 = vpop.f32.mrf.mxu1  ;;  %v8223_v50 = vpop.f32.mrf.mxu0  ;;  %v5362_v36 = vrot.slane %v5360_v5, 1  ;;  %v6069_v23 = vsel %vm2093_vm1, %v6064_v18, %v6068_v20  ;;  %v5372_v26 = vshrl.u32 %v10728_v42, 16 }
 0x229   : > { %v8124_v21 = vadd.f32 %v8123_v3, %v8122_v41  ;;  %v8224_v45 = vadd.f32 %v8223_v50, %v8222_v46  ;;  %v6074_v41 = vrot.slane %v10708_v19, 1  ;;  %v10748_v46 = vld [vmem:[#allocation2 + $0xb4] ss:$8 sps:$4 sm:$0xff]   ;;  %v5339_v1 = vsel %vm1286_vm0, %v5334_v29, %v5338_v53 }
 0x22a   : > { %v8125_v24 = vpop.f32.mrf.mxu1  ;;  %v8225_v37 = vpop.f32.mrf.mxu0  ;;  %5683 = vmatmul.mubr.bf16.gmra.mxu1 %v5323_v30  ;;  %6295 = vmatmul.mubr.bf16.gmra.mxu0 %v6065_v56  ;;  %v5376_v5 = vshll.u32 %v10748_v46, 16 }
 0x22b   : > { %v3036_v27 = vadd.f32 %v8124_v21, %v10474_v62  ;;  %v10744_v40 = vadd.f32 %v8224_v45, %v3034_v51  ;;  %5690 = vmatprep.mubr.bf16.mxu1 %v5347_v44  ;;  %6302 = vmatprep.mubr.bf16.mxu0 %v6071_v63  ;;  %v5348_v62 = vshrl.u32 %v10725_v2, 16  ;;  %v5352_v51 = vshll.u32 %v10741_v8, 16 }
 0x22c   : > { %v8126_v17 = vpop.f32.mrf.mxu1  ;;  %v8226_v54 = vpop.f32.mrf.mxu0  ;;  %v5363_v44 = vsel %vm1286_vm0, %v5358_v47, %v5362_v36  ;;  %v6075_v63 = vsel %vm2093_vm1, %v6070_v13, %v6074_v41  ;;  %v6072_v13 = vrot.slane %v10725_v2, 1 }
 0x22d   : > { %v8127_v48 = vadd.f32 %v8126_v17, %v8125_v24  ;;  %v8227_v30 = vadd.f32 %v8226_v54, %v8225_v37  ;;  %v5354_v37 = vrot.slane %v5352_v51, 1  ;;  %v10765_v17 = vld [vmem:[#allocation2 + $0xb0] ss:$8 sps:$4 sm:$0xff]  }
 0x22e   : > { %v8128_v60 = vpop.f32.mrf.mxu1  ;;  %v8228_v56 = vpop.f32.mrf.mxu0 }
 0x22f   : > { %v3037_v32 = vadd.f32 %v8127_v48, %v10485_v22  ;;  %v10753_v3 = vadd.f32 %v8227_v30, %v3035_v11  ;;  %v5350_v11 = vor.u32 %v5348_v62, %v5338_v53  ;;  %v5374_v48 = vor.u32 %v5372_v26, %v5362_v36 }
 0x230   : > { %v8129_v50 = vpop.f32.mrf.mxu1  ;;  %v8229_v19 = vpop.f32.mrf.mxu0  ;;  %v5378_v30 = vrot.slane %v5376_v5, 1  ;;  %v5368_v36 = vshll.u32 %v10765_v17, 16  ;;  %v5388_v26 = vshrl.u32 %v10748_v46, 16 }
 0x231   : > { %v8130_v21 = vadd.f32 %v8129_v50, %v8128_v60  ;;  %v8230_v45 = vadd.f32 %v8229_v19, %v8228_v56  ;;  %v6078_v60 = vrot.slane %v10728_v42, 1  ;;  %v10768_v56 = vld [vmem:[#allocation2 + $0xc4] ss:$8 sps:$4 sm:$0xff]   ;;  %v6073_v50 = vsel %vm2093_vm1, %v6068_v20, %v6072_v13  ;;  %v10781_v20 = vld [vmem:[#allocation2 + $0xc0] ss:$8 sps:$4 sm:$0xff]  }
 0x232   : > { %v8131_v24 = vpop.f32.mrf.mxu1  ;;  %v8231_v22 = vpop.f32.mrf.mxu0  ;;  %5691 = vmatmul.mubr.bf16.gmra.mxu1 %v5339_v1  ;;  %6303 = vmatmul.mubr.bf16.gmra.mxu0 %v6069_v23  ;;  %v5364_v1 = vshrl.u32 %v10741_v8, 16  ;;  %v5392_v5 = vshll.u32 %v10768_v56, 16 }
 0x233   : > { %v3038_v18 = vadd.f32 %v8130_v21, %v10494_v58  ;;  %v10762_v29 = vadd.f32 %v8230_v45, %v3036_v27  ;;  %5698 = vmatprep.mubr.bf16.mxu1 %v5363_v44  ;;  %6310 = vmatprep.mubr.bf16.mxu0 %v6075_v63  ;;  %v5355_v27 = vsel %vm1286_vm0, %v5350_v11, %v5354_v37 }
 0x234   : > { %v8132_v54 = vpop.f32.mrf.mxu1  ;;  %v8232_v47 = vpop.f32.mrf.mxu0  ;;  %v5379_v44 = vsel %vm1286_vm0, %v5374_v48, %v5378_v30  ;;  %v6079_v63 = vsel %vm2093_vm1, %v6074_v41, %v6078_v60  ;;  %v5370_v41 = vrot.slane %v5368_v36, 1 }
 0x235   : > { %v8133_v53 = vadd.f32 %v8132_v54, %v8131_v24  ;;  %v8233_v62 = vadd.f32 %v8232_v47, %v8231_v22  ;;  %v6076_v54 = vrot.slane %v10741_v8, 1 }
 0x236   : > { %v8134_v51 = vpop.f32.mrf.mxu1  ;;  %v8234_v58 = vpop.f32.mrf.mxu0 }
 0x237   : > { %v3039_v2 = vadd.f32 %v8133_v53, %v10504_v49  ;;  %v10773_v23 = vadd.f32 %v8233_v62, %v3037_v32  ;;  %v5366_v32 = vor.u32 %v5364_v1, %v5354_v37  ;;  %v5390_v53 = vor.u32 %v5388_v26, %v5378_v30 }
 0x238   : > { %v8135_v19 = vpop.f32.mrf.mxu1  ;;  %v8235_v42 = vpop.f32.mrf.mxu0  ;;  %v5394_v62 = vrot.slane %v5392_v5, 1  ;;  %v6077_v30 = vsel %vm2093_vm1, %v6072_v13, %v6076_v54  ;;  %v5404_v26 = vshrl.u32 %v10768_v56, 16 }
 0x239   : > { %v8136_v21 = vadd.f32 %v8135_v19, %v8134_v51  ;;  %v8236_v45 = vadd.f32 %v8235_v42, %v8234_v58  ;;  %v6082_v51 = vrot.slane %v10748_v46, 1  ;;  %v10788_v58 = vld [vmem:[#allocation2 + $0xd4] ss:$8 sps:$4 sm:$0xff]   ;;  %v5371_v8 = vsel %vm1286_vm0, %v5366_v32, %v5370_v41 }
 0x23a   : > { %v8137_v24 = vpop.f32.mrf.mxu1  ;;  %v8237_v49 = vpop.f32.mrf.mxu0  ;;  %5699 = vmatmul.mubr.bf16.gmra.mxu1 %v5355_v27  ;;  %6311 = vmatmul.mubr.bf16.gmra.mxu0 %v6073_v50  ;;  %v5408_v5 = vshll.u32 %v10788_v58, 16 }
 0x23b   : > { %v3040_v22 = vadd.f32 %v8136_v21, %v10514_v57  ;;  %v10784_v11 = vadd.f32 %v8236_v45, %v3038_v18  ;;  %5706 = vmatprep.mubr.bf16.mxu1 %v5379_v44  ;;  %6318 = vmatprep.mubr.bf16.mxu0 %v6079_v63  ;;  %v5380_v57 = vshrl.u32 %v10765_v17, 16  ;;  %v5384_v18 = vshll.u32 %v10781_v20, 16 }
 0x23c   : > { %v8138_v47 = vpop.f32.mrf.mxu1  ;;  %v8238_v48 = vpop.f32.mrf.mxu0  ;;  %v5395_v44 = vsel %vm1286_vm0, %v5390_v53, %v5394_v62  ;;  %v6083_v63 = vsel %vm2093_vm1, %v6078_v60, %v6082_v51  ;;  %v6080_v60 = vrot.slane %v10765_v17, 1 }
 0x23d   : > { %v8139_v37 = vadd.f32 %v8138_v47, %v8137_v24  ;;  %v8239_v27 = vadd.f32 %v8238_v48, %v8237_v49  ;;  %v5386_v49 = vrot.slane %v5384_v18, 1  ;;  %v10805_v47 = vld [vmem:[#allocation2 + $0xd0] ss:$8 sps:$4 sm:$0xff]  }
 0x23e   : > { %v8140_v1 = vpop.f32.mrf.mxu1  ;;  %v8240_v50 = vpop.f32.mrf.mxu0 }
 0x23f   : > { %v3041_v36 = vadd.f32 %v8139_v37, %v10525_v15  ;;  %v10793_v19 = vadd.f32 %v8239_v27, %v3039_v2  ;;  %v5382_v2 = vor.u32 %v5380_v57, %v5370_v41  ;;  %v5406_v37 = vor.u32 %v5404_v26, %v5394_v62 }
 0x240   : > { %v8141_v42 = vpop.f32.mrf.mxu1  ;;  %v8241_v46 = vpop.f32.mrf.mxu0  ;;  %v5410_v27 = vrot.slane %v5408_v5, 1  ;;  %v5400_v62 = vshll.u32 %v10805_v47, 16  ;;  %v5420_v26 = vshrl.u32 %v10788_v58, 16 }
 0x241   : > { %v8142_v21 = vadd.f32 %v8141_v42, %v8140_v1  ;;  %v8242_v45 = vadd.f32 %v8241_v46, %v8240_v50  ;;  %v6086_v1 = vrot.slane %v10768_v56, 1  ;;  %v10808_v50 = vld [vmem:[#allocation2 + $0xe4] ss:$8 sps:$4 sm:$0xff]   ;;  %v6081_v42 = vsel %vm2093_vm1, %v6076_v54, %v6080_v60  ;;  %v10821_v54 = vld [vmem:[#allocation2 + $0xe0] ss:$8 sps:$4 sm:$0xff]  }
 0x242   : > { %v8143_v24 = vpop.f32.mrf.mxu1  ;;  %v8243_v15 = vpop.f32.mrf.mxu0  ;;  %5707 = vmatmul.mubr.bf16.gmra.mxu1 %v5371_v8  ;;  %6319 = vmatmul.mubr.bf16.gmra.mxu0 %v6077_v30  ;;  %v5396_v8 = vshrl.u32 %v10781_v20, 16  ;;  %v5424_v5 = vshll.u32 %v10808_v50, 16 }
 0x243   : > { %v3042_v13 = vadd.f32 %v8142_v21, %v10534_v61  ;;  %v10802_v32 = vadd.f32 %v8242_v45, %v3040_v22  ;;  %5714 = vmatprep.mubr.bf16.mxu1 %v5395_v44  ;;  %6326 = vmatprep.mubr.bf16.mxu0 %v6083_v63  ;;  %v5387_v22 = vsel %vm1286_vm0, %v5382_v2, %v5386_v49 }
 0x244   : > { %v8144_v48 = vpop.f32.mrf.mxu1  ;;  %v8244_v53 = vpop.f32.mrf.mxu0  ;;  %v5411_v44 = vsel %vm1286_vm0, %v5406_v37, %v5410_v27  ;;  %v6087_v63 = vsel %vm2093_vm1, %v6082_v51, %v6086_v1  ;;  %v5402_v51 = vrot.slane %v5400_v62, 1 }
 0x245   : > { %v8145_v41 = vadd.f32 %v8144_v48, %v8143_v24  ;;  %v8245_v57 = vadd.f32 %v8244_v53, %v8243_v15  ;;  %v6084_v48 = vrot.slane %v10781_v20, 1 }
 0x246   : > { %v8146_v18 = vpop.f32.mrf.mxu1  ;;  %v8246_v61 = vpop.f32.mrf.mxu0 }
 0x247   : > { %v3043_v17 = vadd.f32 %v8145_v41, %v10544_v33  ;;  %v10813_v30 = vadd.f32 %v8245_v57, %v3041_v36  ;;  %v5398_v36 = vor.u32 %v5396_v8, %v5386_v49  ;;  %v5422_v41 = vor.u32 %v5420_v26, %v5410_v27 }
 0x248   : > { %v8147_v46 = vpop.f32.mrf.mxu1  ;;  %v8247_v56 = vpop.f32.mrf.mxu0  ;;  %v5426_v57 = vrot.slane %v5424_v5, 1  ;;  %v6085_v27 = vsel %vm2093_vm1, %v6080_v60, %v6084_v48  ;;  %v5436_v26 = vshrl.u32 %v10808_v50, 16 }
 0x249   : > { %v8148_v21 = vadd.f32 %v8147_v46, %v8146_v18  ;;  %v8248_v45 = vadd.f32 %v8247_v56, %v8246_v61  ;;  %v6090_v18 = vrot.slane %v10788_v58, 1  ;;  %v10828_v61 = vld [vmem:[#allocation2 + $0xf4] ss:$8 sps:$4 sm:$0xff]   ;;  %v5403_v20 = vsel %vm1286_vm0, %v5398_v36, %v5402_v51 }
 0x24a   : > { %v8149_v24 = vpop.f32.mrf.mxu1  ;;  %v8249_v33 = vpop.f32.mrf.mxu0  ;;  %5715 = vmatmul.mubr.bf16.gmra.mxu1 %v5387_v22  ;;  %6327 = vmatmul.mubr.bf16.gmra.mxu0 %v6081_v42  ;;  %v5440_v5 = vshll.u32 %v10828_v61, 16 }
 0x24b   : > { %v3044_v15 = vadd.f32 %v8148_v21, %v10554_v52  ;;  %v10824_v2 = vadd.f32 %v8248_v45, %v3042_v13  ;;  %5722 = vmatprep.mubr.bf16.mxu1 %v5411_v44  ;;  %6334 = vmatprep.mubr.bf16.mxu0 %v6087_v63  ;;  %v5412_v52 = vshrl.u32 %v10805_v47, 16  ;;  %v5416_v13 = vshll.u32 %v10821_v54, 16 }
 0x24c   : > { %v8150_v53 = vpop.f32.mrf.mxu1  ;;  %v8250_v37 = vpop.f32.mrf.mxu0  ;;  %v5427_v44 = vsel %vm1286_vm0, %v5422_v41, %v5426_v57  ;;  %v6091_v63 = vsel %vm2093_vm1, %v6086_v1, %v6090_v18  ;;  %v6088_v1 = vrot.slane %v10805_v47, 1 }
 0x24d   : > { %v8151_v49 = vadd.f32 %v8150_v53, %v8149_v24  ;;  %v8251_v22 = vadd.f32 %v8250_v37, %v8249_v33  ;;  %v5418_v33 = vrot.slane %v5416_v13, 1  ;;  %v10845_v53 = vld [vmem:[#allocation2 + $0xf0] ss:$8 sps:$4 sm:$0xff]  }
 0x24e   : > { %v8152_v8 = vpop.f32.mrf.mxu1  ;;  %v8252_v42 = vpop.f32.mrf.mxu0 }
 0x24f   : > { %v3045_v62 = vadd.f32 %v8151_v49, %v10564_v14  ;;  %v10833_v46 = vadd.f32 %v8251_v22, %v3043_v17  ;;  %v5414_v17 = vor.u32 %v5412_v52, %v5402_v51  ;;  %v5438_v49 = vor.u32 %v5436_v26, %v5426_v57 }
 0x250   : > { %v8153_v56 = vpop.f32.mrf.mxu1  ;;  %v8253_v58 = vpop.f32.mrf.mxu0  ;;  %v5442_v22 = vrot.slane %v5440_v5, 1  ;;  %v5432_v57 = vshll.u32 %v10845_v53, 16  ;;  %v5452_v26 = vshrl.u32 %v10828_v61, 16 }
 0x251   : > { %v8154_v21 = vadd.f32 %v8153_v56, %v8152_v8  ;;  %v8254_v45 = vadd.f32 %v8253_v58, %v8252_v42  ;;  %v6094_v8 = vrot.slane %v10808_v50, 1  ;;  %v10848_v42 = vld [vmem:[#allocation2 + $0x104] ss:$8 sps:$4 sm:$0xff]   ;;  %v6089_v56 = vsel %vm2093_vm1, %v6084_v48, %v6088_v1  ;;  %v10861_v48 = vld [vmem:[#allocation2 + $0x100] ss:$8 sps:$4 sm:$0xff]  }
 0x252   : > { %v8255_v24 = vpop.f32.mrf.mxu0  ;;  %v8277_v14 = vpop.f32.mrf.mxu1  ;;  %5723 = vmatmul.mubr.bf16.gmra.mxu1 %v5403_v20  ;;  %6335 = vmatmul.mubr.bf16.gmra.mxu0 %v6085_v27  ;;  %v5428_v20 = vshrl.u32 %v10821_v54, 16  ;;  %v5456_v5 = vshll.u32 %v10848_v42, 16 }
 0x253   : > { %v3046_v60 = vadd.f32 %v8154_v21, %v10573_v31  ;;  %v10842_v36 = vadd.f32 %v8254_v45, %v3044_v15  ;;  %5730 = vmatprep.mubr.bf16.mxu1 %v5427_v44  ;;  %6342 = vmatprep.mubr.bf16.mxu0 %v6091_v63  ;;  %v5419_v15 = vsel %vm1286_vm0, %v5414_v17, %v5418_v33 }
 0x254   : > { %v8256_v37 = vpop.f32.mrf.mxu0  ;;  %v8278_v41 = vpop.f32.mrf.mxu1  ;;  %v5443_v44 = vsel %vm1286_vm0, %v5438_v49, %v5442_v22  ;;  %v6095_v63 = vsel %vm2093_vm1, %v6090_v18, %v6094_v8  ;;  %v5434_v18 = vrot.slane %v5432_v57, 1 }
 0x255   : > { %v8257_v51 = vadd.f32 %v8256_v37, %v8255_v24  ;;  %v8279_v52 = vadd.f32 %v8278_v41, %v8277_v14  ;;  %v6092_v37 = vrot.slane %v10821_v54, 1 }
 0x256   : > { %v8258_v13 = vpop.f32.mrf.mxu0  ;;  %v8280_v31 = vpop.f32.mrf.mxu1 }
 0x257   : > { %v10852_v27 = vadd.f32 %v8257_v51, %v3045_v62  ;;  %v4443_v47 = vadd.f32 %v8279_v52, %v10584_v0  ;;  %v5430_v0 = vor.u32 %v5428_v20, %v5418_v33  ;;  %v5454_v51 = vor.u32 %v5452_v26, %v5442_v22 }
 0x258   : > { %v8259_v58 = vpop.f32.mrf.mxu0  ;;  %v8281_v50 = vpop.f32.mrf.mxu1  ;;  %v5458_v52 = vrot.slane %v5456_v5, 1  ;;  %v6093_v22 = vsel %vm2093_vm1, %v6088_v1, %v6092_v37  ;;  %v5468_v26 = vshrl.u32 %v10848_v42, 16 }
 0x259   : > { %v8260_v21 = vadd.f32 %v8259_v58, %v8258_v13  ;;  %v8282_v45 = vadd.f32 %v8281_v50, %v8280_v31  ;;  %v6098_v13 = vrot.slane %v10828_v61, 1  ;;  %v10868_v31 = vld [vmem:[#allocation2 + $0x114] ss:$8 sps:$4 sm:$0xff]   ;;  %v5435_v54 = vsel %vm1286_vm0, %v5430_v0, %v5434_v18 }
 0x25a   : > { %v8283_v62 = vpop.f32.mrf.mxu1  ;;  %v8383_v24 = vpop.f32.mrf.mxu0  ;;  %5731 = vmatmul.mubr.bf16.gmra.mxu1 %v5419_v15  ;;  %6343 = vmatmul.mubr.bf16.gmra.mxu0 %v6089_v56  ;;  %v5444_v56 = vshrl.u32 %v10845_v53, 16  ;;  %v5472_v5 = vshll.u32 %v10868_v31, 16 }
 0x25b   : > { %v10863_v14 = vadd.f32 %v8260_v21, %v3046_v60  ;;  %v4444_v17 = vadd.f32 %v8282_v45, %v10594_v35  ;;  %5738 = vmatprep.mubr.bf16.mxu1 %v5443_v44  ;;  %6350 = vmatprep.mubr.bf16.mxu0 %v6095_v63  ;;  %v5448_v35 = vshll.u32 %v10861_v48, 16  ;;  %v5459_v44 = vsel %vm1286_vm0, %v5454_v51, %v5458_v52 }
 0x25c   : > { %v8284_v41 = vpop.f32.mrf.mxu1  ;;  %v8384_v49 = vpop.f32.mrf.mxu0  ;;  %v6099_v63 = vsel %vm2093_vm1, %v6094_v8, %v6098_v13  ;;  %v6096_v8 = vrot.slane %v10845_v53, 1 }
 0x25d   : > { %v8285_v33 = vadd.f32 %v8284_v41, %v8283_v62  ;;  %v8385_v15 = vadd.f32 %v8384_v49, %v8383_v24  ;;  %v5085_v62 = vld [vmem:[#allocation2 + $0x120] sm:$0x11]  ;;  %v5446_v24 = vor.u32 %v5444_v56, %v5434_v18  ;;  %v5450_v0 = vrot.slane %v5448_v35, 1  ;;  %v10885_v49 = vld [vmem:[#allocation2 + $0x110] ss:$8 sps:$4 sm:$0xff]  }
 0x25e   : > { %v8286_v20 = vpop.f32.mrf.mxu1  ;;  %v8386_v60 = vpop.f32.mrf.mxu0 }
 0x25f   : > { %v4445_v57 = vadd.f32 %v8285_v33, %v10603_v12  ;;  %v10873_v58 = vadd.f32 %v8385_v15, %v4443_v47  ;;  %v5470_v15 = vor.u32 %v5468_v26, %v5458_v52  ;;  %v5464_v52 = vshll.u32 %v10885_v49, 16 }
 0x260   : > { %v8287_v50 = vpop.f32.mrf.mxu1  ;;  %v8387_v61 = vpop.f32.mrf.mxu0 }
 0x261   : > { %v8288_v21 = vadd.f32 %v8287_v50, %v8286_v20  ;;  %v8388_v45 = vadd.f32 %v8387_v61, %v8386_v60  ;;  %v5474_v20 = vrot.slane %v5472_v5, 1  ;;  %v6102_v60 = vrot.slane %v10848_v42, 1 }
 0x262   : > { %v8289_v12 = vpop.f32.mrf.mxu1  ;;  %v8389_v47 = vpop.f32.mrf.mxu0  ;;  %5739 = vmatmul.mubr.bf16.gmra.mxu1 %v5435_v54  ;;  %6351 = vmatmul.mubr.bf16.gmra.mxu0 %v6093_v22  ;;  %v7479_v54 = vcombine.high %v5085_v62, %v5085_v62  ;;  %v6097_v61 = vsel %vm2093_vm1, %v6092_v37, %v6096_v8  ;;  %v5484_v5 = vshrl.u32 %v10868_v31, 16 }
 0x263   : > { %v4446_v1 = vadd.f32 %v8288_v21, %v10611_v43  ;;  %v10882_v41 = vadd.f32 %v8388_v45, %v4444_v17  ;;  %5746 = vmatprep.mubr.bf16.mxu1 %v5459_v44  ;;  %6358 = vmatprep.mubr.bf16.mxu0 %v6099_v63  ;;  %v5451_v43 = vsel %vm1286_vm0, %v5446_v24, %v5450_v0  ;;  %v5460_v17 = vshrl.u32 %v10861_v48, 16 }
 0x264   : > { %v8290_v51 = vpop.f32.mrf.mxu1  ;;  %v8390_v33 = vpop.f32.mrf.mxu0  ;;  %v5475_v42 = vsel %vm1286_vm0, %v5470_v15, %v5474_v20  ;;  %v6103_v26 = vsel %vm2093_vm1, %v6098_v13, %v6102_v60  ;;  %v5488_v21 = vshll.u32 %v7479_v54, 16  ;;  %v6100_v13 = vrot.slane %v10861_v48, 1 }
 0x265   : > { %v8291_v22 = vadd.f32 %v8290_v51, %v8289_v12  ;;  %v8391_v18 = vadd.f32 %v8390_v33, %v8389_v47  ;;  %v5466_v33 = vrot.slane %v5464_v52, 1  ;;  %v5486_v54 = vor.u32 %v5484_v5, %v5474_v20 }
 0x266   : > { %v8292_v56 = vpop.f32.mrf.mxu1  ;;  %v8392_v35 = vpop.f32.mrf.mxu0  ;;  %v6101_v52 = vsel %vm2093_vm1, %v6096_v8, %v6100_v13  ;;  %v6104_v8 = vrot.slane %v10885_v49, 1 }
 0x267   : > { %v4447_v50 = vadd.f32 %v8291_v22, %v10620_v39  ;;  %v10891_v53 = vadd.f32 %v8391_v18, %v4445_v57  ;;  %v5462_v39 = vor.u32 %v5460_v17, %v5450_v0  ;;  %v7478_v57 = vcombine.low %v5085_v62, %v5085_v62 }
 0x268   : > { %v8293_v44 = vpop.f32.mrf.mxu1  ;;  %v8393_v63 = vpop.f32.mrf.mxu0  ;;  %v5490_v18 = vrot.slane %v5488_v21, 1 }
 0x269   : > { %v8294_v45 = vadd.f32 %v8293_v44, %v8292_v56  ;;  %v8394_v12 = vadd.f32 %v8393_v63, %v8392_v35  ;;  %v6106_v56 = vrot.slane %v10868_v31, 1  ;;  %v5467_v48 = vsel %vm1286_vm0, %v5462_v39, %v5466_v33 }
 0x26a   : > { %v8295_v47 = vpop.f32.mrf.mxu1  ;;  %v8395_v24 = vpop.f32.mrf.mxu0  ;;  %5747 = vmatmul.mubr.bf16.gmra.mxu1 %v5451_v43  ;;  %6359 = vmatmul.mubr.bf16.gmra.mxu0 %v6097_v61  ;;  %v5891_v61 = vld [vmem:[#allocation2 + $0x120] sm:$0x11]  ;;  %v5491_v31 = vsel %vm1286_vm0, %v5486_v54, %v5490_v18 }
 0x26b   : > { %v4448_v37 = vadd.f32 %v8294_v45, %v10628_v7  ;;  %v10899_v51 = vadd.f32 %v8394_v12, %v4446_v1  ;;  %5754 = vmatprep.mubr.bf16.mxu1 %v5475_v42  ;;  %6366 = vmatprep.mubr.bf16.mxu0 %v6103_v26  ;;  %v5476_v7 = vshrl.u32 %v10885_v49, 16  ;;  %v5480_v1 = vshll.u32 %v7478_v57, 16 }
 0x26c   : > { %v8296_v15 = vpop.f32.mrf.mxu1  ;;  %v8396_v22 = vpop.f32.mrf.mxu0  ;;  %v6107_v42 = vsel %vm2093_vm1, %v6102_v60, %v6106_v56  ;;  %v7559_v26 = vcombine.high %v5891_v61, %v5891_v61 }
 0x26d   : > { %v8297_v35 = vadd.f32 %v8296_v15, %v8295_v47  ;;  %v8397_v43 = vadd.f32 %v8396_v22, %v8395_v24 }
 0x26e   : > { %v8298_v0 = vpop.f32.mrf.mxu1  ;;  %v8398_v62 = vpop.f32.mrf.mxu0  ;;  %v6110_v60 = vrot.slane %v7559_v26, 1 }
 0x26f   : > { %v4449_v17 = vadd.f32 %v8297_v35, %v10635_v6  ;;  %v10905_v44 = vadd.f32 %v8397_v43, %v4447_v50  ;;  %v5478_v6 = vor.u32 %v5476_v7, %v5466_v33  ;;  %v5482_v50 = vrot.slane %v5480_v1, 1 }
 0x270   : > { %v8299_v20 = vpop.f32.mrf.mxu1  ;;  %v8399_v63 = vpop.f32.mrf.mxu0  ;;  %v6111_v49 = vsel %vm2093_vm1, %v6106_v56, %v6110_v60 }
 0x271   : > { %v8300_v5 = vadd.f32 %v8299_v20, %v8298_v0  ;;  %v8400_v21 = vadd.f32 %v8399_v63, %v8398_v62  ;;  %v5483_v35 = vsel %vm1286_vm0, %v5478_v6, %v5482_v50 }
 0x272   : > { %v8301_v45 = vpop.f32.mrf.mxu1  ;;  %v8401_v12 = vpop.f32.mrf.mxu0  ;;  %5755 = vmatmul.mubr.bf16.gmra.mxu1 %v5467_v48  ;;  %6367 = vmatmul.mubr.bf16.gmra.mxu0 %v6101_v52 }
 0x273   : > { %v4450_v47 = vadd.f32 %v8300_v5, %v10643_v4  ;;  %v10912_v24 = vadd.f32 %v8400_v21, %v4448_v37  ;;  %5762 = vmatprep.mubr.bf16.mxu1 %v5491_v31  ;;  %6374 = vmatprep.mubr.bf16.mxu0 %v6107_v42  ;;  %v6105_v4 = vsel %vm2093_vm1, %v6100_v13, %v6104_v8 }
 0x274   : > { %v8302_v39 = vpop.f32.mrf.mxu1  ;;  %v8402_v57 = vpop.f32.mrf.mxu0  ;;  %v7558_v37 = vcombine.low %v5891_v61, %v5891_v61 }
 0x275   : > { %v8303_v15 = vadd.f32 %v8302_v39, %v8301_v45  ;;  %v8403_v22 = vadd.f32 %v8402_v57, %v8401_v12 }
 0x276   : > { %v8304_v54 = vpop.f32.mrf.mxu1  ;;  %v8404_v18 = vpop.f32.mrf.mxu0 }
 0x277   : > { %v4451_v33 = vadd.f32 %v8303_v15, %v10653_v34  ;;  %v10917_v43 = vadd.f32 %v8403_v22, %v4449_v17  ;;  %v6108_v34 = vrot.slane %v7558_v37, 1 }
 0x278   : > { %v8305_v0 = vpop.f32.mrf.mxu1  ;;  %v8405_v62 = vpop.f32.mrf.mxu0 }
 0x279   : > { %v8306_v7 = vadd.f32 %v8305_v0, %v8304_v54  ;;  %v8406_v1 = vadd.f32 %v8405_v62, %v8404_v18  ;;  %v6109_v21 = vsel %vm2093_vm1, %v6104_v8, %v6108_v34 }
 0x27a   : > { %v8307_v48 = vpop.f32.mrf.mxu1  ;;  %v8407_v52 = vpop.f32.mrf.mxu0  ;;  %5763 = vmatmul.mubr.bf16.gmra.mxu1 %v5483_v35  ;;  %6375 = vmatmul.mubr.bf16.gmra.mxu0 %v6105_v4 }
 0x27b   : > { %v4452_v20 = vadd.f32 %v8306_v7, %v10665_v59  ;;  %v10922_v63 = vadd.f32 %v8406_v1, %v4450_v47  ;;  %6382 = vmatprep.mubr.bf16.mxu0 %v6111_v49 }
 0x27c   : > { %v8308_v17 = vpop.f32.mrf.mxu1  ;;  %v8408_v31 = vpop.f32.mrf.mxu0 }
 0x27d   : > { %v8309_v13 = vadd.f32 %v8308_v17, %v8307_v48  ;;  %v8409_v61 = vadd.f32 %v8408_v31, %v8407_v52 }
 0x27e   : > { %v8310_v42 = vpop.f32.mrf.mxu1  ;;  %v8410_v26 = vpop.f32.mrf.mxu0 }
 0x27f   : > { %v4453_v56 = vadd.f32 %v8309_v13, %v10673_v10  ;;  %v10925_v5 = vadd.f32 %v8409_v61, %v4451_v33 }
 0x280   : > { %v8311_v45 = vpop.f32.mrf.mxu1  ;;  %v8411_v12 = vpop.f32.mrf.mxu0 }
 0x281   : > { %v8312_v6 = vadd.f32 %v8311_v45, %v8310_v42  ;;  %v8412_v59 = vadd.f32 %v8411_v12, %v8410_v26 }
 0x282   : > { %v8313_v50 = vpop.f32.mrf.mxu1  ;;  %v8413_v47 = vpop.f32.mrf.mxu0  ;;  %6383 = vmatmul.mubr.bf16.gmra.mxu0 %v6109_v21 }
 0x283   : > { %v4454_v39 = vadd.f32 %v8312_v6, %v10682_v28  ;;  %v10929_v57 = vadd.f32 %v8412_v59, %v4452_v20 }
 0x284   : > { %v8314_v60 = vpop.f32.mrf.mxu1  ;;  %v8414_v15 = vpop.f32.mrf.mxu0 }
 0x285   : > { %v8315_v22 = vadd.f32 %v8314_v60, %v8313_v50  ;;  %v8415_v54 = vadd.f32 %v8414_v15, %v8413_v47 }
 0x286   : > { %v8316_v10 = vpop.f32.mrf.mxu1  ;;  %v8416_v18 = vpop.f32.mrf.mxu0 }
 0x287   : > { %v4455_v35 = vadd.f32 %v8315_v22, %v10693_v9  ;;  %v10932_v8 = vadd.f32 %v8415_v54, %v4453_v56 }
 0x288   : > { %v8317_v33 = vpop.f32.mrf.mxu1  ;;  %v8417_v4 = vpop.f32.mrf.mxu0 }
 0x289   : > { %v8318_v37 = vadd.f32 %v8317_v33, %v8316_v10  ;;  %v8418_v0 = vadd.f32 %v8417_v4, %v8416_v18 }
 0x28a   : > { %v8319_v62 = vpop.f32.mrf.mxu1  ;;  %v8419_v49 = vpop.f32.mrf.mxu0 }
 0x28b   : > { %v4456_v28 = vadd.f32 %v8318_v37, %v10704_v16  ;;  %v10935_v7 = vadd.f32 %v8418_v0, %v4454_v39 }
 0x28c   : > { %v8320_v1 = vpop.f32.mrf.mxu1  ;;  %v8420_v48 = vpop.f32.mrf.mxu0 }
 0x28d   : > { %v8321_v52 = vadd.f32 %v8320_v1, %v8319_v62  ;;  %v8421_v20 = vadd.f32 %v8420_v48, %v8419_v49 }
 0x28e   : > { %v8322_v34 = vpop.f32.mrf.mxu1  ;;  %v8422_v17 = vpop.f32.mrf.mxu0 }
 0x28f   : > { %v4457_v9 = vadd.f32 %v8321_v52, %v10713_v55  ;;  %v10938_v31 = vadd.f32 %v8421_v20, %v4455_v35 }
 0x290   : > { %v8323_v13 = vpop.f32.mrf.mxu1  ;;  %v8423_v61 = vpop.f32.mrf.mxu0 }
 0x291   : > { %v8324_v42 = vadd.f32 %v8323_v13, %v8322_v34  ;;  %v8424_v26 = vadd.f32 %v8423_v61, %v8422_v17 }
 0x292   : > { %v8325_v56 = vpop.f32.mrf.mxu1  ;;  %v8425_v21 = vpop.f32.mrf.mxu0 }
 0x293   : > { %v4458_v16 = vadd.f32 %v8324_v42, %v10722_v38  ;;  %v10941_v45 = vadd.f32 %v8424_v26, %v4456_v28 }
 0x294   : > { %v8326_v12 = vpop.f32.mrf.mxu1  ;;  %v8426_v6 = vpop.f32.mrf.mxu0 }
 0x295   : > { %v8327_v59 = vadd.f32 %v8326_v12, %v8325_v56  ;;  %v8427_v50 = vadd.f32 %v8426_v6, %v8425_v21 }
 0x296   : > { %v8328_v47 = vpop.f32.mrf.mxu1  ;;  %v8428_v39 = vpop.f32.mrf.mxu0 }
 0x297   : > { %v4459_v55 = vadd.f32 %v8327_v59, %v10733_v25  ;;  %v10944_v60 = vadd.f32 %v8427_v50, %v4457_v9 }
 0x298   : > { %v8329_v15 = vpop.f32.mrf.mxu1  ;;  %v8429_v22 = vpop.f32.mrf.mxu0 }
 0x299   : > { %v8330_v54 = vadd.f32 %v8329_v15, %v8328_v47  ;;  %v8430_v10 = vadd.f32 %v8429_v22, %v8428_v39 }
 0x29a   : > { %v8331_v18 = vpop.f32.mrf.mxu1  ;;  %v8431_v35 = vpop.f32.mrf.mxu0 }
 0x29b   : > { %v4460_v38 = vadd.f32 %v8330_v54, %v10744_v40  ;;  %v10947_v33 = vadd.f32 %v8430_v10, %v4458_v16 }
 0x29c   : > { %v8332_v4 = vpop.f32.mrf.mxu1  ;;  %v8432_v37 = vpop.f32.mrf.mxu0 }
 0x29d   : > { %v8333_v0 = vadd.f32 %v8332_v4, %v8331_v18  ;;  %v8433_v62 = vadd.f32 %v8432_v37, %v8431_v35 }
 0x29e   : > { %v8334_v49 = vpop.f32.mrf.mxu1  ;;  %v8434_v28 = vpop.f32.mrf.mxu0 }
 0x29f   : > { %v4461_v25 = vadd.f32 %v8333_v0, %v10753_v3  ;;  %v10950_v1 = vadd.f32 %v8433_v62, %v4459_v55 }
 0x2a0   : > { %v8335_v48 = vpop.f32.mrf.mxu1  ;;  %v8435_v52 = vpop.f32.mrf.mxu0 }
 0x2a1   : > { %v8336_v20 = vadd.f32 %v8335_v48, %v8334_v49  ;;  %v8436_v34 = vadd.f32 %v8435_v52, %v8434_v28 }
 0x2a2   : > { %v8337_v17 = vpop.f32.mrf.mxu1  ;;  %v8437_v9 = vpop.f32.mrf.mxu0 }
 0x2a3   : > { %v4462_v40 = vadd.f32 %v8336_v20, %v10762_v29  ;;  %v10953_v13 = vadd.f32 %v8436_v34, %v4460_v38 }
 0x2a4   : > { %v8338_v61 = vpop.f32.mrf.mxu1  ;;  %v8438_v42 = vpop.f32.mrf.mxu0 }
 0x2a5   : > { %v8339_v26 = vadd.f32 %v8338_v61, %v8337_v17  ;;  %v8439_v56 = vadd.f32 %v8438_v42, %v8437_v9 }
 0x2a6   : > { %v8340_v21 = vpop.f32.mrf.mxu1  ;;  %v8440_v16 = vpop.f32.mrf.mxu0 }
 0x2a7   : > { %v4463_v3 = vadd.f32 %v8339_v26, %v10773_v23  ;;  %v10956_v12 = vadd.f32 %v8439_v56, %v4461_v25 }
 0x2a8   : > { %v8341_v6 = vpop.f32.mrf.mxu1  ;;  %v8441_v59 = vpop.f32.mrf.mxu0 }
 0x2a9   : > { %v8342_v50 = vadd.f32 %v8341_v6, %v8340_v21  ;;  %v8442_v47 = vadd.f32 %v8441_v59, %v8440_v16 }
 0x2aa   : > { %v8343_v39 = vpop.f32.mrf.mxu1  ;;  %v8443_v55 = vpop.f32.mrf.mxu0 }
 0x2ab   : > { %v4464_v29 = vadd.f32 %v8342_v50, %v10784_v11  ;;  %v10959_v15 = vadd.f32 %v8442_v47, %v4462_v40 }
 0x2ac   : > { %v8344_v22 = vpop.f32.mrf.mxu1  ;;  %v8444_v54 = vpop.f32.mrf.mxu0 }
 0x2ad   : > { %v8345_v10 = vadd.f32 %v8344_v22, %v8343_v39  ;;  %v8445_v18 = vadd.f32 %v8444_v54, %v8443_v55 }
 0x2ae   : > { %v8346_v35 = vpop.f32.mrf.mxu1  ;;  %v8446_v38 = vpop.f32.mrf.mxu0 }
 0x2af   : > { %v4465_v23 = vadd.f32 %v8345_v10, %v10793_v19  ;;  %v10962_v4 = vadd.f32 %v8445_v18, %v4463_v3 }
 0x2b0   : > { %v8347_v37 = vpop.f32.mrf.mxu1  ;;  %v8447_v0 = vpop.f32.mrf.mxu0 }
 0x2b1   : > { %v8348_v62 = vadd.f32 %v8347_v37, %v8346_v35  ;;  %v8448_v49 = vadd.f32 %v8447_v0, %v8446_v38 }
 0x2b2   : > { %v8349_v28 = vpop.f32.mrf.mxu1  ;;  %v8449_v25 = vpop.f32.mrf.mxu0 }
 0x2b3   : > { %v4466_v11 = vadd.f32 %v8348_v62, %v10802_v32  ;;  %v10965_v48 = vadd.f32 %v8448_v49, %v4464_v29 }
 0x2b4   : > { %v8350_v52 = vpop.f32.mrf.mxu1  ;;  %v8450_v20 = vpop.f32.mrf.mxu0 }
 0x2b5   : > { %v8351_v34 = vadd.f32 %v8350_v52, %v8349_v28  ;;  %v8451_v17 = vadd.f32 %v8450_v20, %v8449_v25 }
 0x2b6   : > { %v8352_v9 = vpop.f32.mrf.mxu1  ;;  %v8452_v40 = vpop.f32.mrf.mxu0 }
 0x2b7   : > { %v4467_v19 = vadd.f32 %v8351_v34, %v10813_v30  ;;  %v10968_v61 = vadd.f32 %v8451_v17, %v4465_v23 }
 0x2b8   : > { %v8353_v42 = vpop.f32.mrf.mxu1  ;;  %v8453_v26 = vpop.f32.mrf.mxu0 }
 0x2b9   : > { %v8354_v56 = vadd.f32 %v8353_v42, %v8352_v9  ;;  %v8454_v21 = vadd.f32 %v8453_v26, %v8452_v40 }
 0x2ba   : > { %v8355_v16 = vpop.f32.mrf.mxu1  ;;  %v8455_v3 = vpop.f32.mrf.mxu0 }
 0x2bb   : > { %v4468_v32 = vadd.f32 %v8354_v56, %v10824_v2  ;;  %v10971_v6 = vadd.f32 %v8454_v21, %v4466_v11 }
 0x2bc   : > { %v8356_v59 = vpop.f32.mrf.mxu1  ;;  %v8456_v50 = vpop.f32.mrf.mxu0 }
 0x2bd   : > { %v8357_v47 = vadd.f32 %v8356_v59, %v8355_v16  ;;  %v8457_v39 = vadd.f32 %v8456_v50, %v8455_v3 }
 0x2be   : > { %v8358_v55 = vpop.f32.mrf.mxu1  ;;  %v8458_v29 = vpop.f32.mrf.mxu0 }
 0x2bf   : > { %v4469_v30 = vadd.f32 %v8357_v47, %v10833_v46  ;;  %v10974_v22 = vadd.f32 %v8457_v39, %v4467_v19 }
 0x2c0   : > { %v8359_v54 = vpop.f32.mrf.mxu1  ;;  %v8459_v10 = vpop.f32.mrf.mxu0 }
 0x2c1   : > { %v8360_v18 = vadd.f32 %v8359_v54, %v8358_v55  ;;  %v8460_v35 = vadd.f32 %v8459_v10, %v8458_v29 }
 0x2c2   : > { %v8361_v38 = vpop.f32.mrf.mxu1  ;;  %v8461_v23 = vpop.f32.mrf.mxu0 }
 0x2c3   : > { %v4470_v2 = vadd.f32 %v8360_v18, %v10842_v36  ;;  %v10977_v37 = vadd.f32 %v8460_v35, %v4468_v32  ;;  %v10993_v35 = vld [vmem:[%s11122_s3] ss:$0 sm:$0xff] }
 0x2c4   : > { %v8362_v0 = vpop.f32.mrf.mxu1  ;;  %v8462_v62 = vpop.f32.mrf.mxu0 }
 0x2c5   : > { %v8363_v49 = vadd.f32 %v8362_v0, %v8361_v38  ;;  %v8463_v28 = vadd.f32 %v8462_v62, %v8461_v23 }
 0x2c6   : > { %v8364_v25 = vpop.f32.mrf.mxu1  ;;  %v8464_v11 = vpop.f32.mrf.mxu0 }
 0x2c7   : > { %v4471_v46 = vadd.f32 %v8363_v49, %v10852_v27  ;;  %v10980_v52 = vadd.f32 %v8463_v28, %v4469_v30 }
 0x2c8   : > { %v8365_v20 = vpop.f32.mrf.mxu1  ;;  %v8465_v34 = vpop.f32.mrf.mxu0 }
 0x2c9   : > { %v8366_v17 = vadd.f32 %v8365_v20, %v8364_v25  ;;  %v8466_v9 = vadd.f32 %v8465_v34, %v8464_v11 }
 0x2ca   : > { %v8467_v40 = vpop.f32.mrf.mxu0  ;;  %v8489_v19 = vpop.f32.mrf.mxu1 }
 0x2cb   : > { %v4472_v36 = vadd.f32 %v8366_v17, %v10863_v14  ;;  %v10983_v42 = vadd.f32 %v8466_v9, %v4470_v2 }
 0x2cc   : > { %v8468_v26 = vpop.f32.mrf.mxu0  ;;  %v8490_v56 = vpop.f32.mrf.mxu1 }
 0x2cd   : > { %v8469_v21 = vadd.f32 %v8468_v26, %v8467_v40  ;;  %v8491_v50 = vadd.f32 %v8490_v56, %v8489_v19 }
 0x2ce   : > { %v8470_v16 = vpop.f32.mrf.mxu0  ;;  %v8492_v3 = vpop.f32.mrf.mxu1 }
 0x2cf   : > { %v10985_v32 = vadd.f32 %v8469_v21, %v4471_v46  ;;  %v5801_v14 = vadd.f32 %v8491_v50, %v10873_v58  ;;  %v11000_v58 = vld [vmem:[%s11123_s4] ss:$0 sm:$0xff] }
 0x2d0   : > { %v8471_v27 = vpop.f32.mrf.mxu0  ;;  %v8493_v59 = vpop.f32.mrf.mxu1 }
 0x2d1   : > { %v8472_v47 = vadd.f32 %v8471_v27, %v8470_v16  ;;  %v8494_v10 = vadd.f32 %v8493_v59, %v8492_v3 }
 0x2d2   : > { %v8495_v39 = vpop.f32.mrf.mxu1  ;;  %v8595_v55 = vpop.f32.mrf.mxu0 }
 0x2d3   : > { %v10987_v29 = vadd.f32 %v8472_v47, %v4472_v36  ;;  %v5802_v49 = vadd.f32 %v8494_v10, %v10882_v41 }
 0x2d4   : > { %v8496_v30 = vpop.f32.mrf.mxu1  ;;  %v8596_v54 = vpop.f32.mrf.mxu0 }
 0x2d5   : > { %v8597_v18 = vadd.f32 %v8596_v54, %v8595_v55  ;;  %v8497_v28 = vadd.f32 %v8496_v30, %v8495_v39 }
 0x2d6   : > { %v8498_v38 = vpop.f32.mrf.mxu1  ;;  %v8598_v23 = vpop.f32.mrf.mxu0 }
 0x2d7   : > { %v6421_v2 = vadd.f32 %v8597_v18, %v5801_v14  ;;  %v5803_v36 = vadd.f32 %v8497_v28, %v10891_v53 }
 0x2d8   : > { %v8499_v0 = vpop.f32.mrf.mxu1  ;;  %v8599_v62 = vpop.f32.mrf.mxu0 }
 0x2d9   : > { %v6518_v25 = vmul.f32 %v10993_v35, %v6421_v2  ;;  %v8600_v11 = vadd.f32 %v8599_v62, %v8598_v23  ;;  %v8500_v9 = vadd.f32 %v8499_v0, %v8498_v38 }
 0x2da   : > { %v8501_v46 = vpop.f32.mrf.mxu1  ;;  %v8601_v20 = vpop.f32.mrf.mxu0 }
 0x2db   : > { %v6422_v34 = vadd.f32 %v8600_v11, %v5802_v49  ;;  %v6555_v17 = vadd.f32 %v11000_v58, %v6518_v25  ;;  %v5804_v59 = vadd.f32 %v8500_v9, %v10899_v51 }
 0x2dc   : > { %v8502_v40 = vpop.f32.mrf.mxu1  ;;  %v8602_v19 = vpop.f32.mrf.mxu0 }
 0x2dd   : > { %v6519_v41 = vmul.f32 %v10993_v35, %v6422_v34  ;;  %v8603_v26 = vadd.f32 %v8602_v19, %v8601_v20  ;;  %v6585_v27 = vmax.f32 %v6555_v17, 0.0  ;;  %v8503_v55 = vadd.f32 %v8502_v40, %v8501_v46 }
 0x2de   : > { %v8504_v56 = vpop.f32.mrf.mxu1  ;;  %v8604_v21 = vpop.f32.mrf.mxu0 }
 0x2df   : > { %v6556_v16 = vadd.f32 %v11000_v58, %v6519_v41  ;;  %v6423_v3 = vadd.f32 %v8603_v26, %v5803_v36  ;;  %v5805_v62 = vadd.f32 %v8503_v55, %v10905_v44 }
 0x2e0   : > { %v8505_v50 = vpop.f32.mrf.mxu1  ;;  %v8605_v47 = vpop.f32.mrf.mxu0 }
 0x2e1   : > { %v6586_v39 = vmax.f32 %v6556_v16, 0.0  ;;  %v6520_v30 = vmul.f32 %v10993_v35, %v6423_v3  ;;  %v8606_v54 = vadd.f32 %v8605_v47, %v8604_v21  ;;  %v8506_v23 = vadd.f32 %v8505_v50, %v8504_v56 }
 0x2e2   : > { %v8507_v53 = vpop.f32.mrf.mxu1  ;;  %v8607_v14 = vpop.f32.mrf.mxu0 }
 0x2e3   : > { %v7645_v10 = vpack.c.bf16 %v6586_v39, %v6585_v27  ;;  %v6424_v18 = vadd.f32 %v8606_v54, %v5804_v59  ;;  %v6557_v38 = vadd.f32 %v11000_v58, %v6520_v30  ;;  %v5806_v34 = vadd.f32 %v8506_v23, %v10912_v24 }
 0x2e4   : > { %v8508_v2 = vpop.f32.mrf.mxu1  ;;  %v8608_v0 = vpop.f32.mrf.mxu0 }
 0x2e5   : > { %7646 = vst [vmem:[%s9220_s11] sm:$0xff] %v7645_v10   ;;  %v6521_v51 = vmul.f32 %v10993_v35, %v6424_v18  ;;  %v8609_v49 = vadd.f32 %v8608_v0, %v8607_v14  ;;  %v6587_v20 = vmax.f32 %v6557_v38, 0.0  ;;  %v8509_v19 = vadd.f32 %v8508_v2, %v8507_v53 }
 0x2e6   : > { %v8510_v28 = vpop.f32.mrf.mxu1  ;;  %v8610_v25 = vpop.f32.mrf.mxu0 }
 0x2e7   : > { %v6558_v11 = vadd.f32 %v11000_v58, %v6521_v51  ;;  %v6425_v46 = vadd.f32 %v8609_v49, %v5805_v62  ;;  %v5807_v50 = vadd.f32 %v8509_v19, %v10917_v43 }
 0x2e8   : > { %v8511_v17 = vpop.f32.mrf.mxu1  ;;  %v8611_v9 = vpop.f32.mrf.mxu0 }
 0x2e9   : > { %v6588_v40 = vmax.f32 %v6558_v11, 0.0  ;;  %v6522_v36 = vmul.f32 %v10993_v35, %v6425_v46  ;;  %v8612_v41 = vadd.f32 %v8611_v9, %v8610_v25  ;;  %v8512_v3 = vadd.f32 %v8511_v17, %v8510_v28 }
 0x2ea   : > { %v8513_v44 = vpop.f32.mrf.mxu1  ;;  %v8613_v26 = vpop.f32.mrf.mxu0 }
 0x2eb   : > { %v7650_v56 = vpack.c.bf16 %v6588_v40, %v6587_v20  ;;  %v6426_v21 = vadd.f32 %v8612_v41, %v5806_v34  ;;  %v6559_v16 = vadd.f32 %v11000_v58, %v6522_v36  ;;  %v5808_v14 = vadd.f32 %v8512_v3, %v10922_v63 }
 0x2ec   : > { %v8514_v27 = vpop.f32.mrf.mxu1  ;;  %v8614_v59 = vpop.f32.mrf.mxu0 }
 0x2ed   : > { %7717 = vst [vmem:[%s9220_s11 + $0x8] sm:$0xff] %v7650_v56   ;;  %v6523_v24 = vmul.f32 %v10993_v35, %v6426_v21  ;;  %v8615_v47 = vadd.f32 %v8614_v59, %v8613_v26  ;;  %v6589_v53 = vmax.f32 %v6559_v16, 0.0  ;;  %v8515_v23 = vadd.f32 %v8514_v27, %v8513_v44 }
 0x2ee   : > { %v8516_v39 = vpop.f32.mrf.mxu1  ;;  %v8616_v55 = vpop.f32.mrf.mxu0 }
 0x2ef   : > { %v6560_v30 = vadd.f32 %v11000_v58, %v6523_v24  ;;  %v6427_v54 = vadd.f32 %v8615_v47, %v5807_v50  ;;  %v5809_v20 = vadd.f32 %v8515_v23, %v10925_v5 }
 0x2f0   : > { %v8517_v10 = vpop.f32.mrf.mxu1  ;;  %v8617_v18 = vpop.f32.mrf.mxu0 }
 0x2f1   : > { %v6590_v38 = vmax.f32 %v6560_v30, 0.0  ;;  %v6524_v2 = vmul.f32 %v10993_v35, %v6427_v54  ;;  %v8618_v0 = vadd.f32 %v8617_v18, %v8616_v55  ;;  %v8518_v25 = vadd.f32 %v8517_v10, %v8516_v39 }
 0x2f2   : > { %v8519_v43 = vpop.f32.mrf.mxu1  ;;  %v8619_v62 = vpop.f32.mrf.mxu0 }
 0x2f3   : > { %v7655_v51 = vpack.c.bf16 %v6590_v38, %v6589_v53  ;;  %v6428_v49 = vadd.f32 %v8618_v0, %v5808_v14  ;;  %v6561_v28 = vadd.f32 %v11000_v58, %v6524_v2  ;;  %v5810_v41 = vadd.f32 %v8518_v25, %v10929_v57 }
 0x2f4   : > { %v8520_v11 = vpop.f32.mrf.mxu1  ;;  %v8620_v46 = vpop.f32.mrf.mxu0 }
 0x2f5   : > { %7718 = vst [vmem:[%s9220_s11 + $0x10] sm:$0xff] %v7655_v51   ;;  %v6525_v63 = vmul.f32 %v10993_v35, %v6428_v49  ;;  %v8621_v34 = vadd.f32 %v8620_v46, %v8619_v62  ;;  %v6591_v36 = vmax.f32 %v6561_v28, 0.0  ;;  %v8521_v21 = vadd.f32 %v8520_v11, %v8519_v43 }
 0x2f6   : > { %v8522_v17 = vpop.f32.mrf.mxu1  ;;  %v8622_v9 = vpop.f32.mrf.mxu0 }
 0x2f7   : > { %v6562_v40 = vadd.f32 %v11000_v58, %v6525_v63  ;;  %v6429_v19 = vadd.f32 %v8621_v34, %v5809_v20  ;;  %v5811_v30 = vadd.f32 %v8521_v21, %v10932_v8 }
 0x2f8   : > { %v8523_v44 = vpop.f32.mrf.mxu1  ;;  %v8623_v26 = vpop.f32.mrf.mxu0 }
 0x2f9   : > { %v6592_v56 = vmax.f32 %v6562_v40, 0.0  ;;  %v6526_v16 = vmul.f32 %v10993_v35, %v6429_v19  ;;  %v8624_v3 = vadd.f32 %v8623_v26, %v8622_v9  ;;  %v8524_v47 = vadd.f32 %v8523_v44, %v8522_v17 }
 0x2fa   : > { %v8525_v5 = vpop.f32.mrf.mxu1  ;;  %v8625_v27 = vpop.f32.mrf.mxu0 }
 0x2fb   : > { %v7660_v59 = vpack.c.bf16 %v6592_v56, %v6591_v36  ;;  %v6430_v50 = vadd.f32 %v8624_v3, %v5810_v41  ;;  %v6563_v24 = vadd.f32 %v11000_v58, %v6526_v16  ;;  %v5812_v23 = vadd.f32 %v8524_v47, %v10935_v7 }
 0x2fc   : > { %v8526_v39 = vpop.f32.mrf.mxu1  ;;  %v8626_v55 = vpop.f32.mrf.mxu0 }
 0x2fd   : > { %7719 = vst [vmem:[%s9220_s11 + $0x18] sm:$0xff] %v7660_v59   ;;  %v6527_v57 = vmul.f32 %v10993_v35, %v6430_v50  ;;  %v8627_v54 = vadd.f32 %v8626_v55, %v8625_v27  ;;  %v6593_v38 = vmax.f32 %v6563_v24, 0.0  ;;  %v8527_v62 = vadd.f32 %v8526_v39, %v8525_v5 }
 0x2fe   : > { %v8528_v53 = vpop.f32.mrf.mxu1  ;;  %v8628_v14 = vpop.f32.mrf.mxu0 }
 0x2ff   : > { %v6564_v10 = vadd.f32 %v11000_v58, %v6527_v57  ;;  %v6431_v18 = vadd.f32 %v8627_v54, %v5811_v30  ;;  %v5813_v17 = vadd.f32 %v8527_v62, %v10938_v31 }
 0x300   : > { %v8529_v2 = vpop.f32.mrf.mxu1  ;;  %v8629_v0 = vpop.f32.mrf.mxu0 }
 0x301   : > { %v6594_v43 = vmax.f32 %v6564_v10, 0.0  ;;  %v6528_v51 = vmul.f32 %v10993_v35, %v6431_v18  ;;  %v8630_v49 = vadd.f32 %v8629_v0, %v8628_v14  ;;  %v8530_v20 = vadd.f32 %v8529_v2, %v8528_v53 }
 0x302   : > { %v8531_v8 = vpop.f32.mrf.mxu1  ;;  %v8631_v28 = vpop.f32.mrf.mxu0 }
 0x303   : > { %v7665_v25 = vpack.c.bf16 %v6594_v43, %v6593_v38  ;;  %v6432_v11 = vadd.f32 %v8630_v49, %v5812_v23  ;;  %v6565_v46 = vadd.f32 %v11000_v58, %v6528_v51  ;;  %v5814_v26 = vadd.f32 %v8530_v20, %v10941_v45 }
 0x304   : > { %v8532_v63 = vpop.f32.mrf.mxu1  ;;  %v8632_v34 = vpop.f32.mrf.mxu0 }
 0x305   : > { %7720 = vst [vmem:[%s9220_s11 + $0x20] sm:$0xff] %v7665_v25   ;;  %v6529_v7 = vmul.f32 %v10993_v35, %v6432_v11  ;;  %v8633_v9 = vadd.f32 %v8632_v34, %v8631_v28  ;;  %v6595_v44 = vmax.f32 %v6565_v46, 0.0  ;;  %v8533_v3 = vadd.f32 %v8532_v63, %v8531_v8 }
 0x306   : > { %v8534_v40 = vpop.f32.mrf.mxu1  ;;  %v8634_v19 = vpop.f32.mrf.mxu0 }
 0x307   : > { %v6566_v36 = vadd.f32 %v11000_v58, %v6529_v7  ;;  %v6433_v41 = vadd.f32 %v8633_v9, %v5813_v17  ;;  %v5815_v57 = vadd.f32 %v8533_v3, %v10944_v60 }
 0x308   : > { %v8535_v56 = vpop.f32.mrf.mxu1  ;;  %v8635_v21 = vpop.f32.mrf.mxu0 }
 0x309   : > { %v6596_v16 = vmax.f32 %v6566_v36, 0.0  ;;  %v6530_v5 = vmul.f32 %v10993_v35, %v6433_v41  ;;  %v8636_v27 = vadd.f32 %v8635_v21, %v8634_v19  ;;  %v8536_v39 = vadd.f32 %v8535_v56, %v8534_v40 }
 0x30a   : > { %v8537_v31 = vpop.f32.mrf.mxu1  ;;  %v8637_v59 = vpop.f32.mrf.mxu0 }
 0x30b   : > { %v7670_v50 = vpack.c.bf16 %v6596_v16, %v6595_v44  ;;  %v6434_v24 = vadd.f32 %v8636_v27, %v5814_v26  ;;  %v6567_v47 = vadd.f32 %v11000_v58, %v6530_v5  ;;  %v5816_v23 = vadd.f32 %v8536_v39, %v10947_v33 }
 0x30c   : > { %v8538_v55 = vpop.f32.mrf.mxu1  ;;  %v8638_v30 = vpop.f32.mrf.mxu0 }
 0x30d   : > { %7721 = vst [vmem:[%s9220_s11 + $0x28] sm:$0xff] %v7670_v50   ;;  %v6531_v45 = vmul.f32 %v10993_v35, %v6434_v24  ;;  %v8639_v54 = vadd.f32 %v8638_v30, %v8637_v59  ;;  %v6597_v38 = vmax.f32 %v6567_v47, 0.0  ;;  %v8539_v62 = vadd.f32 %v8538_v55, %v8537_v31 }
 0x30e   : > { %v8540_v53 = vpop.f32.mrf.mxu1  ;;  %v8640_v14 = vpop.f32.mrf.mxu0 }
 0x30f   : > { %v6568_v10 = vadd.f32 %v11000_v58, %v6531_v45  ;;  %v6435_v18 = vadd.f32 %v8639_v54, %v5815_v57  ;;  %v5817_v34 = vadd.f32 %v8539_v62, %v10950_v1 }
 0x310   : > { %v8541_v2 = vpop.f32.mrf.mxu1  ;;  %v8641_v0 = vpop.f32.mrf.mxu0 }
 0x311   : > { %v6598_v43 = vmax.f32 %v6568_v10, 0.0  ;;  %v6532_v51 = vmul.f32 %v10993_v35, %v6435_v18  ;;  %v8642_v49 = vadd.f32 %v8641_v0, %v8640_v14  ;;  %v8542_v46 = vadd.f32 %v8541_v2, %v8540_v53 }
 0x312   : > { %v8543_v60 = vpop.f32.mrf.mxu1  ;;  %v8643_v8 = vpop.f32.mrf.mxu0 }
 0x313   : > { %v7675_v28 = vpack.c.bf16 %v6598_v43, %v6597_v38  ;;  %v6436_v25 = vadd.f32 %v8642_v49, %v5816_v23  ;;  %v6569_v11 = vadd.f32 %v11000_v58, %v6532_v51  ;;  %v5818_v41 = vadd.f32 %v8542_v46, %v10953_v13 }
 0x314   : > { %v8544_v20 = vpop.f32.mrf.mxu1  ;;  %v8644_v63 = vpop.f32.mrf.mxu0 }
 0x315   : > { %7722 = vst [vmem:[%s9220_s11 + $0x30] sm:$0xff] %v7675_v28   ;;  %v6533_v33 = vmul.f32 %v10993_v35, %v6436_v25  ;;  %v8645_v17 = vadd.f32 %v8644_v63, %v8643_v8  ;;  %v6599_v36 = vmax.f32 %v6569_v11, 0.0  ;;  %v8545_v21 = vadd.f32 %v8544_v20, %v8543_v60 }
 0x316   : > { %v8546_v7 = vpop.f32.mrf.mxu1  ;;  %v8646_v9 = vpop.f32.mrf.mxu0 }
 0x317   : > { %v6570_v40 = vadd.f32 %v11000_v58, %v6533_v33  ;;  %v6437_v19 = vadd.f32 %v8645_v17, %v5817_v34  ;;  %v5819_v39 = vadd.f32 %v8545_v21, %v10956_v12 }
 0x318   : > { %v8547_v44 = vpop.f32.mrf.mxu1  ;;  %v8647_v26 = vpop.f32.mrf.mxu0 }
 0x319   : > { %v6600_v56 = vmax.f32 %v6570_v40, 0.0  ;;  %v6534_v16 = vmul.f32 %v10993_v35, %v6437_v19  ;;  %v8648_v3 = vadd.f32 %v8647_v26, %v8646_v9  ;;  %v8548_v50 = vadd.f32 %v8547_v44, %v8546_v7 }
 0x31a   : > { %v8549_v1 = vpop.f32.mrf.mxu1  ;;  %v8649_v5 = vpop.f32.mrf.mxu0 }
 0x31b   : > { %v7680_v27 = vpack.c.bf16 %v6600_v56, %v6599_v36  ;;  %v6438_v31 = vadd.f32 %v8648_v3, %v5818_v41  ;;  %v6571_v59 = vadd.f32 %v11000_v58, %v6534_v16  ;;  %v5820_v14 = vadd.f32 %v8548_v50, %v10959_v15 }
 0x31c   : > { %v8550_v24 = vpop.f32.mrf.mxu1  ;;  %v8650_v47 = vpop.f32.mrf.mxu0 }
 0x31d   : > { %7723 = vst [vmem:[%s9220_s11 + $0x38] sm:$0xff] %v7680_v27   ;;  %v6535_v13 = vmul.f32 %v10993_v35, %v6438_v31  ;;  %v8651_v55 = vadd.f32 %v8650_v47, %v8649_v5  ;;  %v6601_v53 = vmax.f32 %v6571_v59, 0.0  ;;  %v8551_v23 = vadd.f32 %v8550_v24, %v8549_v1 }
 0x31e   : > { %v8552_v30 = vpop.f32.mrf.mxu1  ;;  %v8652_v57 = vpop.f32.mrf.mxu0 }
 0x31f   : > { %v6572_v45 = vadd.f32 %v11000_v58, %v6535_v13  ;;  %v6439_v54 = vadd.f32 %v8651_v55, %v5819_v39  ;;  %v5821_v25 = vadd.f32 %v8551_v23, %v10962_v4 }
 0x320   : > { %v8553_v10 = vpop.f32.mrf.mxu1  ;;  %v8653_v18 = vpop.f32.mrf.mxu0 }
 0x321   : > { %v6602_v38 = vmax.f32 %v6572_v45, 0.0  ;;  %v6536_v2 = vmul.f32 %v10993_v35, %v6439_v54  ;;  %v8654_v0 = vadd.f32 %v8653_v18, %v8652_v57  ;;  %v8554_v60 = vadd.f32 %v8553_v10, %v8552_v30 }
 0x322   : > { %v8555_v12 = vpop.f32.mrf.mxu1  ;;  %v8655_v43 = vpop.f32.mrf.mxu0 }
 0x323   : > { %v7685_v62 = vpack.c.bf16 %v6602_v38, %v6601_v53  ;;  %v6440_v51 = vadd.f32 %v8654_v0, %v5820_v14  ;;  %v6573_v49 = vadd.f32 %v11000_v58, %v6536_v2  ;;  %v5822_v17 = vadd.f32 %v8554_v60, %v10965_v48 }
 0x324   : > { %v8556_v8 = vpop.f32.mrf.mxu1  ;;  %v8656_v28 = vpop.f32.mrf.mxu0 }
 0x325   : > { %7724 = vst [vmem:[%s9220_s11 + $0x40] sm:$0xff] %v7685_v62   ;;  %v6537_v15 = vmul.f32 %v10993_v35, %v6440_v51  ;;  %v8657_v11 = vadd.f32 %v8656_v28, %v8655_v43  ;;  %v6603_v33 = vmax.f32 %v6573_v49, 0.0  ;;  %v8557_v19 = vadd.f32 %v8556_v8, %v8555_v12 }
 0x326   : > { %v8558_v46 = vpop.f32.mrf.mxu1  ;;  %v8658_v20 = vpop.f32.mrf.mxu0 }
 0x327   : > { %v6574_v63 = vadd.f32 %v11000_v58, %v6537_v15  ;;  %v6441_v34 = vadd.f32 %v8657_v11, %v5821_v25  ;;  %v5823_v5 = vadd.f32 %v8557_v19, %v10968_v61 }
 0x328   : > { %v8559_v7 = vpop.f32.mrf.mxu1  ;;  %v8659_v9 = vpop.f32.mrf.mxu0 }
 0x329   : > { %v6604_v40 = vmax.f32 %v6574_v63, 0.0  ;;  %v6538_v36 = vmul.f32 %v10993_v35, %v6441_v34  ;;  %v8660_v41 = vadd.f32 %v8659_v9, %v8658_v20  ;;  %v8560_v16 = vadd.f32 %v8559_v7, %v8558_v46 }
 0x32a   : > { %v8561_v4 = vpop.f32.mrf.mxu1  ;;  %v8661_v44 = vpop.f32.mrf.mxu0 }
 0x32b   : > { %v7690_v26 = vpack.c.bf16 %v6604_v40, %v6603_v33  ;;  %v6442_v56 = vadd.f32 %v8660_v41, %v5822_v17  ;;  %v6575_v21 = vadd.f32 %v11000_v58, %v6538_v36  ;;  %v5824_v39 = vadd.f32 %v8560_v16, %v10971_v6 }
 0x32c   : > { %v8562_v3 = vpop.f32.mrf.mxu1  ;;  %v8662_v1 = vpop.f32.mrf.mxu0 }
 0x32d   : > { %7725 = vst [vmem:[%s9220_s11 + $0x48] sm:$0xff] %v7690_v26   ;;  %v6539_v48 = vmul.f32 %v10993_v35, %v6442_v56  ;;  %v8663_v27 = vadd.f32 %v8662_v1, %v8661_v44  ;;  %v6605_v47 = vmax.f32 %v6575_v21, 0.0  ;;  %v8563_v57 = vadd.f32 %v8562_v3, %v8561_v4 }
 0x32e   : > { %v8564_v31 = vpop.f32.mrf.mxu1  ;;  %v8664_v59 = vpop.f32.mrf.mxu0 }
 0x32f   : > { %v6576_v50 = vadd.f32 %v11000_v58, %v6539_v48  ;;  %v6443_v24 = vadd.f32 %v8663_v27, %v5823_v5  ;;  %v5825_v0 = vadd.f32 %v8563_v57, %v10974_v22 }
 0x330   : > { %v8565_v13 = vpop.f32.mrf.mxu1  ;;  %v8665_v55 = vpop.f32.mrf.mxu0 }
 0x331   : > { %v6606_v30 = vmax.f32 %v6576_v50, 0.0  ;;  %v6540_v45 = vmul.f32 %v10993_v35, %v6443_v24  ;;  %v8666_v54 = vadd.f32 %v8665_v55, %v8664_v59  ;;  %v8566_v38 = vadd.f32 %v8565_v13, %v8564_v31 }
 0x332   : > { %v8567_v61 = vpop.f32.mrf.mxu1  ;;  %v8667_v53 = vpop.f32.mrf.mxu0 }
 0x333   : > { %v7695_v14 = vpack.c.bf16 %v6606_v30, %v6605_v47  ;;  %v6444_v10 = vadd.f32 %v8666_v54, %v5824_v39  ;;  %v6577_v18 = vadd.f32 %v11000_v58, %v6540_v45  ;;  %v5826_v8 = vadd.f32 %v8566_v38, %v10977_v37 }
 0x334   : > { %v8568_v23 = vpop.f32.mrf.mxu1  ;;  %v8668_v2 = vpop.f32.mrf.mxu0 }
 0x335   : > { %7726 = vst [vmem:[%s9220_s11 + $0x50] sm:$0xff] %v7695_v14   ;;  %v6541_v6 = vmul.f32 %v10993_v35, %v6444_v10  ;;  %v8669_v12 = vadd.f32 %v8668_v2, %v8667_v53  ;;  %v6607_v60 = vmax.f32 %v6577_v18, 0.0  ;;  %v8569_v11 = vadd.f32 %v8568_v23, %v8567_v61 }
 0x336   : > { %v8570_v43 = vpop.f32.mrf.mxu1  ;;  %v8670_v62 = vpop.f32.mrf.mxu0 }
 0x337   : > { %v6578_v51 = vadd.f32 %v11000_v58, %v6541_v6  ;;  %v6445_v49 = vadd.f32 %v8669_v12, %v5825_v0  ;;  %v5827_v19 = vadd.f32 %v8569_v11, %v10980_v52 }
 0x338   : > { %v8571_v28 = vpop.f32.mrf.mxu1  ;;  %v8671_v25 = vpop.f32.mrf.mxu0 }
 0x339   : > { %v6608_v15 = vmax.f32 %v6578_v51, 0.0  ;;  %v6542_v46 = vmul.f32 %v10993_v35, %v6445_v49  ;;  %v8672_v20 = vadd.f32 %v8671_v25, %v8670_v62  ;;  %v8572_v7 = vadd.f32 %v8571_v28, %v8570_v43 }
 0x33a   : > { %v8573_v22 = vpop.f32.mrf.mxu1  ;;  %v8673_v63 = vpop.f32.mrf.mxu0 }
 0x33b   : > { %v7700_v34 = vpack.c.bf16 %v6608_v15, %v6607_v60  ;;  %v6446_v33 = vadd.f32 %v8672_v20, %v5826_v8  ;;  %v6579_v17 = vadd.f32 %v11000_v58, %v6542_v46  ;;  %v5828_v21 = vadd.f32 %v8572_v7, %v10983_v42 }
 0x33c   : > { %v8574_v9 = vpop.f32.mrf.mxu1  ;;  %v8674_v40 = vpop.f32.mrf.mxu0 }
 0x33d   : > { %7727 = vst [vmem:[%s9220_s11 + $0x58] sm:$0xff] %v7700_v34   ;;  %v6543_v37 = vmul.f32 %v10993_v35, %v6446_v33  ;;  %v8675_v36 = vadd.f32 %v8674_v40, %v8673_v63  ;;  %v6609_v56 = vmax.f32 %v6579_v17, 0.0  ;;  %v8575_v1 = vadd.f32 %v8574_v9, %v8573_v22 }
 0x33e   : > { %v8576_v41 = vpop.f32.mrf.mxu1  ;;  %v8676_v4 = vpop.f32.mrf.mxu0 }
 0x33f   : > { %v6580_v44 = vadd.f32 %v11000_v58, %v6543_v37  ;;  %v6447_v26 = vadd.f32 %v8675_v36, %v5827_v19  ;;  %v5829_v47 = vadd.f32 %v8575_v1, %v10985_v32 }
 0x340   : > { %v8677_v16 = vpop.f32.mrf.mxu0  ;;  %v8577_v48 = vpop.f32.mrf.mxu1 }
 0x341   : > { %v6610_v3 = vmax.f32 %v6580_v44, 0.0  ;;  %v6544_v5 = vmul.f32 %v10993_v35, %v6447_v26  ;;  %v8678_v27 = vadd.f32 %v8677_v16, %v8676_v4  ;;  %v8578_v50 = vadd.f32 %v8577_v48, %v8576_v41 }
 0x342   : > { %v8679_v52 = vpop.f32.mrf.mxu0 }
 0x343   : > { %v7705_v31 = vpack.c.bf16 %v6610_v3, %v6609_v56  ;;  %v6448_v59 = vadd.f32 %v8678_v27, %v5828_v21  ;;  %v6581_v39 = vadd.f32 %v11000_v58, %v6544_v5  ;;  %v5830_v45 = vadd.f32 %v8578_v50, %v10987_v29 }
 0x344   : > { %v8680_v24 = vpop.f32.mrf.mxu0 }
 0x345   : > { %7728 = vst [vmem:[%s9220_s11 + $0x60] sm:$0xff] %v7705_v31   ;;  %v6545_v42 = vmul.f32 %v10993_v35, %v6448_v59  ;;  %v8681_v13 = vadd.f32 %v8680_v24, %v8679_v52  ;;  %v6611_v61 = vmax.f32 %v6581_v39, 0.0 }
 0x346   : > { %v8682_v55 = vpop.f32.mrf.mxu0 }
 0x347   : > { %v6582_v30 = vadd.f32 %v11000_v58, %v6545_v42  ;;  %v6449_v57 = vadd.f32 %v8681_v13, %v5829_v47 }
 0x348   : > { %v8683_v54 = vpop.f32.mrf.mxu0 }
 0x349   : > { %v6612_v53 = vmax.f32 %v6582_v30, 0.0  ;;  %v6546_v14 = vmul.f32 %v10993_v35, %v6449_v57  ;;  %v8684_v10 = vadd.f32 %v8683_v54, %v8682_v55 }
 0x34b   : > { %v7710_v18 = vpack.c.bf16 %v6612_v53, %v6611_v61  ;;  %v6450_v32 = vadd.f32 %v8684_v10, %v5830_v45  ;;  %v6583_v38 = vadd.f32 %v11000_v58, %v6546_v14 }
 0x34d   : > { %7729 = vst [vmem:[%s9220_s11 + $0x68] sm:$0xff] %v7710_v18   ;;  %v6547_v23 = vmul.f32 %v10993_v35, %v6450_v32  ;;  %v6613_v0 = vmax.f32 %v6583_v38, 0.0 }
 0x34f   : > { %v6584_v2 = vadd.f32 %v11000_v58, %v6547_v23 }
 0x351   : > { %v6614_v6 = vmax.f32 %v6584_v2, 0.0 }
 0x353   : > { %v7715_v12 = vpack.c.bf16 %v6614_v6, %v6613_v0 }
 0x355   : > { %7730 = vst [vmem:[%s9220_s11 + $0x70] sm:$0xff] %v7715_v12  }
 0x356 PF: > { %s15_s22 = sadd.s32 1, %s9153_s22   ;;  %s11125_s18 = smov %s9145_s20 }
 0x357   : > { %p12_p7 = scmp.ge.s32.totalorder %s15_s22, 6   ;;  %s11126_s19 = smov %s9149_s21 }
 0x358   : > { %s11127_s20 = smov %s11130_s23  ;;  %s11128_s21 = smov %s11134_s24 }
 0x359   :  { %14 = sbr.rel (!%p12_p7) target bundleno = 3 (0x3), region = 174 }
 0x35e   :  { %6795 = vsyncmov [#allocation3] }
 0x361   :  { %s6796_s11 = vpop.sfrf %6795 }
 0x362   :  { %p7610_p8 = scmp.ne.s32.totalorder %s6796_s11, 0 }
 0x364   :  { %6800 = shalt.err (%p7610_p8)  }
 0x365   :  { %6802 = vsyncmov [#allocation3 + $0x1] }
 0x368   :  { %s6803_s6 = vpop.sfrf %6802 }
 0x369   :  { %p7611_p9 = scmp.ne.s32.totalorder %s6803_s6, 0 }
 0x36b   :  { %6807 = shalt.err (%p7611_p9)  }

// kernel: up_forward.5
= control target key start
LH: loop header
LB: loop body
LE: loop exit
PB: predicated region body
PF: predicated region fallthrough
CT: control target
= control target key end

     0   :  { %s6675_s15 = smov 0   ;;  %s6677_s16 = smov 0   ;;  %s7853_s0 = inlined_call_operand.vmem [shape: bf16[2,552,128], index: 0, kind: input, shape index: {}]   ;;  %s7854_s1 = inlined_call_operand.vmem [shape: bf16[9,128,128], index: 1, kind: input, shape index: {}]   ;;  %s7855_s2 = inlined_call_operand.vmem [shape: f32[1,128], index: 2, kind: input, shape index: {}]   ;;  %s7856_s3 = inlined_call_operand.vmem [shape: f32[1,128], index: 3, kind: input, shape index: {}]   ;;  %s7857_s4 = inlined_call_operand.vmem [shape: bf16[2,480,128], index: 4, kind: output, shape index: {}]  }
   0x1   :  { %s6679_s17 = smov 0   ;;  %s6681_s18 = smov 0  }
   0x2   :  { %s6683_s19 = smov 0  }
   0x3 LB: > { %s23_s20 = sadd.s32 1, %s6638_s17  ;;  %s26_s21 = sadd.s32 1, %s6642_s18  ;;  %s6646_s19 = sphi %s6683_s19, %s14_s19   ;;  %s6642_s18 = sphi %s6681_s18, %s7861_s18   ;;  %s6638_s17 = sphi %s6679_s17, %s7860_s17   ;;  %s6634_s16 = sphi %s6677_s16, %s7859_s16   ;;  %s6630_s15 = sphi %s6675_s15, %s7858_s15  }
   0x4   : > { %p24_p0 = scmp.ge.s32.totalorder %s23_s20, 2  ;;  %p4944_p1 = scmp.ge.s32.totalorder %s6646_s19, 1 }
   0x5   : > { %p142_p2 = scmp.lt.s32.totalorder %s6646_s19, 5 }
   0x6   : > { %s7863_s20 = smov (%p24_p0, %s23_s20), 0  ;;  %s7865_s21 = smov (!%p24_p0, %s26_s21), %s6642_s18 }
   0x7   : > { %p143_p3 = pnand %p4944_p1, %p142_p2  ;;  %p28_p4 = scmp.ge.s32.totalorder %s7865_s21, 2 }
   0x8   : > { %s165_s22 = smul.u32 (!%p143_p3), 30, %s6630_s15  ;;  %p166_p5 = scmp.lt.s32.totalorder (!%p143_p3), %s6634_s16, 1 }
   0x9   : > { %s7867_s21 = smov (%p28_p4, %s7865_s21), 0  ;;  %146 = sbr.rel (%p143_p3) target bundleno = 808 (0x328), region = 32 }
   0xa   : > { %s176_s23 = smul.u32 (!%p143_p3), 240, %s6630_s15  ;;  %p168_p6 = scmp.lt.s32.totalorder (!%p143_p3), %s165_s22, 59 }
   0xb   : > { %s179_s27 = smul.u32 (!%p143_p3), 69, %s6634_s16 }
   0xc   : > { %s177_s26 = sshra.s32 (!%p143_p3), %s176_s23, 3 }
   0xd   : > { %s180_s30 = sadd.s32 (!%p143_p3), %s179_s27, %s177_s26 }
   0xe   : > { %s167_s24 = scalar_select %p166_p5, %s6634_s16, 1 }
   0xf   : > { %s7869_s22 = smov (!%p168_p6, %s165_s22), 59  ;;  %s4946_s8 = sshll.u32 %s180_s30, 2 }
  0x10   : > { %s6350_s25 = smul.u32 60, %s167_s24  ;;  %s6713_s11 = scalar_lea.vmem %s7853_s0, %s4946_s8 }
  0x11   : > { %v221_v0 = vld [vmem:[%s6713_s11] sm:$0xff]  ;;  %v223_v1 = vld [vmem:[%s6713_s11 + $0x8] sm:$0xff]  ;;  %v225_v2 = vld [vmem:[%s6713_s11 + $0x10] sm:$0xff] }
  0x12   : > { %s171_s28 = sadd.s32 %s6350_s25, %s7869_s22  ;;  %222 = vst [vmem:[#allocation2] sm:$0xff] %v221_v0  ;;  %224 = vst [vmem:[#allocation2 + $0x8] sm:$0xff] %v223_v1  ;;  %v227_v3 = vld [vmem:[%s6713_s11 + $0x18] sm:$0xff]  ;;  %v229_v4 = vld [vmem:[%s6713_s11 + $0x20] sm:$0xff] }
  0x13   : > { %s4945_s29 = sshll.u32 %s171_s28, 2  ;;  %226 = vst [vmem:[#allocation2 + $0x10] sm:$0xff] %v225_v2  ;;  %v231_v5 = vld [vmem:[%s6713_s11 + $0x28] sm:$0xff]  ;;  %228 = vst [vmem:[#allocation2 + $0x18] sm:$0xff] %v227_v3  ;;  %v233_v6 = vld [vmem:[%s6713_s11 + $0x30] sm:$0xff] }
  0x14   : > { %s6708_s7 = scalar_lea.vmem %s7857_s4, %s4945_s29  ;;  %230 = vst [vmem:[#allocation2 + $0x20] sm:$0xff] %v229_v4  ;;  %232 = vst [vmem:[#allocation2 + $0x28] sm:$0xff] %v231_v5  ;;  %v235_v7 = vld [vmem:[%s6713_s11 + $0x38] sm:$0xff]  ;;  %v237_v8 = vld [vmem:[%s6713_s11 + $0x40] sm:$0xff] }
  0x15   : > { %234 = vst [vmem:[#allocation2 + $0x30] sm:$0xff] %v233_v6  ;;  %236 = vst [vmem:[#allocation2 + $0x38] sm:$0xff] %v235_v7  ;;  %v239_v9 = vld [vmem:[%s6713_s11 + $0x48] sm:$0xff]  ;;  %v241_v10 = vld [vmem:[%s6713_s11 + $0x50] sm:$0xff] }
  0x16   : > { %238 = vst [vmem:[#allocation2 + $0x40] sm:$0xff] %v237_v8  ;;  %v243_v11 = vld [vmem:[%s6713_s11 + $0x58] sm:$0xff]  ;;  %240 = vst [vmem:[#allocation2 + $0x48] sm:$0xff] %v239_v9  ;;  %v245_v12 = vld [vmem:[%s6713_s11 + $0x60] sm:$0xff] }
  0x17   : > { %242 = vst [vmem:[#allocation2 + $0x50] sm:$0xff] %v241_v10  ;;  %244 = vst [vmem:[#allocation2 + $0x58] sm:$0xff] %v243_v11  ;;  %v247_v13 = vld [vmem:[%s6713_s11 + $0x68] sm:$0xff]  ;;  %v249_v14 = vld [vmem:[%s6713_s11 + $0x70] sm:$0xff] }
  0x18   : > { %246 = vst [vmem:[#allocation2 + $0x60] sm:$0xff] %v245_v12  ;;  %248 = vst [vmem:[#allocation2 + $0x68] sm:$0xff] %v247_v13  ;;  %v251_v15 = vld [vmem:[%s6713_s11 + $0x78] sm:$0xff]  ;;  %v253_v16 = vld [vmem:[%s6713_s11 + $0x80] sm:$0xff] }
  0x19   : > { %250 = vst [vmem:[#allocation2 + $0x70] sm:$0xff] %v249_v14  ;;  %v255_v17 = vld [vmem:[%s6713_s11 + $0x88] sm:$0xff]  ;;  %252 = vst [vmem:[#allocation2 + $0x78] sm:$0xff] %v251_v15  ;;  %v257_v18 = vld [vmem:[%s6713_s11 + $0x90] sm:$0xff] }
  0x1a   : > { %254 = vst [vmem:[#allocation2 + $0x80] sm:$0xff] %v253_v16  ;;  %256 = vst [vmem:[#allocation2 + $0x88] sm:$0xff] %v255_v17 }
  0x1b   : > { %258 = vst [vmem:[#allocation2 + $0x90] sm:$0xff] %v257_v18 }
  0x1c   : > { %274 = vsyncadd [#allocation3], 2496 }
  0x1d   : > { %6626 = dma.done.wait [#allocation3], 2496 }
  0x1e   : > { %6627 = vsyncadd [#allocation3], 4294964800  ;;  %v6648_v19 = vmov 0.0   ;;  %vm6649_vm0 = vmmov 0   ;;  %v6393_v20 = vld [vmem:[%s7854_s1 + $0x38] sm:$0xff]   ;;  %v6394_v21 = vld [vmem:[%s7854_s1 + $0x30] sm:$0xff]  }
  0x1f   : > { %5650 = vmatprep.subr.bf16.mxu0 %v6648_v19  ;;  %6334 = vmatprep.subr.bf16.mxu1 %v6648_v19  ;;  %v6395_v22 = vld [vmem:[%s7854_s1 + $0x28] sm:$0xff]   ;;  %v6396_v23 = vld [vmem:[%s7854_s1 + $0x20] sm:$0xff]   ;;  %v6397_v24 = vld [vmem:[%s7854_s1 + $0x18] sm:$0xff]   ;;  %vm772_vm1 = vsmask.f32 7424  ;;  %vm1329_vm2 = vcmask 1046528  }
  0x20   : > { %5666 = vmatprep.mubr.msk.bf16.mxu0 %vm6649_vm0, %v6648_v19  ;;  %5698 = vmatprep.mubr.msk.bf16.mxu1 %vm6649_vm0, %v6648_v19  ;;  %v6398_v25 = vld [vmem:[%s7854_s1 + $0x10] sm:$0xff]   ;;  %v6399_v26 = vld [vmem:[%s7854_s1 + $0x8] sm:$0xff]   ;;  %v6400_v27 = vld [vmem:[%s7854_s1] sm:$0xff]  }
  0x21   : > { %5651 = vmatpush3.bf16.msra.mxu0 %v6393_v20  ;;  %6342 = vmatpush3.bf16.msra.mxu1 %v6393_v20  ;;  %v6401_v28 = vld [vmem:[#allocation2] sm:$0xff]   ;;  %v6403_v30 = vld [vmem:[%s7854_s1 + $0xb8] sm:$0xff]   ;;  %v6407_v32 = vld [vmem:[%s7854_s1 + $0xb0] sm:$0xff]  }
  0x22   : > { %5652 = vmatprep.subr.bf16.mxu0 %v6648_v19  ;;  %6335 = vmatprep.subr.bf16.mxu1 %v6648_v19  ;;  %v6402_v29 = vld [vmem:[#allocation2 + $0x40] sm:$0xff]   ;;  %v6404_v31 = vld [vmem:[%s7854_s1 + $0x78] sm:$0xff]   ;;  %v6408_v33 = vld [vmem:[%s7854_s1 + $0x70] sm:$0xff]  }
  0x23   : > { %v6405_v34 = vld [vmem:[#allocation2 + $0x8] sm:$0xff]   ;;  %v6415_v38 = vld [vmem:[%s7854_s1 + $0xa0] sm:$0xff]   ;;  %v6409_v40 = vld [vmem:[#allocation2 + $0x10] sm:$0xff]  }
  0x24   : > { %v6406_v35 = vld [vmem:[#allocation2 + $0x48] sm:$0xff]   ;;  %v6416_v39 = vld [vmem:[%s7854_s1 + $0x60] sm:$0xff]   ;;  %v6410_v41 = vld [vmem:[#allocation2 + $0x50] sm:$0xff]  }
  0x25   : > { %5653 = vmatpush3.bf16.msra.mxu0 %v6394_v21  ;;  %6343 = vmatpush3.bf16.msra.mxu1 %v6394_v21  ;;  %v6411_v36 = vld [vmem:[%s7854_s1 + $0xa8] sm:$0xff]   ;;  %v6419_v42 = vld [vmem:[%s7854_s1 + $0x98] sm:$0xff]   ;;  %v6423_v44 = vld [vmem:[%s7854_s1 + $0x90] sm:$0xff]  }
  0x26   : > { %5654 = vmatprep.subr.bf16.mxu0 %v6648_v19  ;;  %6336 = vmatprep.subr.bf16.mxu1 %v6648_v19  ;;  %v6412_v37 = vld [vmem:[%s7854_s1 + $0x68] sm:$0xff]   ;;  %v6420_v43 = vld [vmem:[%s7854_s1 + $0x58] sm:$0xff]   ;;  %v6424_v45 = vld [vmem:[%s7854_s1 + $0x50] sm:$0xff]  }
  0x27   : > { %v6413_v46 = vld [vmem:[#allocation2 + $0x18] sm:$0xff]   ;;  %v6427_v48 = vld [vmem:[%s7854_s1 + $0x48] sm:$0xff]   ;;  %v6429_v50 = vld [vmem:[%s7854_s1 + $0x40] sm:$0xff]  }
  0x28   : > { %v6414_v47 = vld [vmem:[#allocation2 + $0x58] sm:$0xff]   ;;  %v6428_v49 = vld [vmem:[%s7854_s1 + $0x88] sm:$0xff]   ;;  %v6433_v51 = vld [vmem:[%s7854_s1 + $0x80] sm:$0xff]  }
  0x29   : > { %5655 = vmatpush3.bf16.msra.mxu0 %v6395_v22  ;;  %6344 = vmatpush3.bf16.msra.mxu1 %v6395_v22  ;;  %v6417_v52 = vld [vmem:[#allocation2 + $0x20] sm:$0xff]   ;;  %v6421_v54 = vld [vmem:[#allocation2 + $0x28] sm:$0xff]   ;;  %v6425_v59 = vld [vmem:[#allocation2 + $0x30] sm:$0xff]  }
  0x2a   : > { %5656 = vmatprep.subr.bf16.mxu0 %v6648_v19  ;;  %6337 = vmatprep.subr.bf16.mxu1 %v6648_v19  ;;  %v6418_v53 = vld [vmem:[#allocation2 + $0x60] sm:$0xff]   ;;  %v6422_v55 = vld [vmem:[#allocation2 + $0x68] sm:$0xff]   ;;  %v6426_v60 = vld [vmem:[#allocation2 + $0x70] sm:$0xff]  }
  0x2b   : > { %v6431_v56 = vld [vmem:[#allocation2] sm:$0xff]   ;;  %v6432_v57 = vld [vmem:[#allocation2 + $0x8] sm:$0xff]   ;;  %v6435_v0 = vld [vmem:[#allocation2 + $0x10] sm:$0xff]  }
  0x2c   : > { %v776_v58 = vshll.u32 %v6431_v56, 16  ;;  %v774_v61 = vshrl.u32 %v6431_v56, 16  ;;  %v781_v63 = vshll.u32 %v6432_v57, 16  ;;  %v6430_v3 = vld [vmem:[#allocation2 + $0x38] sm:$0xff]   ;;  %v789_v4 = vshll.u32 %v6435_v0, 16  ;;  %v6437_v8 = vld [vmem:[#allocation2 + $0x8] sm:$0xff]  }
  0x2d   : > { %5657 = vmatpush3.bf16.msra.mxu0 %v6396_v23  ;;  %6345 = vmatpush3.bf16.msra.mxu1 %v6396_v23  ;;  %v6436_v5 = vld [vmem:[#allocation2] sm:$0xfe]   ;;  %v785_v7 = vshrl.u32 %v6432_v57, 16  ;;  %v6434_v9 = vld [vmem:[%s7854_s1 + $0xf8] sm:$0xff]   ;;  %v1331_v13 = vrot.slane %v6437_v8, 1  ;;  %v6441_v15 = vld [vmem:[%s7854_s1 + $0xf0] sm:$0xff]  }
  0x2e   : > { %5658 = vmatprep.subr.bf16.mxu0 %v6648_v19  ;;  %6338 = vmatprep.subr.bf16.mxu1 %v6648_v19  ;;  %v778_v62 = vrot.slane %v776_v58, 1  ;;  %v783_v2 = vrot.slane %v781_v63, 1  ;;  %v791_v10 = vrot.slane %v789_v4, 1  ;;  %v1330_v11 = vrot.slane %v6436_v5, 1  ;;  %v6439_v14 = vld [vmem:[#allocation2 + $0x18] sm:$0xff]   ;;  %v6440_v22 = vld [vmem:[#allocation2 + $0x10] sm:$0xff]  }
  0x2f   : > { %v6438_v18 = vld [vmem:[%s7854_s1 + $0x138] sm:$0xff]   ;;  %v793_v20 = vshrl.u32 %v6435_v0, 16  ;;  %v797_v21 = vshll.u32 %v6439_v14, 16  ;;  %v6442_v23 = vld [vmem:[#allocation2 + $0x20] sm:$0xff]   ;;  %v6452_v0 = vld [vmem:[#allocation2 + $0x30] sm:$0xff]  }
  0x30   : > { %v779_v1 = vor.u32 %v778_v62, %v774_v61  ;;  %v787_v12 = vor.u32 %v785_v7, %v783_v2  ;;  %v1332_v17 = vsel %vm1329_vm2, %v1330_v11, %v1331_v13  ;;  %v6477_v56 = vld [vmem:[%s7854_s1 + $0xc0] sm:$0xff]   ;;  %v6472_v62 = vld [vmem:[%s7854_s1 + $0x108] sm:$0xff]   ;;  %v6451_v63 = vld [vmem:[#allocation2 + $0x38] sm:$0xff]   ;;  %v1341_v8 = vrot.slane %v6452_v0, 1 }
  0x31   : > { %5659 = vmatpush3.bf16.msra.mxu0 %v6397_v24  ;;  %6346 = vmatpush3.bf16.msra.mxu1 %v6397_v24  ;;  %v6447_v24 = vld [vmem:[%s7854_s1 + $0xe8] sm:$0xff]   ;;  %v829_v7 = vshll.u32 %v6451_v63, 16  ;;  %v6455_v11 = vld [vmem:[#allocation2 + $0x40] sm:$0xff]  }
  0x32   : > { %5660 = vmatprep.subr.bf16.mxu0 %v6648_v19  ;;  %6339 = vmatprep.subr.bf16.mxu1 %v6648_v19  ;;  %v784_v6 = vsel %vm772_vm1, %v779_v1, %v783_v2  ;;  %v792_v16 = vsel %vm772_vm1, %v787_v12, %v791_v10  ;;  %v833_v12 = vshrl.u32 %v6451_v63, 16 }
  0x35   : > { %5661 = vmatpush3.bf16.msra.mxu0 %v6398_v25  ;;  %6347 = vmatpush3.bf16.msra.mxu1 %v6398_v25  ;;  %v795_v25 = vor.u32 %v793_v20, %v791_v10  ;;  %v831_v10 = vrot.slane %v829_v7, 1  ;;  %v6474_v7 = vld [vmem:[#allocation2 + $0x68] sm:$0xff]  }
  0x36   : > { %5662 = vmatprep.subr.bf16.mxu0 %v6648_v19  ;;  %6340 = vmatprep.subr.bf16.mxu1 %v6648_v19 }
  0x37   : > { %v835_v20 = vor.u32 %v833_v12, %v831_v10 }
  0x39   : > { %5663 = vmatpush3.bf16.msra.mxu0 %v6399_v26  ;;  %6348 = vmatpush3.bf16.msra.mxu1 %v6399_v26  ;;  %v799_v26 = vrot.slane %v797_v21, 1 }
  0x3a   : > { %5664 = vmatprep.subr.bf16.mxu0 %v6648_v19  ;;  %6341 = vmatprep.subr.bf16.mxu1 %v6648_v19 }
  0x3d   : > { %5665 = vmatpush3.bf16.msra.mxu0 %v6400_v27  ;;  %6349 = vmatpush3.bf16.msra.mxu1 %v6400_v27  ;;  %v1333_v27 = vrot.slane %v6440_v22, 1 }
  0x3e   : > { %5802 = vmatprep.subr.bf16.mxu0 %v6648_v19  ;;  %5726 = vmatprep.subr.bf16.mxu1 %v6648_v19 }
  0x40   : > { %5667 = vmatmul.mubr.bf16.vlgmr.msra.gmra.mxu0 %v6401_v28  ;;  %5699 = vmatmul.mubr.bf16.vlgmr.msra.gmra.mxu1 %v6402_v29  ;;  %v6444_v28 = vld [vmem:[%s7854_s1 + $0x130] sm:$0xff]   ;;  %v6453_v29 = vld [vmem:[%s7854_s1 + $0xe0] sm:$0xff]  }
  0x41   : > { %5803 = vmatpush3.bf16.msra.mxu0 %v6403_v30  ;;  %5670 = vmatprep.mubr.msk.bf16.mxu0 %vm6649_vm0, %v6648_v19  ;;  %v805_v30 = vshll.u32 %v6442_v23, 16 }
  0x42   : > { %5702 = vmatprep.mubr.msk.bf16.mxu1 %vm6649_vm0, %v6648_v19  ;;  %5727 = vmatpush3.bf16.msra.mxu1 %v6404_v31  ;;  %v800_v31 = vsel %vm772_vm1, %v795_v25, %v799_v26  ;;  %v841_v25 = vshrl.u32 %v6455_v11, 16 }
  0x43   : > { %5804 = vmatprep.subr.bf16.mxu0 %v6648_v19  ;;  %5728 = vmatprep.subr.bf16.mxu1 %v6648_v19 }
  0x45   : > { %5805 = vmatpush3.bf16.msra.mxu0 %v6407_v32  ;;  %v1334_v32 = vsel %vm1329_vm2, %v1331_v13, %v1333_v27 }
  0x46   : > { %5729 = vmatpush3.bf16.msra.mxu1 %v6408_v33  ;;  %5806 = vmatprep.subr.bf16.mxu0 %v6648_v19  ;;  %v801_v33 = vshrl.u32 %v6439_v14, 16 }
  0x47   : > { %5730 = vmatprep.subr.bf16.mxu1 %v6648_v19 }
  0x48   : > { %5671 = vmatmul.mubr.bf16.gmra.mxu0 %v6405_v34  ;;  %5703 = vmatmul.mubr.bf16.gmra.mxu1 %v6406_v35  ;;  %v6443_v34 = vld [vmem:[#allocation2 + $0x18] sm:$0xff]   ;;  %v6448_v35 = vld [vmem:[%s7854_s1 + $0x128] sm:$0xff]  }
  0x49   : > { %5674 = vmatprep.mubr.msk.bf16.mxu0 %vm6649_vm0, %v6648_v19  ;;  %5706 = vmatprep.mubr.msk.bf16.mxu1 %vm6649_vm0, %v6648_v19 }
  0x4a   : > { %5807 = vmatpush3.bf16.msra.mxu0 %v6411_v36  ;;  %5731 = vmatpush3.bf16.msra.mxu1 %v6412_v37  ;;  %v6445_v36 = vld [vmem:[#allocation2 + $0x28] sm:$0xff]   ;;  %v6459_v37 = vld [vmem:[%s7854_s1 + $0xd8] sm:$0xff]  }
  0x4b   : > { %5808 = vmatprep.subr.bf16.mxu0 %v6648_v19  ;;  %5732 = vmatprep.subr.bf16.mxu1 %v6648_v19 }
  0x4e   : > { %5809 = vmatpush3.bf16.msra.mxu0 %v6415_v38  ;;  %5733 = vmatpush3.bf16.msra.mxu1 %v6416_v39  ;;  %v807_v38 = vrot.slane %v805_v30, 1  ;;  %v6446_v39 = vld [vmem:[#allocation2 + $0x20] sm:$0xff]   ;;  %v6461_v30 = vld [vmem:[#allocation2 + $0x50] sm:$0xff]  }
  0x4f   : > { %5810 = vmatprep.subr.bf16.mxu0 %v6648_v19  ;;  %5734 = vmatprep.subr.bf16.mxu1 %v6648_v19 }
  0x50   : > { %5675 = vmatmul.mubr.bf16.gmra.mxu0 %v6409_v40  ;;  %5707 = vmatmul.mubr.bf16.gmra.mxu1 %v6410_v41  ;;  %v803_v40 = vor.u32 %v801_v33, %v799_v26  ;;  %v1335_v41 = vrot.slane %v6443_v34, 1 }
  0x51   : > { %5678 = vmatprep.mubr.msk.bf16.mxu0 %vm6649_vm0, %v6648_v19  ;;  %5710 = vmatprep.mubr.msk.bf16.mxu1 %vm6649_vm0, %v6648_v19 }
  0x52   : > { %5811 = vmatpush3.bf16.msra.mxu0 %v6419_v42  ;;  %5735 = vmatpush3.bf16.msra.mxu1 %v6420_v43  ;;  %v6454_v42 = vld [vmem:[%s7854_s1 + $0x120] sm:$0xff]   ;;  %v809_v43 = vshrl.u32 %v6442_v23, 16 }
  0x53   : > { %5812 = vmatprep.subr.bf16.mxu0 %v6648_v19  ;;  %5736 = vmatprep.subr.bf16.mxu1 %v6648_v19 }
  0x56   : > { %5813 = vmatpush3.bf16.msra.mxu0 %v6423_v44  ;;  %5737 = vmatpush3.bf16.msra.mxu1 %v6424_v45  ;;  %v6465_v44 = vld [vmem:[%s7854_s1 + $0xd0] sm:$0xff]   ;;  %v808_v45 = vsel %vm772_vm1, %v803_v40, %v807_v38 }
  0x57   : > { %5738 = vmatprep.subr.bf16.mxu1 %v6648_v19  ;;  %5814 = vmatprep.subr.bf16.mxu0 %v6648_v19 }
  0x58   : > { %5679 = vmatmul.mubr.bf16.gmra.mxu0 %v6413_v46  ;;  %5711 = vmatmul.mubr.bf16.gmra.mxu1 %v6414_v47  ;;  %v1336_v46 = vsel %vm1329_vm2, %v1333_v27, %v1335_v41  ;;  %v813_v47 = vshll.u32 %v6445_v36, 16 }
  0x59   : > { %5682 = vmatprep.mubr.msk.bf16.mxu0 %vm6649_vm0, %v6648_v19  ;;  %5714 = vmatprep.mubr.msk.bf16.mxu1 %vm6649_vm0, %v6648_v19 }
  0x5a   : > { %5739 = vmatpush3.bf16.msra.mxu1 %v6427_v48  ;;  %5815 = vmatpush3.bf16.msra.mxu0 %v6428_v49  ;;  %v6460_v48 = vld [vmem:[%s7854_s1 + $0x118] sm:$0xff]   ;;  %v1337_v49 = vrot.slane %v6446_v39, 1 }
  0x5b   : > { %5740 = vmatprep.subr.bf16.mxu1 %v6648_v19  ;;  %5816 = vmatprep.subr.bf16.mxu0 %v6648_v19 }
  0x5c   : > { %v1338_v58 = vsel %vm1329_vm2, %v1335_v41, %v1337_v49 }
  0x5e   : > { %5741 = vmatpush3.bf16.msra.mxu1 %v6429_v50  ;;  %5817 = vmatpush3.bf16.msra.mxu0 %v6433_v51  ;;  %v6471_v50 = vld [vmem:[%s7854_s1 + $0xc8] sm:$0xff]   ;;  %v6449_v51 = vld [vmem:[#allocation2 + $0x30] sm:$0xff]  }
  0x5f   : > { %5878 = vmatprep.subr.bf16.mxu1 %v6648_v19  ;;  %5954 = vmatprep.subr.bf16.mxu0 %v6648_v19 }
  0x60   : > { %5683 = vmatmul.mubr.bf16.gmra.mxu0 %v6417_v52  ;;  %5715 = vmatmul.mubr.bf16.gmra.mxu1 %v6418_v53  ;;  %v6450_v52 = vld [vmem:[#allocation2 + $0x28] sm:$0xff]   ;;  %v811_v53 = vor.u32 %v809_v43, %v807_v38  ;;  %v857_v43 = vshrl.u32 %v6461_v30, 16 }
  0x61   : > { %5686 = vmatprep.mubr.msk.bf16.mxu0 %vm6649_vm0, %v6648_v19  ;;  %5718 = vmatprep.mubr.msk.bf16.mxu1 %vm6649_vm0, %v6648_v19  ;;  %v1339_v61 = vrot.slane %v6450_v52, 1 }
  0x63   : > { %v1340_v5 = vsel %vm1329_vm2, %v1337_v49, %v1339_v61  ;;  %v1342_v14 = vsel %vm1329_vm2, %v1339_v61, %v1341_v8 }
  0x68   : > { %5687 = vmatmul.mubr.bf16.gmra.mxu0 %v6421_v54  ;;  %5719 = vmatmul.mubr.bf16.gmra.mxu1 %v6422_v55  ;;  %v815_v54 = vrot.slane %v813_v47, 1  ;;  %v6466_v55 = vld [vmem:[%s7854_s1 + $0x110] sm:$0xff]  }
  0x69   : > { %5690 = vmatprep.mubr.msk.bf16.mxu0 %vm6649_vm0, %v6648_v19  ;;  %5722 = vmatprep.mubr.msk.bf16.mxu1 %vm6649_vm0, %v6648_v19 }
  0x6a   : > { %v816_v57 = vsel %vm772_vm1, %v811_v53, %v815_v54  ;;  %v6468_v53 = vld [vmem:[#allocation2 + $0x58] sm:$0xff]  }
  0x70   : > { %5691 = vmatmul.mubr.bf16.gmra.mxu0 %v6425_v59  ;;  %5723 = vmatmul.mubr.bf16.gmra.mxu1 %v6426_v60  ;;  %v817_v59 = vshrl.u32 %v6445_v36, 16  ;;  %v821_v60 = vshll.u32 %v6449_v51, 16  ;;  %v6463_v36 = vld [vmem:[#allocation2 + $0x58] sm:$0xff]  }
  0x71   : > { %5694 = vmatprep.mubr.msk.bf16.mxu0 %vm6649_vm0, %v6648_v19  ;;  %5742 = vmatprep.mubr.msk.bf16.mxu1 %vm6649_vm0, %v6648_v19  ;;  %v861_v40 = vshll.u32 %v6463_v36, 16  ;;  %v865_v49 = vshrl.u32 %v6463_v36, 16  ;;  %v6487_v36 = vld [vmem:[#allocation2 + $0x1c] sm:$0xff]  }
  0x72   : > { %v819_v1 = vor.u32 %v817_v59, %v815_v54  ;;  %v823_v2 = vrot.slane %v821_v60, 1  ;;  %v6469_v54 = vld [vmem:[#allocation2 + $0x68] sm:$0xff]  }
  0x73   : > { %v877_v61 = vshll.u32 %v6469_v54, 16 }
  0x74   : > { %v824_v4 = vsel %vm772_vm1, %v819_v1, %v823_v2 }
  0x75   : > { %v879_v0 = vrot.slane %v877_v61, 1 }
  0x78   : > { %5695 = vmatmul.mubr.bf16.gmra.mxu0 %v6430_v3  ;;  %5743 = vmatmul.mubr.bf16.vlgmr.msra.gmra.mxu1 %v784_v6  ;;  %v6478_v3 = vld [vmem:[%s7854_s1 + $0x100] sm:$0xff]   ;;  %v825_v6 = vshrl.u32 %v6449_v51, 16 }
  0x79   : > { %5746 = vmatprep.mubr.msk.bf16.mxu1 %vm6649_vm0, %v6648_v19  ;;  %5818 = vmatprep.mubr.msk.bf16.mxu0 %vm6649_vm0, %v6648_v19 }
  0x7a   : > { %5879 = vmatpush3.bf16.msra.mxu1 %v6434_v9  ;;  %v827_v9 = vor.u32 %v825_v6, %v823_v2  ;;  %v6473_v2 = vld [vmem:[#allocation2 + $0x70] sm:$0xff]  }
  0x7b   : > { %5880 = vmatprep.subr.bf16.mxu1 %v6648_v19  ;;  %v885_v6 = vshll.u32 %v6473_v2, 16  ;;  %v889_v12 = vshrl.u32 %v6473_v2, 16  ;;  %v6489_v2 = vld [vmem:[#allocation2 + $0x24] sm:$0xff]  }
  0x7c   : > { %v832_v13 = vsel %vm772_vm1, %v827_v9, %v831_v10 }
  0x7d   : > { %v887_v10 = vrot.slane %v885_v6, 1 }
  0x7e   : > { %5881 = vmatpush3.bf16.msra.mxu1 %v6441_v15  ;;  %v837_v15 = vshll.u32 %v6455_v11, 16  ;;  %v1355_v11 = vrot.slane %v6474_v7, 1 }
  0x7f   : > { %5882 = vmatprep.subr.bf16.mxu1 %v6648_v19 }
  0x80   : > { %5747 = vmatmul.mubr.bf16.gmra.mxu1 %v792_v16  ;;  %5819 = vmatmul.mubr.bf16.vlgmr.msra.gmra.mxu0 %v1332_v17  ;;  %v6456_v16 = vld [vmem:[#allocation2 + $0x38] sm:$0xff]   ;;  %v6457_v17 = vld [vmem:[#allocation2 + $0x48] sm:$0xff]   ;;  %v839_v21 = vrot.slane %v837_v15, 1 }
  0x81   : > { %5955 = vmatpush3.bf16.msra.mxu0 %v6438_v18  ;;  %5750 = vmatprep.mubr.msk.bf16.mxu1 %vm6649_vm0, %v6648_v19  ;;  %v6458_v18 = vld [vmem:[#allocation2 + $0x40] sm:$0xff]   ;;  %v1343_v22 = vrot.slane %v6456_v16, 1  ;;  %v845_v26 = vshll.u32 %v6457_v17, 16  ;;  %v6476_v16 = vld [vmem:[#allocation2 + $0x70] sm:$0xff]  }
  0x82   : > { %5822 = vmatprep.mubr.msk.bf16.mxu0 %vm6649_vm0, %v6648_v19  ;;  %5956 = vmatprep.subr.bf16.mxu0 %v6648_v19  ;;  %v840_v23 = vsel %vm772_vm1, %v835_v20, %v839_v21  ;;  %v1345_v27 = vrot.slane %v6458_v18, 1  ;;  %v1357_v20 = vrot.slane %v6476_v16, 1 }
  0x83   : > { %5883 = vmatpush3.bf16.msra.mxu1 %v6447_v24  ;;  %v1344_v24 = vsel %vm1329_vm2, %v1341_v8, %v1343_v22  ;;  %v6475_v8 = vld [vmem:[#allocation2 + $0x78] ss:$0 sps:$4 sm:$0x11]  }
  0x84   : > { %5884 = vmatprep.subr.bf16.mxu1 %v6648_v19  ;;  %v1346_v34 = vsel %vm1329_vm2, %v1343_v22, %v1345_v27  ;;  %v893_v15 = vshll.u32 %v6475_v8, 16  ;;  %v1358_v22 = vsel %vm1329_vm2, %v1355_v11, %v1357_v20  ;;  %v6507_v8 = vld [vmem:[%s7854_s1 + $0x198] sm:$0xff]  }
  0x85   : > { %5957 = vmatpush3.bf16.msra.mxu0 %v6444_v28  ;;  %v843_v28 = vor.u32 %v841_v25, %v839_v21 }
  0x86   : > { %5958 = vmatprep.subr.bf16.mxu0 %v6648_v19  ;;  %v895_v18 = vrot.slane %v893_v15, 1 }
  0x87   : > { %5885 = vmatpush3.bf16.msra.mxu1 %v6453_v29  ;;  %v847_v29 = vrot.slane %v845_v26, 1  ;;  %v6484_v26 = vld [vmem:[#allocation2 + $0x14] sm:$0xff]  }
  0x88   : > { %5751 = vmatmul.mubr.bf16.gmra.mxu1 %v800_v31  ;;  %5823 = vmatmul.mubr.bf16.gmra.mxu0 %v1334_v32  ;;  %v6462_v31 = vld [vmem:[#allocation2 + $0x48] sm:$0xff]   ;;  %v849_v32 = vshrl.u32 %v6457_v17, 16  ;;  %v891_v17 = vor.u32 %v889_v12, %v887_v10 }
  0x89   : > { %5754 = vmatprep.mubr.msk.bf16.mxu1 %vm6649_vm0, %v6648_v19  ;;  %5826 = vmatprep.mubr.msk.bf16.mxu0 %vm6649_vm0, %v6648_v19  ;;  %v848_v33 = vsel %vm772_vm1, %v843_v28, %v847_v29  ;;  %v6480_v28 = vld [vmem:[#allocation2 + $0xc] sm:$0xff]  }
  0x8a   : > { %5959 = vmatpush3.bf16.msra.mxu0 %v6448_v35  ;;  %5886 = vmatprep.subr.bf16.mxu1 %v6648_v19  ;;  %v853_v35 = vshll.u32 %v6461_v30, 16  ;;  %v851_v38 = vor.u32 %v849_v32, %v847_v29  ;;  %v896_v21 = vsel %vm772_vm1, %v891_v17, %v895_v18  ;;  %v2229_v32 = vshll.u32 %v6484_v26, 16  ;;  %v6513_v17 = vld [vmem:[%s7854_s1 + $0x190] sm:$0xff]   ;;  %v6524_v18 = vld [vmem:[%s7854_s1 + $0x140] sm:$0xff]  }
  0x8b   : > { %5960 = vmatprep.subr.bf16.mxu0 %v6648_v19  ;;  %5887 = vmatpush3.bf16.msra.mxu1 %v6459_v37  ;;  %v1347_v37 = vrot.slane %v6462_v31, 1 }
  0x8c   : > { %5888 = vmatprep.subr.bf16.mxu1 %v6648_v19  ;;  %v855_v39 = vrot.slane %v853_v35, 1  ;;  %v2231_v35 = vrot.slane %v2229_v32, 1 }
  0x8e   : > { %5961 = vmatpush3.bf16.msra.mxu0 %v6454_v42  ;;  %v856_v41 = vsel %vm772_vm1, %v851_v38, %v855_v39  ;;  %v1348_v42 = vsel %vm1329_vm2, %v1345_v27, %v1347_v37  ;;  %v6482_v38 = vld [vmem:[#allocation2 + $0x14] sm:$0xff]  }
  0x8f   : > { %5962 = vmatprep.subr.bf16.mxu0 %v6648_v19  ;;  %5889 = vmatpush3.bf16.msra.mxu1 %v6465_v44  ;;  %v6464_v44 = vld [vmem:[#allocation2 + $0x50] sm:$0xff]  }
  0x90   : > { %5755 = vmatmul.mubr.bf16.gmra.mxu1 %v808_v45  ;;  %5827 = vmatmul.mubr.bf16.gmra.mxu0 %v1336_v46  ;;  %v863_v45 = vrot.slane %v861_v40, 1  ;;  %v859_v46 = vor.u32 %v857_v43, %v855_v39  ;;  %v1349_v47 = vrot.slane %v6464_v44, 1  ;;  %v6485_v40 = vld [vmem:[%s7854_s1 + $0x1b8] sm:$0xff]   ;;  %v6494_v43 = vld [vmem:[%s7854_s1 + $0x168] sm:$0xff]  }
  0x91   : > { %5758 = vmatprep.mubr.msk.bf16.mxu1 %vm6649_vm0, %v6648_v19  ;;  %5830 = vmatprep.mubr.msk.bf16.mxu0 %vm6649_vm0, %v6648_v19 }
  0x92   : > { %5963 = vmatpush3.bf16.msra.mxu0 %v6460_v48  ;;  %5890 = vmatprep.subr.bf16.mxu1 %v6648_v19  ;;  %v6467_v48 = vld [vmem:[#allocation2 + $0x60] sm:$0xff]   ;;  %v1350_v51 = vsel %vm1329_vm2, %v1347_v37, %v1349_v47  ;;  %v6488_v37 = vld [vmem:[%s7854_s1 + $0x170] sm:$0xff]  }
  0x93   : > { %5964 = vmatprep.subr.bf16.mxu0 %v6648_v19  ;;  %5891 = vmatpush3.bf16.msra.mxu1 %v6471_v50  ;;  %v864_v50 = vsel %vm772_vm1, %v859_v46, %v863_v45  ;;  %v869_v52 = vshll.u32 %v6467_v48, 16  ;;  %v6490_v46 = vld [vmem:[#allocation2 + $0x24] sm:$0xff]  }
  0x94   : > { %5892 = vmatprep.subr.bf16.mxu1 %v6648_v19 }
  0x96   : > { %5965 = vmatpush3.bf16.msra.mxu0 %v6466_v55  ;;  %v867_v55 = vor.u32 %v865_v49, %v863_v45  ;;  %v6486_v49 = vld [vmem:[#allocation2 + $0x1c] sm:$0xff]  }
  0x97   : > { %5966 = vmatprep.subr.bf16.mxu0 %v6648_v19  ;;  %5893 = vmatpush3.bf16.msra.mxu1 %v6477_v56  ;;  %v871_v56 = vrot.slane %v869_v52, 1  ;;  %v2245_v52 = vshll.u32 %v6490_v46, 16 }
  0x98   : > { %5759 = vmatmul.mubr.bf16.gmra.mxu1 %v816_v57  ;;  %5831 = vmatmul.mubr.bf16.gmra.mxu0 %v1338_v58  ;;  %v1351_v57 = vrot.slane %v6468_v53, 1  ;;  %v873_v58 = vshrl.u32 %v6467_v48, 16  ;;  %v6500_v48 = vld [vmem:[%s7854_s1 + $0x160] sm:$0xff]   ;;  %v6495_v53 = vld [vmem:[%s7854_s1 + $0x1a8] sm:$0xff]  }
  0x99   : > { %5762 = vmatprep.mubr.msk.bf16.mxu1 %vm6649_vm0, %v6648_v19  ;;  %5834 = vmatprep.mubr.msk.bf16.mxu0 %vm6649_vm0, %v6648_v19  ;;  %v872_v59 = vsel %vm772_vm1, %v867_v55, %v871_v56 }
  0x9a   : > { %5967 = vmatpush3.bf16.msra.mxu0 %v6472_v62  ;;  %6030 = vmatprep.subr.bf16.mxu1 %v6648_v19  ;;  %v1352_v60 = vsel %vm1329_vm2, %v1349_v47, %v1351_v57  ;;  %v6470_v62 = vld [vmem:[#allocation2 + $0x60] sm:$0xff]   ;;  %v875_v63 = vor.u32 %v873_v58, %v871_v56  ;;  %v6491_v47 = vld [vmem:[%s7854_s1 + $0x1b0] sm:$0xff]   ;;  %v2247_v58 = vrot.slane %v2245_v52, 1 }
  0x9b   : > { %5968 = vmatprep.subr.bf16.mxu0 %v6648_v19  ;;  %v1353_v1 = vrot.slane %v6470_v62, 1  ;;  %v6501_v62 = vld [vmem:[%s7854_s1 + $0x1a0] sm:$0xff]  }
  0x9e   : > { %5969 = vmatpush3.bf16.msra.mxu0 %v6478_v3  ;;  %v881_v3 = vshrl.u32 %v6469_v54, 16  ;;  %v6506_v54 = vld [vmem:[%s7854_s1 + $0x158] sm:$0xff]  }
  0x9f   : > { %6106 = vmatprep.subr.bf16.mxu0 %v6648_v19 }
  0xa0   : > { %5763 = vmatmul.mubr.bf16.gmra.mxu1 %v824_v4  ;;  %5835 = vmatmul.mubr.bf16.gmra.mxu0 %v1340_v5  ;;  %v880_v4 = vsel %vm772_vm1, %v875_v63, %v879_v0  ;;  %v1354_v5 = vsel %vm1329_vm2, %v1351_v57, %v1353_v1  ;;  %v883_v9 = vor.u32 %v881_v3, %v879_v0  ;;  %v6512_v63 = vld [vmem:[%s7854_s1 + $0x150] sm:$0xff]  }
  0xa1   : > { %5766 = vmatprep.mubr.msk.bf16.mxu1 %vm6649_vm0, %v6648_v19  ;;  %5838 = vmatprep.mubr.msk.bf16.mxu0 %vm6649_vm0, %v6648_v19 }
  0xa8   : > { %5767 = vmatmul.mubr.bf16.gmra.mxu1 %v832_v13  ;;  %5839 = vmatmul.mubr.bf16.gmra.mxu0 %v1342_v14  ;;  %v888_v13 = vsel %vm772_vm1, %v883_v9, %v887_v10  ;;  %v1356_v14 = vsel %vm1329_vm2, %v1353_v1, %v1355_v11  ;;  %v6518_v9 = vld [vmem:[%s7854_s1 + $0x148] sm:$0xff]  }
  0xa9   : > { %5770 = vmatprep.mubr.msk.bf16.mxu1 %vm6649_vm0, %v6648_v19  ;;  %5842 = vmatprep.mubr.msk.bf16.mxu0 %vm6649_vm0, %v6648_v19 }
  0xb0   : > { %5771 = vmatmul.mubr.bf16.gmra.mxu1 %v840_v23  ;;  %5843 = vmatmul.mubr.bf16.gmra.mxu0 %v1344_v24  ;;  %v6479_v23 = vld [vmem:[#allocation2 + $0x78] ss:$0 sps:$4 sm:$0x11]   ;;  %v6483_v24 = vld [vmem:[#allocation2 + $0xc] sm:$0xff]  }
  0xb1   : > { %5774 = vmatprep.mubr.msk.bf16.mxu1 %vm6649_vm0, %v6648_v19  ;;  %5846 = vmatprep.mubr.msk.bf16.mxu0 %vm6649_vm0, %v6648_v19  ;;  %v1359_v25 = vrot.slane %v6479_v23, 1  ;;  %v2224_v27 = vshll.u32 %v6483_v24, 16  ;;  %v2222_v30 = vshrl.u32 %v6483_v24, 16 }
  0xb3   : > { %v1360_v29 = vsel %vm1329_vm2, %v1357_v20, %v1359_v25  ;;  %v2226_v31 = vrot.slane %v2224_v27, 1 }
  0xb8   : > { %5775 = vmatmul.mubr.bf16.gmra.mxu1 %v848_v33  ;;  %5847 = vmatmul.mubr.bf16.gmra.mxu0 %v1346_v34  ;;  %v6481_v33 = vld [vmem:[%s7854_s1 + $0x178] sm:$0xff]   ;;  %v2227_v34 = vor.u32 %v2226_v31, %v2222_v30 }
  0xb9   : > { %5778 = vmatprep.mubr.msk.bf16.mxu1 %vm6649_vm0, %v6648_v19  ;;  %5850 = vmatprep.mubr.msk.bf16.mxu0 %vm6649_vm0, %v6648_v19 }
  0xba   : > { %v2232_v39 = vsel %vm772_vm1, %v2227_v34, %v2231_v35 }
  0xc0   : > { %5779 = vmatmul.mubr.bf16.gmra.mxu1 %v856_v41  ;;  %5851 = vmatmul.mubr.bf16.gmra.mxu0 %v1348_v42  ;;  %v2233_v41 = vshrl.u32 %v6484_v26, 16  ;;  %v2237_v42 = vshll.u32 %v6487_v36, 16 }
  0xc1   : > { %5782 = vmatprep.mubr.msk.bf16.mxu1 %vm6649_vm0, %v6648_v19  ;;  %5854 = vmatprep.mubr.msk.bf16.mxu0 %vm6649_vm0, %v6648_v19 }
  0xc2   : > { %v2235_v44 = vor.u32 %v2233_v41, %v2231_v35  ;;  %v2239_v45 = vrot.slane %v2237_v42, 1 }
  0xc8   : > { %5783 = vmatmul.mubr.bf16.gmra.mxu1 %v864_v50  ;;  %5855 = vmatmul.mubr.bf16.gmra.mxu0 %v1350_v51  ;;  %v2240_v50 = vsel %vm772_vm1, %v2235_v44, %v2239_v45  ;;  %v2241_v51 = vshrl.u32 %v6487_v36, 16  ;;  %v6525_v36 = vld [vmem:[%s7854_s1 + $0x180] sm:$0xff]  }
  0xc9   : > { %5786 = vmatprep.mubr.msk.bf16.mxu1 %vm6649_vm0, %v6648_v19  ;;  %5858 = vmatprep.mubr.msk.bf16.mxu0 %vm6649_vm0, %v6648_v19 }
  0xca   : > { %v2243_v57 = vor.u32 %v2241_v51, %v2239_v45 }
  0xcc   : > { %v2248_v3 = vsel %vm772_vm1, %v2243_v57, %v2247_v58 }
  0xd0   : > { %5787 = vmatmul.mubr.bf16.gmra.mxu1 %v872_v59  ;;  %5859 = vmatmul.mubr.bf16.gmra.mxu0 %v1352_v60  ;;  %v6493_v59 = vld [vmem:[#allocation2 + $0x2c] sm:$0xff]  }
  0xd1   : > { %5790 = vmatprep.mubr.msk.bf16.mxu1 %vm6649_vm0, %v6648_v19  ;;  %5862 = vmatprep.mubr.msk.bf16.mxu0 %vm6649_vm0, %v6648_v19  ;;  %v2257_v24 = vshrl.u32 %v6493_v59, 16 }
  0xd8   : > { %5791 = vmatmul.mubr.bf16.gmra.mxu1 %v880_v4  ;;  %5863 = vmatmul.mubr.bf16.gmra.mxu0 %v1354_v5  ;;  %v2249_v4 = vshrl.u32 %v6490_v46, 16  ;;  %v2253_v5 = vshll.u32 %v6493_v59, 16 }
  0xd9   : > { %5794 = vmatprep.mubr.msk.bf16.mxu1 %vm6649_vm0, %v6648_v19  ;;  %5866 = vmatprep.mubr.msk.bf16.mxu0 %vm6649_vm0, %v6648_v19 }
  0xda   : > { %v2251_v12 = vor.u32 %v2249_v4, %v2247_v58  ;;  %v6505_v4 = vld [vmem:[#allocation2 + $0x4c] sm:$0xff]  }
  0xe0   : > { %5795 = vmatmul.mubr.bf16.gmra.mxu1 %v888_v13  ;;  %5867 = vmatmul.mubr.bf16.gmra.mxu0 %v1356_v14  ;;  %v2255_v13 = vrot.slane %v2253_v5, 1  ;;  %v6497_v14 = vld [vmem:[#allocation2 + $0x34] sm:$0xff]  }
  0xe1   : > { %5798 = vmatprep.mubr.msk.bf16.mxu1 %vm6649_vm0, %v6648_v19  ;;  %5870 = vmatprep.mubr.msk.bf16.mxu0 %vm6649_vm0, %v6648_v19  ;;  %v2261_v25 = vshll.u32 %v6497_v14, 16  ;;  %v2265_v41 = vshrl.u32 %v6497_v14, 16  ;;  %v2285_v14 = vshll.u32 %v6505_v4, 16 }
  0xe2   : > { %v2256_v23 = vsel %vm772_vm1, %v2251_v12, %v2255_v13  ;;  %v2259_v31 = vor.u32 %v2257_v24, %v2255_v13  ;;  %v6509_v24 = vld [vmem:[#allocation2 + $0x54] sm:$0xff]  }
  0xe3   : > { %v2263_v32 = vrot.slane %v2261_v25, 1 }
  0xe8   : > { %5799 = vmatmul.mubr.bf16.gmra.mxu1 %v896_v21  ;;  %5871 = vmatmul.mubr.bf16.gmra.mxu0 %v1358_v22  ;;  %v6492_v22 = vld [vmem:[#allocation2 + $0x2c] sm:$0xff]  }
  0xe9   : > { %5874 = vmatprep.mubr.msk.bf16.mxu0 %vm6649_vm0, %v6648_v19  ;;  %5894 = vmatprep.mubr.msk.bf16.mxu1 %vm6649_vm0, %v6648_v19 }
  0xf0   : > { %5875 = vmatmul.mubr.bf16.gmra.mxu0 %v1360_v29  ;;  %5895 = vmatmul.mubr.bf16.vlgmr.msra.gmra.mxu1 %v6480_v28  ;;  %v6519_v28 = vld [vmem:[%s7854_s1 + $0x188] sm:$0xff]  }
  0xf1   : > { %5898 = vmatprep.mubr.msk.bf16.mxu1 %vm6649_vm0, %v6648_v19  ;;  %5970 = vmatprep.mubr.msk.bf16.mxu0 %vm6649_vm0, %v6648_v19 }
  0xf2   : > { %6031 = vmatpush3.bf16.msra.mxu1 %v6481_v33  ;;  %v6499_v33 = vld [vmem:[#allocation2 + $0x3c] sm:$0xff]  }
  0xf3   : > { %6032 = vmatprep.subr.bf16.mxu1 %v6648_v19  ;;  %v2269_v42 = vshll.u32 %v6499_v33, 16  ;;  %v2273_v58 = vshrl.u32 %v6499_v33, 16  ;;  %v2289_v33 = vshrl.u32 %v6505_v4, 16 }
  0xf6   : > { %6033 = vmatpush3.bf16.msra.mxu1 %v6488_v37 }
  0xf7   : > { %6034 = vmatprep.subr.bf16.mxu1 %v6648_v19 }
  0xf8   : > { %5899 = vmatmul.mubr.bf16.gmra.mxu1 %v6482_v38  ;;  %5971 = vmatmul.mubr.bf16.vlgmr.msra.gmra.mxu0 %v2232_v39  ;;  %v6496_v39 = vld [vmem:[#allocation2 + $0x34] sm:$0xff]  }
  0xf9   : > { %6107 = vmatpush3.bf16.msra.mxu0 %v6485_v40  ;;  %5902 = vmatprep.mubr.msk.bf16.mxu1 %vm6649_vm0, %v6648_v19  ;;  %v2264_v40 = vsel %vm772_vm1, %v2259_v31, %v2263_v32  ;;  %v6504_v31 = vld [vmem:[#allocation2 + $0x4c] sm:$0xff]  }
  0xfa   : > { %5974 = vmatprep.mubr.msk.bf16.mxu0 %vm6649_vm0, %v6648_v19  ;;  %6108 = vmatprep.subr.bf16.mxu0 %v6648_v19 }
  0xfb   : > { %6035 = vmatpush3.bf16.msra.mxu1 %v6494_v43 }
  0xfc   : > { %6036 = vmatprep.subr.bf16.mxu1 %v6648_v19 }
  0xfd   : > { %6109 = vmatpush3.bf16.msra.mxu0 %v6491_v47  ;;  %v2267_v47 = vor.u32 %v2265_v41, %v2263_v32 }
  0xfe   : > { %6110 = vmatprep.subr.bf16.mxu0 %v6648_v19 }
  0xff   : > { %6037 = vmatpush3.bf16.msra.mxu1 %v6500_v48  ;;  %v2271_v48 = vrot.slane %v2269_v42, 1 }
 0x100   : > { %v7065_v55 = vpop.f32.mrf.mxu0  ;;  %v7067_v56 = vpop.f32.mrf.mxu1  ;;  %5903 = vmatmul.mubr.bf16.gmra.mxu1 %v6486_v49  ;;  %5975 = vmatmul.mubr.bf16.gmra.mxu0 %v2240_v50  ;;  %v6503_v49 = vld [vmem:[#allocation2 + $0x44] sm:$0xff]  }
 0x101   : > { %5906 = vmatprep.mubr.msk.bf16.mxu1 %vm6649_vm0, %v6648_v19  ;;  %5978 = vmatprep.mubr.msk.bf16.mxu0 %vm6649_vm0, %v6648_v19  ;;  %v2272_v57 = vsel %vm772_vm1, %v2267_v47, %v2271_v48  ;;  %v2277_v59 = vshll.u32 %v6503_v49, 16  ;;  %v2281_v13 = vshrl.u32 %v6503_v49, 16 }
 0x102   : > { %v5668_v60 = vpop.f32.mrf.mxu0  ;;  %v5700_v61 = vpop.f32.mrf.mxu1  ;;  %6111 = vmatpush3.bf16.msra.mxu0 %v6495_v53  ;;  %6038 = vmatprep.subr.bf16.mxu1 %v6648_v19 }
 0x103   : > { %6112 = vmatprep.subr.bf16.mxu0 %v6648_v19  ;;  %6039 = vmatpush3.bf16.msra.mxu1 %v6506_v54  ;;  %v6498_v54 = vld [vmem:[#allocation2 + $0x3c] sm:$0xff]  }
 0x104   : > { %v7081_v0 = vpop.f32.mrf.mxu0  ;;  %v7083_v1 = vpop.f32.mrf.mxu1  ;;  %6040 = vmatprep.subr.bf16.mxu1 %v6648_v19 }
 0x106   : > { %v5669_v6 = vpop.f32.mrf.mxu0  ;;  %v5701_v7 = vpop.f32.mrf.mxu1  ;;  %6113 = vmatpush3.bf16.msra.mxu0 %v6501_v62 }
 0x107   : > { %6114 = vmatprep.subr.bf16.mxu0 %v6648_v19  ;;  %6041 = vmatpush3.bf16.msra.mxu1 %v6512_v63 }
 0x108   : > { %v7094_v10 = vpop.f32.mrf.mxu0  ;;  %v7096_v11 = vpop.f32.mrf.mxu1  ;;  %5907 = vmatmul.mubr.bf16.gmra.mxu1 %v6489_v2  ;;  %5979 = vmatmul.mubr.bf16.gmra.mxu0 %v2248_v3  ;;  %v2275_v2 = vor.u32 %v2273_v58, %v2271_v48  ;;  %v2279_v3 = vrot.slane %v2277_v59, 1 }
 0x109   : > { %5910 = vmatprep.mubr.msk.bf16.mxu1 %vm6649_vm0, %v6648_v19  ;;  %5982 = vmatprep.mubr.msk.bf16.mxu0 %vm6649_vm0, %v6648_v19 }
 0x10a   : > { %v5672_v15 = vpop.f32.mrf.mxu0  ;;  %v5704_v16 = vpop.f32.mrf.mxu1  ;;  %6115 = vmatpush3.bf16.msra.mxu0 %v6507_v8  ;;  %6042 = vmatprep.subr.bf16.mxu1 %v6648_v19  ;;  %v2280_v12 = vsel %vm772_vm1, %v2275_v2, %v2279_v3  ;;  %v6515_v2 = vld [vmem:[#allocation2 + $0x64] sm:$0xff]  }
 0x10b   : > { %6116 = vmatprep.subr.bf16.mxu0 %v6648_v19  ;;  %6043 = vmatpush3.bf16.msra.mxu1 %v6518_v9  ;;  %v6502_v9 = vld [vmem:[#allocation2 + $0x44] sm:$0xff]  }
 0x10c   : > { %v7110_v20 = vpop.f32.mrf.mxu0  ;;  %v7112_v21 = vpop.f32.mrf.mxu1  ;;  %6044 = vmatprep.subr.bf16.mxu1 %v6648_v19 }
 0x10e   : > { %v5673_v26 = vpop.f32.mrf.mxu0  ;;  %v5705_v27 = vpop.f32.mrf.mxu1  ;;  %6117 = vmatpush3.bf16.msra.mxu0 %v6513_v17 }
 0x10f   : > { %6118 = vmatprep.subr.bf16.mxu0 %v6648_v19  ;;  %6045 = vmatpush3.bf16.msra.mxu1 %v6524_v18 }
 0x110   : > { %v7120_v29 = vpop.f32.mrf.mxu0  ;;  %v7122_v30 = vpop.f32.mrf.mxu1  ;;  %5911 = vmatmul.mubr.bf16.gmra.mxu1 %v6492_v22  ;;  %5983 = vmatmul.mubr.bf16.gmra.mxu0 %v2256_v23  ;;  %v2283_v22 = vor.u32 %v2281_v13, %v2279_v3  ;;  %v2287_v23 = vrot.slane %v2285_v14, 1  ;;  %v6510_v14 = vld [vmem:[#allocation2 + $0x5c] sm:$0xff]  }
 0x111   : > { %5914 = vmatprep.mubr.msk.bf16.mxu1 %vm6649_vm0, %v6648_v19  ;;  %5986 = vmatprep.mubr.msk.bf16.mxu0 %vm6649_vm0, %v6648_v19 }
 0x112   : > { %v5676_v34 = vpop.f32.mrf.mxu0  ;;  %v5708_v35 = vpop.f32.mrf.mxu1  ;;  %6119 = vmatpush3.bf16.msra.mxu0 %v6519_v28  ;;  %6182 = vmatprep.subr.bf16.mxu1 %v6648_v19  ;;  %v2288_v32 = vsel %vm772_vm1, %v2283_v22, %v2287_v23  ;;  %v2291_v41 = vor.u32 %v2289_v33, %v2287_v23 }
 0x113   : > { %6120 = vmatprep.subr.bf16.mxu0 %v6648_v19  ;;  %v2293_v34 = vshll.u32 %v6509_v24, 16 }
 0x114   : > { %v7133_v37 = vpop.f32.mrf.mxu0  ;;  %v7135_v38 = vpop.f32.mrf.mxu1 }
 0x115   : > { %v2295_v42 = vrot.slane %v2293_v34, 1 }
 0x116   : > { %v5677_v43 = vpop.f32.mrf.mxu0  ;;  %v5709_v44 = vpop.f32.mrf.mxu1  ;;  %6121 = vmatpush3.bf16.msra.mxu0 %v6525_v36 }
 0x117   : > { %6258 = vmatprep.subr.bf16.mxu0 %v6648_v19  ;;  %v6511_v43 = vld [vmem:[#allocation2 + $0x5c] sm:$0xff]  }
 0x118   : > { %v7139_v45 = vpop.f32.mrf.mxu0  ;;  %v7141_v46 = vpop.f32.mrf.mxu1  ;;  %5915 = vmatmul.mubr.bf16.gmra.mxu1 %v6496_v39  ;;  %5987 = vmatmul.mubr.bf16.gmra.mxu0 %v2264_v40 }
 0x119   : > { %5918 = vmatprep.mubr.msk.bf16.mxu1 %vm6649_vm0, %v6648_v19  ;;  %5990 = vmatprep.mubr.msk.bf16.mxu0 %vm6649_vm0, %v6648_v19 }
 0x11a   : > { %v5680_v50 = vpop.f32.mrf.mxu0  ;;  %v5712_v51 = vpop.f32.mrf.mxu1 }
 0x11b   : > { %v6508_v50 = vld [vmem:[#allocation2 + $0x54] sm:$0xff]   ;;  %v2296_v51 = vsel %vm772_vm1, %v2291_v41, %v2295_v42 }
 0x11c   : > { %v7147_v52 = vpop.f32.mrf.mxu0  ;;  %v7149_v53 = vpop.f32.mrf.mxu1 }
 0x11e   : > { %v5681_v60 = vpop.f32.mrf.mxu0  ;;  %v5713_v61 = vpop.f32.mrf.mxu1 }
 0x120   : > { %v7152_v62 = vpop.f32.mrf.mxu0  ;;  %v7154_v63 = vpop.f32.mrf.mxu1  ;;  %5919 = vmatmul.mubr.bf16.gmra.mxu1 %v6498_v54  ;;  %5991 = vmatmul.mubr.bf16.gmra.mxu0 %v2272_v57  ;;  %v2297_v54 = vshrl.u32 %v6509_v24, 16  ;;  %v2301_v57 = vshll.u32 %v6511_v43, 16 }
 0x121   : > { %5922 = vmatprep.mubr.msk.bf16.mxu1 %vm6649_vm0, %v6648_v19  ;;  %5994 = vmatprep.mubr.msk.bf16.mxu0 %vm6649_vm0, %v6648_v19 }
 0x122   : > { %v5684_v5 = vpop.f32.mrf.mxu0  ;;  %v5716_v6 = vpop.f32.mrf.mxu1  ;;  %v2299_v4 = vor.u32 %v2297_v54, %v2295_v42 }
 0x123   : > { %v2303_v5 = vrot.slane %v2301_v57, 1 }
 0x124   : > { %v7160_v7 = vpop.f32.mrf.mxu0  ;;  %v7162_v8 = vpop.f32.mrf.mxu1 }
 0x126   : > { %v5685_v15 = vpop.f32.mrf.mxu0  ;;  %v5717_v16 = vpop.f32.mrf.mxu1 }
 0x127   : > { %v2305_v15 = vshrl.u32 %v6511_v43, 16  ;;  %v2309_v16 = vshll.u32 %v6515_v2, 16  ;;  %v6514_v43 = vld [vmem:[#allocation2 + $0x64] sm:$0xff]  }
 0x128   : > { %v7165_v17 = vpop.f32.mrf.mxu0  ;;  %v7167_v18 = vpop.f32.mrf.mxu1  ;;  %5923 = vmatmul.mubr.bf16.gmra.mxu1 %v6502_v9  ;;  %5995 = vmatmul.mubr.bf16.gmra.mxu0 %v2280_v12 }
 0x129   : > { %5926 = vmatprep.mubr.msk.bf16.mxu1 %vm6649_vm0, %v6648_v19  ;;  %5998 = vmatprep.mubr.msk.bf16.mxu0 %vm6649_vm0, %v6648_v19 }
 0x12a   : > { %v5688_v25 = vpop.f32.mrf.mxu0  ;;  %v5720_v26 = vpop.f32.mrf.mxu1 }
 0x12c   : > { %v7173_v27 = vpop.f32.mrf.mxu0  ;;  %v7175_v28 = vpop.f32.mrf.mxu1 }
 0x12e   : > { %v5689_v35 = vpop.f32.mrf.mxu0  ;;  %v5721_v36 = vpop.f32.mrf.mxu1 }
 0x130   : > { %v7178_v39 = vpop.f32.mrf.mxu0  ;;  %v7180_v40 = vpop.f32.mrf.mxu1  ;;  %5927 = vmatmul.mubr.bf16.gmra.mxu1 %v6504_v31  ;;  %5999 = vmatmul.mubr.bf16.gmra.mxu0 %v2288_v32  ;;  %v2307_v31 = vor.u32 %v2305_v15, %v2303_v5  ;;  %v2311_v32 = vrot.slane %v2309_v16, 1 }
 0x131   : > { %5930 = vmatprep.mubr.msk.bf16.mxu1 %vm6649_vm0, %v6648_v19  ;;  %6002 = vmatprep.mubr.msk.bf16.mxu0 %vm6649_vm0, %v6648_v19 }
 0x132   : > { %v5692_v44 = vpop.f32.mrf.mxu0  ;;  %v5724_v47 = vpop.f32.mrf.mxu1 }
 0x133   : > { %v2312_v44 = vsel %vm772_vm1, %v2307_v31, %v2311_v32 }
 0x134   : > { %v7186_v48 = vpop.f32.mrf.mxu0  ;;  %v7188_v49 = vpop.f32.mrf.mxu1 }
 0x136   : > { %v5693_v58 = vpop.f32.mrf.mxu0  ;;  %v5725_v59 = vpop.f32.mrf.mxu1 }
 0x138   : > { %v7191_v60 = vpop.f32.mrf.mxu0  ;;  %v994_v61 = vpop.f32.mrf.mxu1  ;;  %5931 = vmatmul.mubr.bf16.gmra.mxu1 %v6508_v50  ;;  %6003 = vmatmul.mubr.bf16.gmra.mxu0 %v2296_v51 }
 0x139   : > { %v1143_v3 = vadd.f32 %v994_v61, %v7065_v55  ;;  %5934 = vmatprep.mubr.msk.bf16.mxu1 %vm6649_vm0, %v6648_v19  ;;  %6006 = vmatprep.mubr.msk.bf16.mxu0 %vm6649_vm0, %v6648_v19  ;;  %v2304_v55 = vsel %vm772_vm1, %v2299_v4, %v2303_v5  ;;  %v6521_v61 = vld [vmem:[#allocation2 + $0x74] sm:$0xff]  }
 0x13a   : > { %v5696_v6 = vpop.f32.mrf.mxu0  ;;  %v5744_v9 = vpop.f32.mrf.mxu1  ;;  %v2325_v16 = vshll.u32 %v6521_v61, 16 }
 0x13c   : > { %v7198_v12 = vpop.f32.mrf.mxu0  ;;  %v997_v13 = vpop.f32.mrf.mxu1 }
 0x13d   : > { %v1144_v22 = vadd.f32 %v997_v13, %v7081_v0  ;;  %v6517_v0 = vld [vmem:[#allocation2 + $0x6c] sm:$0xff]  }
 0x13e   : > { %v5697_v23 = vpop.f32.mrf.mxu0  ;;  %v5745_v24 = vpop.f32.mrf.mxu1  ;;  %v2317_v51 = vshll.u32 %v6517_v0, 16  ;;  %v2321_v15 = vshrl.u32 %v6517_v0, 16 }
 0x140   : > { %v1002_v25 = vpop.f32.mrf.mxu1  ;;  %v1458_v26 = vpop.f32.mrf.mxu0  ;;  %5935 = vmatmul.mubr.bf16.gmra.mxu1 %v6510_v14  ;;  %6007 = vmatmul.mubr.bf16.gmra.mxu0 %v2304_v55  ;;  %v6516_v14 = vld [vmem:[#allocation2 + $0x6c] sm:$0xff]  }
 0x141   : > { %v1145_v33 = vadd.f32 %v1002_v25, %v7094_v10  ;;  %v7203_v34 = vadd.f32 %v1458_v26, %v1143_v3  ;;  %5938 = vmatprep.mubr.msk.bf16.mxu1 %vm6649_vm0, %v6648_v19  ;;  %6010 = vmatprep.mubr.msk.bf16.mxu0 %vm6649_vm0, %v6648_v19  ;;  %v2313_v10 = vshrl.u32 %v6515_v2, 16  ;;  %v2319_v2 = vrot.slane %v2317_v51, 1 }
 0x142   : > { %v5748_v35 = vpop.f32.mrf.mxu1  ;;  %v5820_v36 = vpop.f32.mrf.mxu0 }
 0x143   : > { %v2323_v31 = vor.u32 %v2321_v15, %v2319_v2 }
 0x144   : > { %v1005_v41 = vpop.f32.mrf.mxu1  ;;  %v1461_v42 = vpop.f32.mrf.mxu0 }
 0x145   : > { %v1146_v47 = vadd.f32 %v1005_v41, %v7110_v20  ;;  %v7211_v50 = vadd.f32 %v1461_v42, %v1144_v22  ;;  %v2315_v20 = vor.u32 %v2313_v10, %v2311_v32  ;;  %v2327_v32 = vrot.slane %v2325_v16, 1 }
 0x146   : > { %v5749_v54 = vpop.f32.mrf.mxu1  ;;  %v5821_v57 = vpop.f32.mrf.mxu0 }
 0x147   : > { %v2320_v55 = vsel %vm772_vm1, %v2315_v20, %v2319_v2 }
 0x148   : > { %v1010_v58 = vpop.f32.mrf.mxu1  ;;  %v1466_v59 = vpop.f32.mrf.mxu0  ;;  %5939 = vmatmul.mubr.bf16.gmra.mxu1 %v6514_v43  ;;  %6011 = vmatmul.mubr.bf16.gmra.mxu0 %v2312_v44  ;;  %v6520_v43 = vld [vmem:[#allocation2 + $0x74] sm:$0xff]   ;;  %v2328_v44 = vsel %vm772_vm1, %v2323_v31, %v2327_v32 }
 0x149   : > { %v1147_v3 = vadd.f32 %v1010_v58, %v7120_v29  ;;  %v7214_v4 = vadd.f32 %v1466_v59, %v1145_v33  ;;  %5942 = vmatprep.mubr.msk.bf16.mxu1 %vm6649_vm0, %v6648_v19  ;;  %6014 = vmatprep.mubr.msk.bf16.mxu0 %vm6649_vm0, %v6648_v19 }
 0x14a   : > { %v5752_v5 = vpop.f32.mrf.mxu1  ;;  %v5824_v6 = vpop.f32.mrf.mxu0 }
 0x14c   : > { %v1013_v9 = vpop.f32.mrf.mxu1  ;;  %v1469_v13 = vpop.f32.mrf.mxu0 }
 0x14d   : > { %v1148_v22 = vadd.f32 %v1013_v9, %v7133_v37  ;;  %v7221_v29 = vadd.f32 %v1469_v13, %v1146_v47  ;;  %v6523_v37 = vld [vmem:[#allocation2 + $0x7c] sm:$0xff]  }
 0x14e   : > { %v5753_v23 = vpop.f32.mrf.mxu1  ;;  %v5825_v24 = vpop.f32.mrf.mxu0  ;;  %v2333_v51 = vshll.u32 %v6523_v37, 16  ;;  %v2337_v15 = vshrl.u32 %v6523_v37, 16 }
 0x14f   : > { %v6527_v23 = vld [vmem:[#allocation2 + $0xc] sm:$0xfe]   ;;  %v6528_v24 = vld [vmem:[#allocation2 + $0x14] sm:$0xff]  }
 0x150   : > { %v1018_v25 = vpop.f32.mrf.mxu1  ;;  %v1474_v26 = vpop.f32.mrf.mxu0  ;;  %5943 = vmatmul.mubr.bf16.gmra.mxu1 %v6516_v14  ;;  %6015 = vmatmul.mubr.bf16.gmra.mxu0 %v2320_v55  ;;  %v6522_v14 = vld [vmem:[#allocation2 + $0x7c] sm:$0xff]  }
 0x151   : > { %v1149_v33 = vadd.f32 %v1018_v25, %v7139_v45  ;;  %v7225_v35 = vadd.f32 %v1474_v26, %v1147_v3  ;;  %5946 = vmatprep.mubr.msk.bf16.mxu1 %vm6649_vm0, %v6648_v19  ;;  %6018 = vmatprep.mubr.msk.bf16.mxu0 %vm6649_vm0, %v6648_v19  ;;  %v2329_v45 = vshrl.u32 %v6521_v61, 16  ;;  %v6526_v3 = vld [vmem:[#allocation2 + $0x84] ss:$0 sps:$4 sm:$0x11]   ;;  %v2335_v61 = vrot.slane %v2333_v51, 1 }
 0x152   : > { %v5756_v0 = vpop.f32.mrf.mxu1  ;;  %v5828_v36 = vpop.f32.mrf.mxu0  ;;  %v2341_v16 = vshll.u32 %v6526_v3, 16  ;;  %v6529_v3 = vld [vmem:[%s7854_s1 + $0x1f8] sm:$0xff]  }
 0x154   : > { %v1021_v41 = vpop.f32.mrf.mxu1  ;;  %v1477_v42 = vpop.f32.mrf.mxu0  ;;  %v2343_v0 = vrot.slane %v2341_v16, 1 }
 0x155   : > { %v1150_v47 = vadd.f32 %v1021_v41, %v7147_v52  ;;  %v7233_v10 = vadd.f32 %v1477_v42, %v1148_v22  ;;  %v2331_v52 = vor.u32 %v2329_v45, %v2327_v32  ;;  %v2778_v41 = vrot.slane %v6528_v24, 1  ;;  %v6533_v24 = vld [vmem:[#allocation2 + $0x24] sm:$0xff]  }
 0x156   : > { %v5757_v54 = vpop.f32.mrf.mxu1  ;;  %v5829_v57 = vpop.f32.mrf.mxu0 }
 0x157   : > { %v2336_v55 = vsel %vm772_vm1, %v2331_v52, %v2335_v61  ;;  %v6530_v57 = vld [vmem:[#allocation2 + $0x1c] sm:$0xff]  }
 0x158   : > { %v1026_v58 = vpop.f32.mrf.mxu1  ;;  %v1482_v59 = vpop.f32.mrf.mxu0  ;;  %5947 = vmatmul.mubr.bf16.gmra.mxu1 %v6520_v43  ;;  %6019 = vmatmul.mubr.bf16.gmra.mxu0 %v2328_v44 }
 0x159   : > { %v1151_v20 = vadd.f32 %v1026_v58, %v7152_v62  ;;  %v7236_v2 = vadd.f32 %v1482_v59, %v1149_v33  ;;  %5950 = vmatprep.mubr.msk.bf16.mxu1 %vm6649_vm0, %v6648_v19  ;;  %6022 = vmatprep.mubr.msk.bf16.mxu0 %vm6649_vm0, %v6648_v19  ;;  %v2339_v33 = vor.u32 %v2337_v15, %v2335_v61  ;;  %v6531_v15 = vld [vmem:[#allocation2 + $0x18] sm:$0xff]  }
 0x15a   : > { %v5760_v5 = vpop.f32.mrf.mxu1  ;;  %v5832_v6 = vpop.f32.mrf.mxu0 }
 0x15b   : > { %v2780_v5 = vrot.slane %v6530_v57, 1  ;;  %v7302_v57 = vld [vmem:[#allocation2 + $0x2c] sm:$0xff]  }
 0x15c   : > { %v1029_v9 = vpop.f32.mrf.mxu1  ;;  %v1485_v13 = vpop.f32.mrf.mxu0 }
 0x15d   : > { %v1152_v22 = vadd.f32 %v1029_v9, %v7160_v7  ;;  %v7243_v62 = vadd.f32 %v1485_v13, %v1150_v47  ;;  %v2777_v7 = vrot.slane %v6527_v23, 1  ;;  %v6535_v13 = vld [vmem:[%s7854_s1 + $0x1f0] sm:$0xff]   ;;  %v6532_v23 = vld [vmem:[%s7854_s1 + $0x238] sm:$0xff]  }
 0x15e   : > { %v5761_v25 = vpop.f32.mrf.mxu1  ;;  %v5833_v26 = vpop.f32.mrf.mxu0 }
 0x15f   : > { %v2779_v54 = vsel %vm1329_vm2, %v2777_v7, %v2778_v41  ;;  %v6538_v7 = vld [vmem:[%s7854_s1 + $0x230] sm:$0xff]  }
 0x160   : > { %v1034_v31 = vpop.f32.mrf.mxu1  ;;  %v1490_v32 = vpop.f32.mrf.mxu0  ;;  %5951 = vmatmul.mubr.bf16.gmra.mxu1 %v6522_v14  ;;  %6023 = vmatmul.mubr.bf16.gmra.mxu0 %v2336_v55  ;;  %v2781_v55 = vsel %vm1329_vm2, %v2778_v41, %v2780_v5 }
 0x161   : > { %v1153_v36 = vadd.f32 %v1034_v31, %v7165_v17  ;;  %v7247_v37 = vadd.f32 %v1490_v32, %v1151_v20  ;;  %6026 = vmatprep.mubr.msk.bf16.mxu0 %vm6649_vm0, %v6648_v19  ;;  %6046 = vmatprep.mubr.msk.bf16.mxu1 %vm6649_vm0, %v6648_v19  ;;  %v2344_v17 = vsel %vm772_vm1, %v2339_v33, %v2343_v0  ;;  %v6541_v31 = vld [vmem:[%s7854_s1 + $0x1e8] sm:$0xff]  }
 0x162   : > { %v5764_v42 = vpop.f32.mrf.mxu1  ;;  %v5836_v43 = vpop.f32.mrf.mxu0 }
 0x164   : > { %v1037_v44 = vpop.f32.mrf.mxu1  ;;  %v1493_v47 = vpop.f32.mrf.mxu0 }
 0x165   : > { %v1154_v45 = vadd.f32 %v1037_v44, %v7173_v27  ;;  %v7254_v51 = vadd.f32 %v1493_v47, %v1152_v22  ;;  %v6534_v47 = vld [vmem:[#allocation2 + $0x20] sm:$0xff]  }
 0x166   : > { %v5765_v58 = vpop.f32.mrf.mxu1  ;;  %v5837_v59 = vpop.f32.mrf.mxu0 }
 0x168   : > { %v1042_v20 = vpop.f32.mrf.mxu1  ;;  %v1498_v52 = vpop.f32.mrf.mxu0  ;;  %6027 = vmatmul.mubr.bf16.gmra.mxu0 %v2344_v17  ;;  %6047 = vmatmul.mubr.bf16.vlgmr.msra.gmra.mxu1 %v2779_v54 }
 0x169   : > { %v1155_v61 = vadd.f32 %v1042_v20, %v7178_v39  ;;  %v7262_v27 = vadd.f32 %v1498_v52, %v1153_v36  ;;  %6050 = vmatprep.mubr.msk.bf16.mxu1 %vm6649_vm0, %v6648_v19  ;;  %6122 = vmatprep.mubr.msk.bf16.mxu0 %vm6649_vm0, %v6648_v19  ;;  %v2782_v36 = vrot.slane %v6533_v24, 1  ;;  %v6539_v24 = vld [vmem:[#allocation2 + $0x34] sm:$0xff]  }
 0x16a   : > { %v5768_v6 = vpop.f32.mrf.mxu1  ;;  %v5840_v9 = vpop.f32.mrf.mxu0  ;;  %6183 = vmatpush3.bf16.msra.mxu1 %v6529_v3  ;;  %v6542_v3 = vld [vmem:[%s7854_s1 + $0x228] sm:$0xff]  }
 0x16b   : > { %6184 = vmatprep.subr.bf16.mxu1 %v6648_v19  ;;  %v2783_v54 = vsel %vm1329_vm2, %v2780_v5, %v2782_v36  ;;  %v2784_v5 = vrot.slane %v7302_v57, 1 }
 0x16c   : > { %v1045_v14 = vpop.f32.mrf.mxu1  ;;  %v1501_v39 = vpop.f32.mrf.mxu0 }
 0x16d   : > { %v1156_v16 = vadd.f32 %v1045_v14, %v7186_v48  ;;  %v7273_v22 = vadd.f32 %v1501_v39, %v1154_v45  ;;  %v6559_v14 = vld [vmem:[%s7854_s1 + $0x1d0] sm:$0xff]  }
 0x16e   : > { %v5769_v25 = vpop.f32.mrf.mxu1  ;;  %v5841_v26 = vpop.f32.mrf.mxu0  ;;  %6185 = vmatpush3.bf16.msra.mxu1 %v6535_v13  ;;  %v6548_v13 = vld [vmem:[%s7854_s1 + $0x220] sm:$0xff]  }
 0x16f   : > { %6186 = vmatprep.subr.bf16.mxu1 %v6648_v19 }
 0x170   : > { %v1050_v32 = vpop.f32.mrf.mxu1  ;;  %v1506_v48 = vpop.f32.mrf.mxu0  ;;  %6051 = vmatmul.mubr.bf16.gmra.mxu1 %v2781_v55  ;;  %6123 = vmatmul.mubr.bf16.vlgmr.msra.gmra.mxu0 %v6531_v15 }
 0x171   : > { %v1157_v33 = vadd.f32 %v1050_v32, %v7191_v60  ;;  %v7284_v0 = vadd.f32 %v1506_v48, %v1155_v61  ;;  %6259 = vmatpush3.bf16.msra.mxu0 %v6532_v23  ;;  %6054 = vmatprep.mubr.msk.bf16.mxu1 %vm6649_vm0, %v6648_v19  ;;  %v6547_v60 = vld [vmem:[%s7854_s1 + $0x1e0] sm:$0xff]   ;;  %v2785_v23 = vsel %vm1329_vm2, %v2782_v36, %v2784_v5  ;;  %v6565_v48 = vld [vmem:[%s7854_s1 + $0x1c8] sm:$0xff]  }
 0x172   : > { %v5772_v41 = vpop.f32.mrf.mxu1  ;;  %v5844_v42 = vpop.f32.mrf.mxu0  ;;  %6126 = vmatprep.mubr.msk.bf16.mxu0 %vm6649_vm0, %v6648_v19  ;;  %6260 = vmatprep.subr.bf16.mxu0 %v6648_v19 }
 0x173   : > { %6187 = vmatpush3.bf16.msra.mxu1 %v6541_v31  ;;  %v6554_v31 = vld [vmem:[%s7854_s1 + $0x218] sm:$0xff]  }
 0x174   : > { %v1053_v43 = vpop.f32.mrf.mxu1  ;;  %v1509_v44 = vpop.f32.mrf.mxu0  ;;  %6188 = vmatprep.subr.bf16.mxu1 %v6648_v19 }
 0x175   : > { %v1158_v45 = vadd.f32 %v1053_v43, %v7198_v12  ;;  %v7299_v17 = vadd.f32 %v1509_v44, %v1156_v16  ;;  %6261 = vmatpush3.bf16.msra.mxu0 %v6538_v7  ;;  %v6553_v12 = vld [vmem:[%s7854_s1 + $0x1d8] sm:$0xff]   ;;  %v6537_v16 = vld [vmem:[#allocation2 + $0x28] sm:$0xff]   ;;  %v6571_v44 = vld [vmem:[%s7854_s1 + $0x1c0] sm:$0xff]  }
 0x176   : > { %v5773_v58 = vpop.f32.mrf.mxu1  ;;  %v5845_v59 = vpop.f32.mrf.mxu0  ;;  %6262 = vmatprep.subr.bf16.mxu0 %v6648_v19 }
 0x177   : > { %6189 = vmatpush3.bf16.msra.mxu1 %v6547_v60  ;;  %v6560_v60 = vld [vmem:[%s7854_s1 + $0x210] sm:$0xff]   ;;  %v6543_v59 = vld [vmem:[#allocation2 + $0x3c] sm:$0xff]  }
 0x178   : > { %v1058_v20 = vpop.f32.mrf.mxu1  ;;  %v1514_v52 = vpop.f32.mrf.mxu0  ;;  %6055 = vmatmul.mubr.bf16.gmra.mxu1 %v2783_v54  ;;  %6127 = vmatmul.mubr.bf16.gmra.mxu0 %v6534_v47  ;;  %v6540_v54 = vld [vmem:[#allocation2 + $0x30] sm:$0xff]  }
 0x179   : > { %v7311_v61 = vadd.f32 %v1514_v52, %v1157_v33  ;;  %6058 = vmatprep.mubr.msk.bf16.mxu1 %vm6649_vm0, %v6648_v19  ;;  %6130 = vmatprep.mubr.msk.bf16.mxu0 %vm6649_vm0, %v6648_v19  ;;  %v1159_v32 = vadd.f32 %v1058_v20, %v7067_v56  ;;  %v2786_v56 = vrot.slane %v6539_v24, 1 }
 0x17a   : > { %v5776_v6 = vpop.f32.mrf.mxu1  ;;  %v5848_v9 = vpop.f32.mrf.mxu0  ;;  %6263 = vmatpush3.bf16.msra.mxu0 %v6542_v3  ;;  %6190 = vmatprep.subr.bf16.mxu1 %v6648_v19 }
 0x17b   : > { %6264 = vmatprep.subr.bf16.mxu0 %v6648_v19  ;;  %6191 = vmatpush3.bf16.msra.mxu1 %v6553_v12  ;;  %v2787_v58 = vsel %vm1329_vm2, %v2784_v5, %v2786_v56  ;;  %v2788_v5 = vrot.slane %v6543_v59, 1 }
 0x17c   : > { %v1061_v39 = vpop.f32.mrf.mxu1  ;;  %v1517_v15 = vpop.f32.mrf.mxu0  ;;  %6192 = vmatprep.subr.bf16.mxu1 %v6648_v19 }
 0x17d   : > { %v7327_v55 = vadd.f32 %v1517_v15, %v1158_v45  ;;  %v1160_v43 = vadd.f32 %v1061_v39, %v7083_v1  ;;  %v6566_v1 = vld [vmem:[%s7854_s1 + $0x208] sm:$0xff]  }
 0x17e   : > { %v5777_v25 = vpop.f32.mrf.mxu1  ;;  %v5849_v26 = vpop.f32.mrf.mxu0  ;;  %6265 = vmatpush3.bf16.msra.mxu0 %v6548_v13 }
 0x17f   : > { %6266 = vmatprep.subr.bf16.mxu0 %v6648_v19  ;;  %6193 = vmatpush3.bf16.msra.mxu1 %v6559_v14  ;;  %v2789_v25 = vsel %vm1329_vm2, %v2786_v56, %v2788_v5  ;;  %v6545_v26 = vld [vmem:[#allocation2 + $0x44] sm:$0xff]  }
 0x180   : > { %v1066_v33 = vpop.f32.mrf.mxu1  ;;  %v1522_v7 = vpop.f32.mrf.mxu0  ;;  %6059 = vmatmul.mubr.bf16.gmra.mxu1 %v2785_v23  ;;  %6131 = vmatmul.mubr.bf16.gmra.mxu0 %v6537_v16  ;;  %v6544_v23 = vld [vmem:[#allocation2 + $0x38] sm:$0xff]  }
 0x181   : > { %v7338_v36 = vadd.f32 %v1522_v7, %v1159_v32  ;;  %6062 = vmatprep.mubr.msk.bf16.mxu1 %vm6649_vm0, %v6648_v19  ;;  %6134 = vmatprep.mubr.msk.bf16.mxu0 %vm6649_vm0, %v6648_v19  ;;  %v1161_v20 = vadd.f32 %v1066_v33, %v7096_v11  ;;  %v6572_v11 = vld [vmem:[%s7854_s1 + $0x200] sm:$0xff]  }
 0x182   : > { %v5780_v41 = vpop.f32.mrf.mxu1  ;;  %v5852_v42 = vpop.f32.mrf.mxu0  ;;  %6267 = vmatpush3.bf16.msra.mxu0 %v6554_v31  ;;  %6194 = vmatprep.subr.bf16.mxu1 %v6648_v19 }
 0x183   : > { %6268 = vmatprep.subr.bf16.mxu0 %v6648_v19  ;;  %6195 = vmatpush3.bf16.msra.mxu1 %v6565_v48  ;;  %v2790_v41 = vrot.slane %v6545_v26, 1 }
 0x184   : > { %v1069_v47 = vpop.f32.mrf.mxu1  ;;  %v1525_v45 = vpop.f32.mrf.mxu0  ;;  %6196 = vmatprep.subr.bf16.mxu1 %v6648_v19 }
 0x185   : > { %v7354_v57 = vadd.f32 %v1525_v45, %v1160_v43  ;;  %v1162_v39 = vadd.f32 %v1069_v47, %v7112_v21  ;;  %v2791_v45 = vsel %vm1329_vm2, %v2788_v5, %v2790_v41 }
 0x186   : > { %v5781_v3 = vpop.f32.mrf.mxu1  ;;  %v5853_v12 = vpop.f32.mrf.mxu0  ;;  %6269 = vmatpush3.bf16.msra.mxu0 %v6560_v60 }
 0x187   : > { %6270 = vmatprep.subr.bf16.mxu0 %v6648_v19  ;;  %6197 = vmatpush3.bf16.msra.mxu1 %v6571_v44 }
 0x188   : > { %v1074_v52 = vpop.f32.mrf.mxu1  ;;  %v1530_v6 = vpop.f32.mrf.mxu0  ;;  %6063 = vmatmul.mubr.bf16.gmra.mxu1 %v2787_v58  ;;  %6135 = vmatmul.mubr.bf16.gmra.mxu0 %v6540_v54  ;;  %v6549_v54 = vld [vmem:[#allocation2 + $0x4c] sm:$0xff]  }
 0x189   : > { %v7362_v9 = vadd.f32 %v1530_v6, %v1161_v20  ;;  %6066 = vmatprep.mubr.msk.bf16.mxu1 %vm6649_vm0, %v6648_v19  ;;  %6138 = vmatprep.mubr.msk.bf16.mxu0 %vm6649_vm0, %v6648_v19  ;;  %v1163_v48 = vadd.f32 %v1074_v52, %v7122_v30  ;;  %v6546_v30 = vld [vmem:[#allocation2 + $0x40] sm:$0xff]  }
 0x18a   : > { %v5784_v13 = vpop.f32.mrf.mxu1  ;;  %v5856_v14 = vpop.f32.mrf.mxu0  ;;  %6271 = vmatpush3.bf16.msra.mxu0 %v6566_v1 }
 0x18b   : > { %6272 = vmatprep.subr.bf16.mxu0 %v6648_v19 }
 0x18c   : > { %v1077_v15 = vpop.f32.mrf.mxu1  ;;  %v1533_v16 = vpop.f32.mrf.mxu0 }
 0x18d   : > { %v7373_v24 = vadd.f32 %v1533_v16, %v1162_v39  ;;  %v1164_v60 = vadd.f32 %v1077_v15, %v7135_v38  ;;  %v2792_v38 = vrot.slane %v6549_v54, 1  ;;  %v6551_v15 = vld [vmem:[#allocation2 + $0x54] sm:$0xff]  }
 0x18e   : > { %v5785_v31 = vpop.f32.mrf.mxu1  ;;  %v5857_v32 = vpop.f32.mrf.mxu0  ;;  %6273 = vmatpush3.bf16.msra.mxu0 %v6572_v11 }
 0x18f   : > { %v2793_v39 = vsel %vm1329_vm2, %v2790_v41, %v2792_v38 }
 0x190   : > { %v1082_v33 = vpop.f32.mrf.mxu1  ;;  %v1538_v7 = vpop.f32.mrf.mxu0  ;;  %6067 = vmatmul.mubr.bf16.gmra.mxu1 %v2789_v25  ;;  %6139 = vmatmul.mubr.bf16.gmra.mxu0 %v6544_v23 }
 0x191   : > { %v7377_v21 = vadd.f32 %v1538_v7, %v1163_v48  ;;  %6070 = vmatprep.mubr.msk.bf16.mxu1 %vm6649_vm0, %v6648_v19  ;;  %6142 = vmatprep.mubr.msk.bf16.mxu0 %vm6649_vm0, %v6648_v19  ;;  %v1165_v3 = vadd.f32 %v1082_v33, %v7141_v46  ;;  %v6550_v46 = vld [vmem:[#allocation2 + $0x48] sm:$0xff]  }
 0x192   : > { %v5788_v56 = vpop.f32.mrf.mxu1  ;;  %v5860_v42 = vpop.f32.mrf.mxu0 }
 0x194   : > { %v1085_v43 = vpop.f32.mrf.mxu1  ;;  %v1541_v44 = vpop.f32.mrf.mxu0 }
 0x195   : > { %v7384_v47 = vadd.f32 %v1541_v44, %v1164_v60  ;;  %v1166_v5 = vadd.f32 %v1085_v43, %v7149_v53  ;;  %v2794_v53 = vrot.slane %v6551_v15, 1  ;;  %v6555_v43 = vld [vmem:[#allocation2 + $0x5c] sm:$0xff]  }
 0x196   : > { %v5789_v58 = vpop.f32.mrf.mxu1  ;;  %v5861_v59 = vpop.f32.mrf.mxu0 }
 0x197   : > { %v2795_v60 = vsel %vm1329_vm2, %v2792_v38, %v2794_v53 }
 0x198   : > { %v1090_v12 = vpop.f32.mrf.mxu1  ;;  %v1546_v1 = vpop.f32.mrf.mxu0  ;;  %6071 = vmatmul.mubr.bf16.gmra.mxu1 %v2791_v45  ;;  %6143 = vmatmul.mubr.bf16.gmra.mxu0 %v6546_v30 }
 0x199   : > { %v7388_v20 = vadd.f32 %v1546_v1, %v1165_v3  ;;  %6074 = vmatprep.mubr.msk.bf16.mxu1 %vm6649_vm0, %v6648_v19  ;;  %6146 = vmatprep.mubr.msk.bf16.mxu0 %vm6649_vm0, %v6648_v19  ;;  %v1167_v25 = vadd.f32 %v1090_v12, %v7154_v63  ;;  %v6552_v63 = vld [vmem:[#allocation2 + $0x50] sm:$0xff]  }
 0x19a   : > { %v5792_v52 = vpop.f32.mrf.mxu1  ;;  %v5864_v6 = vpop.f32.mrf.mxu0 }
 0x19c   : > { %v1093_v13 = vpop.f32.mrf.mxu1  ;;  %v1549_v14 = vpop.f32.mrf.mxu0 }
 0x19d   : > { %v7395_v11 = vadd.f32 %v1549_v14, %v1166_v5  ;;  %v1168_v7 = vadd.f32 %v1093_v13, %v7162_v8  ;;  %v2796_v8 = vrot.slane %v6555_v43, 1  ;;  %v6557_v13 = vld [vmem:[#allocation2 + $0x64] sm:$0xff]  }
 0x19e   : > { %v5793_v16 = vpop.f32.mrf.mxu1  ;;  %v5865_v23 = vpop.f32.mrf.mxu0 }
 0x19f   : > { %v2797_v5 = vsel %vm1329_vm2, %v2794_v53, %v2796_v8 }
 0x1a0   : > { %v1098_v26 = vpop.f32.mrf.mxu1  ;;  %v1554_v31 = vpop.f32.mrf.mxu0  ;;  %6075 = vmatmul.mubr.bf16.gmra.mxu1 %v2793_v39  ;;  %6147 = vmatmul.mubr.bf16.gmra.mxu0 %v6550_v46 }
 0x1a1   : > { %v7399_v32 = vadd.f32 %v1554_v31, %v1167_v25  ;;  %6078 = vmatprep.mubr.msk.bf16.mxu1 %vm6649_vm0, %v6648_v19  ;;  %6150 = vmatprep.mubr.msk.bf16.mxu0 %vm6649_vm0, %v6648_v19  ;;  %v1169_v45 = vadd.f32 %v1098_v26, %v7167_v18  ;;  %v6556_v18 = vld [vmem:[#allocation2 + $0x58] sm:$0xff]   ;;  %v2798_v25 = vrot.slane %v6557_v13, 1 }
 0x1a2   : > { %v5796_v48 = vpop.f32.mrf.mxu1  ;;  %v5868_v33 = vpop.f32.mrf.mxu0 }
 0x1a3   : > { %v6558_v33 = vld [vmem:[#allocation2 + $0x60] sm:$0xff]  }
 0x1a4   : > { %v1101_v41 = vpop.f32.mrf.mxu1  ;;  %v1557_v56 = vpop.f32.mrf.mxu0 }
 0x1a5   : > { %v7406_v42 = vadd.f32 %v1557_v56, %v1168_v7  ;;  %v1170_v1 = vadd.f32 %v1101_v41, %v7175_v28  ;;  %v6561_v56 = vld [vmem:[#allocation2 + $0x6c] sm:$0xff]  }
 0x1a6   : > { %v5797_v44 = vpop.f32.mrf.mxu1  ;;  %v5869_v30 = vpop.f32.mrf.mxu0 }
 0x1a8   : > { %v1106_v54 = vpop.f32.mrf.mxu1  ;;  %v1562_v58 = vpop.f32.mrf.mxu0  ;;  %6079 = vmatmul.mubr.bf16.gmra.mxu1 %v2795_v60  ;;  %6151 = vmatmul.mubr.bf16.gmra.mxu0 %v6552_v63 }
 0x1a9   : > { %v7410_v59 = vadd.f32 %v1562_v58, %v1169_v45  ;;  %6082 = vmatprep.mubr.msk.bf16.mxu1 %vm6649_vm0, %v6648_v19  ;;  %6154 = vmatprep.mubr.msk.bf16.mxu0 %vm6649_vm0, %v6648_v19  ;;  %v1171_v39 = vadd.f32 %v1106_v54, %v7180_v40 }
 0x1aa   : > { %v5800_v3 = vpop.f32.mrf.mxu1  ;;  %v5872_v12 = vpop.f32.mrf.mxu0 }
 0x1ab   : > { %v6562_v3 = vld [vmem:[#allocation2 + $0x68] sm:$0xff]  }
 0x1ac   : > { %v1109_v38 = vpop.f32.mrf.mxu1  ;;  %v1565_v52 = vpop.f32.mrf.mxu0 }
 0x1ad   : > { %v7417_v6 = vadd.f32 %v1565_v52, %v1170_v1  ;;  %v1172_v53 = vadd.f32 %v1109_v38, %v7188_v49  ;;  %v2800_v49 = vrot.slane %v6561_v56, 1  ;;  %v6563_v38 = vld [vmem:[#allocation2 + $0x74] sm:$0xff]  }
 0x1ae   : > { %v5801_v14 = vpop.f32.mrf.mxu1  ;;  %v5873_v46 = vpop.f32.mrf.mxu0 }
 0x1b0   : > { %v1570_v15 = vpop.f32.mrf.mxu0  ;;  %v1886_v16 = vpop.f32.mrf.mxu1  ;;  %6083 = vmatmul.mubr.bf16.gmra.mxu1 %v2797_v5  ;;  %6155 = vmatmul.mubr.bf16.gmra.mxu0 %v6556_v18 }
 0x1b1   : > { %v7421_v23 = vadd.f32 %v1570_v15, %v1171_v39  ;;  %v2035_v28 = vadd.f32 %v1886_v16, %v7203_v34  ;;  %6086 = vmatprep.mubr.msk.bf16.mxu1 %vm6649_vm0, %v6648_v19  ;;  %6158 = vmatprep.mubr.msk.bf16.mxu0 %vm6649_vm0, %v6648_v19  ;;  %v2799_v34 = vsel %vm1329_vm2, %v2796_v8, %v2798_v25 }
 0x1b2   : > { %v5876_v26 = vpop.f32.mrf.mxu0  ;;  %v5896_v31 = vpop.f32.mrf.mxu1 }
 0x1b4   : > { %v1573_v40 = vpop.f32.mrf.mxu0  ;;  %v1889_v48 = vpop.f32.mrf.mxu1 }
 0x1b5   : > { %v7429_v7 = vadd.f32 %v1573_v40, %v1172_v53  ;;  %v2036_v41 = vadd.f32 %v1889_v48, %v7211_v50  ;;  %v6567_v53 = vld [vmem:[#allocation2 + $0x7c] sm:$0xff]  }
 0x1b6   : > { %v5877_v63 = vpop.f32.mrf.mxu0  ;;  %v5897_v60 = vpop.f32.mrf.mxu1 }
 0x1b8   : > { %v1894_v43 = vpop.f32.mrf.mxu1  ;;  %v2442_v44 = vpop.f32.mrf.mxu0  ;;  %6087 = vmatmul.mubr.bf16.gmra.mxu1 %v2799_v34  ;;  %6159 = vmatmul.mubr.bf16.gmra.mxu0 %v6558_v33 }
 0x1b9   : > { %v2037_v30 = vadd.f32 %v1894_v43, %v7214_v4  ;;  %v7434_v45 = vadd.f32 %v2442_v44, %v2035_v28  ;;  %6090 = vmatprep.mubr.msk.bf16.mxu1 %vm6649_vm0, %v6648_v19  ;;  %6162 = vmatprep.mubr.msk.bf16.mxu0 %vm6649_vm0, %v6648_v19  ;;  %v2801_v4 = vsel %vm1329_vm2, %v2798_v25, %v2800_v49  ;;  %v6564_v25 = vld [vmem:[#allocation2 + $0x70] sm:$0xff]  }
 0x1ba   : > { %v5900_v50 = vpop.f32.mrf.mxu1  ;;  %v5972_v54 = vpop.f32.mrf.mxu0 }
 0x1bc   : > { %v1897_v58 = vpop.f32.mrf.mxu1  ;;  %v2445_v8 = vpop.f32.mrf.mxu0 }
 0x1bd   : > { %v2038_v12 = vadd.f32 %v1897_v58, %v7221_v29  ;;  %v7441_v1 = vadd.f32 %v2445_v8, %v2036_v41  ;;  %v2802_v29 = vrot.slane %v6563_v38, 1  ;;  %v6574_v58 = vld [vmem:[#allocation2 + $0x18] sm:$0xff]  }
 0x1be   : > { %v5901_v52 = vpop.f32.mrf.mxu1  ;;  %v5973_v18 = vpop.f32.mrf.mxu0 }
 0x1c0   : > { %v1902_v5 = vpop.f32.mrf.mxu1  ;;  %v2450_v13 = vpop.f32.mrf.mxu0  ;;  %6091 = vmatmul.mubr.bf16.gmra.mxu1 %v2801_v4  ;;  %6163 = vmatmul.mubr.bf16.gmra.mxu0 %v6562_v3 }
 0x1c1   : > { %v2039_v14 = vadd.f32 %v1902_v5, %v7225_v35  ;;  %v7445_v46 = vadd.f32 %v2450_v13, %v2037_v30  ;;  %6094 = vmatprep.mubr.msk.bf16.mxu1 %vm6649_vm0, %v6648_v19  ;;  %6166 = vmatprep.mubr.msk.bf16.mxu0 %vm6649_vm0, %v6648_v19  ;;  %v2803_v35 = vsel %vm1329_vm2, %v2800_v49, %v2802_v29  ;;  %v6568_v30 = vld [vmem:[#allocation2 + $0x78] sm:$0xff]   ;;  %v6569_v49 = vld [vmem:[#allocation2 + $0x84] ss:$0 sps:$4 sm:$0x11]   ;;  %v3671_v5 = vshll.u32 %v6574_v58, 16 }
 0x1c2   : > { %v5904_v39 = vpop.f32.mrf.mxu1  ;;  %v5976_v15 = vpop.f32.mrf.mxu0  ;;  %v2806_v38 = vrot.slane %v6569_v49, 1  ;;  %v6573_v49 = vld [vmem:[#allocation2 + $0x88] sm:$0xff]  }
 0x1c4   : > { %v1905_v16 = vpop.f32.mrf.mxu1  ;;  %v2453_v28 = vpop.f32.mrf.mxu0 }
 0x1c5   : > { %v2040_v26 = vadd.f32 %v1905_v16, %v7233_v10  ;;  %v7452_v31 = vadd.f32 %v2453_v28, %v2038_v12  ;;  %v2804_v10 = vrot.slane %v6567_v53, 1  ;;  %v6570_v16 = vld [vmem:[#allocation2 + $0x80] sm:$0xff]   ;;  %v3669_v28 = vshrl.u32 %v6574_v58, 16 }
 0x1c6   : > { %v5905_v40 = vpop.f32.mrf.mxu1  ;;  %v5977_v48 = vpop.f32.mrf.mxu0 }
 0x1c7   : > { %v2807_v15 = vsel %vm1329_vm2, %v2804_v10, %v2806_v38 }
 0x1c8   : > { %v1910_v33 = vpop.f32.mrf.mxu1  ;;  %v2458_v41 = vpop.f32.mrf.mxu0  ;;  %6095 = vmatmul.mubr.bf16.gmra.mxu1 %v2803_v35  ;;  %6167 = vmatmul.mubr.bf16.gmra.mxu0 %v6564_v25 }
 0x1c9   : > { %v2041_v34 = vadd.f32 %v1910_v33, %v7236_v2  ;;  %v7456_v56 = vadd.f32 %v2458_v41, %v2039_v14  ;;  %6098 = vmatprep.mubr.msk.bf16.mxu1 %vm6649_vm0, %v6648_v19  ;;  %6170 = vmatprep.mubr.msk.bf16.mxu0 %vm6649_vm0, %v6648_v19  ;;  %v2805_v2 = vsel %vm1329_vm2, %v2802_v29, %v2804_v10  ;;  %v6576_v41 = vld [vmem:[#allocation2 + $0x28] sm:$0xff]  }
 0x1ca   : > { %v5908_v63 = vpop.f32.mrf.mxu1  ;;  %v5980_v60 = vpop.f32.mrf.mxu0 }
 0x1cc   : > { %v1913_v43 = vpop.f32.mrf.mxu1  ;;  %v2461_v44 = vpop.f32.mrf.mxu0 }
 0x1cd   : > { %v2042_v50 = vadd.f32 %v1913_v43, %v7243_v62  ;;  %v7463_v54 = vadd.f32 %v2461_v44, %v2040_v26  ;;  %v6575_v62 = vld [vmem:[#allocation2 + $0x20] sm:$0xff]   ;;  %v3673_v26 = vrot.slane %v3671_v5, 1 }
 0x1ce   : > { %v5909_v8 = vpop.f32.mrf.mxu1  ;;  %v5981_v3 = vpop.f32.mrf.mxu0  ;;  %v3676_v35 = vshll.u32 %v6575_v62, 16 }
 0x1cf   : > { %v6577_v3 = vld [vmem:[#allocation2 + $0x18] sm:$0xfe]  }
 0x1d0   : > { %v1918_v12 = vpop.f32.mrf.mxu1  ;;  %v2466_v4 = vpop.f32.mrf.mxu0  ;;  %6099 = vmatmul.mubr.bf16.gmra.mxu1 %v2805_v2  ;;  %6171 = vmatmul.mubr.bf16.gmra.mxu0 %v6568_v30  ;;  %v3678_v10 = vrot.slane %v3676_v35, 1  ;;  %v3684_v2 = vshll.u32 %v6576_v41, 16 }
 0x1d1   : > { %v2043_v52 = vadd.f32 %v1918_v12, %v7247_v37  ;;  %v7467_v18 = vadd.f32 %v2466_v4, %v2041_v34  ;;  %6102 = vmatprep.mubr.msk.bf16.mxu1 %vm6649_vm0, %v6648_v19  ;;  %6174 = vmatprep.mubr.msk.bf16.mxu0 %vm6649_vm0, %v6648_v19  ;;  %v6578_v12 = vld [vmem:[#allocation2 + $0x20] sm:$0xff]  }
 0x1d2   : > { %v5912_v13 = vpop.f32.mrf.mxu1  ;;  %v5984_v14 = vpop.f32.mrf.mxu0 }
 0x1d3   : > { %v3686_v14 = vrot.slane %v3684_v2, 1 }
 0x1d4   : > { %v1921_v29 = vpop.f32.mrf.mxu1  ;;  %v2469_v39 = vpop.f32.mrf.mxu0 }
 0x1d5   : > { %v2044_v37 = vadd.f32 %v1921_v29, %v7254_v51  ;;  %v7475_v25 = vadd.f32 %v2469_v39, %v2042_v50  ;;  %v3674_v51 = vor.u32 %v3673_v26, %v3669_v28  ;;  %v3680_v50 = vshrl.u32 %v6575_v62, 16 }
 0x1d6   : > { %v5913_v53 = vpop.f32.mrf.mxu1  ;;  %v5985_v40 = vpop.f32.mrf.mxu0  ;;  %v4225_v39 = vrot.slane %v6578_v12, 1 }
 0x1d7   : > { %v3679_v8 = vsel %vm772_vm1, %v3674_v51, %v3678_v10  ;;  %v3682_v13 = vor.u32 %v3680_v50, %v3678_v10  ;;  %v3688_v53 = vshrl.u32 %v6576_v41, 16 }
 0x1d8   : > { %v1926_v48 = vpop.f32.mrf.mxu1  ;;  %v2474_v33 = vpop.f32.mrf.mxu0  ;;  %6103 = vmatmul.mubr.bf16.gmra.mxu1 %v2807_v15  ;;  %6175 = vmatmul.mubr.bf16.gmra.mxu0 %v6570_v16  ;;  %v6579_v15 = vld [vmem:[#allocation2 + $0x30] sm:$0xff]  }
 0x1d9   : > { %v2045_v34 = vadd.f32 %v1926_v48, %v7262_v27  ;;  %v7478_v63 = vadd.f32 %v2474_v33, %v2043_v52  ;;  %6178 = vmatprep.mubr.msk.bf16.mxu0 %vm6649_vm0, %v6648_v19  ;;  %6198 = vmatprep.mubr.msk.bf16.mxu1 %vm6649_vm0, %v6648_v19  ;;  %v3687_v35 = vsel %vm772_vm1, %v3682_v13, %v3686_v14  ;;  %v3692_v33 = vshll.u32 %v6579_v15, 16  ;;  %v6582_v13 = vld [vmem:[#allocation2 + $0x30] sm:$0xff]  }
 0x1da   : > { %v5916_v60 = vpop.f32.mrf.mxu1  ;;  %v5988_v43 = vpop.f32.mrf.mxu0  ;;  %v3696_v12 = vshrl.u32 %v6579_v15, 16 }
 0x1dc   : > { %v1929_v44 = vpop.f32.mrf.mxu1  ;;  %v2477_v30 = vpop.f32.mrf.mxu0 }
 0x1dd   : > { %v2046_v58 = vadd.f32 %v1929_v44, %v7273_v22  ;;  %v7485_v27 = vadd.f32 %v2477_v30, %v2044_v37  ;;  %v4224_v22 = vrot.slane %v6577_v3, 1  ;;  %v3690_v44 = vor.u32 %v3688_v53, %v3686_v14  ;;  %v6581_v30 = vld [vmem:[#allocation2 + $0x38] sm:$0xff]  }
 0x1de   : > { %v5917_v4 = vpop.f32.mrf.mxu1  ;;  %v5989_v38 = vpop.f32.mrf.mxu0 }
 0x1df   : > { %v4226_v48 = vsel %vm1329_vm2, %v4224_v22, %v4225_v39  ;;  %v3700_v4 = vshll.u32 %v6581_v30, 16 }
 0x1e0   : > { %v1934_v52 = vpop.f32.mrf.mxu1  ;;  %v2482_v5 = vpop.f32.mrf.mxu0  ;;  %6179 = vmatmul.mubr.bf16.gmra.mxu0 %v6573_v49  ;;  %6199 = vmatmul.mubr.bf16.vlgmr.msra.gmra.mxu1 %v3679_v8 }
 0x1e1   : > { %v2047_v29 = vadd.f32 %v1934_v52, %v7284_v0  ;;  %v7489_v62 = vadd.f32 %v2482_v5, %v2045_v34  ;;  %6202 = vmatprep.mubr.msk.bf16.mxu1 %vm6649_vm0, %v6648_v19  ;;  %6274 = vmatprep.mubr.msk.bf16.mxu0 %vm6649_vm0, %v6648_v19  ;;  %v6580_v34 = vld [vmem:[#allocation2 + $0x28] sm:$0xff]  }
 0x1e2   : > { %v5920_v16 = vpop.f32.mrf.mxu1  ;;  %v5992_v28 = vpop.f32.mrf.mxu0  ;;  %v4227_v41 = vrot.slane %v6580_v34, 1  ;;  %v3704_v34 = vshrl.u32 %v6581_v30, 16 }
 0x1e4   : > { %v1937_v37 = vpop.f32.mrf.mxu1  ;;  %v2485_v26 = vpop.f32.mrf.mxu0  ;;  %v4228_v5 = vsel %vm1329_vm2, %v4225_v39, %v4227_v41  ;;  %v6583_v39 = vld [vmem:[#allocation2 + $0x40] sm:$0xff]  }
 0x1e5   : > { %v2048_v0 = vadd.f32 %v1937_v37, %v7299_v17  ;;  %v7497_v40 = vadd.f32 %v2485_v26, %v2046_v58  ;;  %v3694_v17 = vrot.slane %v3692_v33, 1  ;;  %v3702_v37 = vrot.slane %v3700_v4, 1 }
 0x1e6   : > { %v5921_v51 = vpop.f32.mrf.mxu1  ;;  %v5993_v10 = vpop.f32.mrf.mxu0 }
 0x1e7   : > { %v3698_v28 = vor.u32 %v3696_v12, %v3694_v17 }
 0x1e8   : > { %v1942_v60 = vpop.f32.mrf.mxu1  ;;  %v2490_v43 = vpop.f32.mrf.mxu0  ;;  %6203 = vmatmul.mubr.bf16.gmra.mxu1 %v3687_v35  ;;  %6275 = vmatmul.mubr.bf16.vlgmr.msra.gmra.mxu0 %v4226_v48 }
 0x1e9   : > { %v2049_v49 = vadd.f32 %v1942_v60, %v7311_v61  ;;  %v7501_v50 = vadd.f32 %v2490_v43, %v2047_v29  ;;  %6206 = vmatprep.mubr.msk.bf16.mxu1 %vm6649_vm0, %v6648_v19  ;;  %6278 = vmatprep.mubr.msk.bf16.mxu0 %vm6649_vm0, %v6648_v19  ;;  %v3695_v61 = vsel %vm772_vm1, %v3690_v44, %v3694_v17  ;;  %v3708_v60 = vshll.u32 %v6583_v39, 16  ;;  %v6584_v43 = vld [vmem:[#allocation2 + $0x38] sm:$0xff]  }
 0x1ea   : > { %v5924_v2 = vpop.f32.mrf.mxu1  ;;  %v5996_v58 = vpop.f32.mrf.mxu0  ;;  %v3703_v33 = vsel %vm772_vm1, %v3698_v28, %v3702_v37  ;;  %v4231_v30 = vrot.slane %v6584_v43, 1 }
 0x1eb   : > { %v3706_v58 = vor.u32 %v3704_v34, %v3702_v37 }
 0x1ec   : > { %v1945_v8 = vpop.f32.mrf.mxu1  ;;  %v2493_v3 = vpop.f32.mrf.mxu0 }
 0x1ed   : > { %v2050_v38 = vadd.f32 %v1945_v8, %v7327_v55  ;;  %v7508_v52 = vadd.f32 %v2493_v3, %v2048_v0  ;;  %v4229_v55 = vrot.slane %v6582_v13, 1  ;;  %v6585_v8 = vld [vmem:[#allocation2 + $0x48] sm:$0xff]  }
 0x1ee   : > { %v5925_v14 = vpop.f32.mrf.mxu1  ;;  %v5997_v29 = vpop.f32.mrf.mxu0  ;;  %v3716_v13 = vshll.u32 %v6585_v8, 16  ;;  %v3720_v43 = vshrl.u32 %v6585_v8, 16 }
 0x1ef   : > { %v4230_v10 = vsel %vm1329_vm2, %v4227_v41, %v4229_v55 }
 0x1f0   : > { %v1950_v22 = vpop.f32.mrf.mxu1  ;;  %v2498_v16 = vpop.f32.mrf.mxu0  ;;  %6207 = vmatmul.mubr.bf16.gmra.mxu1 %v3695_v61  ;;  %6279 = vmatmul.mubr.bf16.gmra.mxu0 %v4228_v5  ;;  %v3712_v5 = vshrl.u32 %v6583_v39, 16 }
 0x1f1   : > { %v2051_v15 = vadd.f32 %v1950_v22, %v7338_v36  ;;  %v7513_v26 = vadd.f32 %v2498_v16, %v2049_v49  ;;  %6210 = vmatprep.mubr.msk.bf16.mxu1 %vm6649_vm0, %v6648_v19  ;;  %6282 = vmatprep.mubr.msk.bf16.mxu0 %vm6649_vm0, %v6648_v19  ;;  %v4232_v22 = vsel %vm1329_vm2, %v4229_v55, %v4231_v30  ;;  %v6586_v16 = vld [vmem:[#allocation2 + $0x40] sm:$0xff]   ;;  %v6587_v55 = vld [vmem:[#allocation2 + $0x50] sm:$0xff]  }
 0x1f2   : > { %v5928_v35 = vpop.f32.mrf.mxu1  ;;  %v6000_v53 = vpop.f32.mrf.mxu0 }
 0x1f4   : > { %v1953_v0 = vpop.f32.mrf.mxu1  ;;  %v2501_v48 = vpop.f32.mrf.mxu0 }
 0x1f5   : > { %v2052_v51 = vadd.f32 %v1953_v0, %v7354_v57  ;;  %v7521_v36 = vadd.f32 %v2501_v48, %v2050_v38  ;;  %v3710_v57 = vrot.slane %v3708_v60, 1  ;;  %v3718_v0 = vrot.slane %v3716_v13, 1 }
 0x1f6   : > { %v5929_v44 = vpop.f32.mrf.mxu1  ;;  %v6001_v49 = vpop.f32.mrf.mxu0 }
 0x1f7   : > { %v3714_v53 = vor.u32 %v3712_v5, %v3710_v57 }
 0x1f8   : > { %v1958_v17 = vpop.f32.mrf.mxu1  ;;  %v2506_v2 = vpop.f32.mrf.mxu0  ;;  %6211 = vmatmul.mubr.bf16.gmra.mxu1 %v3703_v33  ;;  %6283 = vmatmul.mubr.bf16.gmra.mxu0 %v4230_v10 }
 0x1f9   : > { %v2053_v3 = vadd.f32 %v1958_v17, %v7362_v9  ;;  %v7525_v12 = vadd.f32 %v2506_v2, %v2051_v15  ;;  %6214 = vmatprep.mubr.msk.bf16.mxu1 %vm6649_vm0, %v6648_v19  ;;  %6286 = vmatprep.mubr.msk.bf16.mxu0 %vm6649_vm0, %v6648_v19  ;;  %v3711_v9 = vsel %vm772_vm1, %v3706_v58, %v3710_v57  ;;  %v3724_v17 = vshll.u32 %v6587_v55, 16  ;;  %v6588_v2 = vld [vmem:[#allocation2 + $0x48] sm:$0xff]  }
 0x1fa   : > { %v5932_v41 = vpop.f32.mrf.mxu1  ;;  %v6004_v4 = vpop.f32.mrf.mxu0  ;;  %v3719_v60 = vsel %vm772_vm1, %v3714_v53, %v3718_v0  ;;  %v4235_v8 = vrot.slane %v6588_v2, 1 }
 0x1fb   : > { %v3722_v4 = vor.u32 %v3720_v43, %v3718_v0 }
 0x1fc   : > { %v1961_v38 = vpop.f32.mrf.mxu1  ;;  %v2509_v61 = vpop.f32.mrf.mxu0 }
 0x1fd   : > { %v2054_v14 = vadd.f32 %v1961_v38, %v7373_v24  ;;  %v7532_v29 = vadd.f32 %v2509_v61, %v2052_v51  ;;  %v4233_v24 = vrot.slane %v6586_v16, 1  ;;  %v6589_v38 = vld [vmem:[#allocation2 + $0x58] sm:$0xff]  }
 0x1fe   : > { %v5933_v28 = vpop.f32.mrf.mxu1  ;;  %v6005_v37 = vpop.f32.mrf.mxu0  ;;  %v3732_v16 = vshll.u32 %v6589_v38, 16  ;;  %v3736_v2 = vshrl.u32 %v6589_v38, 16 }
 0x1ff   : > { %v4234_v49 = vsel %vm1329_vm2, %v4231_v30, %v4233_v24 }
 0x200   : > { %v1966_v15 = vpop.f32.mrf.mxu1  ;;  %v2514_v35 = vpop.f32.mrf.mxu0  ;;  %6215 = vmatmul.mubr.bf16.gmra.mxu1 %v3711_v9  ;;  %6287 = vmatmul.mubr.bf16.gmra.mxu0 %v4232_v22  ;;  %v3728_v22 = vshrl.u32 %v6587_v55, 16 }
 0x201   : > { %v2055_v39 = vadd.f32 %v1966_v15, %v7377_v21  ;;  %v7537_v48 = vadd.f32 %v2514_v35, %v2053_v3  ;;  %6218 = vmatprep.mubr.msk.bf16.mxu1 %vm6649_vm0, %v6648_v19  ;;  %6290 = vmatprep.mubr.msk.bf16.mxu0 %vm6649_vm0, %v6648_v19  ;;  %v4236_v15 = vsel %vm1329_vm2, %v4233_v24, %v4235_v8  ;;  %v6590_v35 = vld [vmem:[#allocation2 + $0x50] sm:$0xff]   ;;  %v6591_v24 = vld [vmem:[#allocation2 + $0x60] sm:$0xff]  }
 0x202   : > { %v5936_v33 = vpop.f32.mrf.mxu1  ;;  %v6008_v34 = vpop.f32.mrf.mxu0 }
 0x204   : > { %v1969_v51 = vpop.f32.mrf.mxu1  ;;  %v2517_v10 = vpop.f32.mrf.mxu0 }
 0x205   : > { %v2056_v44 = vadd.f32 %v1969_v51, %v7384_v47  ;;  %v7545_v21 = vadd.f32 %v2517_v10, %v2054_v14  ;;  %v3726_v47 = vrot.slane %v3724_v17, 1  ;;  %v3734_v51 = vrot.slane %v3732_v16, 1 }
 0x206   : > { %v5937_v58 = vpop.f32.mrf.mxu1  ;;  %v6009_v3 = vpop.f32.mrf.mxu0 }
 0x207   : > { %v3730_v34 = vor.u32 %v3728_v22, %v3726_v47 }
 0x208   : > { %v1974_v57 = vpop.f32.mrf.mxu1  ;;  %v2522_v41 = vpop.f32.mrf.mxu0  ;;  %6219 = vmatmul.mubr.bf16.gmra.mxu1 %v3719_v60  ;;  %6291 = vmatmul.mubr.bf16.gmra.mxu0 %v4234_v49 }
 0x209   : > { %v2057_v61 = vadd.f32 %v1974_v57, %v7388_v20  ;;  %v7549_v5 = vadd.f32 %v2522_v41, %v2055_v39  ;;  %6222 = vmatprep.mubr.msk.bf16.mxu1 %vm6649_vm0, %v6648_v19  ;;  %6294 = vmatprep.mubr.msk.bf16.mxu0 %vm6649_vm0, %v6648_v19  ;;  %v3727_v20 = vsel %vm772_vm1, %v3722_v4, %v3726_v47  ;;  %v3740_v57 = vshll.u32 %v6591_v24, 16  ;;  %v6592_v41 = vld [vmem:[#allocation2 + $0x58] sm:$0xff]  }
 0x20a   : > { %v5940_v30 = vpop.f32.mrf.mxu1  ;;  %v6012_v13 = vpop.f32.mrf.mxu0  ;;  %v3735_v17 = vsel %vm772_vm1, %v3730_v34, %v3734_v51  ;;  %v4239_v38 = vrot.slane %v6592_v41, 1 }
 0x20b   : > { %v3738_v13 = vor.u32 %v3736_v2, %v3734_v51 }
 0x20c   : > { %v1977_v14 = vpop.f32.mrf.mxu1  ;;  %v2525_v9 = vpop.f32.mrf.mxu0 }
 0x20d   : > { %v2058_v28 = vadd.f32 %v1977_v14, %v7395_v11  ;;  %v7556_v37 = vadd.f32 %v2525_v9, %v2056_v44  ;;  %v4237_v11 = vrot.slane %v6590_v35, 1  ;;  %v6593_v14 = vld [vmem:[#allocation2 + $0x68] sm:$0xff]  }
 0x20e   : > { %v5941_v53 = vpop.f32.mrf.mxu1  ;;  %v6013_v0 = vpop.f32.mrf.mxu0  ;;  %v3748_v35 = vshll.u32 %v6593_v14, 16  ;;  %v3752_v41 = vshrl.u32 %v6593_v14, 16 }
 0x20f   : > { %v4238_v3 = vsel %vm1329_vm2, %v4235_v8, %v4237_v11 }
 0x210   : > { %v1982_v39 = vpop.f32.mrf.mxu1  ;;  %v2530_v33 = vpop.f32.mrf.mxu0  ;;  %6223 = vmatmul.mubr.bf16.gmra.mxu1 %v3727_v20  ;;  %6295 = vmatmul.mubr.bf16.gmra.mxu0 %v4236_v15  ;;  %v3744_v15 = vshrl.u32 %v6591_v24, 16 }
 0x211   : > { %v2059_v55 = vadd.f32 %v1982_v39, %v7399_v32  ;;  %v7561_v10 = vadd.f32 %v2530_v33, %v2057_v61  ;;  %6226 = vmatprep.mubr.msk.bf16.mxu1 %vm6649_vm0, %v6648_v19  ;;  %6298 = vmatprep.mubr.msk.bf16.mxu0 %vm6649_vm0, %v6648_v19  ;;  %v4240_v39 = vsel %vm1329_vm2, %v4237_v11, %v4239_v38  ;;  %v6594_v33 = vld [vmem:[#allocation2 + $0x60] sm:$0xff]   ;;  %v6595_v11 = vld [vmem:[#allocation2 + $0x70] sm:$0xff]  }
 0x212   : > { %v5944_v60 = vpop.f32.mrf.mxu1  ;;  %v6016_v43 = vpop.f32.mrf.mxu0 }
 0x214   : > { %v1985_v44 = vpop.f32.mrf.mxu1  ;;  %v2533_v49 = vpop.f32.mrf.mxu0 }
 0x215   : > { %v2060_v58 = vadd.f32 %v1985_v44, %v7406_v42  ;;  %v7569_v32 = vadd.f32 %v2533_v49, %v2058_v28  ;;  %v3742_v42 = vrot.slane %v3740_v57, 1  ;;  %v3750_v44 = vrot.slane %v3748_v35, 1 }
 0x216   : > { %v5945_v4 = vpop.f32.mrf.mxu1  ;;  %v6017_v61 = vpop.f32.mrf.mxu0 }
 0x217   : > { %v3746_v43 = vor.u32 %v3744_v15, %v3742_v42 }
 0x218   : > { %v1990_v47 = vpop.f32.mrf.mxu1  ;;  %v2538_v30 = vpop.f32.mrf.mxu0  ;;  %6227 = vmatmul.mubr.bf16.gmra.mxu1 %v3735_v17  ;;  %6299 = vmatmul.mubr.bf16.gmra.mxu0 %v4238_v3 }
 0x219   : > { %v2061_v9 = vadd.f32 %v1990_v47, %v7410_v59  ;;  %v7573_v22 = vadd.f32 %v2538_v30, %v2059_v55  ;;  %6230 = vmatprep.mubr.msk.bf16.mxu1 %vm6649_vm0, %v6648_v19  ;;  %6302 = vmatprep.mubr.msk.bf16.mxu0 %vm6649_vm0, %v6648_v19  ;;  %v3743_v59 = vsel %vm772_vm1, %v3738_v13, %v3742_v42  ;;  %v3756_v47 = vshll.u32 %v6595_v11, 16  ;;  %v6596_v30 = vld [vmem:[#allocation2 + $0x68] sm:$0xff]  }
 0x21a   : > { %v5948_v8 = vpop.f32.mrf.mxu1  ;;  %v6020_v16 = vpop.f32.mrf.mxu0  ;;  %v3751_v57 = vsel %vm772_vm1, %v3746_v43, %v3750_v44 }
 0x21b   : > { %v3754_v16 = vor.u32 %v3752_v41, %v3750_v44 }
 0x21c   : > { %v1993_v28 = vpop.f32.mrf.mxu1  ;;  %v2541_v20 = vpop.f32.mrf.mxu0 }
 0x21d   : > { %v2062_v53 = vadd.f32 %v1993_v28, %v7417_v6  ;;  %v7580_v0 = vadd.f32 %v2541_v20, %v2060_v58  ;;  %v4241_v6 = vrot.slane %v6594_v33, 1  ;;  %v6597_v28 = vld [vmem:[#allocation2 + $0x78] sm:$0xff]  }
 0x21e   : > { %v5949_v34 = vpop.f32.mrf.mxu1  ;;  %v6021_v51 = vpop.f32.mrf.mxu0  ;;  %v3764_v33 = vshll.u32 %v6597_v28, 16 }
 0x21f   : > { %v4242_v61 = vsel %vm1329_vm2, %v4239_v38, %v4241_v6  ;;  %v4243_v38 = vrot.slane %v6596_v30, 1  ;;  %v3768_v30 = vshrl.u32 %v6597_v28, 16 }
 0x220   : > { %v1998_v55 = vpop.f32.mrf.mxu1  ;;  %v2546_v60 = vpop.f32.mrf.mxu0  ;;  %6231 = vmatmul.mubr.bf16.gmra.mxu1 %v3743_v59  ;;  %6303 = vmatmul.mubr.bf16.gmra.mxu0 %v4240_v39  ;;  %v3760_v39 = vshrl.u32 %v6595_v11, 16 }
 0x221   : > { %v2063_v24 = vadd.f32 %v1998_v55, %v7421_v23  ;;  %v7585_v49 = vadd.f32 %v2546_v60, %v2061_v9  ;;  %6234 = vmatprep.mubr.msk.bf16.mxu1 %vm6649_vm0, %v6648_v19  ;;  %6306 = vmatprep.mubr.msk.bf16.mxu0 %vm6649_vm0, %v6648_v19  ;;  %v4244_v55 = vsel %vm1329_vm2, %v4241_v6, %v4243_v38  ;;  %v6598_v60 = vld [vmem:[#allocation2 + $0x70] sm:$0xff]   ;;  %v6599_v6 = vld [vmem:[#allocation2 + $0x80] sm:$0xff]  }
 0x222   : > { %v5952_v17 = vpop.f32.mrf.mxu1  ;;  %v6024_v2 = vpop.f32.mrf.mxu0 }
 0x224   : > { %v2001_v58 = vpop.f32.mrf.mxu1  ;;  %v2549_v3 = vpop.f32.mrf.mxu0 }
 0x225   : > { %v2064_v4 = vadd.f32 %v2001_v58, %v7429_v7  ;;  %v7593_v23 = vadd.f32 %v2549_v3, %v2062_v53  ;;  %v3758_v7 = vrot.slane %v3756_v47, 1  ;;  %v3766_v58 = vrot.slane %v3764_v33, 1 }
 0x226   : > { %v5953_v13 = vpop.f32.mrf.mxu1  ;;  %v6025_v9 = vpop.f32.mrf.mxu0 }
 0x227   : > { %v3762_v2 = vor.u32 %v3760_v39, %v3758_v7 }
 0x228   : > { %v2554_v42 = vpop.f32.mrf.mxu0  ;;  %v2905_v8 = vpop.f32.mrf.mxu1  ;;  %6235 = vmatmul.mubr.bf16.gmra.mxu1 %v3751_v57  ;;  %6307 = vmatmul.mubr.bf16.gmra.mxu0 %v4242_v61 }
 0x229   : > { %v7596_v20 = vadd.f32 %v2554_v42, %v2063_v24  ;;  %v3054_v14 = vadd.f32 %v2905_v8, %v7434_v45  ;;  %6238 = vmatprep.mubr.msk.bf16.mxu1 %vm6649_vm0, %v6648_v19  ;;  %6310 = vmatprep.mubr.msk.bf16.mxu0 %vm6649_vm0, %v6648_v19  ;;  %v3759_v45 = vsel %vm772_vm1, %v3754_v16, %v3758_v7  ;;  %v3772_v42 = vshll.u32 %v6599_v6, 16  ;;  %v6600_v8 = vld [vmem:[#allocation2 + $0x78] sm:$0xff]  }
 0x22a   : > { %v6028_v15 = vpop.f32.mrf.mxu0  ;;  %v6048_v35 = vpop.f32.mrf.mxu1  ;;  %v3767_v47 = vsel %vm772_vm1, %v3762_v2, %v3766_v58  ;;  %v4247_v28 = vrot.slane %v6600_v8, 1 }
 0x22b   : > { %v3770_v35 = vor.u32 %v3768_v30, %v3766_v58 }
 0x22c   : > { %v2557_v53 = vpop.f32.mrf.mxu0  ;;  %v2908_v59 = vpop.f32.mrf.mxu1 }
 0x22d   : > { %v7603_v34 = vadd.f32 %v2557_v53, %v2064_v4  ;;  %v3055_v51 = vadd.f32 %v2908_v59, %v7441_v1  ;;  %v4245_v1 = vrot.slane %v6598_v60, 1  ;;  %v6601_v53 = vld [vmem:[#allocation2 + $0x88] sm:$0xff]  }
 0x22e   : > { %v6029_v43 = vpop.f32.mrf.mxu0  ;;  %v6049_v44 = vpop.f32.mrf.mxu1  ;;  %v3780_v60 = vshll.u32 %v6601_v53, 16  ;;  %v3784_v8 = vshrl.u32 %v6601_v53, 16 }
 0x22f   : > { %v4246_v9 = vsel %vm1329_vm2, %v4243_v38, %v4245_v1 }
 0x230   : > { %v2913_v24 = vpop.f32.mrf.mxu1  ;;  %v3333_v17 = vpop.f32.mrf.mxu0  ;;  %6239 = vmatmul.mubr.bf16.gmra.mxu1 %v3759_v45  ;;  %6311 = vmatmul.mubr.bf16.gmra.mxu0 %v4244_v55  ;;  %v3776_v55 = vshrl.u32 %v6599_v6, 16 }
 0x231   : > { %v3056_v11 = vadd.f32 %v2913_v24, %v7445_v46  ;;  %v7609_v3 = vadd.f32 %v3333_v17, %v3054_v14  ;;  %6242 = vmatprep.mubr.msk.bf16.mxu1 %vm6649_vm0, %v6648_v19  ;;  %6314 = vmatprep.mubr.msk.bf16.mxu0 %vm6649_vm0, %v6648_v19  ;;  %v4248_v24 = vsel %vm1329_vm2, %v4245_v1, %v4247_v28  ;;  %v6602_v17 = vld [vmem:[#allocation2 + $0x80] sm:$0xff]   ;;  %v6603_v1 = vld [vmem:[#allocation2 + $0x90] ss:$0 sps:$4 sm:$0x11]  }
 0x232   : > { %v6052_v57 = vpop.f32.mrf.mxu1  ;;  %v6124_v41 = vpop.f32.mrf.mxu0 }
 0x234   : > { %v2916_v4 = vpop.f32.mrf.mxu1  ;;  %v3336_v61 = vpop.f32.mrf.mxu0 }
 0x235   : > { %v3057_v13 = vadd.f32 %v2916_v4, %v7452_v31  ;;  %v7617_v46 = vadd.f32 %v3336_v61, %v3055_v51  ;;  %v3774_v31 = vrot.slane %v3772_v42, 1  ;;  %v3782_v4 = vrot.slane %v3780_v60, 1 }
 0x236   : > { %v6053_v16 = vpop.f32.mrf.mxu1  ;;  %v6125_v14 = vpop.f32.mrf.mxu0 }
 0x237   : > { %v3778_v41 = vor.u32 %v3776_v55, %v3774_v31 }
 0x238   : > { %v2921_v7 = vpop.f32.mrf.mxu1  ;;  %v3341_v15 = vpop.f32.mrf.mxu0  ;;  %6243 = vmatmul.mubr.bf16.gmra.mxu1 %v3767_v47  ;;  %6315 = vmatmul.mubr.bf16.gmra.mxu0 %v4246_v9 }
 0x239   : > { %v3058_v59 = vadd.f32 %v2921_v7, %v7456_v56  ;;  %v7621_v39 = vadd.f32 %v3341_v15, %v3056_v11  ;;  %6246 = vmatprep.mubr.msk.bf16.mxu1 %vm6649_vm0, %v6648_v19  ;;  %6318 = vmatprep.mubr.msk.bf16.mxu0 %vm6649_vm0, %v6648_v19  ;;  %v3775_v56 = vsel %vm772_vm1, %v3770_v35, %v3774_v31  ;;  %v3788_v7 = vshll.u32 %v6603_v1, 16  ;;  %v6604_v15 = vld [vmem:[#allocation2 + $0x88] sm:$0xff]  }
 0x23a   : > { %v6056_v38 = vpop.f32.mrf.mxu1  ;;  %v6128_v33 = vpop.f32.mrf.mxu0  ;;  %v3783_v42 = vsel %vm772_vm1, %v3778_v41, %v3782_v4  ;;  %v4251_v53 = vrot.slane %v6604_v15, 1 }
 0x23b   : > { %v3786_v33 = vor.u32 %v3784_v8, %v3782_v4 }
 0x23c   : > { %v2924_v51 = vpop.f32.mrf.mxu1  ;;  %v3344_v45 = vpop.f32.mrf.mxu0 }
 0x23d   : > { %v3059_v43 = vadd.f32 %v2924_v51, %v7463_v54  ;;  %v7628_v44 = vadd.f32 %v3344_v45, %v3057_v13  ;;  %v4249_v54 = vrot.slane %v6602_v17, 1 }
 0x23e   : > { %v6057_v2 = vpop.f32.mrf.mxu1  ;;  %v6129_v58 = vpop.f32.mrf.mxu0 }
 0x23f   : > { %v4250_v14 = vsel %vm1329_vm2, %v4247_v28, %v4249_v54  ;;  %v4252_v17 = vsel %vm1329_vm2, %v4249_v54, %v4251_v53  ;;  %v6605_v2 = vld [vmem:[#allocation2 + $0x90] ss:$0 sps:$4 sm:$0x11]  }
 0x240   : > { %v2929_v11 = vpop.f32.mrf.mxu1  ;;  %v3349_v57 = vpop.f32.mrf.mxu0  ;;  %6247 = vmatmul.mubr.bf16.gmra.mxu1 %v3775_v56  ;;  %6319 = vmatmul.mubr.bf16.gmra.mxu0 %v4248_v24 }
 0x241   : > { %v3060_v6 = vadd.f32 %v2929_v11, %v7467_v18  ;;  %v7633_v61 = vadd.f32 %v3349_v57, %v3058_v59  ;;  %6250 = vmatprep.mubr.msk.bf16.mxu1 %vm6649_vm0, %v6648_v19  ;;  %6322 = vmatprep.mubr.msk.bf16.mxu0 %vm6649_vm0, %v6648_v19 }
 0x242   : > { %v6060_v47 = vpop.f32.mrf.mxu1  ;;  %v6132_v30 = vpop.f32.mrf.mxu0 }
 0x244   : > { %v2932_v13 = vpop.f32.mrf.mxu1  ;;  %v3352_v9 = vpop.f32.mrf.mxu0 }
 0x245   : > { %v3061_v16 = vadd.f32 %v2932_v13, %v7475_v25  ;;  %v7641_v18 = vadd.f32 %v3352_v9, %v3059_v43  ;;  %v3790_v25 = vrot.slane %v3788_v7, 1 }
 0x246   : > { %v6061_v35 = vpop.f32.mrf.mxu1  ;;  %v6133_v59 = vpop.f32.mrf.mxu0 }
 0x248   : > { %v2937_v31 = vpop.f32.mrf.mxu1  ;;  %v3357_v38 = vpop.f32.mrf.mxu0  ;;  %6251 = vmatmul.mubr.bf16.gmra.mxu1 %v3783_v42  ;;  %6323 = vmatmul.mubr.bf16.gmra.mxu0 %v4250_v14 }
 0x249   : > { %v3062_v51 = vadd.f32 %v2937_v31, %v7478_v63  ;;  %v7645_v45 = vadd.f32 %v3357_v38, %v3060_v6  ;;  %6254 = vmatprep.mubr.msk.bf16.mxu1 %vm6649_vm0, %v6648_v19  ;;  %6326 = vmatprep.mubr.msk.bf16.mxu0 %vm6649_vm0, %v6648_v19  ;;  %v3791_v63 = vsel %vm772_vm1, %v3786_v33, %v3790_v25 }
 0x24a   : > { %v6064_v28 = vpop.f32.mrf.mxu1  ;;  %v6136_v55 = vpop.f32.mrf.mxu0 }
 0x24c   : > { %v2940_v60 = vpop.f32.mrf.mxu1  ;;  %v3360_v43 = vpop.f32.mrf.mxu0 }
 0x24d   : > { %v3063_v56 = vadd.f32 %v2940_v60, %v7485_v27  ;;  %v7652_v24 = vadd.f32 %v3360_v43, %v3061_v16  ;;  %v4253_v27 = vrot.slane %v6605_v2, 1 }
 0x24e   : > { %v6065_v58 = vpop.f32.mrf.mxu1  ;;  %v6137_v11 = vpop.f32.mrf.mxu0 }
 0x24f   : > { %v4254_v42 = vsel %vm1329_vm2, %v4251_v53, %v4253_v27 }
 0x250   : > { %v2945_v57 = vpop.f32.mrf.mxu1  ;;  %v3365_v41 = vpop.f32.mrf.mxu0  ;;  %6255 = vmatmul.mubr.bf16.gmra.mxu1 %v3791_v63  ;;  %6327 = vmatmul.mubr.bf16.gmra.mxu0 %v4252_v17 }
 0x251   : > { %v3064_v4 = vadd.f32 %v2945_v57, %v7489_v62  ;;  %v7657_v6 = vadd.f32 %v3365_v41, %v3062_v51  ;;  %6330 = vmatprep.mubr.msk.bf16.mxu0 %vm6649_vm0, %v6648_v19 }
 0x252   : > { %v6068_v1 = vpop.f32.mrf.mxu1  ;;  %v6140_v47 = vpop.f32.mrf.mxu0 }
 0x254   : > { %v2948_v30 = vpop.f32.mrf.mxu1  ;;  %v3368_v13 = vpop.f32.mrf.mxu0 }
 0x255   : > { %v3065_v54 = vadd.f32 %v2948_v30, %v7497_v40  ;;  %v7662_v9 = vadd.f32 %v3368_v13, %v3063_v56 }
 0x256   : > { %v6069_v8 = vpop.f32.mrf.mxu1  ;;  %v6141_v16 = vpop.f32.mrf.mxu0 }
 0x258   : > { %v2953_v14 = vpop.f32.mrf.mxu1  ;;  %v3373_v62 = vpop.f32.mrf.mxu0  ;;  %6331 = vmatmul.mubr.bf16.gmra.mxu0 %v4254_v42 }
 0x259   : > { %v3066_v7 = vadd.f32 %v2953_v14, %v7501_v50  ;;  %v7666_v15 = vadd.f32 %v3373_v62, %v3064_v4 }
 0x25a   : > { %v6072_v19 = vpop.f32.mrf.mxu1  ;;  %v6144_v35 = vpop.f32.mrf.mxu0 }
 0x25c   : > { %v2956_v59 = vpop.f32.mrf.mxu1  ;;  %v3376_v31 = vpop.f32.mrf.mxu0 }
 0x25d   : > { %v3067_v38 = vadd.f32 %v2956_v59, %v7508_v52  ;;  %v7669_v40 = vadd.f32 %v3376_v31, %v3065_v54 }
 0x25e   : > { %v6073_v33 = vpop.f32.mrf.mxu1  ;;  %v6145_v51 = vpop.f32.mrf.mxu0 }
 0x260   : > { %v2961_v25 = vpop.f32.mrf.mxu1  ;;  %v3381_v53 = vpop.f32.mrf.mxu0 }
 0x261   : > { %v3068_v28 = vadd.f32 %v2961_v25, %v7513_v26  ;;  %v7672_v55 = vadd.f32 %v3381_v53, %v3066_v7 }
 0x262   : > { %v6076_v60 = vpop.f32.mrf.mxu1  ;;  %v6148_v50 = vpop.f32.mrf.mxu0 }
 0x264   : > { %v2964_v43 = vpop.f32.mrf.mxu1  ;;  %v3384_v56 = vpop.f32.mrf.mxu0 }
 0x265   : > { %v3069_v63 = vadd.f32 %v2964_v43, %v7521_v36  ;;  %v7675_v17 = vadd.f32 %v3384_v56, %v3067_v38 }
 0x266   : > { %v6077_v2 = vpop.f32.mrf.mxu1  ;;  %v6149_v52 = vpop.f32.mrf.mxu0 }
 0x268   : > { %v2969_v58 = vpop.f32.mrf.mxu1  ;;  %v3389_v11 = vpop.f32.mrf.mxu0 }
 0x269   : > { %v3070_v57 = vadd.f32 %v2969_v58, %v7525_v12  ;;  %v7678_v41 = vadd.f32 %v3389_v11, %v3068_v28 }
 0x26a   : > { %v6080_v4 = vpop.f32.mrf.mxu1  ;;  %v6152_v26 = vpop.f32.mrf.mxu0 }
 0x26c   : > { %v2972_v27 = vpop.f32.mrf.mxu1  ;;  %v3392_v1 = vpop.f32.mrf.mxu0 }
 0x26d   : > { %v3071_v47 = vadd.f32 %v2972_v27, %v7532_v29  ;;  %v7681_v30 = vadd.f32 %v3392_v1, %v3069_v63 }
 0x26e   : > { %v6081_v13 = vpop.f32.mrf.mxu1  ;;  %v6153_v36 = vpop.f32.mrf.mxu0 }
 0x270   : > { %v2977_v54 = vpop.f32.mrf.mxu1  ;;  %v3397_v42 = vpop.f32.mrf.mxu0 }
 0x271   : > { %v3072_v8 = vadd.f32 %v2977_v54, %v7537_v48  ;;  %v7684_v16 = vadd.f32 %v3397_v42, %v3070_v57 }
 0x272   : > { %v6084_v14 = vpop.f32.mrf.mxu1  ;;  %v6156_v12 = vpop.f32.mrf.mxu0 }
 0x274   : > { %v2980_v62 = vpop.f32.mrf.mxu1  ;;  %v3400_v7 = vpop.f32.mrf.mxu0 }
 0x275   : > { %v3073_v19 = vadd.f32 %v2980_v62, %v7545_v21  ;;  %v7687_v35 = vadd.f32 %v3400_v7, %v3071_v47 }
 0x276   : > { %v6085_v59 = vpop.f32.mrf.mxu1  ;;  %v6157_v29 = vpop.f32.mrf.mxu0 }
 0x278   : > { %v2985_v31 = vpop.f32.mrf.mxu1  ;;  %v3405_v38 = vpop.f32.mrf.mxu0 }
 0x279   : > { %v3074_v33 = vadd.f32 %v2985_v31, %v7549_v5  ;;  %v7690_v51 = vadd.f32 %v3405_v38, %v3072_v8 }
 0x27a   : > { %v6088_v25 = vpop.f32.mrf.mxu1  ;;  %v6160_v48 = vpop.f32.mrf.mxu0 }
 0x27c   : > { %v2988_v53 = vpop.f32.mrf.mxu1  ;;  %v3408_v28 = vpop.f32.mrf.mxu0 }
 0x27d   : > { %v3075_v60 = vadd.f32 %v2988_v53, %v7556_v37  ;;  %v7693_v50 = vadd.f32 %v3408_v28, %v3073_v19 }
 0x27e   : > { %v6089_v43 = vpop.f32.mrf.mxu1  ;;  %v6161_v21 = vpop.f32.mrf.mxu0 }
 0x280   : > { %v2993_v56 = vpop.f32.mrf.mxu1  ;;  %v3413_v63 = vpop.f32.mrf.mxu0 }
 0x281   : > { %v3076_v2 = vadd.f32 %v2993_v56, %v7561_v10  ;;  %v7696_v52 = vadd.f32 %v3413_v63, %v3074_v33 }
 0x282   : > { %v6092_v58 = vpop.f32.mrf.mxu1  ;;  %v6164_v5 = vpop.f32.mrf.mxu0 }
 0x284   : > { %v2996_v11 = vpop.f32.mrf.mxu1  ;;  %v3416_v57 = vpop.f32.mrf.mxu0 }
 0x285   : > { %v3077_v4 = vadd.f32 %v2996_v11, %v7569_v32  ;;  %v7699_v26 = vadd.f32 %v3416_v57, %v3075_v60 }
 0x286   : > { %v6093_v27 = vpop.f32.mrf.mxu1  ;;  %v6165_v37 = vpop.f32.mrf.mxu0 }
 0x288   : > { %v3001_v1 = vpop.f32.mrf.mxu1  ;;  %v3421_v47 = vpop.f32.mrf.mxu0 }
 0x289   : > { %v3078_v13 = vadd.f32 %v3001_v1, %v7573_v22  ;;  %v7702_v36 = vadd.f32 %v3421_v47, %v3076_v2 }
 0x28a   : > { %v6096_v54 = vpop.f32.mrf.mxu1  ;;  %v6168_v10 = vpop.f32.mrf.mxu0 }
 0x28c   : > { %v3004_v42 = vpop.f32.mrf.mxu1  ;;  %v3424_v8 = vpop.f32.mrf.mxu0 }
 0x28d   : > { %v3079_v14 = vadd.f32 %v3004_v42, %v7580_v0  ;;  %v7705_v12 = vadd.f32 %v3424_v8, %v3077_v4 }
 0x28e   : > { %v6097_v62 = vpop.f32.mrf.mxu1  ;;  %v6169_v32 = vpop.f32.mrf.mxu0 }
 0x290   : > { %v3009_v7 = vpop.f32.mrf.mxu1  ;;  %v3429_v19 = vpop.f32.mrf.mxu0 }
 0x291   : > { %v3080_v59 = vadd.f32 %v3009_v7, %v7585_v49  ;;  %v7708_v29 = vadd.f32 %v3429_v19, %v3078_v13 }
 0x292   : > { %v6100_v31 = vpop.f32.mrf.mxu1  ;;  %v6172_v22 = vpop.f32.mrf.mxu0 }
 0x293   : > { %v7734_v31 = vld [vmem:[%s7856_s3] ss:$0 sm:$0xff] }
 0x294   : > { %v3012_v38 = vpop.f32.mrf.mxu1  ;;  %v3432_v33 = vpop.f32.mrf.mxu0 }
 0x295   : > { %v3081_v25 = vadd.f32 %v3012_v38, %v7593_v23  ;;  %v7711_v48 = vadd.f32 %v3432_v33, %v3079_v14  ;;  %v7727_v14 = vld [vmem:[%s7855_s2] ss:$0 sm:$0xff] }
 0x296   : > { %v6101_v53 = vpop.f32.mrf.mxu1  ;;  %v6173_v0 = vpop.f32.mrf.mxu0 }
 0x298   : > { %v3017_v28 = vpop.f32.mrf.mxu1  ;;  %v3437_v60 = vpop.f32.mrf.mxu0 }
 0x299   : > { %v3082_v43 = vadd.f32 %v3017_v28, %v7596_v20  ;;  %v7714_v21 = vadd.f32 %v3437_v60, %v3080_v59 }
 0x29a   : > { %v6104_v56 = vpop.f32.mrf.mxu1  ;;  %v6176_v49 = vpop.f32.mrf.mxu0 }
 0x29c   : > { %v3020_v63 = vpop.f32.mrf.mxu1  ;;  %v3440_v2 = vpop.f32.mrf.mxu0 }
 0x29d   : > { %v3083_v58 = vadd.f32 %v3020_v63, %v7603_v34  ;;  %v7717_v5 = vadd.f32 %v3440_v2, %v3081_v25 }
 0x29e   : > { %v6105_v11 = vpop.f32.mrf.mxu1  ;;  %v6177_v23 = vpop.f32.mrf.mxu0 }
 0x2a0   : > { %v3445_v57 = vpop.f32.mrf.mxu0  ;;  %v3889_v4 = vpop.f32.mrf.mxu1 }
 0x2a1   : > { %v7719_v27 = vadd.f32 %v3445_v57, %v3082_v43  ;;  %v4038_v42 = vadd.f32 %v3889_v4, %v7609_v3 }
 0x2a2   : > { %v6180_v37 = vpop.f32.mrf.mxu0  ;;  %v6200_v1 = vpop.f32.mrf.mxu1 }
 0x2a4   : > { %v3448_v47 = vpop.f32.mrf.mxu0  ;;  %v3892_v20 = vpop.f32.mrf.mxu1 }
 0x2a5   : > { %v7721_v13 = vadd.f32 %v3448_v47, %v3083_v58  ;;  %v4039_v19 = vadd.f32 %v3892_v20, %v7617_v46 }
 0x2a6   : > { %v6181_v54 = vpop.f32.mrf.mxu0  ;;  %v6201_v10 = vpop.f32.mrf.mxu1 }
 0x2a8   : > { %v3897_v8 = vpop.f32.mrf.mxu1  ;;  %v4352_v34 = vpop.f32.mrf.mxu0 }
 0x2a9   : > { %v4501_v62 = vadd.f32 %v4352_v34, %v4038_v42  ;;  %v4040_v53 = vadd.f32 %v3897_v8, %v7621_v39 }
 0x2aa   : > { %v6204_v32 = vpop.f32.mrf.mxu1  ;;  %v6276_v7 = vpop.f32.mrf.mxu0 }
 0x2ab   : > { %v4598_v59 = vmul.f32 %v7727_v14, %v4501_v62 }
 0x2ac   : > { %v3900_v3 = vpop.f32.mrf.mxu1  ;;  %v4355_v22 = vpop.f32.mrf.mxu0 }
 0x2ad   : > { %v4502_v38 = vadd.f32 %v4355_v22, %v4039_v19  ;;  %v4635_v0 = vadd.f32 %v7734_v31, %v4598_v59  ;;  %v4041_v58 = vadd.f32 %v3900_v3, %v7628_v44 }
 0x2ae   : > { %v6205_v33 = vpop.f32.mrf.mxu1  ;;  %v6277_v25 = vpop.f32.mrf.mxu0 }
 0x2af   : > { %v4599_v28 = vmul.f32 %v7727_v14, %v4502_v38  ;;  %v4665_v2 = vmax.f32 %v4635_v0, 0.0 }
 0x2b0   : > { %v3905_v60 = vpop.f32.mrf.mxu1  ;;  %v4360_v46 = vpop.f32.mrf.mxu0 }
 0x2b1   : > { %v4636_v43 = vadd.f32 %v7734_v31, %v4599_v28  ;;  %v4503_v56 = vadd.f32 %v4360_v46, %v4040_v53  ;;  %v4042_v20 = vadd.f32 %v3905_v60, %v7633_v61 }
 0x2b2   : > { %v6208_v49 = vpop.f32.mrf.mxu1  ;;  %v6280_v63 = vpop.f32.mrf.mxu0 }
 0x2b3   : > { %v4666_v11 = vmax.f32 %v4636_v43, 0.0  ;;  %v4600_v23 = vmul.f32 %v7727_v14, %v4503_v56 }
 0x2b4   : > { %v3908_v57 = vpop.f32.mrf.mxu1  ;;  %v4363_v39 = vpop.f32.mrf.mxu0 }
 0x2b5   : > { %v5357_v4 = vpack.c.bf16 %v4666_v11, %v4665_v2  ;;  %v4504_v37 = vadd.f32 %v4363_v39, %v4041_v58  ;;  %v4637_v54 = vadd.f32 %v7734_v31, %v4600_v23  ;;  %v4043_v19 = vadd.f32 %v3908_v57, %v7641_v18 }
 0x2b6   : > { %v6209_v1 = vpop.f32.mrf.mxu1  ;;  %v6281_v47 = vpop.f32.mrf.mxu0 }
 0x2b7   : > { %5358 = vst [vmem:[%s6708_s7] sm:$0xff] %v5357_v4   ;;  %v4601_v10 = vmul.f32 %v7727_v14, %v4504_v37  ;;  %v4667_v7 = vmax.f32 %v4637_v54, 0.0 }
 0x2b8   : > { %v3913_v42 = vpop.f32.mrf.mxu1  ;;  %v4368_v8 = vpop.f32.mrf.mxu0 }
 0x2b9   : > { %v4638_v44 = vadd.f32 %v7734_v31, %v4601_v10  ;;  %v4505_v34 = vadd.f32 %v4368_v8, %v4042_v20  ;;  %v4044_v0 = vadd.f32 %v3913_v42, %v7645_v45 }
 0x2ba   : > { %v6212_v62 = vpop.f32.mrf.mxu1  ;;  %v6284_v32 = vpop.f32.mrf.mxu0 }
 0x2bb   : > { %v4668_v59 = vmax.f32 %v4638_v44, 0.0  ;;  %v4602_v3 = vmul.f32 %v7727_v14, %v4505_v34 }
 0x2bc   : > { %v3916_v22 = vpop.f32.mrf.mxu1  ;;  %v4371_v61 = vpop.f32.mrf.mxu0 }
 0x2bd   : > { %v5362_v38 = vpack.c.bf16 %v4668_v59, %v4667_v7  ;;  %v4506_v33 = vadd.f32 %v4371_v61, %v4043_v19  ;;  %v4639_v28 = vadd.f32 %v7734_v31, %v4602_v3  ;;  %v4045_v58 = vadd.f32 %v3916_v22, %v7652_v24 }
 0x2be   : > { %v6213_v25 = vpop.f32.mrf.mxu1  ;;  %v6285_v53 = vpop.f32.mrf.mxu0 }
 0x2bf   : > { %5429 = vst [vmem:[%s6708_s7 + $0x8] sm:$0xff] %v5362_v38   ;;  %v4603_v60 = vmul.f32 %v7727_v14, %v4506_v33  ;;  %v4669_v2 = vmax.f32 %v4639_v28, 0.0 }
 0x2c0   : > { %v3921_v46 = vpop.f32.mrf.mxu1  ;;  %v4376_v43 = vpop.f32.mrf.mxu0 }
 0x2c1   : > { %v4640_v18 = vadd.f32 %v7734_v31, %v4603_v60  ;;  %v4507_v56 = vadd.f32 %v4376_v43, %v4044_v0  ;;  %v4046_v47 = vadd.f32 %v3921_v46, %v7657_v6 }
 0x2c2   : > { %v6216_v49 = vpop.f32.mrf.mxu1  ;;  %v6288_v63 = vpop.f32.mrf.mxu0 }
 0x2c3   : > { %v4670_v11 = vmax.f32 %v4640_v18, 0.0  ;;  %v4604_v23 = vmul.f32 %v7727_v14, %v4507_v56 }
 0x2c4   : > { %v3924_v57 = vpop.f32.mrf.mxu1  ;;  %v4379_v45 = vpop.f32.mrf.mxu0 }
 0x2c5   : > { %v5367_v39 = vpack.c.bf16 %v4670_v11, %v4669_v2  ;;  %v4508_v4 = vadd.f32 %v4379_v45, %v4045_v58  ;;  %v4641_v20 = vadd.f32 %v7734_v31, %v4604_v23  ;;  %v4047_v32 = vadd.f32 %v3924_v57, %v7662_v9 }
 0x2c6   : > { %v6217_v37 = vpop.f32.mrf.mxu1  ;;  %v6289_v1 = vpop.f32.mrf.mxu0 }
 0x2c7   : > { %5430 = vst [vmem:[%s6708_s7 + $0x10] sm:$0xff] %v5367_v39   ;;  %v4605_v54 = vmul.f32 %v7727_v14, %v4508_v4  ;;  %v4671_v62 = vmax.f32 %v4641_v20, 0.0 }
 0x2c8   : > { %v3929_v10 = vpop.f32.mrf.mxu1  ;;  %v4384_v42 = vpop.f32.mrf.mxu0 }
 0x2c9   : > { %v4642_v24 = vadd.f32 %v7734_v31, %v4605_v54  ;;  %v4509_v8 = vadd.f32 %v4384_v42, %v4046_v47  ;;  %v4048_v33 = vadd.f32 %v3929_v10, %v7666_v15 }
 0x2ca   : > { %v6220_v44 = vpop.f32.mrf.mxu1  ;;  %v6292_v34 = vpop.f32.mrf.mxu0 }
 0x2cb   : > { %v4672_v7 = vmax.f32 %v4642_v24, 0.0  ;;  %v4606_v19 = vmul.f32 %v7727_v14, %v4509_v8 }
 0x2cc   : > { %v3932_v59 = vpop.f32.mrf.mxu1  ;;  %v4387_v6 = vpop.f32.mrf.mxu0 }
 0x2cd   : > { %v5372_v3 = vpack.c.bf16 %v4672_v7, %v4671_v62  ;;  %v4510_v22 = vadd.f32 %v4387_v6, %v4047_v32  ;;  %v4643_v25 = vadd.f32 %v7734_v31, %v4606_v19  ;;  %v4049_v56 = vadd.f32 %v3932_v59, %v7669_v40 }
 0x2ce   : > { %v6221_v61 = vpop.f32.mrf.mxu1  ;;  %v6293_v38 = vpop.f32.mrf.mxu0 }
 0x2cf   : > { %5431 = vst [vmem:[%s6708_s7 + $0x18] sm:$0xff] %v5372_v3   ;;  %v4607_v53 = vmul.f32 %v7727_v14, %v4510_v22  ;;  %v4673_v18 = vmax.f32 %v4643_v25, 0.0 }
 0x2d0   : > { %v3937_v0 = vpop.f32.mrf.mxu1  ;;  %v4392_v28 = vpop.f32.mrf.mxu0 }
 0x2d1   : > { %v4644_v9 = vadd.f32 %v7734_v31, %v4607_v53  ;;  %v4511_v60 = vadd.f32 %v4392_v28, %v4048_v33  ;;  %v4050_v45 = vadd.f32 %v3937_v0, %v7672_v55 }
 0x2d2   : > { %v6224_v46 = vpop.f32.mrf.mxu1  ;;  %v6296_v43 = vpop.f32.mrf.mxu0 }
 0x2d3   : > { %v4674_v49 = vmax.f32 %v4644_v9, 0.0  ;;  %v4608_v63 = vmul.f32 %v7727_v14, %v4511_v60 }
 0x2d4   : > { %v3940_v2 = vpop.f32.mrf.mxu1  ;;  %v4395_v15 = vpop.f32.mrf.mxu0 }
 0x2d5   : > { %v5377_v58 = vpack.c.bf16 %v4674_v49, %v4673_v18  ;;  %v4512_v11 = vadd.f32 %v4395_v15, %v4049_v56  ;;  %v4645_v39 = vadd.f32 %v7734_v31, %v4608_v63  ;;  %v4051_v42 = vadd.f32 %v3940_v2, %v7675_v17 }
 0x2d6   : > { %v6225_v23 = vpop.f32.mrf.mxu1  ;;  %v6297_v57 = vpop.f32.mrf.mxu0 }
 0x2d7   : > { %5432 = vst [vmem:[%s6708_s7 + $0x20] sm:$0xff] %v5377_v58   ;;  %v4609_v4 = vmul.f32 %v7727_v14, %v4512_v11  ;;  %v4675_v10 = vmax.f32 %v4645_v39, 0.0 }
 0x2d8   : > { %v3945_v37 = vpop.f32.mrf.mxu1  ;;  %v4400_v1 = vpop.f32.mrf.mxu0 }
 0x2d9   : > { %v4646_v40 = vadd.f32 %v7734_v31, %v4609_v4  ;;  %v4513_v47 = vadd.f32 %v4400_v1, %v4050_v45  ;;  %v4052_v19 = vadd.f32 %v3945_v37, %v7678_v41 }
 0x2da   : > { %v6228_v20 = vpop.f32.mrf.mxu1  ;;  %v6300_v54 = vpop.f32.mrf.mxu0 }
 0x2db   : > { %v4676_v24 = vmax.f32 %v4646_v40, 0.0  ;;  %v4610_v8 = vmul.f32 %v7727_v14, %v4513_v47 }
 0x2dc   : > { %v3948_v44 = vpop.f32.mrf.mxu1  ;;  %v4403_v55 = vpop.f32.mrf.mxu0 }
 0x2dd   : > { %v5382_v34 = vpack.c.bf16 %v4676_v24, %v4675_v10  ;;  %v4514_v62 = vadd.f32 %v4403_v55, %v4051_v42  ;;  %v4647_v59 = vadd.f32 %v7734_v31, %v4610_v8  ;;  %v4053_v53 = vadd.f32 %v3948_v44, %v7681_v30 }
 0x2de   : > { %v6229_v32 = vpop.f32.mrf.mxu1  ;;  %v6301_v7 = vpop.f32.mrf.mxu0 }
 0x2df   : > { %5433 = vst [vmem:[%s6708_s7 + $0x28] sm:$0xff] %v5382_v34   ;;  %v4611_v6 = vmul.f32 %v7727_v14, %v4514_v62  ;;  %v4677_v25 = vmax.f32 %v4647_v59, 0.0 }
 0x2e0   : > { %v3953_v3 = vpop.f32.mrf.mxu1  ;;  %v4408_v22 = vpop.f32.mrf.mxu0 }
 0x2e1   : > { %v4648_v17 = vadd.f32 %v7734_v31, %v4611_v6  ;;  %v4515_v61 = vadd.f32 %v4408_v22, %v4052_v19  ;;  %v4054_v56 = vadd.f32 %v3953_v3, %v7684_v16 }
 0x2e2   : > { %v6232_v38 = vpop.f32.mrf.mxu1  ;;  %v6304_v33 = vpop.f32.mrf.mxu0 }
 0x2e3   : > { %v4678_v0 = vmax.f32 %v4648_v17, 0.0  ;;  %v4612_v28 = vmul.f32 %v7727_v14, %v4515_v61 }
 0x2e4   : > { %v3956_v9 = vpop.f32.mrf.mxu1  ;;  %v4411_v41 = vpop.f32.mrf.mxu0 }
 0x2e5   : > { %v5387_v60 = vpack.c.bf16 %v4678_v0, %v4677_v25  ;;  %v4516_v46 = vadd.f32 %v4411_v41, %v4053_v53  ;;  %v4649_v49 = vadd.f32 %v7734_v31, %v4612_v28  ;;  %v4055_v45 = vadd.f32 %v3956_v9, %v7687_v35 }
 0x2e6   : > { %v6233_v43 = vpop.f32.mrf.mxu1  ;;  %v6305_v18 = vpop.f32.mrf.mxu0 }
 0x2e7   : > { %5434 = vst [vmem:[%s6708_s7 + $0x30] sm:$0xff] %v5387_v60   ;;  %v4613_v63 = vmul.f32 %v7727_v14, %v4516_v46  ;;  %v4679_v57 = vmax.f32 %v4649_v49, 0.0 }
 0x2e8   : > { %v3961_v2 = vpop.f32.mrf.mxu1  ;;  %v4416_v15 = vpop.f32.mrf.mxu0 }
 0x2e9   : > { %v4650_v30 = vadd.f32 %v7734_v31, %v4613_v63  ;;  %v4517_v58 = vadd.f32 %v4416_v15, %v4054_v56  ;;  %v4056_v54 = vadd.f32 %v3961_v2, %v7690_v51 }
 0x2ea   : > { %v6236_v11 = vpop.f32.mrf.mxu1  ;;  %v6308_v23 = vpop.f32.mrf.mxu0 }
 0x2eb   : > { %v4680_v39 = vmax.f32 %v4650_v30, 0.0  ;;  %v4614_v4 = vmul.f32 %v7727_v14, %v4517_v58 }
 0x2ec   : > { %v3964_v37 = vpop.f32.mrf.mxu1  ;;  %v4419_v16 = vpop.f32.mrf.mxu0 }
 0x2ed   : > { %v5392_v1 = vpack.c.bf16 %v4680_v39, %v4679_v57  ;;  %v4518_v40 = vadd.f32 %v4419_v16, %v4055_v45  ;;  %v4651_v10 = vadd.f32 %v7734_v31, %v4614_v4  ;;  %v4057_v32 = vadd.f32 %v3964_v37, %v7693_v50 }
 0x2ee   : > { %v6237_v47 = vpop.f32.mrf.mxu1  ;;  %v6309_v20 = vpop.f32.mrf.mxu0 }
 0x2ef   : > { %5435 = vst [vmem:[%s6708_s7 + $0x38] sm:$0xff] %v5392_v1   ;;  %v4615_v42 = vmul.f32 %v7727_v14, %v4518_v40  ;;  %v4681_v62 = vmax.f32 %v4651_v10, 0.0 }
 0x2f0   : > { %v3969_v24 = vpop.f32.mrf.mxu1  ;;  %v4424_v8 = vpop.f32.mrf.mxu0 }
 0x2f1   : > { %v4652_v35 = vadd.f32 %v7734_v31, %v4615_v42  ;;  %v4519_v44 = vadd.f32 %v4424_v8, %v4056_v54  ;;  %v4058_v61 = vadd.f32 %v3969_v24, %v7696_v52 }
 0x2f2   : > { %v6240_v55 = vpop.f32.mrf.mxu1  ;;  %v6312_v34 = vpop.f32.mrf.mxu0 }
 0x2f3   : > { %v4682_v7 = vmax.f32 %v4652_v35, 0.0  ;;  %v4616_v19 = vmul.f32 %v7727_v14, %v4519_v44 }
 0x2f4   : > { %v3972_v59 = vpop.f32.mrf.mxu1  ;;  %v4427_v51 = vpop.f32.mrf.mxu0 }
 0x2f5   : > { %v5397_v6 = vpack.c.bf16 %v4682_v7, %v4681_v62  ;;  %v4520_v3 = vadd.f32 %v4427_v51, %v4057_v32  ;;  %v4653_v38 = vadd.f32 %v7734_v31, %v4616_v19  ;;  %v4059_v60 = vadd.f32 %v3972_v59, %v7699_v26 }
 0x2f6   : > { %v6241_v22 = vpop.f32.mrf.mxu1  ;;  %v6313_v17 = vpop.f32.mrf.mxu0 }
 0x2f7   : > { %5436 = vst [vmem:[%s6708_s7 + $0x40] sm:$0xff] %v5397_v6   ;;  %v4617_v33 = vmul.f32 %v7727_v14, %v4520_v3  ;;  %v4683_v41 = vmax.f32 %v4653_v38, 0.0 }
 0x2f8   : > { %v3977_v25 = vpop.f32.mrf.mxu1  ;;  %v4432_v53 = vpop.f32.mrf.mxu0 }
 0x2f9   : > { %v4654_v50 = vadd.f32 %v7734_v31, %v4617_v33  ;;  %v4521_v0 = vadd.f32 %v4432_v53, %v4058_v61  ;;  %v4060_v15 = vadd.f32 %v3977_v25, %v7702_v36 }
 0x2fa   : > { %v6244_v28 = vpop.f32.mrf.mxu1  ;;  %v6316_v9 = vpop.f32.mrf.mxu0 }
 0x2fb   : > { %v4684_v46 = vmax.f32 %v4654_v50, 0.0  ;;  %v4618_v43 = vmul.f32 %v7727_v14, %v4521_v0 }
 0x2fc   : > { %v3980_v18 = vpop.f32.mrf.mxu1  ;;  %v4435_v52 = vpop.f32.mrf.mxu0 }
 0x2fd   : > { %v5402_v56 = vpack.c.bf16 %v4684_v46, %v4683_v41  ;;  %v4522_v49 = vadd.f32 %v4435_v52, %v4059_v60  ;;  %v4655_v30 = vadd.f32 %v7734_v31, %v4618_v43  ;;  %v4061_v37 = vadd.f32 %v3980_v18, %v7705_v12 }
 0x2fe   : > { %v6245_v63 = vpop.f32.mrf.mxu1  ;;  %v6317_v2 = vpop.f32.mrf.mxu0 }
 0x2ff   : > { %5437 = vst [vmem:[%s6708_s7 + $0x48] sm:$0xff] %v5402_v56   ;;  %v4619_v58 = vmul.f32 %v7727_v14, %v4522_v49  ;;  %v4685_v4 = vmax.f32 %v4655_v30, 0.0 }
 0x300   : > { %v3985_v11 = vpop.f32.mrf.mxu1  ;;  %v4440_v23 = vpop.f32.mrf.mxu0 }
 0x301   : > { %v4656_v26 = vadd.f32 %v7734_v31, %v4619_v58  ;;  %v4523_v57 = vadd.f32 %v4440_v23, %v4060_v15  ;;  %v4062_v42 = vadd.f32 %v3985_v11, %v7708_v29 }
 0x302   : > { %v6248_v45 = vpop.f32.mrf.mxu1  ;;  %v6320_v39 = vpop.f32.mrf.mxu0 }
 0x303   : > { %v4686_v16 = vmax.f32 %v4656_v26, 0.0  ;;  %v4620_v1 = vmul.f32 %v7727_v14, %v4523_v57 }
 0x304   : > { %v3988_v40 = vpop.f32.mrf.mxu1  ;;  %v4443_v36 = vpop.f32.mrf.mxu0 }
 0x305   : > { %v5407_v47 = vpack.c.bf16 %v4686_v16, %v4685_v4  ;;  %v4524_v20 = vadd.f32 %v4443_v36, %v4061_v37  ;;  %v4657_v24 = vadd.f32 %v7734_v31, %v4620_v1  ;;  %v4063_v7 = vadd.f32 %v3988_v40, %v7711_v48 }
 0x306   : > { %v6249_v54 = vpop.f32.mrf.mxu1  ;;  %v6321_v10 = vpop.f32.mrf.mxu0 }
 0x307   : > { %5438 = vst [vmem:[%s6708_s7 + $0x50] sm:$0xff] %v5407_v47   ;;  %v4621_v8 = vmul.f32 %v7727_v14, %v4524_v20  ;;  %v4687_v32 = vmax.f32 %v4657_v24, 0.0 }
 0x308   : > { %v3993_v35 = vpop.f32.mrf.mxu1  ;;  %v4448_v44 = vpop.f32.mrf.mxu0 }
 0x309   : > { %v4658_v12 = vadd.f32 %v7734_v31, %v4621_v8  ;;  %v4525_v55 = vadd.f32 %v4448_v44, %v4062_v42  ;;  %v4064_v61 = vadd.f32 %v3993_v35, %v7714_v21 }
 0x30a   : > { %v6252_v34 = vpop.f32.mrf.mxu1  ;;  %v6324_v62 = vpop.f32.mrf.mxu0 }
 0x30b   : > { %v4688_v19 = vmax.f32 %v4658_v12, 0.0  ;;  %v4622_v59 = vmul.f32 %v7727_v14, %v4525_v55 }
 0x30c   : > { %v3996_v51 = vpop.f32.mrf.mxu1  ;;  %v4451_v29 = vpop.f32.mrf.mxu0 }
 0x30d   : > { %v5412_v6 = vpack.c.bf16 %v4688_v19, %v4687_v32  ;;  %v4526_v3 = vadd.f32 %v4451_v29, %v4063_v7  ;;  %v4659_v38 = vadd.f32 %v7734_v31, %v4622_v59  ;;  %v4065_v41 = vadd.f32 %v3996_v51, %v7717_v5 }
 0x30e   : > { %v6253_v22 = vpop.f32.mrf.mxu1  ;;  %v6325_v17 = vpop.f32.mrf.mxu0 }
 0x30f   : > { %5439 = vst [vmem:[%s6708_s7 + $0x58] sm:$0xff] %v5412_v6   ;;  %v4623_v33 = vmul.f32 %v7727_v14, %v4526_v3  ;;  %v4689_v9 = vmax.f32 %v4659_v38, 0.0 }
 0x310   : > { %v4001_v25 = vpop.f32.mrf.mxu1  ;;  %v4456_v53 = vpop.f32.mrf.mxu0 }
 0x311   : > { %v4660_v48 = vadd.f32 %v7734_v31, %v4623_v33  ;;  %v4527_v50 = vadd.f32 %v4456_v53, %v4064_v61  ;;  %v4066_v63 = vadd.f32 %v4001_v25, %v7719_v27 }
 0x312   : > { %v6256_v0 = vpop.f32.mrf.mxu1  ;;  %v6328_v28 = vpop.f32.mrf.mxu0 }
 0x313   : > { %v4690_v60 = vmax.f32 %v4660_v48, 0.0  ;;  %v4624_v46 = vmul.f32 %v7727_v14, %v4527_v50 }
 0x314   : > { %v4004_v43 = vpop.f32.mrf.mxu1  ;;  %v4459_v21 = vpop.f32.mrf.mxu0 }
 0x315   : > { %v5417_v18 = vpack.c.bf16 %v4690_v60, %v4689_v9  ;;  %v4528_v52 = vadd.f32 %v4459_v21, %v4065_v41  ;;  %v4661_v2 = vadd.f32 %v7734_v31, %v4624_v46  ;;  %v4067_v26 = vadd.f32 %v4004_v43, %v7721_v13 }
 0x316   : > { %v6329_v56 = vpop.f32.mrf.mxu0  ;;  %v6257_v49 = vpop.f32.mrf.mxu1 }
 0x317   : > { %5440 = vst [vmem:[%s6708_s7 + $0x60] sm:$0xff] %v5417_v18   ;;  %v4625_v15 = vmul.f32 %v7727_v14, %v4528_v52  ;;  %v4691_v23 = vmax.f32 %v4661_v2, 0.0 }
 0x318   : > { %v4464_v30 = vpop.f32.mrf.mxu0 }
 0x319   : > { %v4662_v5 = vadd.f32 %v7734_v31, %v4625_v15  ;;  %v4529_v58 = vadd.f32 %v4464_v30, %v4066_v63 }
 0x31a   : > { %v6332_v11 = vpop.f32.mrf.mxu0 }
 0x31b   : > { %v4692_v57 = vmax.f32 %v4662_v5, 0.0  ;;  %v4626_v45 = vmul.f32 %v7727_v14, %v4529_v58 }
 0x31c   : > { %v4467_v39 = vpop.f32.mrf.mxu0 }
 0x31d   : > { %v5422_v4 = vpack.c.bf16 %v4692_v57, %v4691_v23  ;;  %v4530_v37 = vadd.f32 %v4467_v39, %v4067_v26  ;;  %v4663_v16 = vadd.f32 %v7734_v31, %v4626_v45 }
 0x31e   : > { %v6333_v27 = vpop.f32.mrf.mxu0 }
 0x31f   : > { %5441 = vst [vmem:[%s6708_s7 + $0x68] sm:$0xff] %v5422_v4   ;;  %v4627_v1 = vmul.f32 %v7727_v14, %v4530_v37  ;;  %v4693_v36 = vmax.f32 %v4663_v16, 0.0 }
 0x321   : > { %v4664_v40 = vadd.f32 %v7734_v31, %v4627_v1 }
 0x323   : > { %v4694_v47 = vmax.f32 %v4664_v40, 0.0 }
 0x325   : > { %v5427_v20 = vpack.c.bf16 %v4694_v47, %v4693_v36 }
 0x327   : > { %5442 = vst [vmem:[%s6708_s7 + $0x70] sm:$0xff] %v5427_v20  }
 0x328 PF: > { %s14_s19 = sadd.s32 1, %s6646_s19   ;;  %s7858_s15 = smov %s6638_s17 }
 0x329   : > { %p11_p7 = scmp.ge.s32.totalorder %s14_s19, 6   ;;  %s7859_s16 = smov %s6642_s18 }
 0x32a   : > { %s7860_s17 = smov %s7863_s20  ;;  %s7861_s18 = smov %s7867_s21 }
 0x32b   :  { %13 = sbr.rel (!%p11_p7) target bundleno = 3 (0x3), region = 119 }
 0x330   :  { %4875 = vsyncmov [#allocation3] }
 0x333   :  { %s4876_s7 = vpop.sfrf %4875 }
 0x334   :  { %p5323_p8 = scmp.ne.s32.totalorder %s4876_s7, 0 }
 0x336   :  { %4880 = shalt.err (%p5323_p8)  }

</bundles_post_ra>
